<compile_context>
chip_gen: v7x
topology: tpu7x:2x2x1
jax: 0.10.0
libtpu: 0.0.40
codegen_flags: <defaults>
</compile_context>

<pallas_src>
import functools

import jax
import jax.numpy as jnp
from jax.experimental import pallas as pl
from jax.experimental.pallas import tpu as pltpu

EPS = 1e-5
LANE = 128
VMEM_LIMIT = 32 * 1024 * 1024   # well under v7x's 64 MiB physical VMEM


def _round_up(x, m):
    return ((x + m - 1) // m) * m


def _pad_axis(x, axis, target):
    pad = [(0, 0)] * x.ndim
    pad[axis] = (0, target - x.shape[axis])
    return jnp.pad(x, pad)


# ---------------------------- fused Pallas kernel ----------------------------

def _fused_kernel(colk_ref, cols_ref, wk_ref, bk_ref, ws_ref, bs_ref,
                  w1_ref, b1_ref, w2_ref, b2_ref, o_ref,
                  *, kh, kw, sh, sw):
    """Whole DepthwiseXCorr forward for ONE batch element, entirely in VMEM.

    colk_ref: [kh*kw, KPAD]   bf16 im2col of the template image (K zero-padded)
    cols_ref: [sh*sw, KPAD]   bf16 im2col of the search image
    wk_ref/ws_ref: [KPAD, Cpad] bf16 conv weights, BN scale folded
    bk_ref/bs_ref: [1, Cpad]  f32 folded BN biases
    w1_ref: [Cpad, Cpad]      bf16 head 1x1 weight, BN scale folded
    b1_ref: [1, Cpad]         f32 folded BN bias
    w2_ref: [Cpad, CoutP]     bf16 head 1x1 weight
    b2_ref: [1, CoutP]        f32 bias
    o_ref : [ho*wo, CoutP]    f32 (spatially flattened -> lane-dense output)
    """
    c = wk_ref.shape[1]

    # conv_kernel branch: one K-dense MXU matmul + folded-BN bias + ReLU.
    kf = jnp.dot(colk_ref[...], wk_ref[...], preferred_element_type=jnp.float32)
    kf = jnp.maximum(kf + bk_ref[...], 0.0)               # [kh*kw, c] f32

    # conv_search branch.
    sf = jnp.dot(cols_ref[...], ws_ref[...], preferred_element_type=jnp.float32)
    sf = jnp.maximum(sf + bs_ref[...], 0.0)               # [sh*sw, c] f32

    # Depthwise cross-correlation on the VPU (kh*kw taps), f32 accumulation.
    ho, wo = sh - kh + 1, sw - kw + 1
    sf3 = sf.reshape(sh, sw, c)
    kf3 = kf.reshape(kh, kw, c)
    acc = jnp.zeros((ho, wo, c), jnp.float32)
    for di in range(kh):                                   # static unroll
        srow = sf3[di:di + ho]                             # hoisted row slice
        for dj in range(kw):
            acc = acc + srow[:, dj:dj + wo, :] * kf3[di, dj, :]
    feat = acc.reshape(ho * wo, c).astype(jnp.bfloat16)    # lane-dense MXU LHS

    # Head: 1x1 conv -> folded-BN bias -> ReLU -> 1x1 conv + bias.
    y = jnp.dot(feat, w1_ref[...], preferred_element_type=jnp.float32)
    y = jnp.maximum(y + b1_ref[...], 0.0).astype(jnp.bfloat16)
    out = jnp.dot(y, w2_ref[...], preferred_element_type=jnp.float32) + b2_ref[...]
    o_ref[...] = out.astype(o_ref.dtype)


# --------------------------- params & BN folding ---------------------------

def fold_bn(gamma, beta, mean, var):
    scale = gamma / jnp.sqrt(var + EPS)
    bias = beta - mean * scale
    return scale, bias


def init_params(key, in_channels, hidden, out_channels):
    keys = iter(jax.random.split(key, 20))

    def conv_w(shape):
        fan_in = shape[1] * shape[2] * shape[3]
        return jax.random.normal(next(keys), shape, jnp.float32) / jnp.sqrt(fan_in)

    def bn(c):
        return dict(
            gamma=1.0 + 0.1 * jax.random.normal(next(keys), (c,), jnp.float32),
            beta=0.1 * jax.random.normal(next(keys), (c,), jnp.float32),
            mean=0.1 * jax.random.normal(next(keys), (c,), jnp.float32),
            var=1.0 + 0.1 * jnp.abs(jax.random.normal(next(keys), (c,), jnp.float32)))

    return dict(
        ck_w=conv_w((hidden, in_channels, 3, 3)), ck_bn=bn(hidden),
        cs_w=conv_w((hidden, in_channels, 3, 3)), cs_bn=bn(hidden),
        h1_w=conv_w((hidden, hidden, 1, 1)), h1_bn=bn(hidden),
        h2_w=conv_w((out_channels, hidden, 1, 1)),
        h2_b=0.1 * jax.random.normal(next(keys), (out_channels,), jnp.float32),
    )


# ------------------------------ forward pass ------------------------------

def _im2col_3x3(x_nhwc, kpad):
    """[B,H,W,Cin] -> [B,(H-2)*(W-2),kpad] bf16 with (kh,kw,cin)-major columns,
    zero-padded along K so the Pallas matmul LHS is lane-dense (K=128).
    Done in the wrapper on the tiny raw inputs (~100 KB total here) so the
    fused kernel only ever DMAs dense matmul operands."""
    B, H, W, C = x_nhwc.shape
    ho, wo = H - 2, W - 2
    cols = [x_nhwc[:, di:di + ho, dj:dj + wo, :].reshape(B, ho * wo, C)
            for di in range(3) for dj in range(3)]
    mat = jnp.concatenate(cols, axis=-1)                   # [B, ho*wo, 9*C]
    return _pad_axis(mat, 2, kpad).astype(jnp.bfloat16)


def depthwise_xcorr_forward(params, kernel_nchw, search_nchw):
    hidden = params['ck_w'].shape[0]
    in_channels = params['ck_w'].shape[1]
    out_channels = params['h2_w'].shape[0]

    chid_pad = _round_up(hidden, LANE)
    cout_pad = _round_up(out_channels, LANE)
    kpad = _round_up(9 * in_channels, LANE)
    # NOTE: v6e/v7x MXUs are 2x256^2 -- only if hidden/out_channels were >=160
    # would padding to 256 pay off there; at hidden=32 keep 128 everywhere.

    B, _, Hk, Wk = kernel_nchw.shape
    _, _, Hs, Ws = search_nchw.shape
    kh, kw = Hk - 2, Wk - 2          # template feature spatial (after 3x3 valid)
    sh, sw = Hs - 2, Ws - 2          # search feature spatial
    ho, wo = sh - kh + 1, sw - kw + 1

    # NCHW -> NHWC once at entry; everything stays channel-last afterwards.
    k_in = jnp.transpose(kernel_nchw, (0, 2, 3, 1)).astype(jnp.bfloat16)
    s_in = jnp.transpose(search_nchw, (0, 2, 3, 1)).astype(jnp.bfloat16)
    colk = _im2col_3x3(k_in, kpad)   # [B, kh*kw, kpad]
    cols = _im2col_3x3(s_in, kpad)   # [B, sh*sw, kpad]

    ck_s, ck_b = fold_bn(**params['ck_bn'])
    cs_s, cs_b = fold_bn(**params['cs_bn'])
    h1_s, h1_b = fold_bn(**params['h1_bn'])

    def conv_weight(w, scale):
        # [Cout, Cin, 3, 3] -> [9*Cin, Cout] in (kh, kw, cin) tap order (matches
        # the im2col column order), BN scale folded, zero-padded to
        # [kpad, chid_pad], cast to bf16.
        wf = jnp.transpose(w, (2, 3, 1, 0)).reshape(-1, w.shape[0]) * scale[None, :]
        return _pad_axis(_pad_axis(wf, 0, kpad), 1, chid_pad).astype(jnp.bfloat16)

    # Padding invariant (correctness): every padded weight row/col and every
    # padded bias entry is exactly ZERO (jnp.pad default), so padded channels
    # stay 0 through each bias+ReLU stage, contribute 0 in the xcorr, and
    # cannot leak into real channels through w1/w2 (their padded rows are zero
    # too).  Do not change the padding value.
    wk = conv_weight(params['ck_w'], ck_s)
    ws = conv_weight(params['cs_w'], cs_s)
    bk = _pad_axis(ck_b, 0, chid_pad).reshape(1, chid_pad)
    bs = _pad_axis(cs_b, 0, chid_pad).reshape(1, chid_pad)

    w1 = params['h1_w'][:, :, 0, 0].T * h1_s[None, :]           # [hidden, hidden]
    w1 = _pad_axis(_pad_axis(w1, 0, chid_pad), 1, chid_pad).astype(jnp.bfloat16)
    b1 = _pad_axis(h1_b, 0, chid_pad).reshape(1, chid_pad)
    w2 = params['h2_w'][:, :, 0, 0].T                            # [hidden, out]
    w2 = _pad_axis(_pad_axis(w2, 0, chid_pad), 1, cout_pad).astype(jnp.bfloat16)
    b2 = _pad_axis(params['h2_b'], 0, cout_pad).reshape(1, cout_pad)

    kernel = functools.partial(_fused_kernel, kh=kh, kw=kw, sh=sh, sw=sw)

    flops_per_b = 2 * (kh * kw * kpad * chid_pad            # conv_kernel matmul
                       + sh * sw * kpad * chid_pad          # conv_search matmul
                       + ho * wo * chid_pad * kh * kw       # depthwise xcorr
                       + ho * wo * chid_pad * chid_pad      # head matmul 1
                       + ho * wo * chid_pad * cout_pad)     # head matmul 2
    bytes_accessed = ((colk.size + cols.size + wk.size + ws.size
                       + w1.size + w2.size) * 2
                      + (bk.size + bs.size + b1.size + b2.size) * 4
                      + B * ho * wo * cout_pad * 4)

    out_flat = pl.pallas_call(
        kernel,
        out_shape=jax.ShapeDtypeStruct((B, ho * wo, cout_pad), jnp.float32),
        grid=(B,),
        in_specs=[
            pl.BlockSpec((None, kh * kw, kpad), lambda b: (b, 0, 0)),
            pl.BlockSpec((None, sh * sw, kpad), lambda b: (b, 0, 0)),
            pl.BlockSpec((kpad, chid_pad), lambda b: (0, 0)),
            pl.BlockSpec((1, chid_pad), lambda b: (0, 0)),
            pl.BlockSpec((kpad, chid_pad), lambda b: (0, 0)),
            pl.BlockSpec((1, chid_pad), lambda b: (0, 0)),
            pl.BlockSpec((chid_pad, chid_pad), lambda b: (0, 0)),
            pl.BlockSpec((1, chid_pad), lambda b: (0, 0)),
            pl.BlockSpec((chid_pad, cout_pad), lambda b: (0, 0)),
            pl.BlockSpec((1, cout_pad), lambda b: (0, 0)),
        ],
        out_specs=pl.BlockSpec((None, ho * wo, cout_pad), lambda b: (b, 0, 0)),
        compiler_params=pltpu.CompilerParams(
            dimension_semantics=("parallel",),   # B>=2 -> both v7x TCs get work
            vmem_limit_bytes=VMEM_LIMIT),
        cost_estimate=pl.CostEstimate(
            flops=B * flops_per_b, transcendentals=0,
            bytes_accessed=bytes_accessed),
    )(colk, cols, wk, bk, ws, bs, w1, b1, w2, b2)

    out = out_flat[:, :, :out_channels].reshape(B, ho, wo, out_channels)
    return jnp.transpose(out, (0, 3, 1, 2))      # NHWC -> NCHW at exit only


# ------------------------- pure-JAX reference -------------------------

def ref_forward(params, kernel_nchw, search_nchw):
    def conv_bn_relu(x, w, bn):
        y = jax.lax.conv_general_dilated(
            x, w, (1, 1), 'VALID', dimension_numbers=('NCHW', 'OIHW', 'NCHW'))
        s, b = fold_bn(**bn)
        return jnp.maximum(y * s[None, :, None, None] + b[None, :, None, None], 0.0)

    def xcorr(x, kern):
        B, C, H, W = x.shape
        xv = x.reshape(1, B * C, H, W)
        kv = kern.reshape(B * C, 1, kern.shape[2], kern.shape[3])
        out = jax.lax.conv_general_dilated(
            xv, kv, (1, 1), 'VALID', dimension_numbers=('NCHW', 'OIHW', 'NCHW'),
            feature_group_count=B * C)
        return out.reshape(B, C, out.shape[2], out.shape[3])

    kf = conv_bn_relu(kernel_nchw, params['ck_w'], params['ck_bn'])
    sf = conv_bn_relu(search_nchw, params['cs_w'], params['cs_bn'])
    feat = xcorr(sf, kf)
    y = jax.lax.conv_general_dilated(
        feat, params['h1_w'], (1, 1), 'VALID',
        dimension_numbers=('NCHW', 'OIHW', 'NCHW'))
    s1, b1 = fold_bn(**params['h1_bn'])
    y = jnp.maximum(y * s1[None, :, None, None] + b1[None, :, None, None], 0.0)
    y = jax.lax.conv_general_dilated(
        y, params['h2_w'], (1, 1), 'VALID',
        dimension_numbers=('NCHW', 'OIHW', 'NCHW'))
    return y + params['h2_b'][None, :, None, None]


if __name__ == "__main__":
    B, Cin, hidden, Cout = 2, 4, 32, 8
    Hk = Wk = 7     # template ("kernel") input spatial
    Hs = Ws = 15    # search input spatial

    key = jax.random.PRNGKey(0)
    k_key, s_key = jax.random.split(key)
    kernel_x = jax.random.normal(k_key, (B, Cin, Hk, Wk), jnp.float32)
    search_x = jax.random.normal(s_key, (B, Cin, Hs, Ws), jnp.float32)

    params = init_params(jax.random.PRNGKey(42), Cin, hidden, Cout)

    out = jax.jit(depthwise_xcorr_forward)(params, kernel_x, search_x)
    out = jax.block_until_ready(out)

    ref = ref_forward(params, kernel_x, search_x)
    assert out.shape == ref.shape == (B, Cout, 9, 9), out.shape

    # bf16 MXU operands with f32 accumulation -> per-element check with a mixed
    # atol/rtol normalized to the output scale.
    scale = float(jnp.max(jnp.abs(ref)))
    abs_err = jnp.abs(out - ref)
    tol = 5e-2 * scale + 5e-2 * jnp.abs(ref)
    assert bool(jnp.all(abs_err <= tol)), float(jnp.max(abs_err) / (scale + 1e-6))
    print("KERNEL_OK")
</pallas_src>

<mosaic_0001>
module attributes {stable_mosaic.version = 11 : i64} {
  func.func @_fused_kernel(%arg0: i32, %arg1: memref<1x25x128xbf16, #tpu.memory_space<vmem>>, %arg2: memref<1x169x128xbf16, #tpu.memory_space<vmem>>, %arg3: memref<128x128xbf16, #tpu.memory_space<vmem>>, %arg4: memref<1x128xf32, #tpu.memory_space<vmem>>, %arg5: memref<128x128xbf16, #tpu.memory_space<vmem>>, %arg6: memref<1x128xf32, #tpu.memory_space<vmem>>, %arg7: memref<128x128xbf16, #tpu.memory_space<vmem>>, %arg8: memref<1x128xf32, #tpu.memory_space<vmem>>, %arg9: memref<128x128xbf16, #tpu.memory_space<vmem>>, %arg10: memref<1x128xf32, #tpu.memory_space<vmem>>, %arg11: memref<1x81x128xf32, #tpu.memory_space<vmem>>) attributes {dimension_semantics = [#tpu.dimension_semantics<parallel>], iteration_bounds = array<i64: 2>, scalar_prefetch = 0 : i64, scratch_operands = 0 : i64, tpu.core_type = #tpu.core_type<tc>, window_params = [{transform_indices = @transform_0, window_bounds = array<i64: 1, 25, 128>}, {transform_indices = @transform_1, window_bounds = array<i64: 1, 169, 128>}, {pipeline_mode = #tpu.pipeline_mode<synchronous>, transform_indices = @transform_2, window_bounds = array<i64: 128, 128>}, {pipeline_mode = #tpu.pipeline_mode<synchronous>, transform_indices = @transform_3, window_bounds = array<i64: 1, 128>}, {pipeline_mode = #tpu.pipeline_mode<synchronous>, transform_indices = @transform_4, window_bounds = array<i64: 128, 128>}, {pipeline_mode = #tpu.pipeline_mode<synchronous>, transform_indices = @transform_5, window_bounds = array<i64: 1, 128>}, {pipeline_mode = #tpu.pipeline_mode<synchronous>, transform_indices = @transform_6, window_bounds = array<i64: 128, 128>}, {pipeline_mode = #tpu.pipeline_mode<synchronous>, transform_indices = @transform_7, window_bounds = array<i64: 1, 128>}, {pipeline_mode = #tpu.pipeline_mode<synchronous>, transform_indices = @transform_8, window_bounds = array<i64: 128, 128>}, {pipeline_mode = #tpu.pipeline_mode<synchronous>, transform_indices = @transform_9, window_bounds = array<i64: 1, 128>}, {transform_indices = @transform_10, window_bounds = array<i64: 1, 81, 128>}]} {
    %c0 = arith.constant 0 : index
    %c0_0 = arith.constant 0 : index
    %c0_1 = arith.constant 0 : index
    %0 = vector.load %arg1[%c0, %c0_0, %c0_1] : memref<1x25x128xbf16, #tpu.memory_space<vmem>>, vector<1x25x128xbf16>
    %1 = vector.shape_cast %0 : vector<1x25x128xbf16> to vector<25x128xbf16>
    %c0_2 = arith.constant 0 : index
    %c0_3 = arith.constant 0 : index
    %2 = vector.load %arg3[%c0_2, %c0_3] : memref<128x128xbf16, #tpu.memory_space<vmem>>, vector<128x128xbf16>
    %cst = arith.constant dense<0.000000e+00> : vector<25x128xf32>
    %3 = tpu.matmul %1, %2, %cst {dimension_numbers = #tpu.dot_dimension_numbers<[1], [0], [0], [1], [0, 0, 1, 1], [], []>} : vector<25x128xbf16>, vector<128x128xbf16>, vector<25x128xf32> -> vector<25x128xf32>
    %c0_4 = arith.constant 0 : index
    %c0_5 = arith.constant 0 : index
    %4 = vector.load %arg4[%c0_4, %c0_5] : memref<1x128xf32, #tpu.memory_space<vmem>>, vector<1x128xf32>
    %5 = vector.broadcast %4 : vector<1x128xf32> to vector<25x128xf32>
    %6 = arith.addf %3, %5 : vector<25x128xf32>
    %cst_6 = arith.constant 0.000000e+00 : f32
    %7 = vector.broadcast %cst_6 : f32 to vector<25x128xf32>
    %8 = arith.maximumf %6, %7 : vector<25x128xf32>
    %c0_7 = arith.constant 0 : index
    %c0_8 = arith.constant 0 : index
    %c0_9 = arith.constant 0 : index
    %9 = vector.load %arg2[%c0_7, %c0_8, %c0_9] : memref<1x169x128xbf16, #tpu.memory_space<vmem>>, vector<1x169x128xbf16>
    %10 = vector.shape_cast %9 : vector<1x169x128xbf16> to vector<169x128xbf16>
    %c0_10 = arith.constant 0 : index
    %c0_11 = arith.constant 0 : index
    %11 = vector.load %arg5[%c0_10, %c0_11] : memref<128x128xbf16, #tpu.memory_space<vmem>>, vector<128x128xbf16>
    %cst_12 = arith.constant dense<0.000000e+00> : vector<169x128xf32>
    %12 = tpu.matmul %10, %11, %cst_12 {dimension_numbers = #tpu.dot_dimension_numbers<[1], [0], [0], [1], [0, 0, 1, 1], [], []>} : vector<169x128xbf16>, vector<128x128xbf16>, vector<169x128xf32> -> vector<169x128xf32>
    %c0_13 = arith.constant 0 : index
    %c0_14 = arith.constant 0 : index
    %13 = vector.load %arg6[%c0_13, %c0_14] : memref<1x128xf32, #tpu.memory_space<vmem>>, vector<1x128xf32>
    %14 = vector.broadcast %13 : vector<1x128xf32> to vector<169x128xf32>
    %15 = arith.addf %12, %14 : vector<169x128xf32>
    %cst_15 = arith.constant 0.000000e+00 : f32
    %16 = vector.broadcast %cst_15 : f32 to vector<169x128xf32>
    %17 = arith.maximumf %15, %16 : vector<169x128xf32>
    %18 = vector.shape_cast %17 : vector<169x128xf32> to vector<13x13x128xf32>
    %19 = vector.shape_cast %8 : vector<25x128xf32> to vector<5x5x128xf32>
    %cst_16 = arith.constant 0.000000e+00 : f32
    %20 = vector.broadcast %cst_16 : f32 to vector<9x9x128xf32>
    %21 = vector.extract_strided_slice %18 {offsets = [0, 0, 0], sizes = [9, 13, 128], strides = [1, 1, 1]} : vector<13x13x128xf32> to vector<9x13x128xf32>
    %22 = vector.extract_strided_slice %21 {offsets = [0, 0, 0], sizes = [9, 9, 128], strides = [1, 1, 1]} : vector<9x13x128xf32> to vector<9x9x128xf32>
    %23 = vector.extract_strided_slice %19 {offsets = [0, 0, 0], sizes = [1, 1, 128], strides = [1, 1, 1]} : vector<5x5x128xf32> to vector<1x1x128xf32>
    %24 = vector.shape_cast %23 : vector<1x1x128xf32> to vector<128xf32>
    %25 = vector.shape_cast %24 : vector<128xf32> to vector<1x1x128xf32>
    %26 = vector.broadcast %25 : vector<1x1x128xf32> to vector<9x9x128xf32>
    %27 = arith.mulf %22, %26 : vector<9x9x128xf32>
    %28 = arith.addf %20, %27 : vector<9x9x128xf32>
    %29 = vector.extract_strided_slice %21 {offsets = [0, 1, 0], sizes = [9, 9, 128], strides = [1, 1, 1]} : vector<9x13x128xf32> to vector<9x9x128xf32>
    %30 = vector.extract_strided_slice %19 {offsets = [0, 1, 0], sizes = [1, 1, 128], strides = [1, 1, 1]} : vector<5x5x128xf32> to vector<1x1x128xf32>
    %31 = vector.shape_cast %30 : vector<1x1x128xf32> to vector<128xf32>
    %32 = vector.shape_cast %31 : vector<128xf32> to vector<1x1x128xf32>
    %33 = vector.broadcast %32 : vector<1x1x128xf32> to vector<9x9x128xf32>
    %34 = arith.mulf %29, %33 : vector<9x9x128xf32>
    %35 = arith.addf %28, %34 : vector<9x9x128xf32>
    %36 = vector.extract_strided_slice %21 {offsets = [0, 2, 0], sizes = [9, 9, 128], strides = [1, 1, 1]} : vector<9x13x128xf32> to vector<9x9x128xf32>
    %37 = vector.extract_strided_slice %19 {offsets = [0, 2, 0], sizes = [1, 1, 128], strides = [1, 1, 1]} : vector<5x5x128xf32> to vector<1x1x128xf32>
    %38 = vector.shape_cast %37 : vector<1x1x128xf32> to vector<128xf32>
    %39 = vector.shape_cast %38 : vector<128xf32> to vector<1x1x128xf32>
    %40 = vector.broadcast %39 : vector<1x1x128xf32> to vector<9x9x128xf32>
    %41 = arith.mulf %36, %40 : vector<9x9x128xf32>
    %42 = arith.addf %35, %41 : vector<9x9x128xf32>
    %43 = vector.extract_strided_slice %21 {offsets = [0, 3, 0], sizes = [9, 9, 128], strides = [1, 1, 1]} : vector<9x13x128xf32> to vector<9x9x128xf32>
    %44 = vector.extract_strided_slice %19 {offsets = [0, 3, 0], sizes = [1, 1, 128], strides = [1, 1, 1]} : vector<5x5x128xf32> to vector<1x1x128xf32>
    %45 = vector.shape_cast %44 : vector<1x1x128xf32> to vector<128xf32>
    %46 = vector.shape_cast %45 : vector<128xf32> to vector<1x1x128xf32>
    %47 = vector.broadcast %46 : vector<1x1x128xf32> to vector<9x9x128xf32>
    %48 = arith.mulf %43, %47 : vector<9x9x128xf32>
    %49 = arith.addf %42, %48 : vector<9x9x128xf32>
    %50 = vector.extract_strided_slice %21 {offsets = [0, 4, 0], sizes = [9, 9, 128], strides = [1, 1, 1]} : vector<9x13x128xf32> to vector<9x9x128xf32>
    %51 = vector.extract_strided_slice %19 {offsets = [0, 4, 0], sizes = [1, 1, 128], strides = [1, 1, 1]} : vector<5x5x128xf32> to vector<1x1x128xf32>
    %52 = vector.shape_cast %51 : vector<1x1x128xf32> to vector<128xf32>
    %53 = vector.shape_cast %52 : vector<128xf32> to vector<1x1x128xf32>
    %54 = vector.broadcast %53 : vector<1x1x128xf32> to vector<9x9x128xf32>
    %55 = arith.mulf %50, %54 : vector<9x9x128xf32>
    %56 = arith.addf %49, %55 : vector<9x9x128xf32>
    %57 = vector.extract_strided_slice %18 {offsets = [1, 0, 0], sizes = [9, 13, 128], strides = [1, 1, 1]} : vector<13x13x128xf32> to vector<9x13x128xf32>
    %58 = vector.extract_strided_slice %57 {offsets = [0, 0, 0], sizes = [9, 9, 128], strides = [1, 1, 1]} : vector<9x13x128xf32> to vector<9x9x128xf32>
    %59 = vector.extract_strided_slice %19 {offsets = [1, 0, 0], sizes = [1, 1, 128], strides = [1, 1, 1]} : vector<5x5x128xf32> to vector<1x1x128xf32>
    %60 = vector.shape_cast %59 : vector<1x1x128xf32> to vector<128xf32>
    %61 = vector.shape_cast %60 : vector<128xf32> to vector<1x1x128xf32>
    %62 = vector.broadcast %61 : vector<1x1x128xf32> to vector<9x9x128xf32>
    %63 = arith.mulf %58, %62 : vector<9x9x128xf32>
    %64 = arith.addf %56, %63 : vector<9x9x128xf32>
    %65 = vector.extract_strided_slice %57 {offsets = [0, 1, 0], sizes = [9, 9, 128], strides = [1, 1, 1]} : vector<9x13x128xf32> to vector<9x9x128xf32>
    %66 = vector.extract_strided_slice %19 {offsets = [1, 1, 0], sizes = [1, 1, 128], strides = [1, 1, 1]} : vector<5x5x128xf32> to vector<1x1x128xf32>
    %67 = vector.shape_cast %66 : vector<1x1x128xf32> to vector<128xf32>
    %68 = vector.shape_cast %67 : vector<128xf32> to vector<1x1x128xf32>
    %69 = vector.broadcast %68 : vector<1x1x128xf32> to vector<9x9x128xf32>
    %70 = arith.mulf %65, %69 : vector<9x9x128xf32>
    %71 = arith.addf %64, %70 : vector<9x9x128xf32>
    %72 = vector.extract_strided_slice %57 {offsets = [0, 2, 0], sizes = [9, 9, 128], strides = [1, 1, 1]} : vector<9x13x128xf32> to vector<9x9x128xf32>
    %73 = vector.extract_strided_slice %19 {offsets = [1, 2, 0], sizes = [1, 1, 128], strides = [1, 1, 1]} : vector<5x5x128xf32> to vector<1x1x128xf32>
    %74 = vector.shape_cast %73 : vector<1x1x128xf32> to vector<128xf32>
    %75 = vector.shape_cast %74 : vector<128xf32> to vector<1x1x128xf32>
    %76 = vector.broadcast %75 : vector<1x1x128xf32> to vector<9x9x128xf32>
    %77 = arith.mulf %72, %76 : vector<9x9x128xf32>
    %78 = arith.addf %71, %77 : vector<9x9x128xf32>
    %79 = vector.extract_strided_slice %57 {offsets = [0, 3, 0], sizes = [9, 9, 128], strides = [1, 1, 1]} : vector<9x13x128xf32> to vector<9x9x128xf32>
    %80 = vector.extract_strided_slice %19 {offsets = [1, 3, 0], sizes = [1, 1, 128], strides = [1, 1, 1]} : vector<5x5x128xf32> to vector<1x1x128xf32>
    %81 = vector.shape_cast %80 : vector<1x1x128xf32> to vector<128xf32>
    %82 = vector.shape_cast %81 : vector<128xf32> to vector<1x1x128xf32>
    %83 = vector.broadcast %82 : vector<1x1x128xf32> to vector<9x9x128xf32>
    %84 = arith.mulf %79, %83 : vector<9x9x128xf32>
    %85 = arith.addf %78, %84 : vector<9x9x128xf32>
    %86 = vector.extract_strided_slice %57 {offsets = [0, 4, 0], sizes = [9, 9, 128], strides = [1, 1, 1]} : vector<9x13x128xf32> to vector<9x9x128xf32>
    %87 = vector.extract_strided_slice %19 {offsets = [1, 4, 0], sizes = [1, 1, 128], strides = [1, 1, 1]} : vector<5x5x128xf32> to vector<1x1x128xf32>
    %88 = vector.shape_cast %87 : vector<1x1x128xf32> to vector<128xf32>
    %89 = vector.shape_cast %88 : vector<128xf32> to vector<1x1x128xf32>
    %90 = vector.broadcast %89 : vector<1x1x128xf32> to vector<9x9x128xf32>
    %91 = arith.mulf %86, %90 : vector<9x9x128xf32>
    %92 = arith.addf %85, %91 : vector<9x9x128xf32>
    %93 = vector.extract_strided_slice %18 {offsets = [2, 0, 0], sizes = [9, 13, 128], strides = [1, 1, 1]} : vector<13x13x128xf32> to vector<9x13x128xf32>
    %94 = vector.extract_strided_slice %93 {offsets = [0, 0, 0], sizes = [9, 9, 128], strides = [1, 1, 1]} : vector<9x13x128xf32> to vector<9x9x128xf32>
    %95 = vector.extract_strided_slice %19 {offsets = [2, 0, 0], sizes = [1, 1, 128], strides = [1, 1, 1]} : vector<5x5x128xf32> to vector<1x1x128xf32>
    %96 = vector.shape_cast %95 : vector<1x1x128xf32> to vector<128xf32>
    %97 = vector.shape_cast %96 : vector<128xf32> to vector<1x1x128xf32>
    %98 = vector.broadcast %97 : vector<1x1x128xf32> to vector<9x9x128xf32>
    %99 = arith.mulf %94, %98 : vector<9x9x128xf32>
    %100 = arith.addf %92, %99 : vector<9x9x128xf32>
    %101 = vector.extract_strided_slice %93 {offsets = [0, 1, 0], sizes = [9, 9, 128], strides = [1, 1, 1]} : vector<9x13x128xf32> to vector<9x9x128xf32>
    %102 = vector.extract_strided_slice %19 {offsets = [2, 1, 0], sizes = [1, 1, 128], strides = [1, 1, 1]} : vector<5x5x128xf32> to vector<1x1x128xf32>
    %103 = vector.shape_cast %102 : vector<1x1x128xf32> to vector<128xf32>
    %104 = vector.shape_cast %103 : vector<128xf32> to vector<1x1x128xf32>
    %105 = vector.broadcast %104 : vector<1x1x128xf32> to vector<9x9x128xf32>
    %106 = arith.mulf %101, %105 : vector<9x9x128xf32>
    %107 = arith.addf %100, %106 : vector<9x9x128xf32>
    %108 = vector.extract_strided_slice %93 {offsets = [0, 2, 0], sizes = [9, 9, 128], strides = [1, 1, 1]} : vector<9x13x128xf32> to vector<9x9x128xf32>
    %109 = vector.extract_strided_slice %19 {offsets = [2, 2, 0], sizes = [1, 1, 128], strides = [1, 1, 1]} : vector<5x5x128xf32> to vector<1x1x128xf32>
    %110 = vector.shape_cast %109 : vector<1x1x128xf32> to vector<128xf32>
    %111 = vector.shape_cast %110 : vector<128xf32> to vector<1x1x128xf32>
    %112 = vector.broadcast %111 : vector<1x1x128xf32> to vector<9x9x128xf32>
    %113 = arith.mulf %108, %112 : vector<9x9x128xf32>
    %114 = arith.addf %107, %113 : vector<9x9x128xf32>
    %115 = vector.extract_strided_slice %93 {offsets = [0, 3, 0], sizes = [9, 9, 128], strides = [1, 1, 1]} : vector<9x13x128xf32> to vector<9x9x128xf32>
    %116 = vector.extract_strided_slice %19 {offsets = [2, 3, 0], sizes = [1, 1, 128], strides = [1, 1, 1]} : vector<5x5x128xf32> to vector<1x1x128xf32>
    %117 = vector.shape_cast %116 : vector<1x1x128xf32> to vector<128xf32>
    %118 = vector.shape_cast %117 : vector<128xf32> to vector<1x1x128xf32>
    %119 = vector.broadcast %118 : vector<1x1x128xf32> to vector<9x9x128xf32>
    %120 = arith.mulf %115, %119 : vector<9x9x128xf32>
    %121 = arith.addf %114, %120 : vector<9x9x128xf32>
    %122 = vector.extract_strided_slice %93 {offsets = [0, 4, 0], sizes = [9, 9, 128], strides = [1, 1, 1]} : vector<9x13x128xf32> to vector<9x9x128xf32>
    %123 = vector.extract_strided_slice %19 {offsets = [2, 4, 0], sizes = [1, 1, 128], strides = [1, 1, 1]} : vector<5x5x128xf32> to vector<1x1x128xf32>
    %124 = vector.shape_cast %123 : vector<1x1x128xf32> to vector<128xf32>
    %125 = vector.shape_cast %124 : vector<128xf32> to vector<1x1x128xf32>
    %126 = vector.broadcast %125 : vector<1x1x128xf32> to vector<9x9x128xf32>
    %127 = arith.mulf %122, %126 : vector<9x9x128xf32>
    %128 = arith.addf %121, %127 : vector<9x9x128xf32>
    %129 = vector.extract_strided_slice %18 {offsets = [3, 0, 0], sizes = [9, 13, 128], strides = [1, 1, 1]} : vector<13x13x128xf32> to vector<9x13x128xf32>
    %130 = vector.extract_strided_slice %129 {offsets = [0, 0, 0], sizes = [9, 9, 128], strides = [1, 1, 1]} : vector<9x13x128xf32> to vector<9x9x128xf32>
    %131 = vector.extract_strided_slice %19 {offsets = [3, 0, 0], sizes = [1, 1, 128], strides = [1, 1, 1]} : vector<5x5x128xf32> to vector<1x1x128xf32>
    %132 = vector.shape_cast %131 : vector<1x1x128xf32> to vector<128xf32>
    %133 = vector.shape_cast %132 : vector<128xf32> to vector<1x1x128xf32>
    %134 = vector.broadcast %133 : vector<1x1x128xf32> to vector<9x9x128xf32>
    %135 = arith.mulf %130, %134 : vector<9x9x128xf32>
    %136 = arith.addf %128, %135 : vector<9x9x128xf32>
    %137 = vector.extract_strided_slice %129 {offsets = [0, 1, 0], sizes = [9, 9, 128], strides = [1, 1, 1]} : vector<9x13x128xf32> to vector<9x9x128xf32>
    %138 = vector.extract_strided_slice %19 {offsets = [3, 1, 0], sizes = [1, 1, 128], strides = [1, 1, 1]} : vector<5x5x128xf32> to vector<1x1x128xf32>
    %139 = vector.shape_cast %138 : vector<1x1x128xf32> to vector<128xf32>
    %140 = vector.shape_cast %139 : vector<128xf32> to vector<1x1x128xf32>
    %141 = vector.broadcast %140 : vector<1x1x128xf32> to vector<9x9x128xf32>
    %142 = arith.mulf %137, %141 : vector<9x9x128xf32>
    %143 = arith.addf %136, %142 : vector<9x9x128xf32>
    %144 = vector.extract_strided_slice %129 {offsets = [0, 2, 0], sizes = [9, 9, 128], strides = [1, 1, 1]} : vector<9x13x128xf32> to vector<9x9x128xf32>
    %145 = vector.extract_strided_slice %19 {offsets = [3, 2, 0], sizes = [1, 1, 128], strides = [1, 1, 1]} : vector<5x5x128xf32> to vector<1x1x128xf32>
    %146 = vector.shape_cast %145 : vector<1x1x128xf32> to vector<128xf32>
    %147 = vector.shape_cast %146 : vector<128xf32> to vector<1x1x128xf32>
    %148 = vector.broadcast %147 : vector<1x1x128xf32> to vector<9x9x128xf32>
    %149 = arith.mulf %144, %148 : vector<9x9x128xf32>
    %150 = arith.addf %143, %149 : vector<9x9x128xf32>
    %151 = vector.extract_strided_slice %129 {offsets = [0, 3, 0], sizes = [9, 9, 128], strides = [1, 1, 1]} : vector<9x13x128xf32> to vector<9x9x128xf32>
    %152 = vector.extract_strided_slice %19 {offsets = [3, 3, 0], sizes = [1, 1, 128], strides = [1, 1, 1]} : vector<5x5x128xf32> to vector<1x1x128xf32>
    %153 = vector.shape_cast %152 : vector<1x1x128xf32> to vector<128xf32>
    %154 = vector.shape_cast %153 : vector<128xf32> to vector<1x1x128xf32>
    %155 = vector.broadcast %154 : vector<1x1x128xf32> to vector<9x9x128xf32>
    %156 = arith.mulf %151, %155 : vector<9x9x128xf32>
    %157 = arith.addf %150, %156 : vector<9x9x128xf32>
    %158 = vector.extract_strided_slice %129 {offsets = [0, 4, 0], sizes = [9, 9, 128], strides = [1, 1, 1]} : vector<9x13x128xf32> to vector<9x9x128xf32>
    %159 = vector.extract_strided_slice %19 {offsets = [3, 4, 0], sizes = [1, 1, 128], strides = [1, 1, 1]} : vector<5x5x128xf32> to vector<1x1x128xf32>
    %160 = vector.shape_cast %159 : vector<1x1x128xf32> to vector<128xf32>
    %161 = vector.shape_cast %160 : vector<128xf32> to vector<1x1x128xf32>
    %162 = vector.broadcast %161 : vector<1x1x128xf32> to vector<9x9x128xf32>
    %163 = arith.mulf %158, %162 : vector<9x9x128xf32>
    %164 = arith.addf %157, %163 : vector<9x9x128xf32>
    %165 = vector.extract_strided_slice %18 {offsets = [4, 0, 0], sizes = [9, 13, 128], strides = [1, 1, 1]} : vector<13x13x128xf32> to vector<9x13x128xf32>
    %166 = vector.extract_strided_slice %165 {offsets = [0, 0, 0], sizes = [9, 9, 128], strides = [1, 1, 1]} : vector<9x13x128xf32> to vector<9x9x128xf32>
    %167 = vector.extract_strided_slice %19 {offsets = [4, 0, 0], sizes = [1, 1, 128], strides = [1, 1, 1]} : vector<5x5x128xf32> to vector<1x1x128xf32>
    %168 = vector.shape_cast %167 : vector<1x1x128xf32> to vector<128xf32>
    %169 = vector.shape_cast %168 : vector<128xf32> to vector<1x1x128xf32>
    %170 = vector.broadcast %169 : vector<1x1x128xf32> to vector<9x9x128xf32>
    %171 = arith.mulf %166, %170 : vector<9x9x128xf32>
    %172 = arith.addf %164, %171 : vector<9x9x128xf32>
    %173 = vector.extract_strided_slice %165 {offsets = [0, 1, 0], sizes = [9, 9, 128], strides = [1, 1, 1]} : vector<9x13x128xf32> to vector<9x9x128xf32>
    %174 = vector.extract_strided_slice %19 {offsets = [4, 1, 0], sizes = [1, 1, 128], strides = [1, 1, 1]} : vector<5x5x128xf32> to vector<1x1x128xf32>
    %175 = vector.shape_cast %174 : vector<1x1x128xf32> to vector<128xf32>
    %176 = vector.shape_cast %175 : vector<128xf32> to vector<1x1x128xf32>
    %177 = vector.broadcast %176 : vector<1x1x128xf32> to vector<9x9x128xf32>
    %178 = arith.mulf %173, %177 : vector<9x9x128xf32>
    %179 = arith.addf %172, %178 : vector<9x9x128xf32>
    %180 = vector.extract_strided_slice %165 {offsets = [0, 2, 0], sizes = [9, 9, 128], strides = [1, 1, 1]} : vector<9x13x128xf32> to vector<9x9x128xf32>
    %181 = vector.extract_strided_slice %19 {offsets = [4, 2, 0], sizes = [1, 1, 128], strides = [1, 1, 1]} : vector<5x5x128xf32> to vector<1x1x128xf32>
    %182 = vector.shape_cast %181 : vector<1x1x128xf32> to vector<128xf32>
    %183 = vector.shape_cast %182 : vector<128xf32> to vector<1x1x128xf32>
    %184 = vector.broadcast %183 : vector<1x1x128xf32> to vector<9x9x128xf32>
    %185 = arith.mulf %180, %184 : vector<9x9x128xf32>
    %186 = arith.addf %179, %185 : vector<9x9x128xf32>
    %187 = vector.extract_strided_slice %165 {offsets = [0, 3, 0], sizes = [9, 9, 128], strides = [1, 1, 1]} : vector<9x13x128xf32> to vector<9x9x128xf32>
    %188 = vector.extract_strided_slice %19 {offsets = [4, 3, 0], sizes = [1, 1, 128], strides = [1, 1, 1]} : vector<5x5x128xf32> to vector<1x1x128xf32>
    %189 = vector.shape_cast %188 : vector<1x1x128xf32> to vector<128xf32>
    %190 = vector.shape_cast %189 : vector<128xf32> to vector<1x1x128xf32>
    %191 = vector.broadcast %190 : vector<1x1x128xf32> to vector<9x9x128xf32>
    %192 = arith.mulf %187, %191 : vector<9x9x128xf32>
    %193 = arith.addf %186, %192 : vector<9x9x128xf32>
    %194 = vector.extract_strided_slice %165 {offsets = [0, 4, 0], sizes = [9, 9, 128], strides = [1, 1, 1]} : vector<9x13x128xf32> to vector<9x9x128xf32>
    %195 = vector.extract_strided_slice %19 {offsets = [4, 4, 0], sizes = [1, 1, 128], strides = [1, 1, 1]} : vector<5x5x128xf32> to vector<1x1x128xf32>
    %196 = vector.shape_cast %195 : vector<1x1x128xf32> to vector<128xf32>
    %197 = vector.shape_cast %196 : vector<128xf32> to vector<1x1x128xf32>
    %198 = vector.broadcast %197 : vector<1x1x128xf32> to vector<9x9x128xf32>
    %199 = arith.mulf %194, %198 : vector<9x9x128xf32>
    %200 = arith.addf %193, %199 : vector<9x9x128xf32>
    %201 = vector.shape_cast %200 : vector<9x9x128xf32> to vector<81x128xf32>
    %202 = arith.truncf %201 : vector<81x128xf32> to vector<81x128xbf16>
    %c0_17 = arith.constant 0 : index
    %c0_18 = arith.constant 0 : index
    %203 = vector.load %arg7[%c0_17, %c0_18] : memref<128x128xbf16, #tpu.memory_space<vmem>>, vector<128x128xbf16>
    %cst_19 = arith.constant dense<0.000000e+00> : vector<81x128xf32>
    %204 = tpu.matmul %202, %203, %cst_19 {dimension_numbers = #tpu.dot_dimension_numbers<[1], [0], [0], [1], [0, 0, 1, 1], [], []>} : vector<81x128xbf16>, vector<128x128xbf16>, vector<81x128xf32> -> vector<81x128xf32>
    %c0_20 = arith.constant 0 : index
    %c0_21 = arith.constant 0 : index
    %205 = vector.load %arg8[%c0_20, %c0_21] : memref<1x128xf32, #tpu.memory_space<vmem>>, vector<1x128xf32>
    %206 = vector.broadcast %205 : vector<1x128xf32> to vector<81x128xf32>
    %207 = arith.addf %204, %206 : vector<81x128xf32>
    %cst_22 = arith.constant 0.000000e+00 : f32
    %208 = vector.broadcast %cst_22 : f32 to vector<81x128xf32>
    %209 = arith.maximumf %207, %208 : vector<81x128xf32>
    %210 = arith.truncf %209 : vector<81x128xf32> to vector<81x128xbf16>
    %c0_23 = arith.constant 0 : index
    %c0_24 = arith.constant 0 : index
    %211 = vector.load %arg9[%c0_23, %c0_24] : memref<128x128xbf16, #tpu.memory_space<vmem>>, vector<128x128xbf16>
    %cst_25 = arith.constant dense<0.000000e+00> : vector<81x128xf32>
    %212 = tpu.matmul %210, %211, %cst_25 {dimension_numbers = #tpu.dot_dimension_numbers<[1], [0], [0], [1], [0, 0, 1, 1], [], []>} : vector<81x128xbf16>, vector<128x128xbf16>, vector<81x128xf32> -> vector<81x128xf32>
    %c0_26 = arith.constant 0 : index
    %c0_27 = arith.constant 0 : index
    %213 = vector.load %arg10[%c0_26, %c0_27] : memref<1x128xf32, #tpu.memory_space<vmem>>, vector<1x128xf32>
    %214 = vector.broadcast %213 : vector<1x128xf32> to vector<81x128xf32>
    %215 = arith.addf %212, %214 : vector<81x128xf32>
    %c0_28 = arith.constant 0 : index
    %c0_29 = arith.constant 0 : index
    %c0_30 = arith.constant 0 : index
    %216 = vector.load %arg11[%c0_28, %c0_29, %c0_30] : memref<1x81x128xf32, #tpu.memory_space<vmem>>, vector<1x81x128xf32>
    %217 = vector.shape_cast %216 : vector<1x81x128xf32> to vector<81x128xf32>
    %218 = vector.shape_cast %215 : vector<81x128xf32> to vector<1x81x128xf32>
    tpu.vector_store %arg11[%c0_28, %c0_29, %c0_30], %218 {strides = array<i32>} : memref<1x81x128xf32, #tpu.memory_space<vmem>>, vector<1x81x128xf32>,
    return
  }
  func.func @transform_0(%arg0: i32) -> (i32, i32, i32) {
    %c0_i32 = arith.constant 0 : i32
    %c0_i32_0 = arith.constant 0 : i32
    %c0_i32_1 = arith.constant 0 : i32
    return %arg0, %c0_i32, %c0_i32_0 : i32, i32, i32
  }
  func.func @transform_1(%arg0: i32) -> (i32, i32, i32) {
    %c0_i32 = arith.constant 0 : i32
    %c0_i32_0 = arith.constant 0 : i32
    %c0_i32_1 = arith.constant 0 : i32
    return %arg0, %c0_i32, %c0_i32_0 : i32, i32, i32
  }
  func.func @transform_2(%arg0: i32) -> (i32, i32) {
    %c0_i32 = arith.constant 0 : i32
    %c0_i32_0 = arith.constant 0 : i32
    %c0_i32_1 = arith.constant 0 : i32
    return %c0_i32, %c0_i32_0 : i32, i32
  }
  func.func @transform_3(%arg0: i32) -> (i32, i32) {
    %c0_i32 = arith.constant 0 : i32
    %c0_i32_0 = arith.constant 0 : i32
    %c0_i32_1 = arith.constant 0 : i32
    return %c0_i32, %c0_i32_0 : i32, i32
  }
  func.func @transform_4(%arg0: i32) -> (i32, i32) {
    %c0_i32 = arith.constant 0 : i32
    %c0_i32_0 = arith.constant 0 : i32
    %c0_i32_1 = arith.constant 0 : i32
    return %c0_i32, %c0_i32_0 : i32, i32
  }
  func.func @transform_5(%arg0: i32) -> (i32, i32) {
    %c0_i32 = arith.constant 0 : i32
    %c0_i32_0 = arith.constant 0 : i32
    %c0_i32_1 = arith.constant 0 : i32
    return %c0_i32, %c0_i32_0 : i32, i32
  }
  func.func @transform_6(%arg0: i32) -> (i32, i32) {
    %c0_i32 = arith.constant 0 : i32
    %c0_i32_0 = arith.constant 0 : i32
    %c0_i32_1 = arith.constant 0 : i32
    return %c0_i32, %c0_i32_0 : i32, i32
  }
  func.func @transform_7(%arg0: i32) -> (i32, i32) {
    %c0_i32 = arith.constant 0 : i32
    %c0_i32_0 = arith.constant 0 : i32
    %c0_i32_1 = arith.constant 0 : i32
    return %c0_i32, %c0_i32_0 : i32, i32
  }
  func.func @transform_8(%arg0: i32) -> (i32, i32) {
    %c0_i32 = arith.constant 0 : i32
    %c0_i32_0 = arith.constant 0 : i32
    %c0_i32_1 = arith.constant 0 : i32
    return %c0_i32, %c0_i32_0 : i32, i32
  }
  func.func @transform_9(%arg0: i32) -> (i32, i32) {
    %c0_i32 = arith.constant 0 : i32
    %c0_i32_0 = arith.constant 0 : i32
    %c0_i32_1 = arith.constant 0 : i32
    return %c0_i32, %c0_i32_0 : i32, i32
  }
  func.func @transform_10(%arg0: i32) -> (i32, i32, i32) {
    %c0_i32 = arith.constant 0 : i32
    %c0_i32_0 = arith.constant 0 : i32
    %c0_i32_1 = arith.constant 0 : i32
    return %arg0, %c0_i32, %c0_i32_0 : i32, i32, i32
  }
}

</mosaic_0001>

<bundles_post_ra>
// kernel: depthwise_xcorr_forward.1
= control target key start
LH: loop header
LB: loop body
LE: loop exit
PB: predicated region body
PF: predicated region fallthrough
CT: control target
= control target key end

     0   :  { %s9036_s13 = smov 0   ;;  %s15289_s0 = inlined_call_operand.vmem [shape: bf16[2,25,128], index: 0, kind: input, shape index: {}]   ;;  %s15290_s1 = inlined_call_operand.vmem [shape: bf16[2,169,128], index: 1, kind: input, shape index: {}]   ;;  %s15291_s2 = inlined_call_operand.vmem [shape: bf16[128,128], index: 2, kind: input, shape index: {}]   ;;  %s15292_s3 = inlined_call_operand.vmem [shape: f32[1,128], index: 3, kind: input, shape index: {}]   ;;  %s15293_s4 = inlined_call_operand.vmem [shape: bf16[128,128], index: 4, kind: input, shape index: {}]   ;;  %s15294_s5 = inlined_call_operand.vmem [shape: f32[1,128], index: 5, kind: input, shape index: {}]   ;;  %s15295_s6 = inlined_call_operand.vmem [shape: bf16[128,128], index: 6, kind: input, shape index: {}]   ;;  %s15296_s7 = inlined_call_operand.vmem [shape: f32[1,128], index: 7, kind: input, shape index: {}]   ;;  %s15297_s8 = inlined_call_operand.vmem [shape: bf16[128,128], index: 8, kind: input, shape index: {}]   ;;  %s15298_s9 = inlined_call_operand.vmem [shape: f32[1,128], index: 9, kind: input, shape index: {}]   ;;  %s15299_s10 = inlined_call_operand.vmem [shape: f32[2,81,128], index: 10, kind: output, shape index: {}]  }
   0x1 LB: > { %s8656_s14 = sadd.s32 4294967295, %s8976_s13   ;;  %p8660_p0 = scmp.ge.s32.totalorder %s8976_s13, 1  ;;  %s8976_s13 = sphi %s9036_s13, %s20_s13  }
   0x2   : > { %p322_p1 = scmp.lt.s32.totalorder %s8976_s13, 3 }
   0x4   : > { %p323_p2 = pnand %p8660_p0, %p322_p1 }
   0x6   : > { %326 = sbr.rel (%p323_p2) target bundleno = 1953 (0x7a1), region = 60 }
   0xd   : > { %v8922_v0 = vld [vmem:[%s15291_s2] sm:$0xff]   ;;  %v8978_v1 = vmov 0.0   ;;  %v8924_v3 = vld [vmem:[%s15291_s2 + $0x8] sm:$0xff]   ;;  %vm8979_vm0 = vmmov 0   ;;  %p365_p3 = scmp.lt.s32.totalorder %s8656_s14, 1  ;;  %v8926_v5 = vld [vmem:[%s15291_s2 + $0x10] sm:$0xff]   ;;  %v849_v32 = vlaneseq }
   0xe   : > { %8794 = vmatprep.subr.bf16.mxu1 %v8978_v1  ;;  %v8923_v2 = vld [vmem:[%s15293_s4] sm:$0xff]   ;;  %8774 = vmatprep.subr.bf16.mxu0 %v8922_v0  ;;  %v8925_v4 = vld [vmem:[%s15293_s4 + $0x8] sm:$0xff]   ;;  %v8927_v6 = vld [vmem:[%s15293_s4 + $0x10] sm:$0xff]   ;;  %v8980_v30 = vmov 1966171168  }
   0xf   : > { %8810 = vmatprep.mubr.msk.bf16.mxu1 %vm8979_vm0, %v8978_v1  ;;  %8795 = vmatpush3.bf16.msra.mxu1 %v8923_v2  ;;  %s18355_s14 = smov (!%p365_p3, %s8656_s14), 1  ;;  %v8928_v7 = vld [vmem:[%s15291_s2 + $0x18] sm:$0xff]   ;;  %v8930_v9 = vld [vmem:[%s15291_s2 + $0x20] sm:$0xff]   ;;  %v8932_v11 = vld [vmem:[%s15291_s2 + $0x28] sm:$0xff]   ;;  %v847_v31 = vunpack.c.l.s4 %v8980_v30  ;;  %v850_v34 = vshrl.u32 %v849_v32, 7 }
  0x10   : > { %8775 = vmatpush3.bf16.msra.mxu0 %v8922_v0  ;;  %8796 = vmatprep.subr.bf16.mxu1 %v8978_v1  ;;  %s8716_s29 = sshll.u32 %s18355_s14, 4  ;;  %v8929_v8 = vld [vmem:[%s15293_s4 + $0x18] sm:$0xff]   ;;  %s8910_s16 = smul.u32 88, %s18355_s14  ;;  %v8931_v10 = vld [vmem:[%s15293_s4 + $0x20] sm:$0xff]   ;;  %v8933_v13 = vld [vmem:[%s15293_s4 + $0x28] sm:$0xff]  }
  0x11   : > { %8776 = vmatprep.subr.bf16.mxu0 %v8924_v3  ;;  %s369_s19 = scalar_lea.vmem %s15289_s0, %s8716_s29  ;;  %v8934_v14 = vld [vmem:[%s15291_s2 + $0x30] sm:$0xff]   ;;  %v8936_v16 = vld [vmem:[%s15291_s2 + $0x38] sm:$0xff]   ;;  %v848_v33 = vunpack.c.0.s8 %v847_v31  ;;  %v9150_v35 = vld [vmem:[%s15294_s5] ss:$0 sm:$0xff]  ;;  %v9160_v48 = vsub.s32 1, %v850_v34  ;;  %v9162_v49 = vsub.s32 2, %v850_v34 }
  0x12   : > { %s9096_s26 = scalar_lea.vmem %s15290_s1, %s8910_s16  ;;  %v8938_v12 = vld [vmem:[%s369_s19] sm:$0xff]   ;;  %v8935_v15 = vld [vmem:[%s15293_s4 + $0x30] sm:$0xff]   ;;  %v8937_v17 = vld [vmem:[%s15293_s4 + $0x38] sm:$0xff]   ;;  %16548 = vst [vmem:[#allocation2_spill] sm:$0xff] %v9150_v35  ;;  %v9164_v52 = vsub.s32 3, %v850_v34  ;;  %v9166_v53 = vsub.s32 4, %v850_v34  ;;  %s15273_s17 = scalar_lea.vmem %s15299_s10, %s8910_s16 }
  0x13   : > { %8797 = vmatpush3.bf16.msra.mxu1 %v8925_v4  ;;  %8790 = vmatprep.mubr.bf16.mxu0 %v8938_v12  ;;  %v8939_v18 = vld [vmem:[%s9096_s26] sm:$0xff]   ;;  %v8940_v19 = vld [vmem:[%s369_s19 + $0x8] sm:$0x1f]   ;;  %v8942_v21 = vld [vmem:[%s9096_s26 + $0x10] sm:$0xff]   ;;  %v9156_v40 = vsub.s32 %v848_v33, %v850_v34  ;;  %16551 = vst [vmem:[#allocation5_spill] sm:$0xff] %v9160_v48  ;;  %v9168_v54 = vsub.s32 5, %v850_v34 }
  0x14   : > { %8777 = vmatpush3.bf16.msra.mxu0 %v8924_v3  ;;  %8798 = vmatprep.subr.bf16.mxu1 %v8978_v1  ;;  %v8941_v20 = vld [vmem:[%s9096_s26 + $0x8] sm:$0xff]   ;;  %v8943_v22 = vld [vmem:[%s9096_s26 + $0x18] sm:$0xff]   ;;  %v8944_v23 = vld [vmem:[%s9096_s26 + $0x20] sm:$0xff]   ;;  %16552 = vst [vmem:[#allocation6_spill] sm:$0xff] %v9162_v49  ;;  %v9170_v55 = vsub.s32 6, %v850_v34  ;;  %v9177_v60 = vsub.s32 7, %v850_v34 }
  0x15   : > { %8778 = vmatprep.subr.bf16.mxu0 %v8926_v5  ;;  %v8945_v24 = vld [vmem:[%s9096_s26 + $0x28] sm:$0xff]   ;;  %v8946_v25 = vld [vmem:[%s9096_s26 + $0x30] sm:$0xff]   ;;  %v8947_v26 = vld [vmem:[%s9096_s26 + $0x38] sm:$0xff]   ;;  %16549 = vst [vmem:[#allocation3_spill] sm:$0xff] %v9156_v40  ;;  %v9182_v63 = vsub.s32 0, %v850_v34 }
  0x16   : > { %v8948_v27 = vld [vmem:[%s9096_s26 + $0x40] sm:$0xff]   ;;  %v8949_v28 = vld [vmem:[%s9096_s26 + $0x48] sm:$0xff]   ;;  %v8950_v29 = vld [vmem:[%s9096_s26 + $0x50] sm:$0x1f]   ;;  %16553 = vst [vmem:[#allocation7_spill] sm:$0xff] %v9164_v52 }
  0x17   : > { %8799 = vmatpush3.bf16.msra.mxu1 %v8927_v6  ;;  %v8665_v38 = vld [vmem:[%s15292_s3] ss:$0 sm:$0xff]  ;;  %16554 = vst [vmem:[#allocation8_spill] sm:$0xff] %v9166_v53  ;;  %16555 = vst [vmem:[#allocation9_spill] sm:$0xff] %v9168_v54 }
  0x18   : > { %8779 = vmatpush3.bf16.msra.mxu0 %v8926_v5  ;;  %8800 = vmatprep.subr.bf16.mxu1 %v8978_v1  ;;  %16556 = vst [vmem:[#allocation10_spill] sm:$0xff] %v9170_v55  ;;  %16557 = vst [vmem:[#allocation11_spill] sm:$0xff] %v9177_v60 }
  0x19   : > { %8780 = vmatprep.subr.bf16.mxu0 %v8928_v7  ;;  %16558 = vst [vmem:[#allocation12_spill] sm:$0xff] %v9182_v63 }
  0x1b   : > { %8801 = vmatpush3.bf16.msra.mxu1 %v8929_v8 }
  0x1c   : > { %8781 = vmatpush3.bf16.msra.mxu0 %v8928_v7  ;;  %8802 = vmatprep.subr.bf16.mxu1 %v8978_v1 }
  0x1d   : > { %8782 = vmatprep.subr.bf16.mxu0 %v8930_v9 }
  0x1f   : > { %8803 = vmatpush3.bf16.msra.mxu1 %v8931_v10 }
  0x20   : > { %8783 = vmatpush3.bf16.msra.mxu0 %v8930_v9  ;;  %8804 = vmatprep.subr.bf16.mxu1 %v8978_v1 }
  0x21   : > { %8784 = vmatprep.subr.bf16.mxu0 %v8932_v11 }
  0x23   : > { %8805 = vmatpush3.bf16.msra.mxu1 %v8933_v13 }
  0x24   : > { %8785 = vmatpush3.bf16.msra.mxu0 %v8932_v11  ;;  %8806 = vmatprep.subr.bf16.mxu1 %v8978_v1 }
  0x25   : > { %8786 = vmatprep.subr.bf16.mxu0 %v8934_v14 }
  0x27   : > { %8807 = vmatpush3.bf16.msra.mxu1 %v8935_v15 }
  0x28   : > { %8787 = vmatpush3.bf16.msra.mxu0 %v8934_v14  ;;  %8808 = vmatprep.subr.bf16.mxu1 %v8978_v1 }
  0x29   : > { %8788 = vmatprep.subr.bf16.mxu0 %v8936_v16 }
  0x2b   : > { %8809 = vmatpush3.bf16.msra.mxu1 %v8937_v17 }
  0x2c   : > { %8789 = vmatpush3.bf16.msra.mxu0 %v8936_v16 }
  0x2e   : > { %8811 = vmatmul.mubr.bf16.vlgmr.msra.gmra.mrb[0].mxu1 %v8939_v18 }
  0x2f   : > { %8791 = vmatmul.mubr.bf16.vlgmr.msra.gmra.mrb[0].mxu0 %v8940_v19  ;;  %8814 = vmatprep.mubr.msk.bf16.mxu1 %vm8979_vm0, %v8978_v1 }
  0x36   : > { %8815 = vmatmul.mubr.bf16.gmra.mrb[4].mxu1 %v8941_v20 }
  0x37   : > { %8818 = vmatprep.mubr.msk.bf16.mxu1 %vm8979_vm0, %v8978_v1 }
  0x3e   : > { %8819 = vmatmul.mubr.bf16.gmra.mrb[8].mxu1 %v8942_v21 }
  0x3f   : > { %8822 = vmatprep.mubr.msk.bf16.mxu1 %vm8979_vm0, %v8978_v1 }
  0x46   : > { %8823 = vmatmul.mubr.bf16.gmra.mrb[12].mxu1 %v8943_v22 }
  0x47   : > { %8826 = vmatprep.mubr.msk.bf16.mxu1 %vm8979_vm0, %v8978_v1 }
  0x4e   : > { %8827 = vmatmul.mubr.bf16.gmra.mrb[16].mxu1 %v8944_v23 }
  0x4f   : > { %8830 = vmatprep.mubr.msk.bf16.mxu1 %vm8979_vm0, %v8978_v1 }
  0x56   : > { %8831 = vmatmul.mubr.bf16.gmra.mrb[20].mxu1 %v8945_v24 }
  0x57   : > { %8834 = vmatprep.mubr.msk.bf16.mxu1 %vm8979_vm0, %v8978_v1 }
  0x5e   : > { %8835 = vmatmul.mubr.bf16.gmra.mrb[24].mxu1 %v8946_v25 }
  0x5f   : > { %8838 = vmatprep.mubr.msk.bf16.mxu1 %vm8979_vm0, %v8978_v1 }
  0x66   : > { %8839 = vmatmul.mubr.bf16.gmra.mrb[28].mxu1 %v8947_v26 }
  0x67   : > { %8842 = vmatprep.mubr.msk.bf16.mxu1 %vm8979_vm0, %v8978_v1 }
  0x6e   : > { %8843 = vmatmul.mubr.bf16.gmra.mrb[32].mxu1 %v8948_v27 }
  0x6f   : > { %8846 = vmatprep.mubr.msk.bf16.mxu1 %vm8979_vm0, %v8978_v1 }
  0x76   : > { %8847 = vmatmul.mubr.bf16.gmra.mrb[36].mxu1 %v8949_v28 }
  0x77   : > { %8850 = vmatprep.mubr.msk.bf16.mxu1 %vm8979_vm0, %v8978_v1 }
  0x7e   : > { %8851 = vmatmul.mubr.bf16.gmra.mrb[40].mxu1 %v8950_v29 }
 0x101   : > { %v714_v36 = vpop.f32.mrb[0].mxu1 }
 0x102   : > { %v8792_v37 = vpop.f32.mrb[0].mxu0  ;;  %v715_v39 = vadd.f32 %v9150_v35, %v714_v36  ;;  %v8812_v42 = vpop.f32.mrb[1].mxu1 }
 0x103   : > { %v511_v41 = vadd.f32 %v8792_v37, %v8665_v38  ;;  %v502_v43 = vpop.f32.mrb[1].mxu0  ;;  %v717_v44 = vpop.f32.mrb[2].mxu1 }
 0x104   : > { %v8793_v45 = vpop.f32.mrb[2].mxu0  ;;  %v801_v46 = vmax.f32 %v715_v39, 0.0  ;;  %v8813_v50 = vpop.f32.mrb[3].mxu1  ;;  %v503_v61 = vadd.f32 %v8665_v38, %v502_v43  ;;  %v9180_v62 = vadd.f32 %v9150_v35, %v717_v44 }
 0x105   : > { %v9158_v47 = vmax.f32 %v511_v41, 0.0  ;;  %v505_v51 = vpop.f32.mrb[3].mxu0  ;;  %v9185_v3 = vadd.f32 %v8793_v45, %v8665_v38 }
 0x106   : > { %v845_v56 = vcombine.high %v801_v46, %v801_v46  ;;  %v852_v57 = vrot.slane %v801_v46, %v9156_v40  ;;  %v9204_v17 = vmax.f32 %v503_v61, 0.0  ;;  %v9212_v22 = vadd.f32 %v8665_v38, %v505_v51 }
 0x107   : > { %16550 = vst [vmem:[#allocation4_spill] sm:$0xff] %v9158_v47  ;;  %v5868_v58 = vrot.slane %v9158_v47, %v9160_v48  ;;  %v6092_v59 = vrot.slane %v9158_v47, %v9162_v49  ;;  %v6316_v7 = vrot.slane %v9158_v47, %v9164_v52  ;;  %v6540_v20 = vrot.slane %v9158_v47, %v9166_v53 }
 0x108   : > { %v859_v0 = vrot.slane %v845_v56, %v9156_v40  ;;  %v860_v1 = vcombine.high %v852_v57, %v852_v57  ;;  %v9188_v4 = vrot.slane %v852_v57, %v9156_v40  ;;  %v6764_v21 = vrot.slane %v9158_v47, %v9168_v54 }
 0x109   : > { %v5870_v2 = vcombine.high %v5868_v58, %v5868_v58  ;;  %v5877_v5 = vrot.slane %v5868_v58, %v9156_v40  ;;  %v6094_v6 = vcombine.high %v6092_v59, %v6092_v59  ;;  %v9193_v8 = vpop.f32.mrb[4].mxu1  ;;  %v6101_v12 = vrot.slane %v6092_v59, %v9156_v40 }
 0x10a   : > { %16559 = vst [vmem:[#allocation13_spill] sm:$0xff] %v9193_v8  ;;  %v861_v9 = vcombine.high %v859_v0, %v859_v0  ;;  %v9196_v10 = vrot.slane %v859_v0, %v9156_v40  ;;  %v9199_v11 = vrot.slane %v860_v1, %v9156_v40  ;;  %v8816_v13 = vpop.f32.mrb[5].mxu1  ;;  %v6318_v16 = vcombine.high %v6316_v7, %v6316_v7 }
 0x10b   : > { %v5884_v14 = vrot.slane %v5870_v2, %v9156_v40  ;;  %v6108_v15 = vrot.slane %v6094_v6, %v9156_v40  ;;  %v9206_v18 = vpop.f32.mrb[6].mxu1  ;;  %v5885_v19 = vcombine.high %v5877_v5, %v5877_v5  ;;  %v9219_v25 = vcombine.high %v9188_v4, %v9188_v4 }
 0x10c   : > { %16560 = vst [vmem:[#allocation14_spill] sm:$0xff] %v9206_v18  ;;  %v8817_v23 = vpop.f32.mrb[7].mxu1  ;;  %v9215_v24 = vrot.slane %v861_v9, %v9156_v40  ;;  %v9222_v26 = vrot.slane %v5877_v5, %v9156_v40  ;;  %v6988_v27 = vrot.slane %v9158_v47, %v9170_v55  ;;  %v9228_v28 = vcombine.high %v9196_v10, %v9196_v10 }
 0x10d   : > { %v9232_v29 = vcombine.high %v9199_v11, %v9199_v11  ;;  %v5886_v30 = vcombine.high %v5884_v14, %v5884_v14  ;;  %v6109_v31 = vcombine.high %v6101_v12, %v6101_v12  ;;  %v9235_v32 = vrot.slane %v5884_v14, %v9156_v40 }
 0x10e   : > { %16561 = vst [vmem:[#allocation15_spill] sm:$0xff] %v9222_v26  ;;  %v6110_v33 = vcombine.high %v6108_v15, %v6108_v15  ;;  %v6325_v34 = vrot.slane %v6316_v7, %v9156_v40  ;;  %v6332_v36 = vrot.slane %v6318_v16, %v9156_v40  ;;  %v9240_v37 = vrot.slane %v5885_v19, %v9156_v40 }
 0x10f   : > { %16562 = vst [vmem:[#allocation16_spill] sm:$0xff] %v9235_v32  ;;  %v6542_v38 = vcombine.high %v6540_v20, %v6540_v20  ;;  %v6549_v39 = vrot.slane %v6540_v20, %v9156_v40  ;;  %v6766_v41 = vcombine.high %v6764_v21, %v6764_v21  ;;  %v9245_v42 = vcombine.high %v9215_v24, %v9215_v24 }
 0x110   : > { %16563 = vst [vmem:[#allocation17_spill] sm:$0xff] %v9240_v37  ;;  %v6333_v43 = vcombine.high %v6325_v34, %v6325_v34  ;;  %v6334_v44 = vcombine.high %v6332_v36, %v6332_v36  ;;  %v6773_v45 = vrot.slane %v6764_v21, %v9156_v40  ;;  %v9251_v50 = vrot.slane %v6101_v12, %v9156_v40 }
 0x111   : > { %v9248_v46 = vpop.f32.mrb[8].mxu1  ;;  %v9254_v51 = vrot.slane %v6108_v15, %v9156_v40  ;;  %v9257_v56 = vrot.slane %v6109_v31, %v9156_v40  ;;  %v6556_v57 = vrot.slane %v6542_v38, %v9156_v40  ;;  %v9261_v59 = vrot.slane %v5886_v30, %v9156_v40 }
 0x112   : > { %16564 = vst [vmem:[#allocation18_spill] sm:$0xff] %v9248_v46  ;;  %16565 = vst [vmem:[#allocation19_spill] sm:$0xff] %v9251_v50  ;;  %v8820_v58 = vpop.f32.mrb[9].mxu1  ;;  %v9264_v61 = vrot.slane %v6110_v33, %v9156_v40  ;;  %v9267_v0 = vrot.slane %v6325_v34, %v9156_v40  ;;  %v6780_v1 = vrot.slane %v6766_v41, %v9156_v40  ;;  %v802_v50 = vmax.f32 %v9180_v62, 0.0 }
 0x113   : > { %16566 = vst [vmem:[#allocation20_spill] sm:$0xff] %v9254_v51  ;;  %16567 = vst [vmem:[#allocation21_spill] sm:$0xff] %v9257_v56  ;;  %v9271_v2 = vrot.slane %v6332_v36, %v9156_v40  ;;  %v9274_v5 = vrot.slane %v6333_v43, %v9156_v40  ;;  %v6557_v6 = vcombine.high %v6549_v39, %v6549_v39 }
 0x114   : > { %16568 = vst [vmem:[#allocation22_spill] sm:$0xff] %v9261_v59  ;;  %16569 = vst [vmem:[#allocation23_spill] sm:$0xff] %v9264_v61  ;;  %v9277_v7 = vrot.slane %v6549_v39, %v9156_v40  ;;  %v9280_v9 = vrot.slane %v6334_v44, %v9156_v40  ;;  %v6781_v12 = vcombine.high %v6773_v45, %v6773_v45 }
 0x115   : > { %16570 = vst [vmem:[#allocation24_spill] sm:$0xff] %v9267_v0  ;;  %16571 = vst [vmem:[#allocation25_spill] sm:$0xff] %v9271_v2  ;;  %v6990_v13 = vcombine.high %v6988_v27, %v6988_v27  ;;  %v6997_v14 = vrot.slane %v6988_v27, %v9156_v40  ;;  %v6558_v15 = vcombine.high %v6556_v57, %v6556_v57 }
 0x116   : > { %16572 = vst [vmem:[#allocation26_spill] sm:$0xff] %v9274_v5  ;;  %16573 = vst [vmem:[#allocation27_spill] sm:$0xff] %v9277_v7  ;;  %v9284_v16 = vrot.slane %v6773_v45, %v9156_v40  ;;  %v7212_v19 = vrot.slane %v9158_v47, %v9177_v60  ;;  %v2284_v20 = vrot.slane %v9204_v17, %v9160_v48 }
 0x117   : > { %16574 = vst [vmem:[#allocation28_spill] sm:$0xff] %v9280_v9  ;;  %v6782_v21 = vcombine.high %v6780_v1, %v6780_v1  ;;  %v7004_v23 = vrot.slane %v6990_v13, %v9156_v40  ;;  %v7005_v30 = vcombine.high %v6997_v14, %v6997_v14  ;;  %v2508_v31 = vrot.slane %v9204_v17, %v9162_v49 }
 0x118   : > { %16575 = vst [vmem:[#allocation29_spill] sm:$0xff] %v9284_v16  ;;  %v7214_v33 = vcombine.high %v7212_v19, %v7212_v19  ;;  %v7221_v27 = vrot.slane %v7212_v19, %v9156_v40  ;;  %v2286_v34 = vcombine.high %v2284_v20, %v2284_v20  ;;  %v2293_v36 = vrot.slane %v2284_v20, %v9156_v40 }
 0x119   : > { %v9296_v38 = vrot.slane %v6556_v57, %v9156_v40  ;;  %v9299_v39 = vrot.slane %v6557_v6, %v9156_v40  ;;  %v9302_v41 = vrot.slane %v6780_v1, %v9156_v40  ;;  %v2510_v43 = vcombine.high %v2508_v31, %v2508_v31 }
 0x11a   : > { %v9305_v44 = vrot.slane %v6781_v12, %v9156_v40  ;;  %v7006_v45 = vcombine.high %v7004_v23, %v7004_v23  ;;  %v7228_v58 = vrot.slane %v7214_v33, %v9156_v40  ;;  %v2300_v13 = vrot.slane %v2286_v34, %v9156_v40 }
 0x11b   : > { %16576 = vst [vmem:[#allocation30_spill] sm:$0xff] %v9296_v38  ;;  %16577 = vst [vmem:[#allocation31_spill] sm:$0xff] %v9299_v39  ;;  %v9310_v19 = vrot.slane %v6558_v15, %v9156_v40  ;;  %v7229_v57 = vcombine.high %v7221_v27, %v7221_v27  ;;  %v2301_v20 = vcombine.high %v2293_v36, %v2293_v36 }
 0x11c   : > { %16578 = vst [vmem:[#allocation32_spill] sm:$0xff] %v9302_v41  ;;  %16579 = vst [vmem:[#allocation33_spill] sm:$0xff] %v9305_v44  ;;  %v2517_v6 = vrot.slane %v2508_v31, %v9156_v40  ;;  %v9314_v9 = vrot.slane %v6782_v21, %v9156_v40  ;;  %v9317_v1 = vrot.slane %v6997_v14, %v9156_v40 }
 0x11d   : > { %16580 = vst [vmem:[#allocation34_spill] sm:$0xff] %v9310_v19  ;;  %v9320_v12 = vrot.slane %v7004_v23, %v9156_v40  ;;  %v9323_v33 = vrot.slane %v7005_v30, %v9156_v40  ;;  %v7230_v34 = vcombine.high %v7228_v58, %v7228_v58  ;;  %v9326_v15 = vrot.slane %v7221_v27, %v9156_v40 }
 0x11e   : > { %16581 = vst [vmem:[#allocation35_spill] sm:$0xff] %v9314_v9  ;;  %16582 = vst [vmem:[#allocation36_spill] sm:$0xff] %v9317_v1  ;;  %v2302_v41 = vcombine.high %v2300_v13, %v2300_v13  ;;  %v2524_v2 = vrot.slane %v2510_v43, %v9156_v40  ;;  %v9330_v31 = vrot.slane %v7006_v45, %v9156_v40 }
 0x11f   : > { %16583 = vst [vmem:[#allocation37_spill] sm:$0xff] %v9320_v12  ;;  %16584 = vst [vmem:[#allocation38_spill] sm:$0xff] %v9323_v33  ;;  %v9333_v21 = vrot.slane %v2293_v36, %v9156_v40  ;;  %v2525_v14 = vcombine.high %v2517_v6, %v2517_v6  ;;  %v2732_v23 = vrot.slane %v9204_v17, %v9164_v52 }
 0x120   : > { %16585 = vst [vmem:[#allocation39_spill] sm:$0xff] %v9326_v15  ;;  %16586 = vst [vmem:[#allocation40_spill] sm:$0xff] %v9330_v31  ;;  %v9338_v30 = vrot.slane %v7228_v58, %v9156_v40  ;;  %v9341_v12 = vrot.slane %v7229_v57, %v9156_v40  ;;  %v9344_v27 = vrot.slane %v2300_v13, %v9156_v40  ;;  %v9376_v31 = vpop.f32.mrb[10].mxu1 }
 0x121   : > { %16587 = vst [vmem:[#allocation41_spill] sm:$0xff] %v9333_v21  ;;  %v9347_v43 = vrot.slane %v2301_v20, %v9156_v40  ;;  %v2734_v45 = vcombine.high %v2732_v23, %v2732_v23  ;;  %v2741_v36 = vrot.slane %v2732_v23, %v9156_v40  ;;  %v2956_v9 = vrot.slane %v9204_v17, %v9166_v53 }
 0x122   : > { %16588 = vst [vmem:[#allocation42_spill] sm:$0xff] %v9338_v30  ;;  %16589 = vst [vmem:[#allocation43_spill] sm:$0xff] %v9341_v12  ;;  %v3180_v61 = vrot.slane %v9204_v17, %v9168_v54  ;;  %v9355_v58 = vrot.slane %v7230_v34, %v9156_v40  ;;  %v9358_v57 = vrot.slane %v2302_v41, %v9156_v40 }
 0x123   : > { %16590 = vst [vmem:[#allocation44_spill] sm:$0xff] %v9344_v27  ;;  %16591 = vst [vmem:[#allocation45_spill] sm:$0xff] %v9347_v43  ;;  %v2526_v13 = vcombine.high %v2524_v2, %v2524_v2  ;;  %v3404_v20 = vrot.slane %v9204_v17, %v9170_v55  ;;  %v9363_v12 = vrot.slane %v2525_v14, %v9156_v40 }
 0x124   : > { %16592 = vst [vmem:[#allocation46_spill] sm:$0xff] %v9355_v58  ;;  %16593 = vst [vmem:[#allocation47_spill] sm:$0xff] %v9358_v57  ;;  %v2748_v23 = vrot.slane %v2734_v45, %v9156_v40  ;;  %v2749_v30 = vcombine.high %v2741_v36, %v2741_v36  ;;  %v2958_v51 = vcombine.high %v2956_v9, %v2956_v9 }
 0x125   : > { %16594 = vst [vmem:[#allocation48_spill] sm:$0xff] %v9363_v12  ;;  %v9367_v59 = vrot.slane %v2517_v6, %v9156_v40  ;;  %v2965_v34 = vrot.slane %v2956_v9, %v9156_v40  ;;  %v3182_v58 = vcombine.high %v3180_v61, %v3180_v61  ;;  %v3189_v41 = vrot.slane %v3180_v61, %v9156_v40  ;;  %v8821_v61 = vpop.f32.mrb[11].mxu1 }
 0x126   : > { %v9373_v32 = vcombine.high %v9347_v43, %v9347_v43  ;;  %v2750_v19 = vcombine.high %v2748_v23, %v2748_v23  ;;  %v2972_v14 = vrot.slane %v2958_v51, %v9156_v40  ;;  %v3406_v38 = vcombine.high %v3404_v20, %v3404_v20  ;;  %16597 = vst [vmem:[#allocation51_spill] sm:$0xff] %v9376_v31 }
 0x127   : > { %16595 = vst [vmem:[#allocation49_spill] sm:$0xff] %v9367_v59  ;;  %v9379_v45 = vrot.slane %v2749_v30, %v9156_v40  ;;  %v2973_v6 = vcombine.high %v2965_v34, %v2965_v34  ;;  %v3196_v15 = vrot.slane %v3182_v58, %v9156_v40  ;;  %v3628_v9 = vrot.slane %v9204_v17, %v9177_v60 }
 0x128   : > { %16596 = vst [vmem:[#allocation50_spill] sm:$0xff] %v9373_v32  ;;  %v9385_v33 = vrot.slane %v2524_v2, %v9156_v40  ;;  %v9388_v1 = vrot.slane %v2526_v13, %v9156_v40  ;;  %v9392_v51 = vcombine.high %v9363_v12, %v9363_v12  ;;  %v9395_v30 = vrot.slane %v2741_v36, %v9156_v40 }
 0x129   : > { %16598 = vst [vmem:[#allocation52_spill] sm:$0xff] %v9379_v45  ;;  %v9398_v44 = vrot.slane %v2748_v23, %v9156_v40  ;;  %v9401_v58 = vrot.slane %v2750_v19, %v9156_v40  ;;  %v9404_v61 = vrot.slane %v2965_v34, %v9156_v40  ;;  %v3197_v2 = vcombine.high %v3189_v41, %v3189_v41 }
 0x12a   : > { %16599 = vst [vmem:[#allocation53_spill] sm:$0xff] %v9385_v33  ;;  %16600 = vst [vmem:[#allocation54_spill] sm:$0xff] %v9388_v1  ;;  %v2974_v39 = vcombine.high %v2972_v14, %v2972_v14  ;;  %v9407_v13 = vrot.slane %v2973_v6, %v9156_v40  ;;  %v3413_v5 = vrot.slane %v3404_v20, %v9156_v40 }
 0x12b   : > { %16601 = vst [vmem:[#allocation55_spill] sm:$0xff] %v9392_v51  ;;  %16602 = vst [vmem:[#allocation56_spill] sm:$0xff] %v9398_v44  ;;  %v3420_v16 = vrot.slane %v3406_v38, %v9156_v40  ;;  %v9413_v36 = vcombine.high %v9379_v45, %v9379_v45  ;;  %v3198_v23 = vcombine.high %v3196_v15, %v3196_v15 }
 0x12c   : > { %16603 = vst [vmem:[#allocation57_spill] sm:$0xff] %v9401_v58  ;;  %16604 = vst [vmem:[#allocation58_spill] sm:$0xff] %v9407_v13  ;;  %v9416_v19 = vrot.slane %v3196_v15, %v9156_v40  ;;  %v3630_v56 = vcombine.high %v3628_v9, %v3628_v9  ;;  %v9419_v34 = vrot.slane %v2972_v14, %v9156_v40 }
 0x12d   : > { %16605 = vst [vmem:[#allocation59_spill] sm:$0xff] %v9413_v36  ;;  %v9422_v37 = vrot.slane %v3189_v41, %v9156_v40  ;;  %v3421_v6 = vcombine.high %v3413_v5, %v3413_v5  ;;  %v3422_v0 = vcombine.high %v3420_v16, %v3420_v16  ;;  %v9425_v20 = vrot.slane %v3420_v16, %v9156_v40 }
 0x12e   : > { %16606 = vst [vmem:[#allocation60_spill] sm:$0xff] %v9416_v19  ;;  %16607 = vst [vmem:[#allocation61_spill] sm:$0xff] %v9419_v34  ;;  %v3637_v38 = vrot.slane %v3628_v9, %v9156_v40  ;;  %v2060_v15 = vrot.slane %v9204_v17, %v9182_v63  ;;  %v9432_v26 = vrot.slane %v2974_v39, %v9156_v40 }
 0x12f   : > { %16608 = vst [vmem:[#allocation62_spill] sm:$0xff] %v9422_v37  ;;  %16609 = vst [vmem:[#allocation63_spill] sm:$0xff] %v9425_v20  ;;  %v9436_v14 = vcombine.high %v9407_v13, %v9407_v13  ;;  %v9439_v41 = vrot.slane %v3197_v2, %v9156_v40  ;;  %v3644_v16 = vrot.slane %v3630_v56, %v9156_v40 }
 0x130   : > { %16610 = vst [vmem:[#allocation64_spill] sm:$0xff] %v9432_v26  ;;  %v9443_v7 = vrot.slane %v3198_v23, %v9156_v40  ;;  %v9447_v62 = vcombine.high %v9416_v19, %v9416_v19  ;;  %v9450_v17 = vrot.slane %v3413_v5, %v9156_v40  ;;  %v3645_v39 = vcombine.high %v3637_v38, %v3637_v38 }
 0x131   : > { %16611 = vst [vmem:[#allocation65_spill] sm:$0xff] %v9436_v14  ;;  %16612 = vst [vmem:[#allocation66_spill] sm:$0xff] %v9439_v41  ;;  %v9453_v9 = vrot.slane %v3421_v6, %v9156_v40  ;;  %v894_v47 = vcombine.high %v802_v50, %v802_v50  ;;  %v901_v2 = vrot.slane %v802_v50, %v9156_v40 }
 0x132   : > { %16613 = vst [vmem:[#allocation67_spill] sm:$0xff] %v9443_v7  ;;  %16614 = vst [vmem:[#allocation68_spill] sm:$0xff] %v9447_v62  ;;  %v2062_v31 = vcombine.high %v2060_v15, %v2060_v15  ;;  %v9457_v56 = vrot.slane %v3422_v0, %v9156_v40  ;;  %v9461_v23 = vcombine.high %v9425_v20, %v9425_v20 }
 0x133   : > { %16615 = vst [vmem:[#allocation69_spill] sm:$0xff] %v9450_v17  ;;  %16616 = vst [vmem:[#allocation70_spill] sm:$0xff] %v9453_v9  ;;  %v2069_v62 = vrot.slane %v2060_v15, %v9156_v40  ;;  %v9466_v5 = vcombine.high %v9333_v21, %v9333_v21  ;;  %v3646_v19 = vcombine.high %v3644_v16, %v3644_v16 }
 0x134   : > { %16617 = vst [vmem:[#allocation71_spill] sm:$0xff] %v9457_v56  ;;  %16618 = vst [vmem:[#allocation72_spill] sm:$0xff] %v9461_v23  ;;  %v908_v6 = vrot.slane %v894_v47, %v9156_v40  ;;  %v909_v46 = vcombine.high %v901_v2, %v901_v2  ;;  %v2076_v50 = vrot.slane %v2062_v31, %v9156_v40  ;;  %v9488_v31 = vpop.f32.mrb[12].mxu1 }
 0x135   : > { %16619 = vst [vmem:[#allocation73_spill] sm:$0xff] %v9466_v5  ;;  %v9471_v7 = vrot.slane %v3644_v16, %v9156_v40  ;;  %v9474_v0 = vrot.slane %v3645_v39, %v9156_v40  ;;  %v2077_v20 = vcombine.high %v2069_v62, %v2069_v62  ;;  %v9477_v23 = vrot.slane %v2069_v62, %v9156_v40 }
 0x136   : > { %v910_v15 = vcombine.high %v908_v6, %v908_v6  ;;  %v9480_v56 = vrot.slane %v901_v2, %v9156_v40  ;;  %v9483_v18 = vrot.slane %v908_v6, %v9156_v40  ;;  %v9486_v47 = vrot.slane %v909_v46, %v9156_v40  ;;  %16624 = vst [vmem:[#allocation78_spill] sm:$0xff] %v9488_v31  ;;  %v8824_v2 = vpop.f32.mrb[13].mxu1 }
 0x137   : > { %16620 = vst [vmem:[#allocation74_spill] sm:$0xff] %v9471_v7  ;;  %16621 = vst [vmem:[#allocation75_spill] sm:$0xff] %v9474_v0  ;;  %v2078_v16 = vcombine.high %v2076_v50, %v2076_v50  ;;  %v9491_v39 = vrot.slane %v2076_v50, %v9156_v40  ;;  %v9494_v14 = vrot.slane %v2077_v20, %v9156_v40  ;;  %v9610_v48 = vpop.f32.mrb[14].mxu1 }
 0x138   : > { %16622 = vst [vmem:[#allocation76_spill] sm:$0xff] %v9477_v23  ;;  %16623 = vst [vmem:[#allocation77_spill] sm:$0xff] %v9483_v18  ;;  %v9498_v62 = vcombine.high %v9477_v23, %v9477_v23  ;;  %v9502_v6 = vcombine.high %v9453_v9, %v9453_v9  ;;  %v9505_v46 = vrot.slane %v3637_v38, %v9156_v40 }
 0x139   : > { %16625 = vst [vmem:[#allocation79_spill] sm:$0xff] %v9491_v39  ;;  %16626 = vst [vmem:[#allocation80_spill] sm:$0xff] %v9494_v14  ;;  %v9508_v31 = vrot.slane %v3646_v19, %v9156_v40  ;;  %v9511_v50 = vrot.slane %v910_v15, %v9156_v40  ;;  %v9515_v20 = vcombine.high %v9471_v7, %v9471_v7 }
 0x13a   : > { %16627 = vst [vmem:[#allocation81_spill] sm:$0xff] %v9498_v62  ;;  %16628 = vst [vmem:[#allocation82_spill] sm:$0xff] %v9502_v6  ;;  %v9519_v2 = vcombine.high %v9474_v0, %v9474_v0  ;;  %v9522_v36 = vrot.slane %v2078_v16, %v9156_v40  ;;  %v9526_v38 = vcombine.high %v9344_v27, %v9344_v27 }
 0x13b   : > { %16629 = vst [vmem:[#allocation83_spill] sm:$0xff] %v9505_v46  ;;  %16630 = vst [vmem:[#allocation84_spill] sm:$0xff] %v9508_v31  ;;  %v9530_v19 = vcombine.high %v9480_v56, %v9480_v56  ;;  %v9534_v15 = vcombine.high %v9483_v18, %v9483_v18  ;;  %v9542_v16 = vcombine.high %v9491_v39, %v9491_v39 }
 0x13c   : > { %16631 = vst [vmem:[#allocation85_spill] sm:$0xff] %v9515_v20  ;;  %16632 = vst [vmem:[#allocation86_spill] sm:$0xff] %v9519_v2  ;;  %v9538_v20 = vcombine.high %v9486_v47, %v9486_v47  ;;  %v9546_v7 = vcombine.high %v9522_v36, %v9522_v36  ;;  %v2119_v2 = vmul.f32 %v9477_v23, %v9188_v4 }
 0x13d   : > { %16633 = vst [vmem:[#allocation87_spill] sm:$0xff] %v9522_v36  ;;  %16634 = vst [vmem:[#allocation88_spill] sm:$0xff] %v9526_v38  ;;  %v2120_v0 = vmul.f32 %v9494_v14, %v9199_v11  ;;  %v2121_v31 = vmul.f32 %v9498_v62, %v9219_v25  ;;  %v9556_v6 = vcombine.high %v9511_v50, %v9511_v50 }
 0x13e   : > { %16635 = vst [vmem:[#allocation89_spill] sm:$0xff] %v9542_v16  ;;  %16636 = vst [vmem:[#allocation90_spill] sm:$0xff] %v9546_v7  ;;  %v2123_v51 = vmul.f32 %v9491_v39, %v9196_v10  ;;  %v2124_v60 = vmul.f32 %v9522_v36, %v9215_v24  ;;  %v9564_v55 = vcombine.high %v9358_v57, %v9358_v57 }
 0x13f   : > { %v2126_v4 = vmul.f32 %v9546_v7, %v9245_v42  ;;  %v2343_v54 = vmul.f32 %v9333_v21, %v9199_v11  ;;  %v2344_v53 = vmul.f32 %v9347_v43, %v9219_v25  ;;  %v2347_v52 = vmul.f32 %v9344_v27, %v9215_v24  ;;  %16642 = vst [vmem:[#allocation96_spill] sm:$0xff] %v9610_v48 }
 0x140   : > { %16637 = vst [vmem:[#allocation91_spill] sm:$0xff] %v9564_v55  ;;  %v2125_v39 = vmul.f32 %v9542_v16, %v9228_v28  ;;  %v2348_v36 = vmul.f32 %v9358_v57, %v9228_v28  ;;  %v2349_v32 = vmul.f32 %v9526_v38, %v9245_v42  ;;  %v2350_v7 = vmul.f32 %v9564_v55, %v9480_v56 }
 0x141   : > { %v2127_v11 = vmul.f32 %v9477_v23, %v9480_v56  ;;  %v2128_v35 = vmul.f32 %v9477_v23, %v9511_v50  ;;  %v2129_v27 = vmul.f32 %v9494_v14, %v9534_v15  ;;  %v2345_v16 = vmul.f32 %v9466_v5, %v9232_v29 }
 0x142   : > { %v9592_v57 = vmul.f32 %v9498_v62, %v9556_v6  ;;  %v2351_v38 = vmul.f32 %v9333_v21, %v9486_v47  ;;  %v2352_v55 = vmul.f32 %v9333_v21, %v9534_v15  ;;  %v2431_v8 = vadd.f32 %v2350_v7, %v2126_v4 }
 0x143   : > { %v2424_v49 = vadd.f32 %v2343_v54, %v2119_v2  ;;  %v2425_v18 = vadd.f32 %v2344_v53, %v2120_v0  ;;  %v2428_v23 = vadd.f32 %v2347_v52, %v2123_v51  ;;  %v9600_v14 = vcombine.high %v9367_v59, %v9367_v59 }
 0x144   : > { %16638 = vst [vmem:[#allocation92_spill] sm:$0xff] %v9592_v57  ;;  %v2429_v40 = vadd.f32 %v2348_v36, %v2124_v60  ;;  %v2430_v5 = vadd.f32 %v2349_v32, %v2125_v39  ;;  %v9604_v62 = vcombine.high %v9385_v33, %v9385_v33  ;;  %v9608_v57 = vcombine.high %v9388_v1, %v9388_v1  ;;  %v8825_v32 = vpop.f32.mrb[15].mxu1 }
 0x145   : > { %16639 = vst [vmem:[#allocation93_spill] sm:$0xff] %v9600_v14  ;;  %v2353_v53 = vmul.f32 %v9347_v43, %v9556_v6  ;;  %v2426_v52 = vadd.f32 %v2345_v16, %v2121_v31  ;;  %v2567_v54 = vmul.f32 %v9367_v59, %v9219_v25  ;;  %v2568_v60 = vmul.f32 %v9363_v12, %v9232_v29 }
 0x146   : > { %16640 = vst [vmem:[#allocation94_spill] sm:$0xff] %v9604_v62  ;;  %16641 = vst [vmem:[#allocation95_spill] sm:$0xff] %v9608_v57  ;;  %v2571_v7 = vmul.f32 %v9385_v33, %v9228_v28  ;;  %v2572_v51 = vmul.f32 %v9388_v1, %v9245_v42  ;;  %v2573_v36 = vmul.f32 %v9604_v62, %v9480_v56 }
 0x147   : > { %v2574_v0 = vmul.f32 %v9608_v57, %v9486_v47  ;;  %v2432_v31 = vadd.f32 %v2351_v38, %v2127_v11  ;;  %v2569_v25 = vmul.f32 %v9600_v14, %v9196_v10  ;;  %v2648_v39 = vadd.f32 %v2567_v54, %v2424_v49 }
 0x148   : > { %v2649_v2 = vadd.f32 %v2568_v60, %v2425_v18  ;;  %v2652_v16 = vadd.f32 %v2571_v7, %v2428_v23  ;;  %v2653_v4 = vadd.f32 %v2572_v51, %v2429_v40  ;;  %v2654_v32 = vadd.f32 %v2573_v36, %v2430_v5  ;;  %v9648_v23 = vpop.f32.mrb[16].mxu1 }
 0x149   : > { %v2655_v48 = vadd.f32 %v2574_v0, %v2431_v8  ;;  %v2650_v33 = vadd.f32 %v2569_v25, %v2426_v52  ;;  %v9630_v1 = vcombine.high %v9395_v30, %v9395_v30  ;;  %v9634_v62 = vcombine.high %v9398_v44, %v9398_v44  ;;  %16646 = vst [vmem:[#allocation100_spill] sm:$0xff] %v9648_v23  ;;  %v8828_v60 = vpop.f32.mrb[17].mxu1 }
 0x14a   : > { %v9638_v38 = vcombine.high %v9401_v58, %v9401_v58  ;;  %v2791_v49 = vmul.f32 %v9395_v30, %v9232_v29  ;;  %v2792_v40 = vmul.f32 %v9379_v45, %v9196_v10  ;;  %v2795_v8 = vmul.f32 %v9398_v44, %v9245_v42 }
 0x14b   : > { %16643 = vst [vmem:[#allocation97_spill] sm:$0xff] %v9630_v1  ;;  %16644 = vst [vmem:[#allocation98_spill] sm:$0xff] %v9634_v62  ;;  %v2796_v18 = vmul.f32 %v9401_v58, %v9480_v56  ;;  %v2433_v5 = vadd.f32 %v2352_v55, %v2128_v35  ;;  %v2793_v11 = vmul.f32 %v9630_v1, %v9215_v24 }
 0x14c   : > { %16645 = vst [vmem:[#allocation99_spill] sm:$0xff] %v9638_v38  ;;  %v2797_v52 = vmul.f32 %v9634_v62, %v9486_v47  ;;  %v2798_v54 = vmul.f32 %v9638_v38, %v9530_v19  ;;  %v2872_v7 = vadd.f32 %v2791_v49, %v2648_v39  ;;  %v2873_v51 = vadd.f32 %v2792_v40, %v2649_v2 }
 0x14d   : > { %v2876_v36 = vadd.f32 %v2795_v8, %v2652_v16  ;;  %v2877_v0 = vadd.f32 %v2796_v18, %v2653_v4  ;;  %v2874_v25 = vadd.f32 %v2793_v11, %v2650_v33  ;;  %v9658_v35 = vcombine.high %v9404_v61, %v9404_v61 }
 0x14e   : > { %v2878_v44 = vadd.f32 %v2797_v52, %v2654_v32  ;;  %v2879_v58 = vadd.f32 %v2798_v54, %v2655_v48  ;;  %v9660_v55 = vadd.f32 %v2353_v53, %v2129_v27  ;;  %v9664_v62 = vcombine.high %v9419_v34, %v9419_v34 }
 0x14f   : > { %16647 = vst [vmem:[#allocation101_spill] sm:$0xff] %v9658_v35  ;;  %v9668_v60 = vcombine.high %v9432_v26, %v9432_v26  ;;  %v3015_v39 = vmul.f32 %v9404_v61, %v9196_v10  ;;  %v3016_v48 = vmul.f32 %v9407_v13, %v9215_v24  ;;  %v3017_v33 = vmul.f32 %v9658_v35, %v9228_v28 }
 0x150   : > { %16648 = vst [vmem:[#allocation102_spill] sm:$0xff] %v9664_v62  ;;  %v3019_v27 = vmul.f32 %v9419_v34, %v9480_v56  ;;  %v3020_v53 = vmul.f32 %v9432_v26, %v9486_v47  ;;  %v2575_v2 = vmul.f32 %v9367_v59, %v9530_v19  ;;  %v3021_v16 = vmul.f32 %v9664_v62, %v9530_v19  ;;  %v16676_v34 = vld [vmem:[#allocation9_spill] sm:$0xff] }
 0x151   : > { %16649 = vst [vmem:[#allocation103_spill] sm:$0xff] %v9668_v60  ;;  %v3022_v4 = vmul.f32 %v9668_v60, %v9538_v20  ;;  %v3096_v32 = vadd.f32 %v3015_v39, %v2872_v7  ;;  %v3097_v49 = vadd.f32 %v3016_v48, %v2873_v51  ;;  %v3098_v40 = vadd.f32 %v3017_v33, %v2874_v25 }
 0x152   : > { %v9686_v8 = vadd.f32 %v3019_v27, %v2876_v36  ;;  %v9688_v18 = vadd.f32 %v3020_v53, %v2877_v0  ;;  %v9690_v56 = vadd.f32 %v3021_v16, %v2878_v44  ;;  %v9696_v47 = vcombine.high %v9422_v37, %v9422_v37 }
 0x153   : > { %v9692_v11 = vadd.f32 %v3022_v4, %v2879_v58  ;;  %v3239_v19 = vmul.f32 %v9422_v37, %v9511_v50  ;;  %v2576_v52 = vmul.f32 %v9367_v59, %v9556_v6  ;;  %v2656_v54 = vadd.f32 %v2575_v2, %v2432_v31 }
 0x154   : > { %16650 = vst [vmem:[#allocation104_spill] sm:$0xff] %v9686_v8  ;;  %16651 = vst [vmem:[#allocation105_spill] sm:$0xff] %v9688_v18  ;;  %v3240_v7 = vmul.f32 %v9439_v41, %v9534_v15  ;;  %v3463_v44 = vmul.f32 %v9450_v17, %v9534_v15  ;;  %v3241_v58 = vmul.f32 %v9696_v47, %v9556_v6  ;;  %v520_v36 = vmax.f32 %v9185_v3, 0.0 }
 0x155   : > { %16652 = vst [vmem:[#allocation106_spill] sm:$0xff] %v9690_v56  ;;  %16653 = vst [vmem:[#allocation107_spill] sm:$0xff] %v9696_v47  ;;  %v3320_v51 = vadd.f32 %v3239_v19, %v3096_v32  ;;  %v9710_v0 = vmax.f32 %v9212_v22, 0.0  ;;  %v2799_v50 = vmul.f32 %v9395_v30, %v9538_v20  ;;  %v3464_v31 = vmul.f32 %v9453_v9, %v9556_v6  ;;  %v16654_v20 = vld [vmem:[#allocation5_spill] sm:$0xff] }
 0x156   : > { %v3321_v25 = vadd.f32 %v3240_v7, %v3097_v49  ;;  %v3687_v39 = vmul.f32 %v9505_v46, %v9556_v6  ;;  %v9718_v15 = vadd.f32 %v3241_v58, %v3098_v40  ;;  %v7436_v33 = vrot.slane %v520_v36, %v9182_v63  ;;  %v16656_v6 = vld [vmem:[#allocation3_spill] sm:$0xff]  ;;  %v16657_v40 = vld [vmem:[#allocation77_spill] sm:$0xff] }
 0x157   : > { %v3544_v48 = vadd.f32 %v3463_v44, %v3320_v51  ;;  %v3852_v3 = vrot.slane %v9710_v0, %v9182_v63  ;;  %v9723_v22 = vadd.f32 %v2576_v52, %v2433_v5  ;;  %v2880_v27 = vadd.f32 %v2799_v50, %v2656_v54  ;;  %v16658_v5 = vld [vmem:[#allocation6_spill] sm:$0xff] }
 0x158   : > { %v9725_v53 = vadd.f32 %v3464_v31, %v3321_v25  ;;  %v4076_v2 = vrot.slane %v9710_v0, %v16654_v20  ;;  %v7438_v4 = vcombine.high %v7436_v33, %v7436_v33  ;;  %v7445_v32 = vrot.slane %v7436_v33, %v16656_v6 }
 0x159   : > { %v9729_v16 = vadd.f32 %v3687_v39, %v3544_v48  ;;  %v3854_v49 = vcombine.high %v3852_v3, %v3852_v3  ;;  %v3023_v19 = vmul.f32 %v9404_v61, %v16657_v40  ;;  %v3861_v7 = vrot.slane %v3852_v3, %v16656_v6  ;;  %v16659_v39 = vld [vmem:[#allocation13_spill] sm:$0xff]  ;;  %v16660_v48 = vld [vmem:[#allocation2_spill] sm:$0xff]  ;;  %v16661_v40 = vld [vmem:[#allocation80_spill] sm:$0xff] }
 0x15a   : > { %v4078_v44 = vcombine.high %v4076_v2, %v4076_v2  ;;  %v4300_v52 = vrot.slane %v9710_v0, %v16658_v5  ;;  %v7452_v54 = vrot.slane %v7438_v4, %v16656_v6  ;;  %v7453_v58 = vcombine.high %v7445_v32, %v7445_v32  ;;  %v16663_v4 = vld [vmem:[#allocation50_spill] sm:$0xff] }
 0x15b   : > { %16655 = vst [vmem:[#allocation5_spill] sm:$0xff] %v9729_v16  ;;  %v3868_v51 = vrot.slane %v3854_v49, %v16656_v6  ;;  %v4085_v36 = vrot.slane %v4076_v2, %v16656_v6  ;;  %v9740_v50 = vadd.f32 %v3023_v19, %v2880_v27  ;;  %v3869_v25 = vcombine.high %v3861_v7, %v3861_v7 }
 0x15c   : > { %v4092_v31 = vrot.slane %v4078_v44, %v16656_v6  ;;  %v9745_v33 = vadd.f32 %v16660_v48, %v16659_v39  ;;  %v7454_v3 = vcombine.high %v7452_v54, %v7452_v54  ;;  %v4302_v20 = vcombine.high %v4300_v52, %v4300_v52  ;;  %v16666_v44 = vld [vmem:[#allocation7_spill] sm:$0xff] }
 0x15d   : > { %v9749_v5 = vcombine.high %v16661_v40, %v16661_v40  ;;  %v9753_v49 = vmul.f32 %v16663_v4, %v9196_v10  ;;  %v9756_v27 = vrot.slane %v7445_v32, %v16656_v6  ;;  %v3870_v2 = vcombine.high %v3868_v51, %v3868_v51 }
 0x15e   : > { %v9759_v19 = vrot.slane %v3861_v7, %v16656_v6  ;;  %v4524_v39 = vrot.slane %v9710_v0, %v16666_v44  ;;  %v9764_v56 = vrot.slane %v7452_v54, %v16656_v6  ;;  %v9767_v18 = vrot.slane %v7453_v58, %v16656_v6 }
 0x15f   : > { %16662 = vst [vmem:[#allocation77_spill] sm:$0xff] %v9749_v5  ;;  %16664 = vst [vmem:[#allocation6_spill] sm:$0xff] %v9756_v27  ;;  %v9770_v8 = vrot.slane %v3868_v51, %v16656_v6  ;;  %v4093_v10 = vcombine.high %v4085_v36, %v4085_v36  ;;  %v9773_v32 = vrot.slane %v3869_v25, %v16656_v6 }
 0x160   : > { %16665 = vst [vmem:[#allocation13_spill] sm:$0xff] %v9759_v19  ;;  %16667 = vst [vmem:[#allocation2_spill] sm:$0xff] %v9764_v56  ;;  %v4094_v27 = vcombine.high %v4092_v31, %v4092_v31  ;;  %v9776_v7 = vrot.slane %v4085_v36, %v16656_v6  ;;  %v4309_v26 = vrot.slane %v4300_v52, %v16656_v6 }
 0x161   : > { %16668 = vst [vmem:[#allocation7_spill] sm:$0xff] %v9767_v18  ;;  %16669 = vst [vmem:[#allocation108_spill] sm:$0xff] %v9770_v8  ;;  %v9780_v44 = vrot.slane %v7454_v3, %v16656_v6  ;;  %v4316_v54 = vrot.slane %v4302_v20, %v16656_v6  ;;  %v4526_v58 = vcombine.high %v4524_v39, %v4524_v39  ;;  %v16673_v18 = vld [vmem:[#allocation8_spill] sm:$0xff] }
 0x162   : > { %16670 = vst [vmem:[#allocation109_spill] sm:$0xff] %v9773_v32  ;;  %16671 = vst [vmem:[#allocation110_spill] sm:$0xff] %v9776_v7  ;;  %v4748_v51 = vrot.slane %v9710_v0, %v16673_v18  ;;  %v9786_v56 = vrot.slane %v3870_v2, %v16656_v6  ;;  %v9789_v25 = vrot.slane %v4092_v31, %v16656_v6 }
 0x163   : > { %16672 = vst [vmem:[#allocation111_spill] sm:$0xff] %v9780_v44  ;;  %v4533_v36 = vrot.slane %v4524_v39, %v16656_v6  ;;  %v4972_v52 = vrot.slane %v9710_v0, %v16676_v34  ;;  %v9796_v3 = vcombine.high %v9770_v8, %v9770_v8  ;;  %v9799_v20 = vrot.slane %v4093_v10, %v16656_v6  ;;  %v16679_v44 = vld [vmem:[#allocation10_spill] sm:$0xff] }
 0x164   : > { %16674 = vst [vmem:[#allocation8_spill] sm:$0xff] %v9786_v56  ;;  %16675 = vst [vmem:[#allocation112_spill] sm:$0xff] %v9789_v25  ;;  %v4540_v18 = vrot.slane %v4526_v58, %v16656_v6  ;;  %v5196_v2 = vrot.slane %v9710_v0, %v16679_v44  ;;  %v4317_v47 = vcombine.high %v4309_v26, %v4309_v26 }
 0x165   : > { %16677 = vst [vmem:[#allocation9_spill] sm:$0xff] %v9796_v3  ;;  %16678 = vst [vmem:[#allocation113_spill] sm:$0xff] %v9799_v20  ;;  %v4318_v31 = vcombine.high %v4316_v54, %v4316_v54  ;;  %v4750_v25 = vcombine.high %v4748_v51, %v4748_v51  ;;  %v4757_v39 = vrot.slane %v4748_v51, %v16656_v6 }
 0x166   : > { %v9807_v34 = vcombine.high %v9773_v32, %v9773_v32  ;;  %v9810_v8 = vrot.slane %v4094_v27, %v16656_v6  ;;  %v9813_v10 = vrot.slane %v4309_v26, %v16656_v6  ;;  %v9816_v58 = vrot.slane %v4316_v54, %v16656_v6 }
 0x167   : > { %v4541_v3 = vcombine.high %v4533_v36, %v4533_v36  ;;  %v4542_v44 = vcombine.high %v4540_v18, %v4540_v18  ;;  %v4764_v23 = vrot.slane %v4750_v25, %v16656_v6  ;;  %v4974_v63 = vcombine.high %v4972_v52, %v4972_v52 }
 0x168   : > { %16680 = vst [vmem:[#allocation10_spill] sm:$0xff] %v9807_v34  ;;  %16681 = vst [vmem:[#allocation114_spill] sm:$0xff] %v9810_v8  ;;  %v4765_v20 = vcombine.high %v4757_v39, %v4757_v39  ;;  %v4981_v51 = vrot.slane %v4972_v52, %v16656_v6  ;;  %v5198_v7 = vcombine.high %v5196_v2, %v5196_v2 }
 0x169   : > { %16682 = vst [vmem:[#allocation115_spill] sm:$0xff] %v9813_v10  ;;  %16683 = vst [vmem:[#allocation116_spill] sm:$0xff] %v9816_v58  ;;  %v5205_v34 = vrot.slane %v5196_v2, %v16656_v6  ;;  %v9822_v27 = vrot.slane %v4317_v47, %v16656_v6  ;;  %v9825_v26 = vrot.slane %v4318_v31, %v16656_v6  ;;  %v9831_v10 = vpop.f32.mrb[18].mxu1 }
 0x16a   : > { %v9828_v54 = vrot.slane %v4533_v36, %v16656_v6  ;;  %v4988_v58 = vrot.slane %v4974_v63, %v16656_v6  ;;  %16687 = vst [vmem:[#allocation120_spill] sm:$0xff] %v9831_v10  ;;  %v9834_v25 = vrot.slane %v4540_v18, %v16656_v6  ;;  %v4766_v52 = vcombine.high %v4764_v23, %v4764_v23  ;;  %v8829_v16 = vpop.f32.mrb[19].mxu1 }
 0x16b   : > { %16684 = vst [vmem:[#allocation117_spill] sm:$0xff] %v9822_v27  ;;  %16685 = vst [vmem:[#allocation118_spill] sm:$0xff] %v9825_v26  ;;  %v4989_v8 = vcombine.high %v4981_v51, %v4981_v51  ;;  %v5212_v2 = vrot.slane %v5198_v7, %v16656_v6  ;;  %v9838_v47 = vrot.slane %v4541_v3, %v16656_v6  ;;  %v16695_v3 = vld [vmem:[#allocation11_spill] sm:$0xff] }
 0x16c   : > { %16686 = vst [vmem:[#allocation119_spill] sm:$0xff] %v9828_v54  ;;  %16688 = vst [vmem:[#allocation121_spill] sm:$0xff] %v9834_v25  ;;  %v9841_v31 = vrot.slane %v4542_v44, %v16656_v6  ;;  %v9844_v36 = vrot.slane %v4757_v39, %v16656_v6  ;;  %v9847_v63 = vrot.slane %v4764_v23, %v16656_v6  ;;  %v803_v44 = vmax.f32 %v9745_v33, 0.0 }
 0x16d   : > { %16689 = vst [vmem:[#allocation122_spill] sm:$0xff] %v9838_v47  ;;  %v9850_v18 = vrot.slane %v4765_v20, %v16656_v6  ;;  %v4990_v25 = vcombine.high %v4988_v58, %v4988_v58  ;;  %v9853_v10 = vrot.slane %v4981_v51, %v16656_v6  ;;  %v5213_v16 = vcombine.high %v5205_v34, %v5205_v34 }
 0x16e   : > { %16690 = vst [vmem:[#allocation123_spill] sm:$0xff] %v9841_v31  ;;  %16691 = vst [vmem:[#allocation124_spill] sm:$0xff] %v9844_v36  ;;  %v5214_v7 = vcombine.high %v5212_v2, %v5212_v2  ;;  %v5420_v26 = vrot.slane %v9710_v0, %v16695_v3  ;;  %v2122_v39 = vmul.f32 %v9749_v5, %v9232_v29 }
 0x16f   : > { %16692 = vst [vmem:[#allocation125_spill] sm:$0xff] %v9847_v63  ;;  %16693 = vst [vmem:[#allocation126_spill] sm:$0xff] %v9850_v18  ;;  %v9861_v23 = vrot.slane %v4766_v52, %v16656_v6  ;;  %v9864_v20 = vrot.slane %v4988_v58, %v16656_v6  ;;  %v9867_v63 = vrot.slane %v4989_v8, %v16656_v6  ;;  %v16702_v8 = vld [vmem:[#allocation55_spill] sm:$0xff] }
 0x170   : > { %16694 = vst [vmem:[#allocation127_spill] sm:$0xff] %v9853_v10  ;;  %v9870_v51 = vrot.slane %v5205_v34, %v16656_v6  ;;  %v9873_v31 = vrot.slane %v5212_v2, %v16656_v6  ;;  %v5422_v0 = vcombine.high %v5420_v26, %v5420_v26  ;;  %v943_v33 = vcombine.high %v803_v44, %v803_v44 }
 0x171   : > { %16696 = vst [vmem:[#allocation11_spill] sm:$0xff] %v9861_v23  ;;  %16697 = vst [vmem:[#allocation128_spill] sm:$0xff] %v9864_v20  ;;  %v950_v3 = vrot.slane %v803_v44, %v16656_v6  ;;  %v9877_v29 = vrot.slane %v5213_v16, %v16656_v6  ;;  %v5429_v52 = vrot.slane %v5420_v26, %v16656_v6  ;;  %v16705_v44 = vld [vmem:[#allocation59_spill] sm:$0xff] }
 0x172   : > { %16698 = vst [vmem:[#allocation129_spill] sm:$0xff] %v9867_v63  ;;  %16699 = vst [vmem:[#allocation130_spill] sm:$0xff] %v9870_v51  ;;  %v2427_v58 = vadd.f32 %v9753_v49, %v2122_v39  ;;  %v2570_v20 = vmul.f32 %v16702_v8, %v9215_v24  ;;  %v9884_v34 = vrot.slane %v4990_v25, %v16656_v6  ;;  %v16706_v24 = vld [vmem:[#allocation65_spill] sm:$0xff]  ;;  %v16714_v51 = vld [vmem:[#allocation14_spill] sm:$0xff] }
 0x173   : > { %16700 = vst [vmem:[#allocation131_spill] sm:$0xff] %v9873_v31  ;;  %16701 = vst [vmem:[#allocation132_spill] sm:$0xff] %v9877_v29  ;;  %v9887_v2 = vrot.slane %v5214_v7, %v16656_v6  ;;  %v957_v31 = vrot.slane %v943_v33, %v16656_v6  ;;  %v2794_v23 = vmul.f32 %v16705_v44, %v9228_v28  ;;  %v16713_v29 = vld [vmem:[#allocation73_spill] sm:$0xff] }
 0x174   : > { %16703 = vst [vmem:[#allocation133_spill] sm:$0xff] %v9884_v34  ;;  %v9893_v16 = vrot.slane %v5422_v0, %v16656_v6  ;;  %v958_v26 = vcombine.high %v950_v3, %v950_v3  ;;  %v9896_v49 = vrot.slane %v950_v3, %v16656_v6  ;;  %v2651_v39 = vadd.f32 %v2570_v20, %v2427_v58 }
 0x175   : > { %16704 = vst [vmem:[#allocation134_spill] sm:$0xff] %v9887_v2  ;;  %v3018_v25 = vmul.f32 %v16706_v24, %v9245_v42  ;;  %v9902_v7 = vcombine.high %v9439_v41, %v9439_v41  ;;  %v9906_v33 = vcombine.high %v9450_v17, %v9450_v17  ;;  %v9910_v28 = vcombine.high %v9505_v46, %v9505_v46 }
 0x176   : > { %v5437_v0 = vcombine.high %v5429_v52, %v5429_v52  ;;  %v9913_v3 = vrot.slane %v5429_v52, %v16656_v6  ;;  %v959_v20 = vcombine.high %v957_v31, %v957_v31  ;;  %v9916_v58 = vrot.slane %v958_v26, %v16656_v6 }
 0x177   : > { %16707 = vst [vmem:[#allocation135_spill] sm:$0xff] %v9902_v7  ;;  %16708 = vst [vmem:[#allocation136_spill] sm:$0xff] %v9906_v33  ;;  %v9920_v42 = vcombine.high %v9896_v49, %v9896_v49  ;;  %v2354_v2 = vmul.f32 %v16713_v29, %v9896_v49  ;;  %v2875_v34 = vadd.f32 %v2794_v23, %v2651_v39 }
 0x178   : > { %16709 = vst [vmem:[#allocation137_spill] sm:$0xff] %v9910_v28  ;;  %16710 = vst [vmem:[#allocation138_spill] sm:$0xff] %v9913_v3  ;;  %v726_v63 = vadd.f32 %v16660_v48, %v16714_v51  ;;  %v5438_v10 = vcombine.high %v9893_v16, %v9893_v16  ;;  %v9930_v52 = vcombine.high %v9916_v58, %v9916_v58  ;;  %v16717_v48 = vld [vmem:[#allocation92_spill] sm:$0xff] }
 0x179   : > { %16711 = vst [vmem:[#allocation139_spill] sm:$0xff] %v9916_v58  ;;  %16712 = vst [vmem:[#allocation140_spill] sm:$0xff] %v9920_v42  ;;  %v2355_v26 = vmul.f32 %v16663_v4, %v9916_v58  ;;  %v2578_v3 = vmul.f32 %v9600_v14, %v9916_v58  ;;  %v9937_v18 = vrot.slane %v957_v31, %v16656_v6 }
 0x17a   : > { %16715 = vst [vmem:[#allocation14_spill] sm:$0xff] %v9930_v52  ;;  %v2131_v23 = vmul.f32 %v9749_v5, %v9896_v49  ;;  %v2435_v51 = vadd.f32 %v2354_v2, %v16717_v48  ;;  %v3099_v39 = vadd.f32 %v3018_v25, %v2875_v34  ;;  %v9944_v36 = vrot.slane %v9893_v16, %v16656_v6  ;;  %v16721_v25 = vld [vmem:[#allocation82_spill] sm:$0xff] }
 0x17b   : > { %16716 = vst [vmem:[#allocation141_spill] sm:$0xff] %v9937_v18  ;;  %v9947_v47 = vrot.slane %v5437_v0, %v16656_v6  ;;  %v9950_v4 = vrot.slane %v959_v20, %v16656_v6  ;;  %v3242_v31 = vmul.f32 %v9902_v7, %v9896_v49  ;;  %v2802_v5 = vmul.f32 %v9630_v1, %v9920_v42 }
 0x17c   : > { %16718 = vst [vmem:[#allocation92_spill] sm:$0xff] %v9944_v36  ;;  %v2436_v54 = vadd.f32 %v2355_v26, %v2131_v23  ;;  %v2659_v27 = vadd.f32 %v2578_v3, %v2435_v51  ;;  %v3465_v34 = vmul.f32 %v9906_v33, %v9896_v49  ;;  %v3026_v2 = vmul.f32 %v9658_v35, %v9930_v52  ;;  %v9969_v23 = vpop.f32.mrb[20].mxu1 }
 0x17d   : > { %16719 = vst [vmem:[#allocation142_spill] sm:$0xff] %v9947_v47  ;;  %16720 = vst [vmem:[#allocation143_spill] sm:$0xff] %v9950_v4  ;;  %v3323_v16 = vadd.f32 %v3242_v31, %v3099_v39  ;;  %v3466_v0 = vmul.f32 %v16721_v25, %v9916_v58  ;;  %v804_v20 = vmax.f32 %v726_v63, 0.0  ;;  %v3689_v3 = vmul.f32 %v9910_v28, %v9916_v58  ;;  %v16728_v28 = vld [vmem:[#allocation76_spill] sm:$0xff] }
 0x17e   : > { %v2883_v48 = vadd.f32 %v2802_v5, %v2659_v27  ;;  %v3546_v36 = vadd.f32 %v3465_v34, %v9718_v15  ;;  %v9967_v26 = vcombine.high %v9937_v18, %v9937_v18  ;;  %16723 = vst [vmem:[#allocation145_spill] sm:$0xff] %v9969_v23  ;;  %v2579_v51 = vmul.f32 %v16702_v8, %v9920_v42  ;;  %v8832_v5 = vpop.f32.mrb[21].mxu1 }
 0x17f   : > { %v9973_v39 = vadd.f32 %v3466_v0, %v3323_v16  ;;  %v992_v31 = vcombine.high %v804_v20, %v804_v20  ;;  %v999_v63 = vrot.slane %v804_v20, %v16656_v6  ;;  %v9982_v34 = vcombine.high %v9950_v4, %v9950_v4  ;;  %v9986_v33 = vpop.f32.mrb[22].mxu1 }
 0x180   : > { %16722 = vst [vmem:[#allocation144_spill] sm:$0xff] %v9967_v26  ;;  %v9976_v27 = vadd.f32 %v3026_v2, %v2883_v48  ;;  %v9978_v15 = vadd.f32 %v3689_v3, %v3546_v36  ;;  %v2136_v25 = vmul.f32 %v16728_v28, %v9950_v4  ;;  %16729 = vst [vmem:[#allocation76_spill] sm:$0xff] %v9986_v33  ;;  %v8833_v36 = vpop.f32.mrb[23].mxu1  ;;  %v16730_v3 = vld [vmem:[#allocation91_spill] sm:$0xff] }
 0x181   : > { %16724 = vst [vmem:[#allocation146_spill] sm:$0xff] %v9973_v39  ;;  %16727 = vst [vmem:[#allocation149_spill] sm:$0xff] %v9982_v34  ;;  %v2803_v16 = vmul.f32 %v16705_v44, %v9930_v52  ;;  %v1006_v0 = vrot.slane %v992_v31, %v16656_v6  ;;  %v1007_v20 = vcombine.high %v999_v63, %v999_v63 }
 0x182   : > { %16725 = vst [vmem:[#allocation147_spill] sm:$0xff] %v9976_v27  ;;  %16726 = vst [vmem:[#allocation148_spill] sm:$0xff] %v9978_v15  ;;  %v9992_v2 = vrot.slane %v999_v63, %v16656_v6  ;;  %v2660_v48 = vadd.f32 %v2579_v51, %v2436_v54  ;;  %v2359_v5 = vmul.f32 %v16730_v3, %v9950_v4  ;;  %v16732_v54 = vld [vmem:[#allocation90_spill] sm:$0xff] }
 0x183   : > { %v2360_v15 = vmul.f32 %v9333_v21, %v9967_v26  ;;  %v2577_v39 = vmul.f32 %v9363_v12, %v9896_v49  ;;  %v1008_v27 = vcombine.high %v1006_v0, %v1006_v0  ;;  %v10001_v52 = vrot.slane %v1006_v0, %v16656_v6 }
 0x184   : > { %v10004_v31 = vrot.slane %v1007_v20, %v16656_v6  ;;  %v10008_v63 = vcombine.high %v9992_v2, %v9992_v2  ;;  %v2135_v51 = vmul.f32 %v16732_v54, %v9937_v18  ;;  %v2584_v7 = vmul.f32 %v9367_v59, %v9982_v34 }
 0x185   : > { %16731 = vst [vmem:[#allocation150_spill] sm:$0xff] %v10001_v52  ;;  %v2441_v36 = vadd.f32 %v2360_v15, %v2136_v25  ;;  %v2658_v35 = vadd.f32 %v2577_v39, %v9660_v55  ;;  %v10016_v44 = vrot.slane %v5438_v10, %v16656_v6  ;;  %v3027_v0 = vmul.f32 %v16706_v24, %v9937_v18  ;;  %v10033_v39 = vpop.f32.mrb[24].mxu1  ;;  %v16737_v24 = vld [vmem:[#allocation81_spill] sm:$0xff] }
 0x186   : > { %v10021_v20 = vrot.slane %v1008_v27, %v16656_v6  ;;  %v10025_v1 = vcombine.high %v10004_v31, %v10004_v31  ;;  %v2884_v8 = vadd.f32 %v2803_v16, %v2660_v48  ;;  %v10029_v25 = vcombine.high %v10001_v52, %v10001_v52  ;;  %16736 = vst [vmem:[#allocation154_spill] sm:$0xff] %v10033_v39  ;;  %v8836_v48 = vpop.f32.mrb[25].mxu1 }
 0x187   : > { %16733 = vst [vmem:[#allocation151_spill] sm:$0xff] %v10016_v44  ;;  %v2137_v55 = vmul.f32 %v16728_v28, %v10008_v63  ;;  %v2440_v10 = vadd.f32 %v2359_v5, %v2135_v51  ;;  %v2362_v44 = vmul.f32 %v9347_v43, %v10001_v52  ;;  %v2139_v47 = vmul.f32 %v16737_v24, %v10001_v52  ;;  %v10049_v33 = vpop.f32.mrb[26].mxu1 }
 0x188   : > { %16734 = vst [vmem:[#allocation152_spill] sm:$0xff] %v10021_v20  ;;  %16735 = vst [vmem:[#allocation153_spill] sm:$0xff] %v10029_v25  ;;  %v2138_v15 = vmul.f32 %v16661_v40, %v10025_v1  ;;  %v2361_v27 = vmul.f32 %v9333_v21, %v10025_v1  ;;  %v2363_v16 = vmul.f32 %v16713_v29, %v10021_v20  ;;  %v8837_v29 = vpop.f32.mrb[27].mxu1 }
 0x189   : > { %v2583_v5 = vmul.f32 %v9608_v57, %v9967_v26  ;;  %v2665_v51 = vadd.f32 %v2584_v7, %v2441_v36  ;;  %v2800_v39 = vmul.f32 %v9395_v30, %v9896_v49  ;;  %16738 = vst [vmem:[#allocation155_spill] sm:$0xff] %v10049_v33  ;;  %v2585_v43 = vmul.f32 %v9367_v59, %v10001_v52 }
 0x18a   : > { %v2442_v23 = vadd.f32 %v2361_v27, %v2137_v55  ;;  %v2443_v40 = vadd.f32 %v2362_v44, %v2138_v15  ;;  %v2801_v48 = vmul.f32 %v9379_v45, %v9916_v58  ;;  %v2444_v21 = vadd.f32 %v2363_v16, %v2139_v47 }
 0x18b   : > { %v2586_v24 = vmul.f32 %v9363_v12, %v10021_v20  ;;  %v2808_v7 = vmul.f32 %v9395_v30, %v9992_v2  ;;  %v2881_v36 = vadd.f32 %v2800_v39, %v9723_v22  ;;  %v10060_v57 = vadd.f32 %v3027_v0, %v2884_v8  ;;  %v16742_v39 = vld [vmem:[#allocation67_spill] sm:$0xff] }
 0x18c   : > { %v2587_v44 = vmul.f32 %v9600_v14, %v10029_v25  ;;  %v2664_v55 = vadd.f32 %v2583_v5, %v2440_v10  ;;  %v2882_v15 = vadd.f32 %v2801_v48, %v2658_v35  ;;  %v2666_v27 = vadd.f32 %v2585_v43, %v2442_v23  ;;  %v16758_v14 = vld [vmem:[#allocation119_spill] sm:$0xff] }
 0x18d   : > { %16739 = vst [vmem:[#allocation156_spill] sm:$0xff] %v10060_v57  ;;  %v2667_v33 = vadd.f32 %v2586_v24, %v2443_v40  ;;  %v2889_v59 = vadd.f32 %v2808_v7, %v2665_v51  ;;  %v3024_v47 = vmul.f32 %v9404_v61, %v9916_v58  ;;  %v10068_v29 = vcombine.high %v10021_v20, %v10021_v20 }
 0x18e   : > { %v2807_v22 = vmul.f32 %v9638_v38, %v9982_v34  ;;  %v2809_v8 = vmul.f32 %v9395_v30, %v10021_v20  ;;  %v3025_v0 = vmul.f32 %v9407_v13, %v9920_v42  ;;  %v10076_v35 = vadd.f32 %v2587_v44, %v2444_v21 }
 0x18f   : > { %16740 = vst [vmem:[#allocation157_spill] sm:$0xff] %v10068_v29  ;;  %v2810_v43 = vmul.f32 %v9379_v45, %v10029_v25  ;;  %v3032_v40 = vmul.f32 %v9404_v61, %v10004_v31  ;;  %v3105_v24 = vadd.f32 %v3024_v47, %v2881_v36  ;;  %v10086_v16 = vcombine.high %v16742_v39, %v16742_v39 }
 0x190   : > { %16741 = vst [vmem:[#allocation158_spill] sm:$0xff] %v10076_v35  ;;  %v10082_v23 = vadd.f32 %v2807_v22, %v2664_v55  ;;  %v3106_v10 = vadd.f32 %v3025_v0, %v2882_v15  ;;  %v3247_v5 = vmul.f32 %v9422_v37, %v9950_v4  ;;  %v10090_v51 = vadd.f32 %v2809_v8, %v2666_v27  ;;  %v16744_v15 = vld [vmem:[#allocation71_spill] sm:$0xff] }
 0x191   : > { %16743 = vst [vmem:[#allocation159_spill] sm:$0xff] %v10086_v16  ;;  %v10092_v21 = vadd.f32 %v2810_v43, %v2667_v33  ;;  %v10094_v48 = vadd.f32 %v3032_v40, %v2889_v59  ;;  %v3248_v7 = vmul.f32 %v9422_v37, %v10008_v63  ;;  %v3246_v36 = vmul.f32 %v10086_v16, %v9937_v18  ;;  %v16746_v43 = vld [vmem:[#allocation84_spill] sm:$0xff]  ;;  %v16757_v18 = vld [vmem:[#allocation117_spill] sm:$0xff] }
 0x192   : > { %v3249_v44 = vmul.f32 %v9439_v41, %v10025_v1  ;;  %v3328_v55 = vadd.f32 %v3247_v5, %v9740_v50  ;;  %v10105_v47 = vcombine.high %v16744_v15, %v16744_v15  ;;  %v3471_v59 = vmul.f32 %v9450_v17, %v9967_v26 }
 0x193   : > { %v3329_v27 = vadd.f32 %v3248_v7, %v3105_v24  ;;  %v3472_v33 = vmul.f32 %v9450_v17, %v10025_v1  ;;  %v3473_v22 = vmul.f32 %v9453_v9, %v10001_v52  ;;  %v3327_v8 = vadd.f32 %v3246_v36, %v9692_v11  ;;  %v16748_v7 = vld [vmem:[#allocation75_spill] sm:$0xff] }
 0x194   : > { %16745 = vst [vmem:[#allocation160_spill] sm:$0xff] %v10105_v47  ;;  %v3330_v0 = vadd.f32 %v3249_v44, %v3106_v10  ;;  %v3470_v50 = vmul.f32 %v10105_v47, %v9950_v4  ;;  %v10118_v40 = vcombine.high %v16746_v43, %v16746_v43  ;;  %v3552_v24 = vadd.f32 %v3471_v59, %v3328_v55 }
 0x195   : > { %v3553_v5 = vadd.f32 %v3472_v33, %v3329_v27  ;;  %v3688_v35 = vmul.f32 %v16748_v7, %v9896_v49  ;;  %v3695_v15 = vmul.f32 %v9505_v46, %v9982_v34  ;;  %v10126_v57 = vmul.f32 %v9664_v62, %v9982_v34 }
 0x196   : > { %16747 = vst [vmem:[#allocation161_spill] sm:$0xff] %v10118_v40  ;;  %v3551_v11 = vadd.f32 %v3470_v50, %v3327_v8  ;;  %v3554_v10 = vadd.f32 %v3473_v22, %v3330_v0  ;;  %v3694_v36 = vmul.f32 %v10118_v40, %v9967_v26  ;;  %v3696_v44 = vmul.f32 %v9505_v46, %v10001_v52 }
 0x197   : > { %16749 = vst [vmem:[#allocation162_spill] sm:$0xff] %v10126_v57  ;;  %v3769_v55 = vadd.f32 %v3688_v35, %v9725_v53  ;;  %v3776_v27 = vadd.f32 %v3695_v15, %v3552_v24  ;;  %v10135_v59 = vcombine.high %v9786_v56, %v9786_v56  ;;  %v3697_v33 = vmul.f32 %v16748_v7, %v10021_v20  ;;  %v16751_v24 = vld [vmem:[#allocation5_spill] sm:$0xff] }
 0x198   : > { %v3775_v43 = vadd.f32 %v3694_v36, %v3551_v11  ;;  %v3911_v22 = vmul.f32 %v9759_v19, %v9896_v49  ;;  %v3912_v8 = vmul.f32 %v9773_v32, %v9916_v58  ;;  %v3031_v0 = vmul.f32 %v9668_v60, %v9992_v2  ;;  %v16752_v36 = vld [vmem:[#allocation114_spill] sm:$0xff] }
 0x199   : > { %16750 = vst [vmem:[#allocation163_spill] sm:$0xff] %v10135_v59  ;;  %v3777_v50 = vadd.f32 %v3696_v44, %v3553_v5  ;;  %v3918_v53 = vmul.f32 %v10135_v59, %v9982_v34  ;;  %v3919_v35 = vmul.f32 %v9759_v19, %v9992_v2  ;;  %v3778_v15 = vadd.f32 %v3697_v33, %v3554_v10  ;;  %v16754_v5 = vld [vmem:[#allocation110_spill] sm:$0xff]  ;;  %v16755_v10 = vld [vmem:[#allocation113_spill] sm:$0xff] }
 0x19a   : > { %v3992_v56 = vadd.f32 %v3911_v22, %v16751_v24  ;;  %v3993_v11 = vadd.f32 %v3912_v8, %v3769_v55  ;;  %v10152_v49 = vcombine.high %v16752_v36, %v16752_v36  ;;  %v3920_v57 = vmul.f32 %v9759_v19, %v10021_v20 }
 0x19b   : > { %v3999_v39 = vadd.f32 %v3918_v53, %v3775_v43  ;;  %v4000_v26 = vadd.f32 %v3919_v35, %v3776_v27  ;;  %v4135_v44 = vmul.f32 %v16754_v5, %v9916_v58  ;;  %v3033_v34 = vmul.f32 %v9404_v61, %v10029_v25  ;;  %v16756_v53 = vld [vmem:[#allocation115_spill] sm:$0xff] }
 0x19c   : > { %16753 = vst [vmem:[#allocation5_spill] sm:$0xff] %v10152_v49  ;;  %v4136_v33 = vmul.f32 %v16755_v10, %v9920_v42  ;;  %v4142_v55 = vmul.f32 %v10152_v49, %v9992_v2  ;;  %v4143_v22 = vmul.f32 %v16754_v5, %v10004_v31  ;;  %v3921_v8 = vmul.f32 %v9773_v32, %v10029_v25  ;;  %v16790_v32 = vld [vmem:[#allocation100_spill] sm:$0xff] }
 0x19d   : > { %v4001_v43 = vadd.f32 %v3920_v57, %v3777_v50  ;;  %v4216_v27 = vadd.f32 %v4135_v44, %v3992_v56  ;;  %v4359_v35 = vmul.f32 %v16756_v53, %v10008_v63  ;;  %v4360_v42 = vmul.f32 %v16757_v18, %v10025_v1  ;;  %v10180_v56 = vpop.f32.mrb[28].mxu1  ;;  %v16760_v50 = vld [vmem:[#allocation122_spill] sm:$0xff]  ;;  %v16804_v18 = vld [vmem:[#allocation49_spill] sm:$0xff] }
 0x19e   : > { %v4217_v24 = vadd.f32 %v4136_v33, %v3993_v11  ;;  %v10170_v36 = vadd.f32 %v4142_v55, %v3999_v39  ;;  %v10172_v4 = vadd.f32 %v4143_v22, %v4000_v26  ;;  %v3034_v2 = vmul.f32 %v9407_v13, %v10068_v29  ;;  %16759 = vst [vmem:[#allocation164_spill] sm:$0xff] %v10180_v56  ;;  %v8840_v44 = vpop.f32.mrb[29].mxu1  ;;  %v16762_v55 = vld [vmem:[#allocation124_spill] sm:$0xff] }
 0x19f   : > { %v4002_v31 = vadd.f32 %v3921_v8, %v3778_v15  ;;  %v4440_v58 = vadd.f32 %v4359_v35, %v4216_v27  ;;  %v4583_v57 = vmul.f32 %v16758_v14, %v10025_v1  ;;  %v10183_v63 = vadd.f32 %v3031_v0, %v10082_v23  ;;  %v10204_v8 = vld [vmem:[%s15294_s5] ss:$0 sm:$0xff] }
 0x1a0   : > { %v4144_v26 = vmul.f32 %v16754_v5, %v10029_v25  ;;  %v4441_v39 = vadd.f32 %v4360_v42, %v4217_v24  ;;  %v4584_v11 = vmul.f32 %v16760_v50, %v10001_v52  ;;  %v10190_v33 = vadd.f32 %v3033_v34, %v10090_v51  ;;  %16764 = vst [vmem:[#allocation167_spill] sm:$0xff] %v10204_v8  ;;  %v16765_v34 = vld [vmem:[#allocation18_spill] sm:$0xff] }
 0x1a1   : > { %v4145_v15 = vmul.f32 %v16755_v10, %v10068_v29  ;;  %v4664_v1 = vadd.f32 %v4583_v57, %v4440_v58  ;;  %v4807_v22 = vmul.f32 %v16762_v55, %v10001_v52  ;;  %v10197_v23 = vadd.f32 %v3034_v2, %v10092_v21  ;;  %v16767_v58 = vld [vmem:[#allocation126_spill] sm:$0xff]  ;;  %v16768_v21 = vld [vmem:[#allocation127_spill] sm:$0xff]  ;;  %v16784_v10 = vld [vmem:[#allocation133_spill] sm:$0xff] }
 0x1a2   : > { %16761 = vst [vmem:[#allocation165_spill] sm:$0xff] %v10190_v33  ;;  %v10199_v0 = vadd.f32 %v4144_v26, %v4001_v43  ;;  %v4665_v42 = vadd.f32 %v4584_v11, %v4441_v39  ;;  %v731_v51 = vadd.f32 %v10204_v8, %v16765_v34  ;;  %v4808_v35 = vmul.f32 %v16767_v58, %v10021_v20  ;;  %v16769_v43 = vld [vmem:[#allocation129_spill] sm:$0xff]  ;;  %v16770_v39 = vld [vmem:[#allocation51_spill] sm:$0xff]  ;;  %v16771_v44 = vld [vmem:[#allocation78_spill] sm:$0xff] }
 0x1a3   : > { %v10208_v27 = vadd.f32 %v4145_v15, %v4002_v31  ;;  %v4888_v24 = vadd.f32 %v4807_v22, %v4664_v1  ;;  %v5031_v2 = vmul.f32 %v16768_v21, %v10021_v20  ;;  %v5032_v57 = vmul.f32 %v16769_v43, %v10029_v25  ;;  %v16772_v15 = vld [vmem:[#allocation130_spill] sm:$0xff]  ;;  %v16775_v43 = vld [vmem:[#allocation123_spill] sm:$0xff]  ;;  %v16778_v58 = vld [vmem:[#allocation4_spill] sm:$0xff] }
 0x1a4   : > { %16763 = vst [vmem:[#allocation166_spill] sm:$0xff] %v10199_v0  ;;  %v805_v26 = vmax.f32 %v731_v51, 0.0  ;;  %v734_v11 = vadd.f32 %v10204_v8, %v16770_v39  ;;  %v739_v29 = vadd.f32 %v10204_v8, %v16771_v44  ;;  %v4889_v34 = vadd.f32 %v4808_v35, %v4665_v42  ;;  %v16773_v52 = vld [vmem:[#allocation118_spill] sm:$0xff]  ;;  %v16777_v39 = vld [vmem:[#allocation12_spill] sm:$0xff]  ;;  %v16780_v42 = vld [vmem:[#allocation11_spill] sm:$0xff] }
 0x1a5   : > { %16766 = vst [vmem:[#allocation18_spill] sm:$0xff] %v10208_v27  ;;  %v5112_v31 = vadd.f32 %v5031_v2, %v4888_v24  ;;  %v5255_v27 = vmul.f32 %v16772_v15, %v10029_v25  ;;  %v10224_v1 = vcombine.high %v16773_v52, %v16773_v52  ;;  %v10229_v51 = vcombine.high %v16775_v43, %v16775_v43  ;;  %v16782_v44 = vld [vmem:[#allocation96_spill] sm:$0xff] }
 0x1a6   : > { %v1041_v22 = vcombine.high %v805_v26, %v805_v26  ;;  %v1048_v20 = vrot.slane %v805_v26, %v16656_v6  ;;  %v10233_v50 = vrot.slane %v16778_v58, %v16777_v39  ;;  %v10237_v35 = vcombine.high %v16780_v42, %v16780_v42 }
 0x1a7   : > { %16774 = vst [vmem:[#allocation51_spill] sm:$0xff] %v10224_v1  ;;  %16776 = vst [vmem:[#allocation78_spill] sm:$0xff] %v10229_v51  ;;  %v806_v24 = vmax.f32 %v734_v11, 0.0  ;;  %v10239_v2 = vmax.f32 %v739_v29, 0.0  ;;  %v742_v52 = vadd.f32 %v10204_v8, %v16782_v44  ;;  %v10249_v58 = vcombine.high %v16784_v10, %v16784_v10  ;;  %v16788_v11 = vld [vmem:[#allocation134_spill] sm:$0xff] }
 0x1a8   : > { %16779 = vst [vmem:[#allocation12_spill] sm:$0xff] %v10233_v50  ;;  %16781 = vst [vmem:[#allocation4_spill] sm:$0xff] %v10237_v35  ;;  %v1055_v26 = vrot.slane %v1041_v22, %v16656_v6  ;;  %v1056_v25 = vcombine.high %v1048_v20, %v1048_v20  ;;  %v10245_v43 = vrot.slane %v1048_v20, %v16656_v6 }
 0x1a9   : > { %16785 = vst [vmem:[#allocation168_spill] sm:$0xff] %v10249_v58  ;;  %v10251_v39 = vadd.f32 %v5032_v57, %v4889_v34  ;;  %v10253_v42 = vadd.f32 %v5255_v27, %v5112_v31  ;;  %v10257_v29 = vcombine.high %v16788_v11, %v16788_v11  ;;  %v10261_v44 = vadd.f32 %v10204_v8, %v16790_v32 }
 0x1aa   : > { %16783 = vst [vmem:[#allocation96_spill] sm:$0xff] %v10245_v43  ;;  %v1057_v22 = vcombine.high %v1055_v26, %v1055_v26  ;;  %v10264_v20 = vrot.slane %v1056_v25, %v16656_v6  ;;  %v10268_v10 = vcombine.high %v10245_v43, %v10245_v43  ;;  %v10272_v27 = vrot.slane %v10233_v50, %v16656_v6 }
 0x1ab   : > { %16786 = vst [vmem:[#allocation169_spill] sm:$0xff] %v10251_v39  ;;  %16787 = vst [vmem:[#allocation170_spill] sm:$0xff] %v10253_v42  ;;  %v1090_v57 = vcombine.high %v806_v24, %v806_v24  ;;  %v10275_v34 = vrot.slane %v806_v24, %v16656_v6  ;;  %v10279_v31 = vmax.f32 %v742_v52, 0.0  ;;  %v10282_v25 = vrot.slane %v1055_v26, %v16656_v6  ;;  %v16798_v52 = vld [vmem:[#allocation89_spill] sm:$0xff]  ;;  %v16799_v26 = vld [vmem:[#allocation88_spill] sm:$0xff] }
 0x1ac   : > { %16789 = vst [vmem:[#allocation171_spill] sm:$0xff] %v10257_v29  ;;  %16791 = vst [vmem:[#allocation100_spill] sm:$0xff] %v10261_v44  ;;  %v10286_v42 = vcombine.high %v10264_v20, %v10264_v20  ;;  %v2144_v50 = vmul.f32 %v16732_v54, %v10264_v20  ;;  %v10292_v39 = vrot.slane %v10239_v2, %v16656_v6  ;;  %v16800_v54 = vld [vmem:[#allocation41_spill] sm:$0xff]  ;;  %v16801_v44 = vld [vmem:[#allocation95_spill] sm:$0xff] }
 0x1ad   : > { %16792 = vst [vmem:[#allocation172_spill] sm:$0xff] %v10264_v20  ;;  %16793 = vst [vmem:[#allocation173_spill] sm:$0xff] %v10268_v10  ;;  %v10295_v24 = vrot.slane %v1057_v22, %v16656_v6  ;;  %v2143_v32 = vmul.f32 %v16798_v52, %v10245_v43  ;;  %v2367_v11 = vmul.f32 %v16799_v26, %v10264_v20  ;;  %v16803_v26 = vld [vmem:[#allocation94_spill] sm:$0xff] }
 0x1ae   : > { %16794 = vst [vmem:[#allocation174_spill] sm:$0xff] %v10272_v27  ;;  %16795 = vst [vmem:[#allocation175_spill] sm:$0xff] %v10279_v31  ;;  %v2368_v56 = vmul.f32 %v16730_v3, %v10268_v10  ;;  %v2145_v8 = vmul.f32 %v16728_v28, %v10268_v10  ;;  %v2369_v15 = vmul.f32 %v16800_v54, %v10286_v42 }
 0x1af   : > { %16796 = vst [vmem:[#allocation176_spill] sm:$0xff] %v10282_v25  ;;  %16797 = vst [vmem:[#allocation177_spill] sm:$0xff] %v10286_v42  ;;  %v2592_v31 = vmul.f32 %v16801_v44, %v10286_v42  ;;  %v10311_v22 = vrot.slane %v10272_v27, %v16656_v6  ;;  %v2448_v43 = vadd.f32 %v2367_v11, %v2143_v32  ;;  %v16808_v32 = vld [vmem:[#allocation98_spill] sm:$0xff] }
 0x1b0   : > { %v2449_v52 = vadd.f32 %v2368_v56, %v2144_v50  ;;  %v2591_v0 = vmul.f32 %v16803_v26, %v10268_v10  ;;  %v10316_v3 = vrot.slane %v1090_v57, %v16656_v6  ;;  %v2450_v33 = vadd.f32 %v2369_v15, %v2145_v8 }
 0x1b1   : > { %16802 = vst [vmem:[#allocation178_spill] sm:$0xff] %v10311_v22  ;;  %v2593_v7 = vmul.f32 %v16804_v18, %v10282_v25  ;;  %v1105_v54 = vcombine.high %v10275_v34, %v10275_v34  ;;  %v10324_v44 = vrot.slane %v10275_v34, %v16656_v6  ;;  %v10328_v56 = vcombine.high %v10282_v25, %v10282_v25 }
 0x1b2   : > { %v10332_v50 = vcombine.high %v10295_v24, %v10295_v24  ;;  %v2672_v11 = vadd.f32 %v2591_v0, %v2448_v43  ;;  %v3255_v8 = vmul.f32 %v10086_v16, %v10264_v20  ;;  %v2673_v15 = vadd.f32 %v2592_v31, %v2449_v52 }
 0x1b3   : > { %16805 = vst [vmem:[#allocation179_spill] sm:$0xff] %v10324_v44  ;;  %16806 = vst [vmem:[#allocation180_spill] sm:$0xff] %v10328_v56  ;;  %v2674_v57 = vadd.f32 %v2593_v7, %v2450_v33  ;;  %v2815_v26 = vmul.f32 %v16808_v32, %v10286_v42  ;;  %v3256_v34 = vmul.f32 %v9422_v37, %v10268_v10 }
 0x1b4   : > { %16807 = vst [vmem:[#allocation181_spill] sm:$0xff] %v10332_v50  ;;  %v2816_v27 = vmul.f32 %v9638_v38, %v10282_v25  ;;  %v2817_v22 = vmul.f32 %v9395_v30, %v10295_v24  ;;  %v3336_v18 = vadd.f32 %v3255_v8, %v10183_v63  ;;  %v3479_v0 = vmul.f32 %v10105_v47, %v10268_v10 }
 0x1b5   : > { %v3039_v7 = vmul.f32 %v9664_v62, %v10282_v25  ;;  %v3040_v33 = vmul.f32 %v9668_v60, %v10295_v24  ;;  %v3337_v43 = vadd.f32 %v3256_v34, %v10094_v48  ;;  %v3480_v31 = vmul.f32 %v9450_v17, %v10286_v42 }
 0x1b6   : > { %v2896_v52 = vadd.f32 %v2815_v26, %v2672_v11  ;;  %v3041_v32 = vmul.f32 %v9404_v61, %v10328_v56  ;;  %v3560_v16 = vadd.f32 %v3479_v0, %v3336_v18  ;;  %v3703_v63 = vmul.f32 %v10118_v40, %v10286_v42 }
 0x1b7   : > { %v2897_v8 = vadd.f32 %v2816_v27, %v2673_v15  ;;  %v2898_v47 = vadd.f32 %v2817_v22, %v2674_v57  ;;  %v3561_v38 = vadd.f32 %v3480_v31, %v3337_v43  ;;  %v3704_v62 = vmul.f32 %v9505_v46, %v10282_v25 }
 0x1b8   : > { %v3784_v60 = vadd.f32 %v3703_v63, %v3560_v16  ;;  %v3927_v48 = vmul.f32 %v10135_v59, %v10282_v25  ;;  %v4366_v26 = vmul.f32 %v10224_v1, %v10264_v20  ;;  %v4367_v11 = vmul.f32 %v16756_v53, %v10268_v10  ;;  %v10372_v16 = vpop.f32.mrb[30].mxu1 }
 0x1b9   : > { %v3785_v18 = vadd.f32 %v3704_v62, %v3561_v38  ;;  %v3928_v34 = vmul.f32 %v9759_v19, %v10295_v24  ;;  %v4151_v27 = vmul.f32 %v10152_v49, %v10295_v24  ;;  %v4590_v22 = vmul.f32 %v10229_v51, %v10268_v10  ;;  %16809 = vst [vmem:[#allocation182_spill] sm:$0xff] %v10372_v16  ;;  %v8841_v62 = vpop.f32.mrb[31].mxu1 }
 0x1ba   : > { %v4008_v15 = vadd.f32 %v3927_v48, %v3784_v60  ;;  %v4447_v57 = vadd.f32 %v4366_v26, %v10170_v36  ;;  %v4448_v0 = vadd.f32 %v4367_v11, %v10172_v4  ;;  %v4591_v43 = vmul.f32 %v16758_v14, %v10286_v42 }
 0x1bb   : > { %v10378_v38 = vadd.f32 %v3039_v7, %v2896_v52  ;;  %v10380_v31 = vadd.f32 %v3040_v33, %v2897_v8  ;;  %v4009_v63 = vadd.f32 %v3928_v34, %v3785_v18  ;;  %v4814_v20 = vmul.f32 %v10237_v35, %v10286_v42  ;;  %v8951_v8 = vld [vmem:[%s15295_s6] sm:$0xff]  }
 0x1bc   : > { %v10384_v10 = vadd.f32 %v4151_v27, %v4008_v15  ;;  %v4671_v51 = vadd.f32 %v4590_v22, %v4447_v57  ;;  %v4672_v60 = vadd.f32 %v4591_v43, %v4448_v0  ;;  %v4815_v36 = vmul.f32 %v16762_v55, %v10282_v25  ;;  %v16817_v27 = vld [vmem:[#allocation80_spill] sm:$0xff]  ;;  %8854 = vmatprep.subr.bf16.mxu0 %v8951_v8 }
 0x1bd   : > { %16810 = vst [vmem:[#allocation183_spill] sm:$0xff] %v10378_v38  ;;  %16811 = vst [vmem:[#allocation184_spill] sm:$0xff] %v10380_v31  ;;  %v4152_v4 = vmul.f32 %v16754_v5, %v10328_v56  ;;  %v1106_v7 = vcombine.high %v10316_v3, %v10316_v3  ;;  %v10393_v33 = vrot.slane %v1105_v54, %v16656_v6  ;;  %8855 = vmatpush3.bf16.msra.mxu0 %v8951_v8  ;;  %v16828_v31 = vld [vmem:[#allocation117_spill] sm:$0xff] }
 0x1be   : > { %16812 = vst [vmem:[#allocation185_spill] sm:$0xff] %v10384_v10  ;;  %v10397_v52 = vcombine.high %v10324_v44, %v10324_v44  ;;  %v4895_v48 = vadd.f32 %v4814_v20, %v4671_v51  ;;  %v4896_v26 = vadd.f32 %v4815_v36, %v4672_v60  ;;  %v5038_v11 = vmul.f32 %v10249_v58, %v10282_v25  ;;  %v16818_v51 = vld [vmem:[#allocation45_spill] sm:$0xff] }
 0x1bf   : > { %16813 = vst [vmem:[#allocation186_spill] sm:$0xff] %v10393_v33  ;;  %v5039_v18 = vmul.f32 %v16768_v21, %v10295_v24  ;;  %v10408_v54 = vrot.slane %v10316_v3, %v16656_v6  ;;  %v10412_v34 = vcombine.high %v10393_v33, %v10393_v33  ;;  %v2147_v22 = vmul.f32 %v16817_v27, %v10324_v44 }
 0x1c0   : > { %16814 = vst [vmem:[#allocation187_spill] sm:$0xff] %v10397_v52  ;;  %v2371_v20 = vmul.f32 %v16818_v51, %v10393_v33  ;;  %v5119_v15 = vadd.f32 %v5038_v11, %v4895_v48  ;;  %v5262_v0 = vmul.f32 %v10257_v29, %v10295_v24  ;;  %v3258_v3 = vmul.f32 %v9439_v41, %v10324_v44 }
 0x1c1   : > { %16815 = vst [vmem:[#allocation188_spill] sm:$0xff] %v10408_v54  ;;  %16816 = vst [vmem:[#allocation189_spill] sm:$0xff] %v10412_v34  ;;  %v10418_v57 = vadd.f32 %v5039_v18, %v4896_v26  ;;  %v10424_v43 = vadd.f32 %v3041_v32, %v2898_v47  ;;  %v10427_v62 = vrot.slane %v1106_v7, %v16656_v6  ;;  %v10440_v47 = vpop.f32.mrb[32].mxu1 }
 0x1c2   : > { %v2452_v60 = vadd.f32 %v2371_v20, %v2147_v22  ;;  %v2595_v36 = vmul.f32 %v9363_v12, %v10397_v52  ;;  %v10431_v10 = vadd.f32 %v4152_v4, %v4009_v63  ;;  %v10433_v48 = vadd.f32 %v5262_v0, %v5119_v15  ;;  %16823 = vst [vmem:[#allocation193_spill] sm:$0xff] %v10440_v47  ;;  %v8844_v11 = vpop.f32.mrb[33].mxu1  ;;  %v8952_v20 = vld [vmem:[%s15295_s6 + $0x8] sm:$0xff]  }
 0x1c3   : > { %16819 = vst [vmem:[#allocation190_spill] sm:$0xff] %v10418_v57  ;;  %16820 = vst [vmem:[#allocation191_spill] sm:$0xff] %v10427_v62  ;;  %v3339_v26 = vadd.f32 %v3258_v3, %v10197_v23  ;;  %v16822_v24 = vcombine.high %v10239_v2, %v10239_v2  ;;  %v10444_v32 = vcombine.high %v10408_v54, %v10408_v54  ;;  %v16826_v3 = vld [vmem:[#allocation75_spill] sm:$0xff]  ;;  %8856 = vmatprep.subr.bf16.mxu0 %v8952_v20 }
 0x1c4   : > { %16821 = vst [vmem:[#allocation192_spill] sm:$0xff] %v10433_v48  ;;  %v2676_v7 = vadd.f32 %v2595_v36, %v2452_v60  ;;  %v2819_v63 = vmul.f32 %v9379_v45, %v10412_v34  ;;  %v2146_v4 = vmul.f32 %v16728_v28, %v10332_v50  ;;  %v3482_v23 = vmul.f32 %v9453_v9, %v10393_v33  ;;  %v16827_v36 = vld [vmem:[#allocation41_spill] sm:$0xff] }
 0x1c5   : > { %v1153_v8 = vrot.slane %v16822_v24, %v16656_v6  ;;  %16824 = vst [vmem:[#allocation194_spill] sm:$0xff] %v10444_v32  ;;  %v1154_v2 = vcombine.high %v10292_v39, %v10292_v39  ;;  %v10462_v15 = vcombine.high %v10427_v62, %v10427_v62  ;;  %v3043_v0 = vmul.f32 %v9407_v13, %v10408_v54  ;;  %v16832_v32 = vld [vmem:[#allocation49_spill] sm:$0xff] }
 0x1c6   : > { %v3706_v60 = vmul.f32 %v16826_v3, %v10397_v52  ;;  %v2370_v24 = vmul.f32 %v16827_v36, %v10324_v44  ;;  %v2900_v11 = vadd.f32 %v2819_v63, %v2676_v7  ;;  %v10472_v38 = vmul.f32 %v16828_v31, %v10324_v44  ;;  %8857 = vmatpush3.bf16.msra.mxu0 %v8952_v20  ;;  %v16836_v54 = vld [vmem:[#allocation165_spill] sm:$0xff] }
 0x1c7   : > { %v1155_v18 = vcombine.high %v1153_v8, %v1153_v8  ;;  %v10455_v22 = vrot.slane %v1153_v8, %v16656_v6  ;;  %16825 = vst [vmem:[#allocation195_spill] sm:$0xff] %v10462_v15  ;;  %v3563_v8 = vadd.f32 %v3482_v23, %v3339_v26  ;;  %v10479_v57 = vrot.slane %v10292_v39, %v16656_v6  ;;  %v10485_v26 = vpop.f32.mrb[34].mxu1 }
 0x1c8   : > { %16829 = vst [vmem:[#allocation41_spill] sm:$0xff] %v10472_v38  ;;  %v2451_v56 = vadd.f32 %v2370_v24, %v2146_v4  ;;  %v2594_v62 = vmul.f32 %v16832_v32, %v10393_v33  ;;  %v3257_v7 = vmul.f32 %v9422_v37, %v10332_v50  ;;  %16833 = vst [vmem:[#allocation49_spill] sm:$0xff] %v10485_v26 }
 0x1c9   : > { %v10475_v48 = vrot.slane %v1155_v18, %v16656_v6  ;;  %16831 = vst [vmem:[#allocation197_spill] sm:$0xff] %v10479_v57  ;;  %v10488_v63 = vrot.slane %v1154_v2, %v16656_v6  ;;  %v10492_v23 = vcombine.high %v10455_v22, %v10455_v22  ;;  %v2155_v39 = vmul.f32 %v16728_v28, %v10455_v22  ;;  %v8845_v18 = vpop.f32.mrb[35].mxu1 }
 0x1ca   : > { %v2675_v24 = vadd.f32 %v2594_v62, %v2451_v56  ;;  %v2818_v38 = vmul.f32 %v9395_v30, %v10397_v52  ;;  %v3338_v20 = vadd.f32 %v3257_v7, %v16836_v54  ;;  %v3481_v2 = vmul.f32 %v9450_v17, %v10324_v44  ;;  %v16840_v7 = vld [vmem:[#allocation166_spill] sm:$0xff] }
 0x1cb   : > { %16830 = vst [vmem:[#allocation196_spill] sm:$0xff] %v10475_v48  ;;  %16834 = vst [vmem:[#allocation198_spill] sm:$0xff] %v10488_v63  ;;  %v2379_v4 = vmul.f32 %v16827_v36, %v10475_v48  ;;  %v10503_v25 = vadd.f32 %v3043_v0, %v2900_v11  ;;  %v10505_v42 = vadd.f32 %v3706_v60, %v3563_v8 }
 0x1cc   : > { %16835 = vst [vmem:[#allocation199_spill] sm:$0xff] %v10492_v23  ;;  %v3042_v3 = vmul.f32 %v9404_v61, %v10412_v34  ;;  %v2899_v9 = vadd.f32 %v2818_v38, %v2675_v24  ;;  %v3562_v41 = vadd.f32 %v3481_v2, %v3338_v20  ;;  %v3705_v56 = vmul.f32 %v9505_v46, %v10393_v33 }
 0x1cd   : > { %16837 = vst [vmem:[#allocation165_spill] sm:$0xff] %v10503_v25  ;;  %16838 = vst [vmem:[#allocation200_spill] sm:$0xff] %v10505_v42  ;;  %v2460_v31 = vadd.f32 %v2379_v4, %v2155_v39  ;;  %v4368_v62 = vmul.f32 %v16756_v53, %v10332_v50  ;;  %v10515_v54 = vcombine.high %v10475_v48, %v10475_v48  ;;  %v16844_v50 = vld [vmem:[#allocation138_spill] sm:$0xff] }
 0x1ce   : > { %v2603_v0 = vmul.f32 %v16832_v32, %v10492_v23  ;;  %v3266_v60 = vmul.f32 %v9422_v37, %v10455_v22  ;;  %v3929_v38 = vmul.f32 %v9759_v19, %v10397_v52  ;;  %v3123_v11 = vadd.f32 %v3042_v3, %v2899_v9 }
 0x1cf   : > { %16839 = vst [vmem:[#allocation201_spill] sm:$0xff] %v10515_v54  ;;  %v3786_v8 = vadd.f32 %v3705_v56, %v3562_v41  ;;  %v4449_v39 = vadd.f32 %v4368_v62, %v16840_v7  ;;  %v4592_v4 = vmul.f32 %v16758_v14, %v10324_v44  ;;  %v3490_v24 = vmul.f32 %v9450_v17, %v10475_v48  ;;  %v16841_v62 = vld [vmem:[#allocation175_spill] sm:$0xff]  ;;  %v16842_v7 = vld [vmem:[#allocation100_spill] sm:$0xff] }
 0x1d0   : > { %v10526_v18 = vadd.f32 %v2603_v0, %v2460_v31  ;;  %v3714_v20 = vmul.f32 %v9505_v46, %v10492_v23  ;;  %v4153_v2 = vmul.f32 %v16754_v5, %v10412_v34  ;;  %v4377_v41 = vmul.f32 %v16756_v53, %v10455_v22 }
 0x1d1   : > { %v4010_v42 = vadd.f32 %v3929_v38, %v3786_v8  ;;  %v4673_v9 = vadd.f32 %v4592_v4, %v4449_v39  ;;  %v4816_v3 = vmul.f32 %v16762_v55, %v10393_v33  ;;  %v3347_v56 = vadd.f32 %v3266_v60, %v3123_v11  ;;  %v8953_v60 = vld [vmem:[%s15295_s6 + $0x10] sm:$0xff]   ;;  %v16843_v11 = vld [vmem:[#allocation130_spill] sm:$0xff] }
 0x1d2   : > { %v4601_v31 = vmul.f32 %v16758_v14, %v10475_v48  ;;  %v1188_v0 = vcombine.high %v16841_v62, %v16841_v62  ;;  %v809_v25 = vmax.f32 %v16842_v7, 0.0  ;;  %v10545_v38 = vmul.f32 %v16762_v55, %v10492_v23  ;;  %8858 = vmatprep.subr.bf16.mxu0 %v8953_v60 }
 0x1d3   : > { %v4234_v44 = vadd.f32 %v4153_v2, %v4010_v42  ;;  %v4897_v8 = vadd.f32 %v4816_v3, %v4673_v9  ;;  %v5040_v39 = vmul.f32 %v16768_v21, %v10397_v52  ;;  %v5264_v4 = vmul.f32 %v16843_v11, %v10412_v34  ;;  %v16845_v3 = vld [vmem:[#allocation178_spill] sm:$0xff]  ;;  %8859 = vmatpush3.bf16.msra.mxu0 %v8953_v60 }
 0x1d4   : > { %v5488_v33 = vmul.f32 %v16844_v50, %v10455_v22  ;;  %v1195_v42 = vrot.slane %v16841_v62, %v16656_v6  ;;  %v1202_v2 = vrot.slane %v1188_v0, %v16656_v6  ;;  %v10561_v23 = vmul.f32 %v16845_v3, %v10475_v48  ;;  %v16847_v62 = vld [vmem:[#allocation27_spill] sm:$0xff] }
 0x1d5   : > { %v4458_v7 = vadd.f32 %v4377_v41, %v4234_v44  ;;  %v5121_v9 = vadd.f32 %v5040_v39, %v4897_v8  ;;  %v1237_v52 = vcombine.high %v809_v25, %v809_v25  ;;  %v3571_v13 = vadd.f32 %v3490_v24, %v3347_v56 }
 0x1d6   : > { %v1204_v45 = vcombine.high %v1202_v2, %v1202_v2  ;;  %v10564_v34 = vrot.slane %v1202_v2, %v16656_v6  ;;  %v1244_v29 = vrot.slane %v809_v25, %v16656_v6  ;;  %v10569_v0 = vmul.f32 %v16847_v62, %v10455_v22  ;;  %v10582_v25 = vpop.f32.mrb[36].mxu1 }
 0x1d7   : > { %v5345_v12 = vadd.f32 %v5264_v4, %v5121_v9  ;;  %v10573_v44 = vcombine.high %v10479_v57, %v10479_v57  ;;  %v1251_v41 = vrot.slane %v1237_v52, %v16656_v6  ;;  %v1203_v8 = vcombine.high %v1195_v42, %v1195_v42  ;;  %16852 = vst [vmem:[#allocation204_spill] sm:$0xff] %v10582_v25  ;;  %v8848_v2 = vpop.f32.mrb[37].mxu1 }
 0x1d8   : > { %16846 = vst [vmem:[#allocation166_spill] sm:$0xff] %v10564_v34  ;;  %16848 = vst [vmem:[#allocation175_spill] sm:$0xff] %v10569_v0  ;;  %v10577_v24 = vrot.slane %v1204_v45, %v16656_v6  ;;  %v1252_v56 = vcombine.high %v1244_v29, %v1244_v29  ;;  %v10580_v39 = vrot.slane %v1244_v29, %v16656_v6 }
 0x1d9   : > { %16849 = vst [vmem:[#allocation100_spill] sm:$0xff] %v10573_v44  ;;  %v5569_v60 = vadd.f32 %v5488_v33, %v5345_v12  ;;  %v10585_v22 = vrot.slane %v1195_v42, %v16656_v6  ;;  %v10589_v4 = vcombine.high %v10564_v34, %v10564_v34  ;;  %v2154_v52 = vmul.f32 %v16728_v28, %v10462_v15 }
 0x1da   : > { %16850 = vst [vmem:[#allocation202_spill] sm:$0xff] %v10577_v24  ;;  %16851 = vst [vmem:[#allocation203_spill] sm:$0xff] %v10580_v39  ;;  %v3795_v45 = vadd.f32 %v3714_v20, %v3571_v13  ;;  %v10595_v9 = vcombine.high %v10488_v63, %v10488_v63  ;;  %v10598_v29 = vrot.slane %v1252_v56, %v16656_v6 }
 0x1db   : > { %16853 = vst [vmem:[#allocation205_spill] sm:$0xff] %v10585_v22  ;;  %16854 = vst [vmem:[#allocation206_spill] sm:$0xff] %v10589_v4  ;;  %v10602_v12 = vcombine.high %v10580_v39, %v10580_v39  ;;  %v1253_v33 = vcombine.high %v1251_v41, %v1251_v41  ;;  %v10605_v42 = vrot.slane %v1251_v41, %v16656_v6 }
 0x1dc   : > { %16855 = vst [vmem:[#allocation207_spill] sm:$0xff] %v10595_v9  ;;  %v2163_v0 = vmul.f32 %v16728_v28, %v10564_v34  ;;  %v2378_v13 = vmul.f32 %v16827_v36, %v10479_v57  ;;  %v10613_v20 = vcombine.high %v10598_v29, %v10598_v29  ;;  %v2164_v56 = vmul.f32 %v16728_v28, %v10598_v29 }
 0x1dd   : > { %16856 = vst [vmem:[#allocation208_spill] sm:$0xff] %v10602_v12  ;;  %16857 = vst [vmem:[#allocation209_spill] sm:$0xff] %v10605_v42  ;;  %v2387_v2 = vmul.f32 %v16827_v36, %v10577_v24  ;;  %v2388_v41 = vmul.f32 %v16827_v36, %v10602_v12  ;;  %v10623_v48 = vcombine.high %v10577_v24, %v10577_v24 }
 0x1de   : > { %16858 = vst [vmem:[#allocation210_spill] sm:$0xff] %v10613_v20  ;;  %v2459_v58 = vadd.f32 %v2378_v13, %v2154_v52  ;;  %v2602_v35 = vmul.f32 %v16832_v32, %v10488_v63  ;;  %v2611_v51 = vmul.f32 %v16832_v32, %v10589_v4  ;;  %v2612_v25 = vmul.f32 %v16832_v32, %v10613_v20 }
 0x1df   : > { %16859 = vst [vmem:[#allocation211_spill] sm:$0xff] %v10623_v48  ;;  %v2468_v27 = vadd.f32 %v2387_v2, %v2163_v0  ;;  %v2469_v1 = vadd.f32 %v2388_v41, %v2164_v56  ;;  %v2827_v59 = vmul.f32 %v9395_v30, %v10515_v54  ;;  %v4682_v40 = vadd.f32 %v4601_v31, %v4458_v7 }
 0x1e0   : > { %v10634_v49 = vrot.slane %v1203_v8, %v16656_v6  ;;  %v2683_v26 = vadd.f32 %v2602_v35, %v2459_v58  ;;  %v2826_v52 = vmul.f32 %v9395_v30, %v10573_v44  ;;  %v3051_v0 = vmul.f32 %v9404_v61, %v10585_v22 }
 0x1e1   : > { %v2692_v13 = vadd.f32 %v2611_v51, %v2468_v27  ;;  %v2693_v47 = vadd.f32 %v2612_v25, %v2469_v1  ;;  %v2908_v16 = vadd.f32 %v2827_v59, %v10526_v18  ;;  %v10642_v56 = vrot.slane %v1253_v33, %v16656_v6 }
 0x1e2   : > { %16860 = vst [vmem:[#allocation212_spill] sm:$0xff] %v10634_v49  ;;  %v2907_v2 = vadd.f32 %v2826_v52, %v2683_v26  ;;  %v3050_v31 = vmul.f32 %v9404_v61, %v10595_v9  ;;  %v3265_v35 = vmul.f32 %v9422_v37, %v10462_v15  ;;  %v2835_v58 = vmul.f32 %v9395_v30, %v10623_v48 }
 0x1e3   : > { %16861 = vst [vmem:[#allocation213_spill] sm:$0xff] %v10642_v56  ;;  %v2836_v1 = vmul.f32 %v9395_v30, %v10605_v42  ;;  %v3132_v59 = vadd.f32 %v3051_v0, %v2908_v16  ;;  %v3274_v27 = vmul.f32 %v9422_v37, %v10564_v34  ;;  %v3275_v26 = vmul.f32 %v9422_v37, %v10598_v29 }
 0x1e4   : > { %v3131_v51 = vadd.f32 %v3050_v31, %v2907_v2  ;;  %v3346_v18 = vadd.f32 %v3265_v35, %v10424_v43  ;;  %v3489_v7 = vmul.f32 %v9450_v17, %v10479_v57  ;;  %v4906_v8 = vadd.f32 %v10545_v38, %v4682_v40 }
 0x1e5   : > { %v10661_v25 = vadd.f32 %v10561_v23, %v5569_v60  ;;  %v2916_v33 = vadd.f32 %v2835_v58, %v2692_v13  ;;  %v2917_v41 = vadd.f32 %v2836_v1, %v2693_v47  ;;  %v3356_v52 = vadd.f32 %v3275_v26, %v3132_v59 }
 0x1e6   : > { %v3355_v16 = vadd.f32 %v3274_v27, %v3131_v51  ;;  %v3570_v0 = vadd.f32 %v3489_v7, %v3346_v18  ;;  %v3713_v2 = vmul.f32 %v9505_v46, %v10488_v63  ;;  %v10667_v31 = vcombine.high %v10605_v42, %v10605_v42 }
 0x1e7   : > { %16862 = vst [vmem:[#allocation214_spill] sm:$0xff] %v10661_v25  ;;  %v3498_v43 = vmul.f32 %v9450_v17, %v10577_v24  ;;  %v3499_v40 = vmul.f32 %v9450_v17, %v10602_v12  ;;  %v3938_v23 = vmul.f32 %v9759_v19, %v10515_v54  ;;  %v3059_v47 = vmul.f32 %v9404_v61, %v10580_v39 }
 0x1e8   : > { %16863 = vst [vmem:[#allocation215_spill] sm:$0xff] %v10667_v31  ;;  %v3060_v38 = vmul.f32 %v9404_v61, %v10642_v56  ;;  %v3794_v60 = vadd.f32 %v3713_v2, %v3570_v0  ;;  %v3937_v13 = vmul.f32 %v9759_v19, %v10573_v44  ;;  %v4162_v59 = vmul.f32 %v16754_v5, %v10585_v22 }
 0x1e9   : > { %v3579_v35 = vadd.f32 %v3498_v43, %v3355_v16  ;;  %v3580_v58 = vadd.f32 %v3499_v40, %v3356_v52  ;;  %v4019_v1 = vadd.f32 %v3938_v23, %v3795_v45  ;;  %v10683_v27 = vadd.f32 %v3059_v47, %v2916_v33 }
 0x1ea   : > { %v10685_v51 = vadd.f32 %v3060_v38, %v2917_v41  ;;  %v4018_v26 = vadd.f32 %v3937_v13, %v3794_v60  ;;  %v4161_v18 = vmul.f32 %v16754_v5, %v10595_v9  ;;  %v3722_v7 = vmul.f32 %v9505_v46, %v10589_v4 }
 0x1eb   : > { %v3723_v0 = vmul.f32 %v9505_v46, %v10613_v20  ;;  %v4243_v16 = vadd.f32 %v4162_v59, %v4019_v1  ;;  %v4376_v45 = vmul.f32 %v16756_v53, %v10462_v15  ;;  %v3946_v33 = vmul.f32 %v9759_v19, %v10623_v48 }
 0x1ec   : > { %v4242_v52 = vadd.f32 %v4161_v18, %v4018_v26  ;;  %v4385_v41 = vmul.f32 %v16756_v53, %v10564_v34  ;;  %v4386_v2 = vmul.f32 %v16756_v53, %v10598_v29  ;;  %v3803_v43 = vadd.f32 %v3722_v7, %v3579_v35 }
 0x1ed   : > { %v3804_v40 = vadd.f32 %v3723_v0, %v3580_v58  ;;  %v4457_v23 = vadd.f32 %v4376_v45, %v10431_v10  ;;  %v4600_v47 = vmul.f32 %v16758_v14, %v10479_v57  ;;  %v4609_v13 = vmul.f32 %v16758_v14, %v10577_v24 }
 0x1ee   : > { %v4466_v38 = vadd.f32 %v4385_v41, %v4242_v52  ;;  %v4467_v60 = vadd.f32 %v4386_v2, %v4243_v16  ;;  %v4610_v1 = vmul.f32 %v16758_v14, %v10602_v12  ;;  %v3947_v59 = vmul.f32 %v9759_v19, %v10605_v42 }
 0x1ef   : > { %v4681_v26 = vadd.f32 %v4600_v47, %v4457_v23  ;;  %v4824_v35 = vmul.f32 %v16762_v55, %v10488_v63  ;;  %v4833_v10 = vmul.f32 %v16762_v55, %v10589_v4  ;;  %v4834_v7 = vmul.f32 %v16762_v55, %v10613_v20 }
 0x1f0   : > { %v4690_v58 = vadd.f32 %v4609_v13, %v4466_v38  ;;  %v4691_v18 = vadd.f32 %v4610_v1, %v4467_v60  ;;  %v5049_v0 = vmul.f32 %v16768_v21, %v10515_v54  ;;  %v4027_v16 = vadd.f32 %v3946_v33, %v3803_v43 }
 0x1f1   : > { %v4028_v45 = vadd.f32 %v3947_v59, %v3804_v40  ;;  %v4905_v52 = vadd.f32 %v4824_v35, %v4681_v26  ;;  %v5048_v41 = vmul.f32 %v16768_v21, %v10573_v44  ;;  %v5273_v31 = vmul.f32 %v16843_v11, %v10585_v22 }
 0x1f2   : > { %v4914_v2 = vadd.f32 %v4833_v10, %v4690_v58  ;;  %v4915_v23 = vadd.f32 %v4834_v7, %v4691_v18  ;;  %v5130_v47 = vadd.f32 %v5049_v0, %v4906_v8  ;;  %v5057_v38 = vmul.f32 %v16768_v21, %v10623_v48 }
 0x1f3   : > { %v5058_v60 = vmul.f32 %v16768_v21, %v10605_v42  ;;  %v5129_v13 = vadd.f32 %v5048_v41, %v4905_v52  ;;  %v5272_v33 = vmul.f32 %v16843_v11, %v10595_v9  ;;  %v4170_v43 = vmul.f32 %v16754_v5, %v10580_v39 }
 0x1f4   : > { %v4171_v40 = vmul.f32 %v16754_v5, %v10642_v56  ;;  %v5354_v8 = vadd.f32 %v5273_v31, %v5130_v47  ;;  %v5497_v1 = vmul.f32 %v16844_v50, %v10598_v29  ;;  %v5138_v59 = vadd.f32 %v5057_v38, %v4914_v2  ;;  %v16866_v47 = vld [vmem:[#allocation120_spill] sm:$0xff] }
 0x1f5   : > { %v5139_v26 = vadd.f32 %v5058_v60, %v4915_v23  ;;  %v5353_v35 = vadd.f32 %v5272_v33, %v5129_v13  ;;  %v5496_v10 = vmul.f32 %v16844_v50, %v10564_v34  ;;  %v10736_v58 = vadd.f32 %v4170_v43, %v4027_v16  ;;  %v16865_v23 = vld [vmem:[#allocation15_spill] sm:$0xff]  ;;  %v16868_v60 = vld [vmem:[#allocation145_spill] sm:$0xff]  ;;  %v16869_v33 = vld [vmem:[#allocation76_spill] sm:$0xff] }
 0x1f6   : > { %v10738_v18 = vadd.f32 %v4171_v40, %v4028_v45  ;;  %v5281_v7 = vmul.f32 %v16843_v11, %v10580_v39  ;;  %v5578_v0 = vadd.f32 %v5497_v1, %v5354_v8  ;;  %v5282_v31 = vmul.f32 %v16843_v11, %v10642_v56  ;;  %v16867_v45 = vld [vmem:[#allocation167_spill] sm:$0xff] }
 0x1f7   : > { %v5577_v52 = vadd.f32 %v5496_v10, %v5353_v35  ;;  %v5720_v41 = vmul.f32 %v16845_v3, %v10577_v24  ;;  %v5721_v2 = vmul.f32 %v16845_v3, %v10602_v12  ;;  %v5944_v16 = vmul.f32 %v16865_v23, %v10589_v4  ;;  %v16871_v35 = vld [vmem:[#allocation154_spill] sm:$0xff] }
 0x1f8   : > { %16864 = vst [vmem:[#allocation216_spill] sm:$0xff] %v10738_v18  ;;  %v750_v38 = vadd.f32 %v16867_v45, %v16866_v47  ;;  %v755_v13 = vadd.f32 %v16867_v45, %v16868_v60  ;;  %v758_v43 = vadd.f32 %v16867_v45, %v16869_v33  ;;  %v10756_v40 = vadd.f32 %v5281_v7, %v5138_v59  ;;  %v16872_v60 = vld [vmem:[#allocation19_spill] sm:$0xff] }
 0x1f9   : > { %v10758_v8 = vadd.f32 %v5282_v31, %v5139_v26  ;;  %v5801_v1 = vadd.f32 %v5720_v41, %v5577_v52  ;;  %v763_v10 = vadd.f32 %v16867_v45, %v16871_v35  ;;  %v5802_v18 = vadd.f32 %v5721_v2, %v5578_v0  ;;  %v16873_v33 = vld [vmem:[#allocation155_spill] sm:$0xff]  ;;  %v16874_v52 = vld [vmem:[#allocation164_spill] sm:$0xff] }
 0x1fa   : > { %v5945_v42 = vmul.f32 %v16865_v23, %v10613_v20  ;;  %v810_v12 = vmax.f32 %v750_v38, 0.0  ;;  %v811_v47 = vmax.f32 %v755_v13, 0.0  ;;  %v6168_v9 = vmul.f32 %v16872_v60, %v10623_v48  ;;  %v16875_v41 = vld [vmem:[#allocation24_spill] sm:$0xff] }
 0x1fb   : > { %16870 = vst [vmem:[#allocation120_spill] sm:$0xff] %v10758_v8  ;;  %v6025_v4 = vadd.f32 %v5944_v16, %v5801_v1  ;;  %v812_v24 = vmax.f32 %v758_v43, 0.0  ;;  %v766_v59 = vadd.f32 %v16867_v45, %v16873_v33  ;;  %v771_v0 = vadd.f32 %v16867_v45, %v16874_v52 }
 0x1fc   : > { %v1286_v26 = vcombine.high %v810_v12, %v810_v12  ;;  %v1293_v7 = vrot.slane %v810_v12, %v16656_v6  ;;  %v1335_v31 = vcombine.high %v811_v47, %v811_v47  ;;  %v6392_v2 = vmul.f32 %v16875_v41, %v10580_v39 }
 0x1fd   : > { %v10775_v16 = vmul.f32 %v16847_v62, %v10598_v29  ;;  %v1342_v38 = vrot.slane %v811_v47, %v16656_v6  ;;  %v10778_v13 = vmax.f32 %v763_v10, 0.0  ;;  %v10780_v43 = vadd.f32 %v5945_v42, %v5802_v18 }
 0x1fe   : > { %v1300_v1 = vrot.slane %v1286_v26, %v16656_v6  ;;  %v1301_v12 = vcombine.high %v1293_v7, %v1293_v7  ;;  %v10784_v35 = vrot.slane %v1293_v7, %v16656_v6  ;;  %v6249_v45 = vadd.f32 %v6168_v9, %v6025_v4 }
 0x1ff   : > { %16876 = vst [vmem:[#allocation167_spill] sm:$0xff] %v10775_v16  ;;  %16877 = vst [vmem:[#allocation145_spill] sm:$0xff] %v10780_v43  ;;  %v10787_v33 = vrot.slane %v1335_v31, %v16656_v6  ;;  %v1384_v52 = vcombine.high %v812_v24, %v812_v24  ;;  %v10789_v8 = vmax.f32 %v766_v59, 0.0  ;;  %v10798_v18 = vmax.f32 %v771_v0, 0.0 }
 0x200   : > { %16878 = vst [vmem:[#allocation76_spill] sm:$0xff] %v10784_v35  ;;  %v1302_v29 = vcombine.high %v1300_v1, %v1300_v1  ;;  %v10792_v47 = vrot.slane %v1301_v12, %v16656_v6  ;;  %v10796_v42 = vcombine.high %v10784_v35, %v10784_v35  ;;  %v1350_v10 = vcombine.high %v1342_v38, %v1342_v38 }
 0x201   : > { %v10801_v26 = vrot.slane %v1342_v38, %v16656_v6  ;;  %v1391_v4 = vrot.slane %v812_v24, %v16656_v6  ;;  %v10807_v59 = vrot.slane %v1300_v1, %v16656_v6  ;;  %v10817_v38 = vadd.f32 %v6392_v2, %v6249_v45 }
 0x202   : > { %16879 = vst [vmem:[#allocation154_spill] sm:$0xff] %v10792_v47  ;;  %16880 = vst [vmem:[#allocation155_spill] sm:$0xff] %v10796_v42  ;;  %v10811_v7 = vcombine.high %v10792_v47, %v10792_v47  ;;  %v2172_v31 = vmul.f32 %v16728_v28, %v10792_v47  ;;  %v2396_v0 = vmul.f32 %v16827_v36, %v10796_v42 }
 0x203   : > { %16881 = vst [vmem:[#allocation164_spill] sm:$0xff] %v10801_v26  ;;  %16882 = vst [vmem:[#allocation217_spill] sm:$0xff] %v10807_v59  ;;  %v3283_v24 = vmul.f32 %v9422_v37, %v10792_v47  ;;  %v1351_v12 = vcombine.high %v10787_v33, %v10787_v33  ;;  %v1398_v1 = vrot.slane %v1384_v52, %v16656_v6 }
 0x204   : > { %16883 = vst [vmem:[#allocation218_spill] sm:$0xff] %v10811_v7  ;;  %16884 = vst [vmem:[#allocation219_spill] sm:$0xff] %v10817_v38  ;;  %v10825_v9 = vrot.slane %v1302_v29, %v16656_v6  ;;  %v2477_v43 = vadd.f32 %v2396_v0, %v2172_v31  ;;  %v2620_v39 = vmul.f32 %v16832_v32, %v10811_v7 }
 0x205   : > { %v10831_v48 = vrot.slane %v10787_v33, %v16656_v6  ;;  %v3364_v2 = vadd.f32 %v3283_v24, %v10683_v27  ;;  %v3507_v45 = vmul.f32 %v9450_v17, %v10796_v42  ;;  %v4394_v38 = vmul.f32 %v16756_v53, %v10792_v47  ;;  %v8954_v27 = vld [vmem:[%s15295_s6 + $0x18] sm:$0xff]   ;;  %v10852_v24 = vpop.f32.mrb[38].mxu1 }
 0x206   : > { %16885 = vst [vmem:[#allocation220_spill] sm:$0xff] %v10825_v9  ;;  %v10839_v52 = vrot.slane %v1350_v10, %v16656_v6  ;;  %v2701_v29 = vadd.f32 %v2620_v39, %v2477_v43  ;;  %v2844_v31 = vmul.f32 %v9395_v30, %v10807_v59  ;;  %v3731_v0 = vmul.f32 %v9505_v46, %v10811_v7  ;;  %v8849_v16 = vpop.f32.mrb[39].mxu1 }
 0x207   : > { %16886 = vst [vmem:[#allocation221_spill] sm:$0xff] %v10831_v48  ;;  %v10847_v33 = vcombine.high %v10801_v26, %v10801_v26  ;;  %16889 = vst [vmem:[#allocation224_spill] sm:$0xff] %v10852_v24  ;;  %v3588_v35 = vadd.f32 %v3507_v45, %v3364_v2  ;;  %v4475_v10 = vadd.f32 %v4394_v38, %v10736_v58  ;;  %8860 = vmatprep.subr.bf16.mxu0 %v8954_v27 }
 0x208   : > { %16887 = vst [vmem:[#allocation222_spill] sm:$0xff] %v10839_v52  ;;  %v4618_v39 = vmul.f32 %v16758_v14, %v10796_v42  ;;  %v5505_v43 = vmul.f32 %v16844_v50, %v10792_v47  ;;  %v10861_v20 = vcombine.high %v10825_v9, %v10825_v9  ;;  %v3068_v44 = vmul.f32 %v9404_v61, %v10825_v9 }
 0x209   : > { %16888 = vst [vmem:[#allocation223_spill] sm:$0xff] %v10847_v33  ;;  %v3955_v25 = vmul.f32 %v9759_v19, %v10807_v59  ;;  %v4842_v58 = vmul.f32 %v16762_v55, %v10811_v7  ;;  %v3812_v38 = vadd.f32 %v3731_v0, %v3588_v35  ;;  %v5729_v16 = vmul.f32 %v16845_v3, %v10796_v42 }
 0x20a   : > { %16890 = vst [vmem:[#allocation225_spill] sm:$0xff] %v10861_v20  ;;  %v4699_v2 = vadd.f32 %v4618_v39, %v4475_v10  ;;  %v5586_v45 = vadd.f32 %v5505_v43, %v10756_v40  ;;  %8861 = vmatpush3.bf16.msra.mxu0 %v8954_v27  ;;  %v2925_v47 = vadd.f32 %v2844_v31, %v2701_v29 }
 0x20b   : > { %v4179_v34 = vmul.f32 %v16754_v5, %v10825_v9  ;;  %v5066_v54 = vmul.f32 %v16768_v21, %v10807_v59  ;;  %v5290_v63 = vmul.f32 %v16843_v11, %v10825_v9  ;;  %v5953_v35 = vmul.f32 %v16865_v23, %v10811_v7 }
 0x20c   : > { %v4923_v57 = vadd.f32 %v4842_v58, %v4699_v2  ;;  %v5810_v15 = vadd.f32 %v5729_v16, %v5586_v45  ;;  %v1399_v40 = vcombine.high %v1391_v4, %v1391_v4  ;;  %v4036_v0 = vadd.f32 %v3955_v25, %v3812_v38 }
 0x20d   : > { %v1400_v10 = vcombine.high %v1398_v1, %v1398_v1  ;;  %v10881_v27 = vrot.slane %v1398_v1, %v16656_v6  ;;  %v1440_v29 = vrot.slane %v10778_v13, %v16656_v6  ;;  %v6177_v39 = vmul.f32 %v16872_v60, %v10807_v59 }
 0x20e   : > { %v5147_v31 = vadd.f32 %v5066_v54, %v4923_v57  ;;  %v6401_v43 = vmul.f32 %v16875_v41, %v10825_v9  ;;  %v10890_v58 = vrot.slane %v1399_v40, %v16656_v6  ;;  %v10892_v2 = vadd.f32 %v3068_v44, %v2925_v47 }
 0x20f   : > { %16891 = vst [vmem:[#allocation226_spill] sm:$0xff] %v10881_v27  ;;  %v6034_v25 = vadd.f32 %v5953_v35, %v5810_v15  ;;  %v10895_v38 = vrot.slane %v1351_v12, %v16656_v6  ;;  %v10899_v1 = vcombine.high %v10831_v48, %v10831_v48  ;;  %v10903_v57 = vcombine.high %v10839_v52, %v10839_v52 }
 0x210   : > { %16892 = vst [vmem:[#allocation227_spill] sm:$0xff] %v10890_v58  ;;  %16893 = vst [vmem:[#allocation228_spill] sm:$0xff] %v10892_v2  ;;  %v10906_v54 = vrot.slane %v1391_v4, %v16656_v6  ;;  %v10909_v45 = vrot.slane %v1400_v10, %v16656_v6  ;;  %v10913_v15 = vcombine.high %v10807_v59, %v10807_v59 }
 0x211   : > { %16894 = vst [vmem:[#allocation229_spill] sm:$0xff] %v10895_v38  ;;  %16895 = vst [vmem:[#allocation230_spill] sm:$0xff] %v10899_v1  ;;  %v10915_v44 = vadd.f32 %v4179_v34, %v4036_v0  ;;  %v10919_v47 = vcombine.high %v10881_v27, %v10881_v27  ;;  %v16902_v12 = vcombine.high %v10778_v13, %v10778_v13 }
 0x212   : > { %16896 = vst [vmem:[#allocation231_spill] sm:$0xff] %v10903_v57  ;;  %16897 = vst [vmem:[#allocation232_spill] sm:$0xff] %v10906_v54  ;;  %v1448_v4 = vcombine.high %v1440_v29, %v1440_v29  ;;  %v10925_v35 = vadd.f32 %v5290_v63, %v5147_v31  ;;  %v10929_v40 = vcombine.high %v10890_v58, %v10890_v58 }
 0x213   : > { %16898 = vst [vmem:[#allocation233_spill] sm:$0xff] %v10909_v45  ;;  %16899 = vst [vmem:[#allocation234_spill] sm:$0xff] %v10913_v15  ;;  %v1447_v16 = vrot.slane %v16902_v12, %v16656_v6  ;;  %v1482_v34 = vcombine.high %v10789_v8, %v10789_v8  ;;  %v1489_v0 = vrot.slane %v10789_v8, %v16656_v6 }
 0x214   : > { %16900 = vst [vmem:[#allocation235_spill] sm:$0xff] %v10915_v44  ;;  %16901 = vst [vmem:[#allocation236_spill] sm:$0xff] %v10919_v47  ;;  %v6258_v10 = vadd.f32 %v6177_v39, %v6034_v25  ;;  %v10936_v2 = vrot.slane %v1440_v29, %v16656_v6  ;;  %v2173_v13 = vmul.f32 %v16728_v28, %v10913_v15 }
 0x215   : > { %16903 = vst [vmem:[#allocation237_spill] sm:$0xff] %v10925_v35  ;;  %16904 = vst [vmem:[#allocation238_spill] sm:$0xff] %v10929_v40  ;;  %v2397_v63 = vmul.f32 %v16827_v36, %v10861_v20  ;;  %v10944_v31 = vcombine.high %v10909_v45, %v10909_v45  ;;  %v1496_v12 = vrot.slane %v1482_v34, %v16656_v6 }
 0x216   : > { %16905 = vst [vmem:[#allocation239_spill] sm:$0xff] %v10936_v2  ;;  %v1497_v35 = vcombine.high %v1489_v0, %v1489_v0  ;;  %v2182_v8 = vmul.f32 %v16728_v28, %v10929_v40  ;;  %v1449_v39 = vcombine.high %v1447_v16, %v1447_v16  ;;  %v2406_v29 = vmul.f32 %v16827_v36, %v10881_v27 }
 0x217   : > { %16906 = vst [vmem:[#allocation240_spill] sm:$0xff] %v10944_v31  ;;  %v2478_v25 = vadd.f32 %v2397_v63, %v2173_v13  ;;  %v2621_v44 = vmul.f32 %v16832_v32, %v10801_v26  ;;  %v10954_v9 = vrot.slane %v1448_v4, %v16656_v6  ;;  %v10957_v59 = vrot.slane %v1489_v0, %v16656_v6 }
 0x218   : > { %v10960_v34 = vrot.slane %v1497_v35, %v16656_v6  ;;  %v2630_v48 = vmul.f32 %v16832_v32, %v10909_v45  ;;  %v1498_v57 = vcombine.high %v1496_v12, %v1496_v12  ;;  %v2487_v7 = vadd.f32 %v2406_v29, %v2182_v8 }
 0x219   : > { %16907 = vst [vmem:[#allocation241_spill] sm:$0xff] %v10954_v9  ;;  %v2702_v42 = vadd.f32 %v2621_v44, %v2478_v25  ;;  %v2845_v13 = vmul.f32 %v9395_v30, %v10839_v52  ;;  %v10966_v63 = vadd.f32 %v6401_v43, %v6258_v10  ;;  %v10969_v4 = vrot.slane %v1447_v16, %v16656_v6 }
 0x21a   : > { %16908 = vst [vmem:[#allocation242_spill] sm:$0xff] %v10960_v34  ;;  %v10972_v0 = vrot.slane %v1496_v12, %v16656_v6  ;;  %v2415_v35 = vmul.f32 %v16827_v36, %v10960_v34  ;;  %v10977_v56 = vrot.slane %v1449_v39, %v16656_v6  ;;  %v2711_v49 = vadd.f32 %v2630_v48, %v2487_v7 }
 0x21b   : > { %16909 = vst [vmem:[#allocation243_spill] sm:$0xff] %v10966_v63  ;;  %16910 = vst [vmem:[#allocation244_spill] sm:$0xff] %v10969_v4  ;;  %v2854_v44 = vmul.f32 %v9395_v30, %v10919_v47  ;;  %v2926_v8 = vadd.f32 %v2845_v13, %v2702_v42  ;;  %v10983_v43 = vcombine.high %v10954_v9, %v10954_v9 }
 0x21c   : > { %16911 = vst [vmem:[#allocation245_spill] sm:$0xff] %v10972_v0  ;;  %16912 = vst [vmem:[#allocation246_spill] sm:$0xff] %v10977_v56  ;;  %v10987_v16 = vcombine.high %v10957_v59, %v10957_v59  ;;  %v2191_v10 = vmul.f32 %v16728_v28, %v10957_v59  ;;  %v3069_v12 = vmul.f32 %v9404_v61, %v10847_v33 }
 0x21d   : > { %16913 = vst [vmem:[#allocation247_spill] sm:$0xff] %v10983_v43  ;;  %v10994_v48 = vrot.slane %v1498_v57, %v16656_v6  ;;  %v2935_v7 = vadd.f32 %v2854_v44, %v2711_v49  ;;  %v3078_v42 = vmul.f32 %v9404_v61, %v10944_v31  ;;  %v3284_v39 = vmul.f32 %v9422_v37, %v10913_v15 }
 0x21e   : > { %16914 = vst [vmem:[#allocation248_spill] sm:$0xff] %v10987_v16  ;;  %v11002_v29 = vcombine.high %v10972_v0, %v10972_v0  ;;  %v2496_v25 = vadd.f32 %v2415_v35, %v2191_v10  ;;  %v3150_v13 = vadd.f32 %v3069_v12, %v2926_v8  ;;  %v3293_v9 = vmul.f32 %v9422_v37, %v10929_v40 }
 0x21f   : > { %16915 = vst [vmem:[#allocation249_spill] sm:$0xff] %v10994_v48  ;;  %v3159_v63 = vadd.f32 %v3078_v42, %v2935_v7  ;;  %v3302_v57 = vmul.f32 %v9422_v37, %v10957_v59  ;;  %v3365_v49 = vadd.f32 %v3284_v39, %v10685_v51  ;;  %v3508_v44 = vmul.f32 %v9450_v17, %v10861_v20 }
 0x220   : > { %16916 = vst [vmem:[#allocation250_spill] sm:$0xff] %v11002_v29  ;;  %v11013_v15 = vcombine.high %v10960_v34, %v10960_v34  ;;  %v2639_v35 = vmul.f32 %v16832_v32, %v10987_v16  ;;  %v3374_v8 = vadd.f32 %v3293_v9, %v3150_v13  ;;  %v3517_v10 = vmul.f32 %v9450_v17, %v10881_v27 }
 0x221   : > { %v3383_v12 = vadd.f32 %v3302_v57, %v3159_v63  ;;  %v3526_v7 = vmul.f32 %v9450_v17, %v10960_v34  ;;  %v3589_v42 = vadd.f32 %v3508_v44, %v3365_v49  ;;  %v3732_v51 = vmul.f32 %v9505_v46, %v10801_v26 }
 0x222   : > { %16917 = vst [vmem:[#allocation251_spill] sm:$0xff] %v11013_v15  ;;  %v11025_v39 = vcombine.high %v10994_v48, %v10994_v48  ;;  %v11027_v20 = vadd.f32 %v2639_v35, %v2496_v25  ;;  %v3598_v22 = vadd.f32 %v3517_v10, %v3374_v8  ;;  %v3741_v9 = vmul.f32 %v9505_v46, %v10909_v45 }
 0x223   : > { %v3607_v13 = vadd.f32 %v3526_v7, %v3383_v12  ;;  %v3750_v63 = vmul.f32 %v9505_v46, %v10987_v16  ;;  %v3813_v57 = vadd.f32 %v3732_v51, %v3589_v42  ;;  %v3956_v49 = vmul.f32 %v9759_v19, %v10839_v52 }
 0x224   : > { %16918 = vst [vmem:[#allocation252_spill] sm:$0xff] %v11025_v39  ;;  %v3822_v44 = vadd.f32 %v3741_v9, %v3598_v22  ;;  %v3965_v26 = vmul.f32 %v9759_v19, %v10919_v47  ;;  %v4180_v25 = vmul.f32 %v16754_v5, %v10847_v33  ;;  %v4189_v35 = vmul.f32 %v16754_v5, %v10944_v31 }
 0x225   : > { %v4037_v8 = vadd.f32 %v3956_v49, %v3813_v57  ;;  %v4404_v10 = vmul.f32 %v16756_v53, %v10929_v40  ;;  %v4413_v12 = vmul.f32 %v16756_v53, %v10957_v59  ;;  %v4628_v7 = vmul.f32 %v16758_v14, %v10881_v27 }
 0x226   : > { %v4046_v22 = vadd.f32 %v3965_v26, %v3822_v44  ;;  %v4637_v42 = vmul.f32 %v16758_v14, %v10960_v34  ;;  %v4852_v51 = vmul.f32 %v16762_v55, %v10909_v45  ;;  %v11053_v9 = vmul.f32 %v16762_v55, %v10987_v16  ;;  %v8955_v26 = vld [vmem:[%s15295_s6 + $0x20] sm:$0xff]   ;;  %v11066_v44 = vpop.f32.mrb[40].mxu1 }
 0x227   : > { %v11055_v57 = vadd.f32 %v3750_v63, %v3607_v13  ;;  %v4261_v49 = vadd.f32 %v4180_v25, %v4037_v8  ;;  %v5076_v40 = vmul.f32 %v16768_v21, %v10919_v47  ;;  %v11061_v33 = vcombine.high %v10895_v38, %v10895_v38  ;;  %16920 = vst [vmem:[#allocation254_spill] sm:$0xff] %v11066_v44  ;;  %v8852_v25 = vpop.f32.mrb[41].mxu1 }
 0x228   : > { %v4270_v52 = vadd.f32 %v4189_v35, %v4046_v22  ;;  %v5300_v29 = vmul.f32 %v16843_v11, %v10944_v31  ;;  %v1531_v13 = vcombine.high %v10798_v18, %v10798_v18  ;;  %v1538_v63 = vrot.slane %v10798_v18, %v16656_v6  ;;  %8862 = vmatprep.subr.bf16.mxu0 %v8955_v26 }
 0x229   : > { %16919 = vst [vmem:[#allocation253_spill] sm:$0xff] %v11061_v33  ;;  %v4485_v8 = vadd.f32 %v4404_v10, %v4261_v49  ;;  %v5524_v38 = vmul.f32 %v16844_v50, %v10957_v59  ;;  %v2190_v24 = vmul.f32 %v16728_v28, %v10983_v43  ;;  %v2405_v35 = vmul.f32 %v16827_v36, %v11061_v33 }
 0x22a   : > { %v4494_v22 = vadd.f32 %v4413_v12, %v4270_v52  ;;  %v1545_v44 = vrot.slane %v1531_v13, %v16656_v6  ;;  %v1546_v48 = vcombine.high %v1538_v63, %v1538_v63  ;;  %v2181_v2 = vmul.f32 %v16728_v28, %v10899_v1  ;;  %8863 = vmatpush3.bf16.msra.mxu0 %v8955_v26 }
 0x22b   : > { %v4709_v18 = vadd.f32 %v4628_v7, %v4485_v8  ;;  %v5748_v10 = vmul.f32 %v16845_v3, %v10960_v34  ;;  %v11087_v49 = vmul.f32 %v16865_v23, %v10987_v16  ;;  %v2414_v25 = vmul.f32 %v16827_v36, %v10969_v4 }
 0x22c   : > { %v11093_v52 = vmul.f32 %v16847_v62, %v10957_v59  ;;  %v11096_v12 = vrot.slane %v1538_v63, %v16656_v6  ;;  %v11099_v26 = vrot.slane %v1546_v48, %v16656_v6  ;;  %v2486_v7 = vadd.f32 %v2405_v35, %v2181_v2 }
 0x22d   : > { %v4933_v13 = vadd.f32 %v4852_v51, %v4709_v18  ;;  %v11103_v8 = vcombine.high %v10906_v54, %v10906_v54  ;;  %v11107_v33 = vcombine.high %v10969_v4, %v10969_v4  ;;  %v2495_v1 = vadd.f32 %v2414_v25, %v2190_v24  ;;  %v11133_v25 = vpop.f32.mrb[42].mxu1 }
 0x22e   : > { %16921 = vst [vmem:[#allocation255_spill] sm:$0xff] %v11093_v52  ;;  %16922 = vst [vmem:[#allocation256_spill] sm:$0xff] %v11096_v12  ;;  %v4718_v31 = vadd.f32 %v4637_v42, %v4494_v22  ;;  %v11111_v59 = vcombine.high %v10977_v56, %v10977_v56  ;;  %v1547_v63 = vcombine.high %v1545_v44, %v1545_v44  ;;  %v8853_v47 = vpop.f32.mrb[43].mxu1 }
 0x22f   : > { %16923 = vst [vmem:[#allocation257_spill] sm:$0xff] %v11099_v26  ;;  %16924 = vst [vmem:[#allocation258_spill] sm:$0xff] %v11103_v8  ;;  %v2629_v48 = vmul.f32 %v16832_v32, %v10906_v54  ;;  %v5157_v2 = vadd.f32 %v5076_v40, %v4933_v13  ;;  %v11116_v51 = vrot.slane %v1545_v44, %v16656_v6  ;;  %v8956_v44 = vld [vmem:[%s15295_s6 + $0x28] sm:$0xff]  }
 0x230   : > { %16925 = vst [vmem:[#allocation259_spill] sm:$0xff] %v11107_v33  ;;  %16926 = vst [vmem:[#allocation260_spill] sm:$0xff] %v11111_v59  ;;  %v2423_v35 = vmul.f32 %v16827_v36, %v11099_v26  ;;  %v2638_v18 = vmul.f32 %v16832_v32, %v10977_v56  ;;  %v11124_v24 = vcombine.high %v11096_v12, %v11096_v12  ;;  %8864 = vmatprep.subr.bf16.mxu0 %v8956_v44 }
 0x231   : > { %16927 = vst [vmem:[#allocation261_spill] sm:$0xff] %v11116_v51  ;;  %v2199_v42 = vmul.f32 %v16728_v28, %v11096_v12  ;;  %v2710_v22 = vadd.f32 %v2629_v48, %v2486_v7  ;;  %v2853_v40 = vmul.f32 %v9395_v30, %v10890_v58  ;;  %16929 = vst [vmem:[#allocation263_spill] sm:$0xff] %v11133_v25  ;;  %8865 = vmatpush3.bf16.msra.mxu0 %v8956_v44 }
 0x232   : > { %16928 = vst [vmem:[#allocation262_spill] sm:$0xff] %v11124_v24  ;;  %v5381_v36 = vadd.f32 %v5300_v29, %v5157_v2  ;;  %v2719_v13 = vadd.f32 %v2638_v18, %v2495_v1  ;;  %v2862_v52 = vmul.f32 %v9395_v30, %v11107_v33  ;;  %v2863_v54 = vmul.f32 %v9395_v30, %v11013_v15 }
 0x233   : > { %v11140_v28 = vrot.slane %v1547_v63, %v16656_v6  ;;  %v2504_v7 = vadd.f32 %v2423_v35, %v2199_v42  ;;  %v2934_v48 = vadd.f32 %v2853_v40, %v2710_v22  ;;  %v3077_v58 = vmul.f32 %v9404_v61, %v11103_v8 }
 0x234   : > { %v5605_v16 = vadd.f32 %v5524_v38, %v5381_v36  ;;  %v2943_v25 = vadd.f32 %v2862_v52, %v2719_v13  ;;  %v2944_v1 = vadd.f32 %v2863_v54, %v11027_v20  ;;  %v3086_v29 = vmul.f32 %v9404_v61, %v11111_v59 }
 0x235   : > { %v11149_v47 = vcombine.high %v11099_v26, %v11099_v26  ;;  %v3087_v63 = vmul.f32 %v9404_v61, %v10972_v0  ;;  %v3158_v2 = vadd.f32 %v3077_v58, %v2934_v48  ;;  %v3301_v35 = vmul.f32 %v9422_v37, %v10983_v43 }
 0x236   : > { %v11157_v38 = vcombine.high %v11116_v51, %v11116_v51  ;;  %v2647_v20 = vmul.f32 %v16832_v32, %v11124_v24  ;;  %v3167_v54 = vadd.f32 %v3086_v29, %v2943_v25  ;;  %v3310_v52 = vmul.f32 %v9422_v37, %v11096_v12 }
 0x237   : > { %16930 = vst [vmem:[#allocation264_spill] sm:$0xff] %v11149_v47  ;;  %v3168_v18 = vadd.f32 %v3087_v63, %v2944_v1  ;;  %v3311_v42 = vmul.f32 %v9422_v37, %v11140_v28  ;;  %v3382_v22 = vadd.f32 %v3301_v35, %v3158_v2  ;;  %v3525_v58 = vmul.f32 %v9450_v17, %v10969_v4 }
 0x238   : > { %16931 = vst [vmem:[#allocation265_spill] sm:$0xff] %v11157_v38  ;;  %v11169_v40 = vcombine.high %v11140_v28, %v11140_v28  ;;  %v2728_v44 = vadd.f32 %v2647_v20, %v2504_v7  ;;  %v3391_v36 = vadd.f32 %v3310_v52, %v3167_v54  ;;  %v3534_v32 = vmul.f32 %v9450_v17, %v11099_v26 }
 0x239   : > { %v2871_v25 = vmul.f32 %v9395_v30, %v11149_v47  ;;  %v3392_v13 = vadd.f32 %v3311_v42, %v3168_v18  ;;  %v3606_v48 = vadd.f32 %v3525_v58, %v3382_v22  ;;  %v3749_v1 = vmul.f32 %v9505_v46, %v10977_v56 }
 0x23a   : > { %16932 = vst [vmem:[#allocation266_spill] sm:$0xff] %v11169_v40  ;;  %v5829_v29 = vadd.f32 %v5748_v10, %v5605_v16  ;;  %v3535_v63 = vmul.f32 %v9450_v17, %v11157_v38  ;;  %v3615_v2 = vadd.f32 %v3534_v32, %v3391_v36  ;;  %v3758_v7 = vmul.f32 %v9505_v46, %v11124_v24 }
 0x23b   : > { %v4942_v35 = vadd.f32 %v11053_v9, %v4718_v31  ;;  %v3830_v20 = vadd.f32 %v3749_v1, %v3606_v48  ;;  %v3973_v54 = vmul.f32 %v9759_v19, %v11107_v33  ;;  %v3974_v30 = vmul.f32 %v9759_v19, %v11013_v15 }
 0x23c   : > { %v2952_v52 = vadd.f32 %v2871_v25, %v2728_v44  ;;  %v3616_v18 = vadd.f32 %v3535_v63, %v3392_v13  ;;  %v3839_v42 = vadd.f32 %v3758_v7, %v3615_v2  ;;  %v3982_v16 = vmul.f32 %v9759_v19, %v11149_v47 }
 0x23d   : > { %v4054_v10 = vadd.f32 %v3973_v54, %v3830_v20  ;;  %v4055_v22 = vadd.f32 %v3974_v30, %v11055_v57  ;;  %v4197_v58 = vmul.f32 %v16754_v5, %v11111_v59  ;;  %v4198_v31 = vmul.f32 %v16754_v5, %v10972_v0 }
 0x23e   : > { %v6053_v9 = vadd.f32 %v11087_v49, %v5829_v29  ;;  %v3095_v36 = vmul.f32 %v9404_v61, %v11116_v51  ;;  %v3759_v44 = vmul.f32 %v9505_v46, %v11169_v40  ;;  %v4421_v32 = vmul.f32 %v16756_v53, %v11096_v12 }
 0x23f   : > { %v4063_v25 = vadd.f32 %v3982_v16, %v3839_v42  ;;  %v4278_v13 = vadd.f32 %v4197_v58, %v4054_v10  ;;  %v4279_v57 = vadd.f32 %v4198_v31, %v4055_v22  ;;  %v4422_v48 = vmul.f32 %v16756_v53, %v11140_v28 }
 0x240   : > { %v11202_v1 = vadd.f32 %v3095_v36, %v2952_v52  ;;  %v11204_v63 = vadd.f32 %v3759_v44, %v3616_v18  ;;  %v4206_v49 = vmul.f32 %v16754_v5, %v11116_v51  ;;  %v5085_v61 = vmul.f32 %v16768_v21, %v11013_v15  ;;  %v11231_v36 = vld [vmem:[%s15294_s5] ss:$0 sm:$0xff] }
 0x241   : > { %v4502_v29 = vadd.f32 %v4421_v32, %v4278_v13  ;;  %v4503_v2 = vadd.f32 %v4422_v48, %v4279_v57  ;;  %v4645_v7 = vmul.f32 %v16758_v14, %v11099_v26  ;;  %v4646_v20 = vmul.f32 %v16758_v14, %v11157_v38  ;;  %16934 = vst [vmem:[#allocation268_spill] sm:$0xff] %v11231_v36  ;;  %v16935_v44 = vld [vmem:[#allocation182_spill] sm:$0xff]  ;;  %v16936_v48 = vld [vmem:[#allocation193_spill] sm:$0xff] }
 0x242   : > { %16933 = vst [vmem:[#allocation267_spill] sm:$0xff] %v11204_v63  ;;  %v4869_v54 = vmul.f32 %v16762_v55, %v11124_v24  ;;  %v5166_v30 = vadd.f32 %v5085_v61, %v4942_v35  ;;  %v5309_v52 = vmul.f32 %v16843_v11, %v10972_v0  ;;  %v6196_v18 = vmul.f32 %v16872_v60, %v11013_v15 }
 0x243   : > { %v11220_v42 = vadd.f32 %v4206_v49, %v4063_v25  ;;  %v4726_v16 = vadd.f32 %v4645_v7, %v4502_v29  ;;  %v4870_v10 = vmul.f32 %v16762_v55, %v11169_v40  ;;  %v5533_v22 = vmul.f32 %v16844_v50, %v11140_v28  ;;  %v16937_v7 = vld [vmem:[#allocation49_spill] sm:$0xff] }
 0x244   : > { %v5390_v58 = vadd.f32 %v5309_v52, %v5166_v30  ;;  %v6277_v31 = vadd.f32 %v6196_v18, %v6053_v9  ;;  %v6420_v35 = vmul.f32 %v16875_v41, %v10972_v0  ;;  %v774_v32 = vadd.f32 %v11231_v36, %v16935_v44 }
 0x245   : > { %v4727_v25 = vadd.f32 %v4646_v20, %v4503_v2  ;;  %v4950_v13 = vadd.f32 %v4869_v54, %v4726_v16  ;;  %v6644_v57 = vmul.f32 %v16847_v62, %v11140_v28  ;;  %v779_v49 = vadd.f32 %v11231_v36, %v16936_v48 }
 0x246   : > { %v5614_v9 = vadd.f32 %v5533_v22, %v5390_v58  ;;  %v6501_v61 = vadd.f32 %v6420_v35, %v6277_v31  ;;  %v816_v29 = vmax.f32 %v774_v32, 0.0  ;;  %v782_v30 = vadd.f32 %v11231_v36, %v16937_v7 }
 0x247   : > { %v5093_v52 = vmul.f32 %v16768_v21, %v11149_v47  ;;  %v5317_v18 = vmul.f32 %v16843_v11, %v11116_v51  ;;  %v5757_v2 = vmul.f32 %v16845_v3, %v11157_v38  ;;  %v817_v20 = vmax.f32 %v779_v49, 0.0 }
 0x248   : > { %v5981_v28 = vmul.f32 %v16865_v23, %v11169_v40  ;;  %v11249_v54 = vadd.f32 %v6644_v57, %v6501_v61  ;;  %v1580_v16 = vcombine.high %v816_v29, %v816_v29  ;;  %v1587_v22 = vrot.slane %v816_v29, %v16656_v6 }
 0x249   : > { %v11252_v58 = vadd.f32 %v4870_v10, %v4727_v25  ;;  %v11256_v31 = vmul.f32 %v16875_v41, %v11116_v51  ;;  %v1629_v35 = vcombine.high %v817_v20, %v817_v20  ;;  %v1636_v44 = vrot.slane %v817_v20, %v16656_v6 }
 0x24a   : > { %16938 = vst [vmem:[#allocation182_spill] sm:$0xff] %v11249_v54  ;;  %v5174_v32 = vadd.f32 %v5093_v52, %v4950_v13  ;;  %v1594_v48 = vrot.slane %v1580_v16, %v16656_v6  ;;  %v1595_v49 = vcombine.high %v1587_v22, %v1587_v22  ;;  %v818_v7 = vmax.f32 %v782_v30, 0.0  ;;  %v16943_v13 = vld [vmem:[#allocation90_spill] sm:$0xff] }
 0x24b   : > { %16939 = vst [vmem:[#allocation193_spill] sm:$0xff] %v11256_v31  ;;  %v5838_v59 = vadd.f32 %v5757_v2, %v5614_v9  ;;  %v11261_v57 = vrot.slane %v1587_v22, %v16656_v6  ;;  %v1643_v61 = vrot.slane %v1629_v35, %v16656_v6  ;;  %v1644_v10 = vcombine.high %v1636_v44, %v1636_v44  ;;  %v16946_v2 = vld [vmem:[#allocation91_spill] sm:$0xff] }
 0x24c   : > { %v1596_v25 = vcombine.high %v1594_v48, %v1594_v48  ;;  %v11265_v29 = vrot.slane %v1594_v48, %v16656_v6  ;;  %v11268_v31 = vrot.slane %v1636_v44, %v16656_v6  ;;  %v2198_v52 = vmul.f32 %v16943_v13, %v11025_v39 }
 0x24d   : > { %16940 = vst [vmem:[#allocation49_spill] sm:$0xff] %v11261_v57  ;;  %v11273_v20 = vrot.slane %v1595_v49, %v16656_v6  ;;  %v1645_v9 = vcombine.high %v1643_v61, %v1643_v61  ;;  %v11276_v30 = vrot.slane %v1643_v61, %v16656_v6  ;;  %v2422_v16 = vmul.f32 %v16946_v2, %v11096_v12 }
 0x24e   : > { %16941 = vst [vmem:[#allocation269_spill] sm:$0xff] %v11265_v29  ;;  %16942 = vst [vmem:[#allocation270_spill] sm:$0xff] %v11268_v31  ;;  %v5398_v22 = vadd.f32 %v5317_v18, %v5174_v32  ;;  %v11281_v35 = vrot.slane %v1596_v25, %v16656_v6  ;;  %v11285_v44 = vcombine.high %v11265_v29, %v11265_v29 }
 0x24f   : > { %16944 = vst [vmem:[#allocation271_spill] sm:$0xff] %v11273_v20  ;;  %16945 = vst [vmem:[#allocation272_spill] sm:$0xff] %v11276_v30  ;;  %v1678_v48 = vcombine.high %v818_v7, %v818_v7  ;;  %v11287_v51 = vadd.f32 %v5981_v28, %v5838_v59  ;;  %v11291_v49 = vcombine.high %v11261_v57, %v11261_v57 }
 0x250   : > { %16947 = vst [vmem:[#allocation273_spill] sm:$0xff] %v11281_v35  ;;  %16948 = vst [vmem:[#allocation274_spill] sm:$0xff] %v11285_v44  ;;  %v11294_v61 = vrot.slane %v1644_v10, %v16656_v6  ;;  %v1685_v54 = vrot.slane %v818_v7, %v16656_v6  ;;  %v11299_v18 = vcombine.high %v11281_v35, %v11281_v35 }
 0x251   : > { %16949 = vst [vmem:[#allocation275_spill] sm:$0xff] %v11287_v51  ;;  %16950 = vst [vmem:[#allocation276_spill] sm:$0xff] %v11291_v49  ;;  %v3319_v32 = vmul.f32 %v9422_v37, %v11281_v35  ;;  %v3991_v59 = vmul.f32 %v9759_v19, %v11268_v31  ;;  %v4430_v28 = vmul.f32 %v16756_v53, %v11281_v35  ;;  %v16956_v51 = vld [vmem:[#allocation5_spill] sm:$0xff] }
 0x252   : > { %16951 = vst [vmem:[#allocation277_spill] sm:$0xff] %v11294_v61  ;;  %16952 = vst [vmem:[#allocation278_spill] sm:$0xff] %v11299_v18  ;;  %v11309_v25 = vcombine.high %v11273_v20, %v11273_v20  ;;  %v11312_v10 = vrot.slane %v1645_v9, %v16656_v6  ;;  %v11316_v7 = vcombine.high %v11276_v30, %v11276_v30 }
 0x253   : > { %v11320_v37 = vmul.f32 %v16956_v51, %v11268_v31  ;;  %v3400_v12 = vadd.f32 %v3319_v32, %v11202_v1  ;;  %v3543_v33 = vmul.f32 %v9450_v17, %v11285_v44  ;;  %v4511_v56 = vadd.f32 %v4430_v28, %v11220_v42 }
 0x254   : > { %16953 = vst [vmem:[#allocation279_spill] sm:$0xff] %v11309_v25  ;;  %16954 = vst [vmem:[#allocation280_spill] sm:$0xff] %v11312_v10  ;;  %v4654_v4 = vmul.f32 %v16758_v14, %v11285_v44  ;;  %v11330_v9 = vcombine.high %v11294_v61, %v11294_v61  ;;  %v3767_v2 = vmul.f32 %v9505_v46, %v11299_v18 }
 0x255   : > { %16955 = vst [vmem:[#allocation281_spill] sm:$0xff] %v11316_v7  ;;  %v5102_v13 = vmul.f32 %v16768_v21, %v11268_v31  ;;  %v5541_v1 = vmul.f32 %v16844_v50, %v11281_v35  ;;  %v3624_v32 = vadd.f32 %v3543_v33, %v3400_v12  ;;  %v4878_v42 = vmul.f32 %v16762_v55, %v11299_v18  ;;  %v16960_v12 = vld [vmem:[#allocation95_spill] sm:$0xff] }
 0x256   : > { %16957 = vst [vmem:[#allocation282_spill] sm:$0xff] %v11330_v9  ;;  %v4735_v17 = vadd.f32 %v4654_v4, %v4511_v56  ;;  %v1692_v28 = vrot.slane %v1678_v48, %v16656_v6  ;;  %v5765_v8 = vmul.f32 %v16845_v3, %v11285_v44  ;;  %v1693_v51 = vcombine.high %v1685_v54, %v1685_v54 }
 0x257   : > { %v5622_v43 = vadd.f32 %v5541_v1, %v5398_v22  ;;  %v2503_v14 = vadd.f32 %v2422_v16, %v2198_v52  ;;  %v3848_v46 = vadd.f32 %v3767_v2, %v3624_v32  ;;  %v5989_v63 = vmul.f32 %v16865_v23, %v11299_v18  ;;  %v16963_v2 = vld [vmem:[#allocation99_spill] sm:$0xff] }
 0x258   : > { %v4959_v53 = vadd.f32 %v4878_v42, %v4735_v17  ;;  %v11346_v25 = vrot.slane %v1685_v54, %v16656_v6  ;;  %v1694_v33 = vcombine.high %v1692_v28, %v1692_v28  ;;  %v11349_v4 = vrot.slane %v1693_v51, %v16656_v6 }
 0x259   : > { %v5846_v56 = vadd.f32 %v5765_v8, %v5622_v43  ;;  %v2646_v22 = vmul.f32 %v16960_v12, %v11099_v26  ;;  %v11355_v48 = vcombine.high %v11312_v10, %v11312_v10  ;;  %v11359_v17 = vmul.f32 %v16754_v5, %v11294_v61 }
 0x25a   : > { %16958 = vst [vmem:[#allocation283_spill] sm:$0xff] %v11346_v25  ;;  %16959 = vst [vmem:[#allocation284_spill] sm:$0xff] %v11349_v4  ;;  %v5183_v52 = vadd.f32 %v5102_v13, %v4959_v53  ;;  %v5326_v54 = vmul.f32 %v16843_v11, %v11294_v61  ;;  %v6213_v8 = vmul.f32 %v16872_v60, %v11268_v31 }
 0x25b   : > { %16961 = vst [vmem:[#allocation285_spill] sm:$0xff] %v11355_v48  ;;  %16962 = vst [vmem:[#allocation286_spill] sm:$0xff] %v11359_v17  ;;  %v6070_v43 = vadd.f32 %v5989_v63, %v5846_v56  ;;  %v2727_v51 = vadd.f32 %v2646_v22, %v2503_v14  ;;  %v2870_v16 = vmul.f32 %v16963_v2, %v11124_v24  ;;  %v16974_v2 = vld [vmem:[#allocation163_spill] sm:$0xff] }
 0x25c   : > { %v11367_v1 = vadd.f32 %v3991_v59, %v3848_v46  ;;  %v6437_v32 = vmul.f32 %v16875_v41, %v11294_v61  ;;  %v11372_v42 = vrot.slane %v1692_v28, %v16656_v6  ;;  %v11376_v53 = vcombine.high %v11346_v25, %v11346_v25  ;;  %v16969_v46 = vld [vmem:[#allocation103_spill] sm:$0xff]  ;;  %v17010_v25 = vld [vmem:[#allocation174_spill] sm:$0xff] }
 0x25d   : > { %v11379_v63 = vrot.slane %v1694_v33, %v16656_v6  ;;  %v11383_v14 = vcombine.high %v11349_v4, %v11349_v4  ;;  %v2951_v13 = vadd.f32 %v2870_v16, %v2727_v51  ;;  %v3094_v59 = vmul.f32 %v16969_v46, %v11149_v47  ;;  %v16971_v28 = vld [vmem:[#allocation159_spill] sm:$0xff]  ;;  %v16973_v33 = vld [vmem:[#allocation161_spill] sm:$0xff]  ;;  %v16975_v51 = vld [vmem:[#allocation204_spill] sm:$0xff] }
 0x25e   : > { %16964 = vst [vmem:[#allocation287_spill] sm:$0xff] %v11367_v1  ;;  %16965 = vst [vmem:[#allocation288_spill] sm:$0xff] %v11372_v42  ;;  %v11387_v56 = vadd.f32 %v5326_v54, %v5183_v52  ;;  %v6294_v22 = vadd.f32 %v6213_v8, %v6070_v43  ;;  %v3318_v17 = vmul.f32 %v16971_v28, %v11265_v29  ;;  %v16972_v1 = vld [vmem:[#allocation160_spill] sm:$0xff]  ;;  %v16976_v52 = vld [vmem:[#allocation51_spill] sm:$0xff] }
 0x25f   : > { %16966 = vst [vmem:[#allocation289_spill] sm:$0xff] %v11376_v53  ;;  %16967 = vst [vmem:[#allocation290_spill] sm:$0xff] %v11379_v63  ;;  %v3542_v61 = vmul.f32 %v16972_v1, %v11281_v35  ;;  %v3175_v24 = vadd.f32 %v3094_v59, %v2951_v13  ;;  %v3766_v26 = vmul.f32 %v16973_v33, %v11285_v44  ;;  %v16977_v43 = vld [vmem:[#allocation78_spill] sm:$0xff]  ;;  %v16979_v35 = vld [vmem:[#allocation45_spill] sm:$0xff] }
 0x260   : > { %16968 = vst [vmem:[#allocation291_spill] sm:$0xff] %v11383_v14  ;;  %16970 = vst [vmem:[#allocation292_spill] sm:$0xff] %v11387_v56  ;;  %v3990_v12 = vmul.f32 %v16974_v2, %v11299_v18  ;;  %v787_v16 = vadd.f32 %v11231_v36, %v16975_v51  ;;  %v4438_v54 = vmul.f32 %v16976_v52, %v11349_v4  ;;  %v16978_v56 = vld [vmem:[#allocation80_spill] sm:$0xff]  ;;  %v16985_v1 = vld [vmem:[#allocation171_spill] sm:$0xff] }
 0x261   : > { %v4662_v8 = vmul.f32 %v16977_v43, %v11376_v53  ;;  %v2183_v47 = vmul.f32 %v16978_v56, %v10881_v27  ;;  %v2192_v13 = vmul.f32 %v16978_v56, %v10960_v34  ;;  %v3399_v59 = vadd.f32 %v3318_v17, %v3175_v24  ;;  %v16980_v46 = vld [vmem:[#allocation248_spill] sm:$0xff] }
 0x262   : > { %v819_v44 = vmax.f32 %v787_v16, 0.0  ;;  %v2407_v18 = vmul.f32 %v16979_v35, %v10909_v45  ;;  %v2416_v51 = vmul.f32 %v16979_v35, %v16980_v46  ;;  %v11411_v2 = vadd.f32 %v6437_v32, %v6294_v22  ;;  %v16982_v52 = vld [vmem:[#allocation4_spill] sm:$0xff] }
 0x263   : > { %v4886_v33 = vmul.f32 %v16982_v52, %v11383_v14  ;;  %v16983_v53 = vld [vmem:[#allocation168_spill] sm:$0xff]  ;;  %v3623_v24 = vadd.f32 %v3542_v61, %v3399_v59  ;;  %v11424_v35 = vmul.f32 %v16985_v1, %v11379_v63  ;;  %v16991_v59 = vld [vmem:[#allocation58_spill] sm:$0xff] }
 0x264   : > { %16981 = vst [vmem:[#allocation204_spill] sm:$0xff] %v11411_v2  ;;  %v11417_v43 = vmul.f32 %v16983_v53, %v11372_v42  ;;  %v16984_v27 = vld [vmem:[#allocation48_spill] sm:$0xff]  ;;  %v1727_v17 = vcombine.high %v819_v44, %v819_v44  ;;  %v1734_v16 = vrot.slane %v819_v44, %v16656_v6  ;;  %v2488_v45 = vadd.f32 %v2407_v18, %v2183_v47  ;;  %v16990_v18 = vld [vmem:[#allocation239_spill] sm:$0xff] }
 0x265   : > { %v2640_v56 = vmul.f32 %v16984_v27, %v11013_v15  ;;  %16986 = vst [vmem:[#allocation293_spill] sm:$0xff] %v11424_v35  ;;  %v2497_v32 = vadd.f32 %v2416_v51, %v2192_v13  ;;  %v16987_v22 = vld [vmem:[#allocation236_spill] sm:$0xff]  ;;  %v3847_v53 = vadd.f32 %v3766_v26, %v3623_v24  ;;  %v3079_v1 = vmul.f32 %v16991_v59, %v16990_v18  ;;  %v16992_v35 = vld [vmem:[#allocation249_spill] sm:$0xff] }
 0x266   : > { %v2631_v14 = vmul.f32 %v16984_v27, %v16987_v22  ;;  %v16988_v2 = vld [vmem:[#allocation240_spill] sm:$0xff]  ;;  %v1741_v28 = vrot.slane %v1727_v17, %v16656_v6  ;;  %v1742_v4 = vcombine.high %v1734_v16, %v1734_v16  ;;  %v3088_v13 = vmul.f32 %v16991_v59, %v16992_v35 }
 0x267   : > { %v16989_v52 = vld [vmem:[#allocation52_spill] sm:$0xff]  ;;  %v2721_v47 = vadd.f32 %v2640_v56, %v2497_v32  ;;  %v4071_v51 = vadd.f32 %v3990_v12, %v3847_v53  ;;  %v11438_v22 = vrot.slane %v1734_v16, %v16656_v6  ;;  %v11451_v12 = vcombine.high %v11268_v31, %v11268_v31  ;;  %v17003_v31 = vld [vmem:[#allocation109_spill] sm:$0xff] }
 0x268   : > { %v2855_v42 = vmul.f32 %v16989_v52, %v16988_v2  ;;  %v2864_v61 = vmul.f32 %v16989_v52, %v10972_v0  ;;  %v2712_v44 = vadd.f32 %v2631_v14, %v2488_v45  ;;  %v1743_v27 = vcombine.high %v1741_v28, %v1741_v28  ;;  %v16995_v14 = vld [vmem:[#allocation66_spill] sm:$0xff] }
 0x269   : > { %v11441_v26 = vrot.slane %v1741_v28, %v16656_v6  ;;  %v11444_v24 = vrot.slane %v1742_v4, %v16656_v6  ;;  %v3312_v56 = vmul.f32 %v16995_v14, %v11157_v38  ;;  %v4295_v32 = vadd.f32 %v11320_v37, %v4071_v51  ;;  %16996 = vst [vmem:[#allocation296_spill] sm:$0xff] %v11451_v12 }
 0x26a   : > { %v2936_v17 = vadd.f32 %v2855_v42, %v2712_v44  ;;  %v2945_v45 = vadd.f32 %v2864_v61, %v2721_v47  ;;  %v11455_v53 = vcombine.high %v11379_v63, %v11379_v63  ;;  %v3303_v28 = vmul.f32 %v16995_v14, %v10960_v34  ;;  %v16997_v42 = vld [vmem:[#allocation70_spill] sm:$0xff] }
 0x26b   : > { %16993 = vst [vmem:[#allocation294_spill] sm:$0xff] %v11441_v26  ;;  %16994 = vst [vmem:[#allocation295_spill] sm:$0xff] %v11444_v24  ;;  %v3527_v61 = vmul.f32 %v16997_v42, %v16980_v46  ;;  %v3536_v44 = vmul.f32 %v16997_v42, %v11169_v40  ;;  %v4519_v37 = vadd.f32 %v4438_v54, %v4295_v32  ;;  %v17004_v42 = vld [vmem:[#allocation113_spill] sm:$0xff] }
 0x26c   : > { %v3160_v4 = vadd.f32 %v3079_v1, %v2936_v17  ;;  %v3169_v16 = vadd.f32 %v3088_v13, %v2945_v45  ;;  %v11464_v47 = vrot.slane %v1743_v27, %v16656_v6  ;;  %v11468_v51 = vcombine.high %v11438_v22, %v11438_v22  ;;  %v17002_v45 = vld [vmem:[#allocation75_spill] sm:$0xff] }
 0x26d   : > { %v11472_v63 = vcombine.high %v11441_v26, %v11441_v26  ;;  %v11476_v1 = vcombine.high %v11444_v24, %v11444_v24  ;;  %v3751_v54 = vmul.f32 %v17002_v45, %v11013_v15  ;;  %v4743_v32 = vadd.f32 %v4662_v8, %v4519_v37 }
 0x26e   : > { %16998 = vst [vmem:[#allocation297_spill] sm:$0xff] %v11464_v47  ;;  %16999 = vst [vmem:[#allocation298_spill] sm:$0xff] %v11468_v51  ;;  %v3384_v13 = vadd.f32 %v3303_v28, %v3160_v4  ;;  %v3393_v17 = vadd.f32 %v3312_v56, %v3169_v16  ;;  %v3760_v27 = vmul.f32 %v17002_v45, %v11261_v57  ;;  %v17005_v28 = vld [vmem:[#allocation117_spill] sm:$0xff]  ;;  %v17006_v16 = vld [vmem:[#allocation122_spill] sm:$0xff] }
 0x26f   : > { %17000 = vst [vmem:[#allocation299_spill] sm:$0xff] %v11472_v63  ;;  %17001 = vst [vmem:[#allocation300_spill] sm:$0xff] %v11476_v1  ;;  %v3975_v34 = vmul.f32 %v17003_v31, %v10972_v0  ;;  %v3984_v59 = vmul.f32 %v17003_v31, %v11273_v20  ;;  %v4199_v14 = vmul.f32 %v17004_v42, %v16992_v35  ;;  %v17007_v45 = vld [vmem:[#allocation126_spill] sm:$0xff] }
 0x270   : > { %v3608_v52 = vadd.f32 %v3527_v61, %v3384_v13  ;;  %v3617_v2 = vadd.f32 %v3536_v44, %v3393_v17  ;;  %v4208_v56 = vmul.f32 %v17004_v42, %v11291_v49  ;;  %v4423_v8 = vmul.f32 %v17005_v28, %v11157_v38 }
 0x271   : > { %v4432_v4 = vmul.f32 %v17005_v28, %v11330_v9  ;;  %v4647_v37 = vmul.f32 %v17006_v16, %v11169_v40  ;;  %v5094_v31 = vmul.f32 %v16768_v21, %v11261_v57  ;;  %v4967_v61 = vadd.f32 %v4886_v33, %v4743_v32  ;;  %v17008_v33 = vld [vmem:[#allocation129_spill] sm:$0xff] }
 0x272   : > { %v3832_v44 = vadd.f32 %v3751_v54, %v3608_v52  ;;  %v3841_v13 = vadd.f32 %v3760_v27, %v3617_v2  ;;  %v4656_v17 = vmul.f32 %v17006_v16, %v11276_v30  ;;  %v4871_v18 = vmul.f32 %v17007_v45, %v11261_v57  ;;  %v17009_v54 = vld [vmem:[#allocation132_spill] sm:$0xff] }
 0x273   : > { %v4880_v38 = vmul.f32 %v17007_v45, %v11312_v10  ;;  %v5175_v63 = vadd.f32 %v5094_v31, %v11252_v58  ;;  %v5318_v47 = vmul.f32 %v16843_v11, %v11273_v20  ;;  %v5095_v52 = vmul.f32 %v17008_v33, %v11273_v20 }
 0x274   : > { %v4056_v26 = vadd.f32 %v3975_v34, %v3832_v44  ;;  %v4065_v1 = vadd.f32 %v3984_v59, %v3841_v13  ;;  %v5104_v2 = vmul.f32 %v17008_v33, %v11316_v7  ;;  %v5319_v32 = vmul.f32 %v17009_v54, %v11291_v49  ;;  %v17012_v13 = vld [vmem:[#allocation142_spill] sm:$0xff] }
 0x275   : > { %v5399_v27 = vadd.f32 %v5318_v47, %v5175_v63  ;;  %v5542_v51 = vmul.f32 %v16844_v50, %v11451_v12  ;;  %v5661_v58 = vcombine.high %v17010_v25, %v17010_v25  ;;  %v11518_v31 = vadd.f32 %v11417_v43, %v4967_v61 }
 0x276   : > { %v4280_v34 = vadd.f32 %v4199_v14, %v4056_v26  ;;  %v4289_v59 = vadd.f32 %v4208_v56, %v4065_v1  ;;  %v5328_v44 = vmul.f32 %v17009_v54, %v11355_v48  ;;  %v5543_v11 = vmul.f32 %v17012_v13, %v11330_v9  ;;  %v17015_v56 = vld [vmem:[#allocation17_spill] sm:$0xff] }
 0x277   : > { %17011 = vst [vmem:[#allocation174_spill] sm:$0xff] %v11518_v31  ;;  %v5552_v63 = vmul.f32 %v17012_v13, %v11438_v22  ;;  %v5623_v47 = vadd.f32 %v5542_v51, %v5399_v27  ;;  %v5766_v50 = vmul.f32 %v16845_v3, %v11330_v9  ;;  %v11530_v43 = vmul.f32 %v16845_v3, %v11438_v22  ;;  %v17020_v3 = vld [vmem:[#allocation73_spill] sm:$0xff] }
 0x278   : > { %v4504_v33 = vadd.f32 %v4423_v8, %v4280_v34  ;;  %v4513_v25 = vadd.f32 %v4432_v4, %v4289_v59  ;;  %v5990_v26 = vmul.f32 %v16865_v23, %v11276_v30  ;;  %v11535_v14 = vrot.slane %v5661_v58, %v16656_v6  ;;  %v17016_v4 = vld [vmem:[#allocation21_spill] sm:$0xff] }
 0x279   : > { %17013 = vst [vmem:[#allocation301_spill] sm:$0xff] %v11530_v43  ;;  %v5847_v1 = vadd.f32 %v5766_v50, %v5623_v47  ;;  %v5991_v61 = vmul.f32 %v17015_v56, %v11312_v10  ;;  %v6214_v51 = vmul.f32 %v16872_v60, %v11312_v10  ;;  %v6215_v34 = vmul.f32 %v17016_v4, %v11316_v7  ;;  %v17017_v47 = vld [vmem:[#allocation224_spill] sm:$0xff]  ;;  %v17019_v4 = vld [vmem:[#allocation81_spill] sm:$0xff] }
 0x27a   : > { %17014 = vst [vmem:[#allocation302_spill] sm:$0xff] %v11535_v14  ;;  %v4728_v27 = vadd.f32 %v4647_v37, %v4504_v33  ;;  %v4737_v8 = vadd.f32 %v4656_v17, %v4513_v25  ;;  %v6438_v59 = vmul.f32 %v16875_v41, %v11316_v7  ;;  %v5767_v31 = vmul.f32 %v11535_v14, %v11276_v30  ;;  %v17018_v17 = vld [vmem:[#allocation77_spill] sm:$0xff] }
 0x27b   : > { %v5776_v50 = vmul.f32 %v11535_v14, %v11444_v24  ;;  %v6071_v58 = vadd.f32 %v5990_v26, %v5847_v1  ;;  %v790_v43 = vadd.f32 %v11231_v36, %v17017_v47  ;;  %v6662_v37 = vmul.f32 %v16847_v62, %v11455_v53  ;;  %v17021_v47 = vld [vmem:[#allocation29_spill] sm:$0xff] }
 0x27c   : > { %v4952_v56 = vadd.f32 %v4871_v18, %v4728_v27  ;;  %v4961_v60 = vadd.f32 %v4880_v38, %v4737_v8  ;;  %v2194_v33 = vmul.f32 %v17018_v17, %v11013_v15  ;;  %v2193_v23 = vmul.f32 %v17019_v4, %v16980_v46  ;;  %v17022_v38 = vld [vmem:[#allocation50_spill] sm:$0xff]  ;;  %v17024_v4 = vld [vmem:[#allocation55_spill] sm:$0xff] }
 0x27d   : > { %v6295_v25 = vadd.f32 %v6214_v51, %v6071_v58  ;;  %v820_v41 = vmax.f32 %v790_v43, 0.0  ;;  %v2417_v14 = vmul.f32 %v17020_v3, %v11013_v15  ;;  %v6886_v18 = vmul.f32 %v17021_v47, %v11438_v22  ;;  %v17023_v51 = vld [vmem:[#allocation93_spill] sm:$0xff] }
 0x27e   : > { %v5176_v26 = vadd.f32 %v5095_v52, %v4952_v56  ;;  %v5185_v1 = vadd.f32 %v5104_v2, %v4961_v60  ;;  %v2418_v27 = vmul.f32 %v17022_v38, %v10972_v0  ;;  %v2641_v43 = vmul.f32 %v17023_v51, %v10972_v0  ;;  %v17025_v56 = vld [vmem:[#allocation97_spill] sm:$0xff] }
 0x27f   : > { %v6519_v8 = vadd.f32 %v6438_v59, %v6295_v25  ;;  %v1776_v36 = vcombine.high %v820_v41, %v820_v41  ;;  %v2498_v62 = vadd.f32 %v2417_v14, %v2193_v23  ;;  %v2642_v15 = vmul.f32 %v17024_v4, %v16992_v35 }
 0x280   : > { %v5400_v58 = vadd.f32 %v5319_v32, %v5176_v26  ;;  %v5409_v17 = vadd.f32 %v5328_v44, %v5185_v1  ;;  %v2499_v46 = vadd.f32 %v2418_v27, %v2194_v33  ;;  %v11568_v60 = vrot.slane %v820_v41, %v16656_v6  ;;  %v17026_v32 = vld [vmem:[#allocation26_spill] sm:$0xff]  ;;  %v17028_v1 = vld [vmem:[#allocation31_spill] sm:$0xff] }
 0x281   : > { %v6743_v52 = vadd.f32 %v6662_v37, %v6519_v8  ;;  %v1790_v2 = vrot.slane %v1776_v36, %v16656_v6  ;;  %v2865_v59 = vmul.f32 %v17025_v56, %v16992_v35  ;;  %v2722_v14 = vadd.f32 %v2641_v43, %v2498_v62  ;;  %v17029_v27 = vld [vmem:[#allocation250_spill] sm:$0xff]  ;;  %v17030_v8 = vld [vmem:[#allocation59_spill] sm:$0xff] }
 0x282   : > { %v5624_v25 = vadd.f32 %v5543_v11, %v5400_v58  ;;  %v5633_v23 = vadd.f32 %v5552_v63, %v5409_v17  ;;  %v2723_v3 = vadd.f32 %v2642_v15, %v2499_v46  ;;  %v6439_v44 = vmul.f32 %v17026_v32, %v11355_v48  ;;  %v17031_v17 = vld [vmem:[#allocation101_spill] sm:$0xff] }
 0x283   : > { %v11575_v33 = vadd.f32 %v6886_v18, %v6743_v52  ;;  %v1792_v26 = vcombine.high %v1790_v2, %v1790_v2  ;;  %v11578_v37 = vrot.slane %v1790_v2, %v16656_v6  ;;  %v11582_v36 = vmul.f32 %v17028_v1, %v11438_v22  ;;  %v17032_v22 = vld [vmem:[#allocation65_spill] sm:$0xff]  ;;  %v17033_v52 = vld [vmem:[#allocation107_spill] sm:$0xff] }
 0x284   : > { %v5848_v41 = vadd.f32 %v5767_v31, %v5624_v25  ;;  %v2866_v11 = vmul.f32 %v17030_v8, %v17029_v27  ;;  %v2946_v63 = vadd.f32 %v2865_v59, %v2722_v14  ;;  %v11586_v62 = vadd.f32 %v5776_v50, %v5633_v23  ;;  %v17034_v23 = vld [vmem:[#allocation135_spill] sm:$0xff] }
 0x285   : > { %17027 = vst [vmem:[#allocation224_spill] sm:$0xff] %v11575_v33  ;;  %v11591_v46 = vrot.slane %v1792_v26, %v16656_v6  ;;  %v3089_v18 = vmul.f32 %v17031_v17, %v17029_v27  ;;  %v3090_v58 = vmul.f32 %v17032_v22, %v11025_v39  ;;  %v3313_v2 = vmul.f32 %v17033_v52, %v11169_v40  ;;  %v17035_v26 = vld [vmem:[#allocation136_spill] sm:$0xff]  ;;  %v17037_v40 = vld [vmem:[#allocation137_spill] sm:$0xff]  ;;  %v17038_v27 = vld [vmem:[#allocation86_spill] sm:$0xff] }
 0x286   : > { %v6072_v31 = vadd.f32 %v5991_v61, %v5848_v41  ;;  %v2947_v43 = vadd.f32 %v2866_v11, %v2723_v3  ;;  %v11601_v50 = vcombine.high %v11578_v37, %v11578_v37  ;;  %v3314_v14 = vmul.f32 %v17034_v23, %v11261_v57  ;;  %v17036_v11 = vld [vmem:[#allocation82_spill] sm:$0xff]  ;;  %v17043_v22 = vld [vmem:[#allocation267_spill] sm:$0xff] }
 0x287   : > { %v11605_v59 = vcombine.high %v11591_v46, %v11591_v46  ;;  %v3170_v25 = vadd.f32 %v3089_v18, %v2946_v63  ;;  %v3537_v41 = vmul.f32 %v17035_v26, %v11261_v57  ;;  %v3538_v15 = vmul.f32 %v17036_v11, %v11273_v20 }
 0x288   : > { %v6296_v61 = vadd.f32 %v6215_v34, %v6072_v31  ;;  %v3171_v3 = vadd.f32 %v3090_v58, %v2947_v43  ;;  %v3761_v39 = vmul.f32 %v17037_v40, %v11273_v20  ;;  %v3762_v35 = vmul.f32 %v17038_v27, %v11291_v49  ;;  %v17040_v31 = vld [vmem:[#allocation279_spill] sm:$0xff]  ;;  %v17041_v43 = vld [vmem:[#allocation10_spill] sm:$0xff] }
 0x289   : > { %v3394_v33 = vadd.f32 %v3313_v2, %v3170_v25  ;;  %v3983_v63 = vmul.f32 %v9759_v19, %v11261_v57  ;;  %v11621_v34 = vcombine.high %v9759_v19, %v9759_v19  ;;  %v3986_v58 = vmul.f32 %v17041_v43, %v17040_v31 }
 0x28a   : > { %v3395_v18 = vadd.f32 %v3314_v14, %v3171_v3  ;;  %v11627_v2 = vcombine.high %v16754_v5, %v16754_v5  ;;  %v11629_v25 = vadd.f32 %v6439_v44, %v6296_v61  ;;  %v4207_v57 = vmul.f32 %v16754_v5, %v11273_v20  ;;  %v17045_v61 = vld [vmem:[#allocation115_spill] sm:$0xff]  ;;  %v17054_v20 = vld [vmem:[#allocation129_spill] sm:$0xff] }
 0x28b   : > { %17039 = vst [vmem:[#allocation303_spill] sm:$0xff] %v11621_v34  ;;  %v3618_v0 = vadd.f32 %v3537_v41, %v3394_v33  ;;  %v4064_v17 = vadd.f32 %v3983_v63, %v17043_v22  ;;  %v3985_v3 = vmul.f32 %v11621_v34, %v11291_v49  ;;  %v11638_v19 = vcombine.high %v17004_v42, %v17004_v42 }
 0x28c   : > { %17042 = vst [vmem:[#allocation304_spill] sm:$0xff] %v11627_v2  ;;  %v3619_v14 = vadd.f32 %v3538_v15, %v3395_v18  ;;  %v4209_v8 = vmul.f32 %v11627_v2, %v17040_v31  ;;  %v11644_v33 = vcombine.high %v17045_v61, %v17045_v61  ;;  %v11648_v22 = vcombine.high %v17005_v28, %v17005_v28  ;;  %v17048_v18 = vld [vmem:[#allocation119_spill] sm:$0xff] }
 0x28d   : > { %17044 = vst [vmem:[#allocation267_spill] sm:$0xff] %v11638_v19  ;;  %v3842_v56 = vadd.f32 %v3761_v39, %v3618_v0  ;;  %v4288_v44 = vadd.f32 %v4207_v57, %v4064_v17  ;;  %v4210_v41 = vmul.f32 %v11638_v19, %v11265_v29  ;;  %v4431_v63 = vmul.f32 %v17045_v61, %v11451_v12 }
 0x28e   : > { %17046 = vst [vmem:[#allocation305_spill] sm:$0xff] %v11644_v33  ;;  %17047 = vst [vmem:[#allocation306_spill] sm:$0xff] %v11648_v22  ;;  %v3843_v15 = vadd.f32 %v3762_v35, %v3619_v14  ;;  %v11656_v5 = vcombine.high %v17048_v18, %v17048_v18  ;;  %v4433_v39 = vmul.f32 %v11644_v33, %v11276_v30 }
 0x28f   : > { %v4066_v0 = vadd.f32 %v3985_v3, %v3842_v56  ;;  %v4434_v57 = vmul.f32 %v11648_v22, %v11312_v10  ;;  %v11664_v35 = vcombine.high %v17006_v16, %v17006_v16  ;;  %v4512_v14 = vadd.f32 %v4431_v63, %v4288_v44 }
 0x290   : > { %17049 = vst [vmem:[#allocation307_spill] sm:$0xff] %v11656_v5  ;;  %v4067_v17 = vadd.f32 %v3986_v58, %v3843_v15  ;;  %v4655_v12 = vmul.f32 %v17048_v18, %v11330_v9  ;;  %v4657_v29 = vmul.f32 %v11656_v5, %v11312_v10  ;;  %v11674_v3 = vcombine.high %v16762_v55, %v16762_v55 }
 0x291   : > { %17050 = vst [vmem:[#allocation308_spill] sm:$0xff] %v11664_v35  ;;  %v4290_v31 = vadd.f32 %v4209_v8, %v4066_v0  ;;  %v4658_v56 = vmul.f32 %v11664_v35, %v11316_v7  ;;  %v11678_v49 = vcombine.high %v17007_v45, %v17007_v45  ;;  %v4879_v15 = vmul.f32 %v16762_v55, %v11276_v30  ;;  %v17057_v55 = vld [vmem:[#allocation130_spill] sm:$0xff] }
 0x292   : > { %17051 = vst [vmem:[#allocation309_spill] sm:$0xff] %v11674_v3  ;;  %v4291_v58 = vadd.f32 %v4210_v41, %v4067_v17  ;;  %v4736_v44 = vadd.f32 %v4655_v12, %v4512_v14  ;;  %v11684_v63 = vcombine.high %v16768_v21, %v16768_v21  ;;  %v4881_v0 = vmul.f32 %v11674_v3, %v11316_v7 }
 0x293   : > { %17052 = vst [vmem:[#allocation310_spill] sm:$0xff] %v11678_v49  ;;  %v4514_v8 = vadd.f32 %v4433_v39, %v4290_v31  ;;  %v4882_v9 = vmul.f32 %v11678_v49, %v11355_v48  ;;  %v11692_v18 = vcombine.high %v17054_v20, %v17054_v20  ;;  %v5103_v17 = vmul.f32 %v16768_v21, %v11312_v10  ;;  %v17056_v31 = vld [vmem:[#allocation283_spill] sm:$0xff]  ;;  %v17062_v10 = vld [vmem:[#allocation284_spill] sm:$0xff] }
 0x294   : > { %17053 = vst [vmem:[#allocation311_spill] sm:$0xff] %v11684_v63  ;;  %v4515_v41 = vadd.f32 %v4434_v57, %v4291_v58  ;;  %v4960_v12 = vadd.f32 %v4879_v15, %v4736_v44  ;;  %v5105_v14 = vmul.f32 %v11684_v63, %v11355_v48  ;;  %v11702_v61 = vcombine.high %v17057_v55, %v17057_v55  ;;  %v17060_v15 = vld [vmem:[#allocation138_spill] sm:$0xff] }
 0x295   : > { %17055 = vst [vmem:[#allocation312_spill] sm:$0xff] %v11692_v18  ;;  %v4738_v30 = vadd.f32 %v4657_v29, %v4514_v8  ;;  %v5106_v39 = vmul.f32 %v11692_v18, %v17056_v31  ;;  %v11706_v28 = vcombine.high %v17009_v54, %v17009_v54  ;;  %v5327_v44 = vmul.f32 %v17057_v55, %v11316_v7 }
 0x296   : > { %17058 = vst [vmem:[#allocation313_spill] sm:$0xff] %v11702_v61  ;;  %v4739_v57 = vadd.f32 %v4658_v56, %v4515_v41  ;;  %v5184_v58 = vadd.f32 %v5103_v17, %v4960_v12  ;;  %v11712_v48 = vcombine.high %v17060_v15, %v17060_v15  ;;  %v5329_v8 = vmul.f32 %v11702_v61, %v17056_v31  ;;  %v17065_v31 = vld [vmem:[#allocation178_spill] sm:$0xff]  ;;  %v17081_v61 = vld [vmem:[#allocation24_spill] sm:$0xff] }
 0x297   : > { %17059 = vst [vmem:[#allocation314_spill] sm:$0xff] %v11706_v28  ;;  %v4962_v29 = vadd.f32 %v4881_v0, %v4738_v30  ;;  %v5330_v21 = vmul.f32 %v11706_v28, %v17062_v10  ;;  %v11720_v42 = vcombine.high %v17012_v13, %v17012_v13  ;;  %v5551_v12 = vmul.f32 %v17060_v15, %v11455_v53  ;;  %v17064_v30 = vld [vmem:[#allocation298_spill] sm:$0xff] }
 0x298   : > { %17061 = vst [vmem:[#allocation315_spill] sm:$0xff] %v11712_v48  ;;  %v4963_v56 = vadd.f32 %v4882_v9, %v4739_v57  ;;  %v5408_v41 = vadd.f32 %v5327_v44, %v5184_v58  ;;  %v5553_v17 = vmul.f32 %v11712_v48, %v11444_v24  ;;  %v11730_v51 = vcombine.high %v17065_v31, %v17065_v31  ;;  %v17067_v10 = vld [vmem:[#allocation302_spill] sm:$0xff]  ;;  %v17069_v58 = vld [vmem:[#allocation15_spill] sm:$0xff]  ;;  %v17071_v44 = vld [vmem:[#allocation17_spill] sm:$0xff] }
 0x299   : > { %17063 = vst [vmem:[#allocation316_spill] sm:$0xff] %v11720_v42  ;;  %v5186_v7 = vadd.f32 %v5105_v14, %v4962_v29  ;;  %v5554_v0 = vmul.f32 %v11720_v42, %v17064_v30  ;;  %v11734_v4 = vcombine.high %v17067_v10, %v17067_v10  ;;  %v11738_v53 = vcombine.high %v17069_v58, %v17069_v58  ;;  %v17073_v31 = vld [vmem:[#allocation300_spill] sm:$0xff] }
 0x29a   : > { %17066 = vst [vmem:[#allocation317_spill] sm:$0xff] %v11730_v51  ;;  %v5187_v9 = vadd.f32 %v5106_v39, %v4963_v56  ;;  %v5632_v57 = vadd.f32 %v5551_v12, %v5408_v41  ;;  %v11742_v14 = vcombine.high %v17071_v44, %v17071_v44  ;;  %v5777_v38 = vmul.f32 %v11730_v51, %v17064_v30  ;;  %v17074_v56 = vld [vmem:[#allocation301_spill] sm:$0xff]  ;;  %v17076_v51 = vld [vmem:[#allocation19_spill] sm:$0xff] }
 0x29b   : > { %17068 = vst [vmem:[#allocation318_spill] sm:$0xff] %v11734_v4  ;;  %17070 = vst [vmem:[#allocation319_spill] sm:$0xff] %v11738_v53  ;;  %v5410_v29 = vadd.f32 %v5329_v8, %v5186_v7  ;;  %v5778_v42 = vmul.f32 %v11734_v4, %v17073_v31  ;;  %v5999_v10 = vmul.f32 %v17069_v58, %v11444_v24  ;;  %v17075_v7 = vld [vmem:[#allocation294_spill] sm:$0xff]  ;;  %v17078_v4 = vld [vmem:[#allocation21_spill] sm:$0xff] }
 0x29c   : > { %17072 = vst [vmem:[#allocation320_spill] sm:$0xff] %v11742_v14  ;;  %v5411_v39 = vadd.f32 %v5330_v21, %v5187_v9  ;;  %v5856_v41 = vadd.f32 %v17074_v56, %v5632_v57  ;;  %v6000_v12 = vmul.f32 %v17071_v44, %v17064_v30  ;;  %v6001_v48 = vmul.f32 %v11738_v53, %v17073_v31 }
 0x29d   : > { %v5634_v13 = vadd.f32 %v5553_v17, %v5410_v29  ;;  %v6002_v8 = vmul.f32 %v11742_v14, %v17075_v7  ;;  %v11759_v15 = vcombine.high %v17076_v51, %v17076_v51  ;;  %v11763_v58 = vcombine.high %v17078_v4, %v17078_v4  ;;  %v17080_v14 = vld [vmem:[#allocation297_spill] sm:$0xff] }
 0x29e   : > { %v5635_v21 = vadd.f32 %v5554_v0, %v5411_v39  ;;  %v6080_v9 = vadd.f32 %v5999_v10, %v5856_v41  ;;  %v6081_v57 = vadd.f32 %v6000_v12, %v11586_v62  ;;  %v6223_v56 = vmul.f32 %v17076_v51, %v17064_v30  ;;  %v17084_v12 = vld [vmem:[#allocation299_spill] sm:$0xff]  ;;  %v17159_v51 = vld [vmem:[#allocation156_spill] sm:$0xff] }
 0x29f   : > { %17077 = vst [vmem:[#allocation301_spill] sm:$0xff] %v11759_v15  ;;  %17079 = vst [vmem:[#allocation321_spill] sm:$0xff] %v11763_v58  ;;  %v5858_v53 = vadd.f32 %v5777_v38, %v5634_v13  ;;  %v6224_v17 = vmul.f32 %v17078_v4, %v17073_v31  ;;  %v6225_v29 = vmul.f32 %v11759_v15, %v17075_v7 }
 0x2a0   : > { %v6226_v44 = vmul.f32 %v11763_v58, %v17080_v14  ;;  %v5859_v55 = vadd.f32 %v5778_v42, %v5635_v21  ;;  %v6304_v28 = vadd.f32 %v6223_v56, %v6080_v9  ;;  %v11776_v10 = vcombine.high %v17081_v61, %v17081_v61  ;;  %v17085_v9 = vld [vmem:[#allocation27_spill] sm:$0xff]  ;;  %v17157_v58 = vld [vmem:[#allocation106_spill] sm:$0xff] }
 0x2a1   : > { %v11780_v62 = vcombine.high %v17026_v32, %v17026_v32  ;;  %v6082_v13 = vadd.f32 %v6001_v48, %v5858_v53  ;;  %v6305_v38 = vadd.f32 %v6224_v17, %v6081_v57  ;;  %v6447_v0 = vmul.f32 %v17081_v61, %v17073_v31  ;;  %v17156_v61 = vld [vmem:[#allocation105_spill] sm:$0xff] }
 0x2a2   : > { %17082 = vst [vmem:[#allocation322_spill] sm:$0xff] %v11776_v10  ;;  %v6448_v39 = vmul.f32 %v17026_v32, %v17075_v7  ;;  %v6083_v41 = vadd.f32 %v6002_v8, %v5859_v55  ;;  %v6449_v42 = vmul.f32 %v11776_v10, %v17080_v14  ;;  %v11792_v56 = vcombine.high %v17085_v9, %v17085_v9  ;;  %v17090_v14 = vld [vmem:[#allocation36_spill] sm:$0xff] }
 0x2a3   : > { %17083 = vst [vmem:[#allocation323_spill] sm:$0xff] %v11780_v62  ;;  %v6450_v21 = vmul.f32 %v11780_v62, %v17084_v12  ;;  %v6306_v30 = vadd.f32 %v6225_v29, %v6082_v13  ;;  %v6528_v48 = vadd.f32 %v6447_v0, %v6304_v28  ;;  %v11796_v57 = vcombine.high %v17028_v1, %v17028_v1  ;;  %v17089_v0 = vld [vmem:[#allocation33_spill] sm:$0xff]  ;;  %v17155_v10 = vld [vmem:[#allocation104_spill] sm:$0xff] }
 0x2a4   : > { %17086 = vst [vmem:[#allocation324_spill] sm:$0xff] %v11792_v56  ;;  %v6529_v53 = vadd.f32 %v6448_v39, %v6305_v38  ;;  %v6307_v17 = vadd.f32 %v6226_v44, %v6083_v41  ;;  %v6671_v55 = vmul.f32 %v17085_v9, %v11578_v37  ;;  %v6672_v8 = vmul.f32 %v17028_v1, %v11591_v46 }
 0x2a5   : > { %17087 = vst [vmem:[#allocation325_spill] sm:$0xff] %v11796_v57  ;;  %v6673_v12 = vmul.f32 %v11792_v56, %v11601_v50  ;;  %v6530_v7 = vadd.f32 %v6449_v42, %v6306_v30  ;;  %v6674_v29 = vmul.f32 %v11796_v57, %v11605_v59  ;;  %v11808_v28 = vcombine.high %v17021_v47, %v17021_v47 }
 0x2a6   : > { %v6895_v44 = vmul.f32 %v17021_v47, %v11591_v46  ;;  %v6531_v13 = vadd.f32 %v6450_v21, %v6307_v17  ;;  %v6752_v38 = vadd.f32 %v6671_v55, %v6528_v48  ;;  %v6753_v37 = vadd.f32 %v6672_v8, %v6529_v53  ;;  %v17092_v21 = vld [vmem:[#allocation38_spill] sm:$0xff]  ;;  %v17094_v17 = vld [vmem:[#allocation293_spill] sm:$0xff] }
 0x2a7   : > { %17088 = vst [vmem:[#allocation326_spill] sm:$0xff] %v11808_v28  ;;  %v6896_v39 = vmul.f32 %v17089_v0, %v11601_v50  ;;  %v6744_v41 = vadd.f32 %v11582_v36, %v11629_v25  ;;  %v6754_v30 = vadd.f32 %v6673_v12, %v6530_v7  ;;  %v6897_v42 = vmul.f32 %v11808_v28, %v11605_v59  ;;  %v17093_v53 = vld [vmem:[#allocation174_spill] sm:$0xff]  ;;  %v17098_v12 = vld [vmem:[#allocation268_spill] sm:$0xff] }
 0x2a8   : > { %v7119_v31 = vmul.f32 %v17090_v14, %v11601_v50  ;;  %v11820_v9 = vadd.f32 %v6674_v29, %v6531_v13  ;;  %v6976_v57 = vadd.f32 %v6895_v44, %v6752_v38  ;;  %v7120_v48 = vmul.f32 %v17092_v21, %v11605_v59  ;;  %v17097_v7 = vld [vmem:[#allocation254_spill] sm:$0xff]  ;;  %v17101_v13 = vld [vmem:[#allocation39_spill] sm:$0xff] }
 0x2a9   : > { %v6977_v46 = vadd.f32 %v6896_v39, %v6753_v37  ;;  %v11826_v55 = vadd.f32 %v17094_v17, %v17093_v53  ;;  %v6887_v36 = vmul.f32 %v17089_v0, %v11444_v24  ;;  %v11830_v25 = vadd.f32 %v6897_v42, %v6754_v30  ;;  %v17105_v53 = vld [vmem:[#allocation139_spill] sm:$0xff]  ;;  %v17121_v24 = vld [vmem:[#allocation53_spill] sm:$0xff] }
 0x2aa   : > { %17091 = vst [vmem:[#allocation327_spill] sm:$0xff] %v11820_v9  ;;  %v795_v8 = vadd.f32 %v17098_v12, %v17097_v7  ;;  %v11836_v50 = vrot.slane %v11568_v60, %v16656_v6  ;;  %v7200_v29 = vadd.f32 %v7119_v31, %v6976_v57  ;;  %v7343_v38 = vmul.f32 %v17101_v13, %v11605_v59  ;;  %v17106_v17 = vld [vmem:[#allocation79_spill] sm:$0xff]  ;;  %v17109_v57 = vld [vmem:[#allocation40_spill] sm:$0xff] }
 0x2ab   : > { %17095 = vst [vmem:[#allocation174_spill] sm:$0xff] %v11826_v55  ;;  %17096 = vst [vmem:[#allocation293_spill] sm:$0xff] %v11830_v25  ;;  %v11838_v44 = vadd.f32 %v7120_v48, %v6977_v46  ;;  %v11842_v37 = vadd.f32 %v6887_v36, %v6744_v41  ;;  %v17103_v39 = vcombine.high %v11568_v60, %v11568_v60  ;;  %v17111_v41 = vld [vmem:[#allocation14_spill] sm:$0xff]  ;;  %v17112_v46 = vld [vmem:[#allocation89_spill] sm:$0xff] }
 0x2ac   : > { %17099 = vst [vmem:[#allocation254_spill] sm:$0xff] %v11836_v50  ;;  %v821_v42 = vmax.f32 %v795_v8, 0.0  ;;  %v2132_v7 = vmul.f32 %v17106_v17, %v17105_v53  ;;  %v11852_v12 = vadd.f32 %v7343_v38, %v7200_v29  ;;  %v11856_v31 = vcombine.high %v17089_v0, %v17089_v0  ;;  %v17113_v8 = vld [vmem:[#allocation140_spill] sm:$0xff]  ;;  %v17115_v29 = vld [vmem:[#allocation47_spill] sm:$0xff]  ;;  %v17119_v55 = vld [vmem:[#allocation141_spill] sm:$0xff] }
 0x2ad   : > { %17100 = vst [vmem:[#allocation268_spill] sm:$0xff] %v11838_v44  ;;  %17102 = vst [vmem:[#allocation328_spill] sm:$0xff] %v11842_v37  ;;  %v11848_v30 = vrot.slane %v17103_v39, %v16656_v6  ;;  %v11860_v59 = vcombine.high %v17109_v57, %v17109_v57  ;;  %v2134_v48 = vmul.f32 %v17112_v46, %v17111_v41  ;;  %v17114_v39 = vld [vmem:[#allocation44_spill] sm:$0xff]  ;;  %v17118_v37 = vld [vmem:[#allocation87_spill] sm:$0xff] }
 0x2ae   : > { %17107 = vst [vmem:[#allocation139_spill] sm:$0xff] %v11852_v12  ;;  %17108 = vst [vmem:[#allocation330_spill] sm:$0xff] %v11856_v31  ;;  %v1825_v60 = vcombine.high %v821_v42, %v821_v42  ;;  %v1832_v36 = vrot.slane %v821_v42, %v16656_v6  ;;  %v2356_v44 = vmul.f32 %v17114_v39, %v17113_v8  ;;  %v17116_v12 = vld [vmem:[#allocation205_spill] sm:$0xff]  ;;  %v17123_v13 = vld [vmem:[#allocation212_spill] sm:$0xff] }
 0x2af   : > { %17104 = vst [vmem:[#allocation329_spill] sm:$0xff] %v11848_v30  ;;  %17110 = vst [vmem:[#allocation331_spill] sm:$0xff] %v11860_v59  ;;  %v2357_v38 = vmul.f32 %v17115_v29, %v17111_v41  ;;  %v11871_v25 = vcombine.high %v17116_v12, %v17116_v12  ;;  %v2133_v9 = vmul.f32 %v17118_v37, %v17113_v8  ;;  %v17120_v30 = vld [vmem:[#allocation88_spill] sm:$0xff]  ;;  %v17125_v57 = vld [vmem:[#allocation213_spill] sm:$0xff] }
 0x2b0   : > { %v2358_v50 = vmul.f32 %v17120_v30, %v17119_v55  ;;  %v2580_v46 = vmul.f32 %v17121_v24, %v17111_v41  ;;  %v1839_v42 = vrot.slane %v1825_v60, %v16656_v6  ;;  %v1840_v17 = vcombine.high %v1832_v36, %v1832_v36  ;;  %v17128_v60 = vld [vmem:[#allocation54_spill] sm:$0xff] }
 0x2b1   : > { %17117 = vst [vmem:[#allocation14_spill] sm:$0xff] %v11871_v25  ;;  %v11881_v39 = vrot.slane %v1832_v36, %v16656_v6  ;;  %v2437_v29 = vadd.f32 %v2356_v44, %v2132_v7  ;;  %v11885_v59 = vcombine.high %v17123_v13, %v17123_v13  ;;  %v11889_v37 = vcombine.high %v17125_v57, %v17125_v57  ;;  %v17129_v36 = vld [vmem:[#allocation143_spill] sm:$0xff]  ;;  %v17130_v0 = vld [vmem:[#allocation94_spill] sm:$0xff] }
 0x2b2   : > { %v2438_v21 = vadd.f32 %v2357_v38, %v2133_v9  ;;  %v2439_v30 = vadd.f32 %v2358_v50, %v2134_v48  ;;  %v1841_v14 = vcombine.high %v1839_v42, %v1839_v42  ;;  %v11892_v24 = vrot.slane %v1840_v17, %v16656_v6  ;;  %v17133_v9 = vld [vmem:[#allocation30_spill] sm:$0xff] }
 0x2b3   : > { %17122 = vst [vmem:[#allocation140_spill] sm:$0xff] %v11881_v39  ;;  %17124 = vst [vmem:[#allocation141_spill] sm:$0xff] %v11885_v59  ;;  %v2581_v28 = vmul.f32 %v17128_v60, %v17119_v55  ;;  %v2582_v44 = vmul.f32 %v17130_v0, %v17129_v36  ;;  %v11899_v7 = vrot.slane %v1839_v42, %v16656_v6  ;;  %v17166_v59 = vld [vmem:[#allocation85_spill] sm:$0xff] }
 0x2b4   : > { %17126 = vst [vmem:[#allocation332_spill] sm:$0xff] %v11889_v37  ;;  %17127 = vst [vmem:[#allocation333_spill] sm:$0xff] %v11892_v24  ;;  %v11903_v47 = vcombine.high %v11881_v39, %v11881_v39  ;;  %v11907_v50 = vmul.f32 %v17133_v9, %v11881_v39  ;;  %v2661_v48 = vadd.f32 %v2580_v46, %v2437_v29  ;;  %v17139_v37 = vld [vmem:[#allocation57_spill] sm:$0xff]  ;;  %v17140_v46 = vld [vmem:[#allocation144_spill] sm:$0xff] }
 0x2b5   : > { %17131 = vst [vmem:[#allocation143_spill] sm:$0xff] %v11899_v7  ;;  %v11910_v17 = vrot.slane %v1841_v14, %v16656_v6  ;;  %v11914_v38 = vcombine.high %v11892_v24, %v11892_v24  ;;  %v11918_v42 = vmul.f32 %v11856_v31, %v11881_v39  ;;  %v2662_v7 = vadd.f32 %v2581_v28, %v2438_v21  ;;  %v17141_v29 = vld [vmem:[#allocation98_spill] sm:$0xff]  ;;  %v17145_v39 = vld [vmem:[#allocation64_spill] sm:$0xff]  ;;  %v17151_v9 = vld [vmem:[#allocation153_spill] sm:$0xff] }
 0x2b6   : > { %17132 = vst [vmem:[#allocation334_spill] sm:$0xff] %v11903_v47  ;;  %17134 = vst [vmem:[#allocation335_spill] sm:$0xff] %v11907_v50  ;;  %v2663_v0 = vadd.f32 %v2582_v44, %v2439_v30  ;;  %v17138_v47 = vld [vmem:[#allocation56_spill] sm:$0xff]  ;;  %v2805_v50 = vmul.f32 %v17139_v37, %v17129_v36  ;;  %v2806_v14 = vmul.f32 %v17141_v29, %v17140_v46  ;;  %v17147_v37 = vld [vmem:[#allocation67_spill] sm:$0xff] }
 0x2b7   : > { %17135 = vst [vmem:[#allocation336_spill] sm:$0xff] %v11910_v17  ;;  %17136 = vst [vmem:[#allocation337_spill] sm:$0xff] %v11914_v38  ;;  %v2804_v60 = vmul.f32 %v17138_v47, %v17119_v55  ;;  %v17142_v17 = vld [vmem:[#allocation34_spill] sm:$0xff]  ;;  %v17144_v38 = vld [vmem:[#allocation61_spill] sm:$0xff]  ;;  %v3029_v28 = vmul.f32 %v17145_v39, %v17140_v46  ;;  %v3244_v31 = vmul.f32 %v17147_v37, %v17113_v8 }
 0x2b8   : > { %17137 = vst [vmem:[#allocation338_spill] sm:$0xff] %v11918_v42  ;;  %v11928_v57 = vmul.f32 %v17142_v17, %v11892_v24  ;;  %v3028_v56 = vmul.f32 %v17144_v38, %v17129_v36  ;;  %v17146_v21 = vld [vmem:[#allocation60_spill] sm:$0xff]  ;;  %v2886_v42 = vadd.f32 %v2805_v50, %v2662_v7  ;;  %v2887_v47 = vadd.f32 %v2806_v14, %v2663_v0  ;;  %v17149_v24 = vld [vmem:[#allocation150_spill] sm:$0xff]  ;;  %v17153_v0 = vld [vmem:[#allocation157_spill] sm:$0xff] }
 0x2b9   : > { %v3243_v30 = vmul.f32 %v17146_v21, %v17105_v53  ;;  %v2885_v44 = vadd.f32 %v2804_v60, %v2661_v48  ;;  %v17148_v29 = vld [vmem:[#allocation68_spill] sm:$0xff]  ;;  %v3252_v39 = vmul.f32 %v17146_v21, %v17151_v9  ;;  %v17152_v60 = vld [vmem:[#allocation162_spill] sm:$0xff]  ;;  %v3253_v50 = vmul.f32 %v17147_v37, %v17153_v0  ;;  %v17189_v6 = vld [vmem:[#allocation121_spill] sm:$0xff] }
 0x2ba   : > { %17143 = vst [vmem:[#allocation144_spill] sm:$0xff] %v11928_v57  ;;  %v3245_v1 = vmul.f32 %v17148_v29, %v17111_v41  ;;  %v3250_v57 = vmul.f32 %v17033_v52, %v17149_v24  ;;  %v17150_v17 = vld [vmem:[#allocation152_spill] sm:$0xff]  ;;  %v3110_v53 = vadd.f32 %v3029_v28, %v2886_v42  ;;  %v3111_v7 = vadd.f32 %v17152_v60, %v2887_v47  ;;  %v17160_v47 = vld [vmem:[#allocation63_spill] sm:$0xff] }
 0x2bb   : > { %v3251_v38 = vmul.f32 %v17034_v23, %v17150_v17  ;;  %v3109_v62 = vadd.f32 %v3028_v56, %v2885_v44  ;;  %v17154_v48 = vld [vmem:[#allocation96_spill] sm:$0xff]  ;;  %v3324_v32 = vadd.f32 %v3243_v30, %v17155_v10  ;;  %v3325_v52 = vadd.f32 %v3244_v31, %v17156_v61  ;;  %v17158_v23 = vld [vmem:[#allocation147_spill] sm:$0xff] }
 0x2bc   : > { %v3254_v14 = vmul.f32 %v17148_v29, %v17154_v48  ;;  %v3326_v15 = vadd.f32 %v3245_v1, %v17157_v58  ;;  %v3331_v4 = vadd.f32 %v3250_v57, %v17158_v23  ;;  %v3334_v42 = vadd.f32 %v3253_v50, %v3110_v53  ;;  %v17161_v60 = vld [vmem:[#allocation71_spill] sm:$0xff]  ;;  %v17162_v29 = vld [vmem:[#allocation72_spill] sm:$0xff] }
 0x2bd   : > { %v3332_v21 = vadd.f32 %v3251_v38, %v17159_v51  ;;  %v3333_v56 = vadd.f32 %v3252_v39, %v3109_v62  ;;  %v3467_v44 = vmul.f32 %v17160_v47, %v17113_v8  ;;  %v3468_v37 = vmul.f32 %v17161_v60, %v17111_v41  ;;  %v17163_v58 = vld [vmem:[#allocation172_spill] sm:$0xff] }
 0x2be   : > { %v3335_v28 = vadd.f32 %v3254_v14, %v3111_v7  ;;  %v3469_v10 = vmul.f32 %v17162_v29, %v17119_v55  ;;  %v3474_v61 = vmul.f32 %v17035_v26, %v17150_v17  ;;  %v3475_v1 = vmul.f32 %v17036_v11, %v17151_v9  ;;  %v17164_v11 = vld [vmem:[#allocation74_spill] sm:$0xff]  ;;  %v17165_v26 = vld [vmem:[#allocation84_spill] sm:$0xff] }
 0x2bf   : > { %v3476_v51 = vmul.f32 %v17160_v47, %v17153_v0  ;;  %v3477_v23 = vmul.f32 %v17161_v60, %v17154_v48  ;;  %v3478_v62 = vmul.f32 %v17162_v29, %v17163_v58  ;;  %v3548_v31 = vadd.f32 %v3467_v44, %v3324_v32 }
 0x2c0   : > { %v3549_v57 = vadd.f32 %v3468_v37, %v3325_v52  ;;  %v3550_v39 = vadd.f32 %v3469_v10, %v3326_v15  ;;  %v3555_v38 = vadd.f32 %v3474_v61, %v3331_v4  ;;  %v3556_v30 = vadd.f32 %v3475_v1, %v3332_v21  ;;  %v17167_v37 = vld [vmem:[#allocation173_spill] sm:$0xff] }
 0x2c1   : > { %v3557_v53 = vadd.f32 %v3476_v51, %v3333_v56  ;;  %v3558_v7 = vadd.f32 %v3477_v23, %v3334_v42  ;;  %v3559_v50 = vadd.f32 %v3478_v62, %v3335_v28  ;;  %v3690_v14 = vmul.f32 %v17038_v27, %v17113_v8  ;;  %v17168_v56 = vld [vmem:[#allocation146_spill] sm:$0xff] }
 0x2c2   : > { %v3691_v47 = vmul.f32 %v17164_v11, %v17111_v41  ;;  %v3692_v60 = vmul.f32 %v17165_v26, %v17119_v55  ;;  %v3693_v29 = vmul.f32 %v17166_v59, %v17129_v36  ;;  %v3698_v32 = vmul.f32 %v17037_v40, %v17151_v9 }
 0x2c3   : > { %v3699_v4 = vmul.f32 %v17038_v27, %v17153_v0  ;;  %v3700_v52 = vmul.f32 %v17164_v11, %v17154_v48  ;;  %v3701_v15 = vmul.f32 %v17165_v26, %v17163_v58  ;;  %v3702_v21 = vmul.f32 %v17166_v59, %v17167_v37  ;;  %v17169_v26 = vld [vmem:[#allocation108_spill] sm:$0xff] }
 0x2c4   : > { %v3771_v42 = vadd.f32 %v3690_v14, %v17168_v56  ;;  %v3772_v28 = vadd.f32 %v3691_v47, %v3548_v31  ;;  %v3773_v44 = vadd.f32 %v3692_v60, %v3549_v57  ;;  %v3774_v10 = vadd.f32 %v3693_v29, %v3550_v39  ;;  %v17170_v59 = vld [vmem:[#allocation8_spill] sm:$0xff]  ;;  %v17171_v47 = vld [vmem:[#allocation9_spill] sm:$0xff] }
 0x2c5   : > { %v3779_v61 = vadd.f32 %v3698_v32, %v3555_v38  ;;  %v3780_v1 = vadd.f32 %v3699_v4, %v3556_v30  ;;  %v3781_v51 = vadd.f32 %v3700_v52, %v3557_v53  ;;  %v3782_v23 = vadd.f32 %v3701_v15, %v3558_v7  ;;  %v17172_v39 = vld [vmem:[#allocation177_spill] sm:$0xff]  ;;  %v17173_v30 = vld [vmem:[#allocation148_spill] sm:$0xff] }
 0x2c6   : > { %v3783_v62 = vadd.f32 %v3702_v21, %v3559_v50  ;;  %v3913_v27 = vmul.f32 %v11621_v34, %v17113_v8  ;;  %v3914_v11 = vmul.f32 %v17041_v43, %v17111_v41  ;;  %v3915_v40 = vmul.f32 %v17169_v26, %v17119_v55 }
 0x2c7   : > { %v3916_v14 = vmul.f32 %v17170_v59, %v17129_v36  ;;  %v3917_v29 = vmul.f32 %v17171_v47, %v17140_v46  ;;  %v3922_v60 = vmul.f32 %v11621_v34, %v17153_v0  ;;  %v3923_v31 = vmul.f32 %v17041_v43, %v17154_v48  ;;  %v17174_v34 = vld [vmem:[#allocation112_spill] sm:$0xff] }
 0x2c8   : > { %v3924_v8 = vmul.f32 %v17169_v26, %v17163_v58  ;;  %v3925_v57 = vmul.f32 %v17170_v59, %v17167_v37  ;;  %v3926_v38 = vmul.f32 %v17171_v47, %v17172_v39  ;;  %v3994_v53 = vadd.f32 %v3913_v27, %v17173_v30  ;;  %v17176_v27 = vld [vmem:[#allocation114_spill] sm:$0xff] }
 0x2c9   : > { %v3995_v7 = vadd.f32 %v3914_v11, %v3771_v42  ;;  %v3996_v50 = vadd.f32 %v3915_v40, %v3772_v28  ;;  %v3997_v32 = vadd.f32 %v3916_v14, %v3773_v44  ;;  %v3998_v4 = vadd.f32 %v3917_v29, %v3774_v10  ;;  %v17177_v42 = vld [vmem:[#allocation149_spill] sm:$0xff] }
 0x2ca   : > { %v4003_v52 = vadd.f32 %v3922_v60, %v3779_v61  ;;  %v4004_v15 = vadd.f32 %v3923_v31, %v3780_v1  ;;  %v4005_v21 = vadd.f32 %v3924_v8, %v3781_v51  ;;  %v4006_v56 = vadd.f32 %v3925_v57, %v3782_v23  ;;  %v17178_v61 = vld [vmem:[#allocation176_spill] sm:$0xff] }
 0x2cb   : > { %v4007_v43 = vadd.f32 %v3926_v38, %v3783_v62  ;;  %v12014_v26 = vcombine.high %v17174_v34, %v17174_v34  ;;  %v4137_v59 = vmul.f32 %v11627_v2, %v17111_v41  ;;  %v4138_v47 = vmul.f32 %v11638_v19, %v17119_v55  ;;  %v17179_v57 = vld [vmem:[#allocation116_spill] sm:$0xff] }
 0x2cc   : > { %v4139_v40 = vmul.f32 %v17174_v34, %v17129_v36  ;;  %v4140_v11 = vmul.f32 %v17176_v27, %v17140_v46  ;;  %v4146_v44 = vmul.f32 %v11627_v2, %v17154_v48  ;;  %v4147_v10 = vmul.f32 %v11638_v19, %v17163_v58 }
 0x2cd   : > { %17175 = vst [vmem:[#allocation150_spill] sm:$0xff] %v12014_v26  ;;  %v4141_v28 = vmul.f32 %v12014_v26, %v17177_v42  ;;  %v4148_v41 = vmul.f32 %v17174_v34, %v17167_v37  ;;  %v4149_v55 = vmul.f32 %v17176_v27, %v17172_v39  ;;  %v4150_v36 = vmul.f32 %v12014_v26, %v17178_v61 }
 0x2ce   : > { %v4218_v1 = vadd.f32 %v4137_v59, %v3994_v53  ;;  %v4219_v46 = vadd.f32 %v4138_v47, %v3995_v7  ;;  %v4220_v51 = vadd.f32 %v4139_v40, %v3996_v50  ;;  %v4221_v23 = vadd.f32 %v4140_v11, %v3997_v32  ;;  %v17181_v47 = vld [vmem:[#allocation118_spill] sm:$0xff]  ;;  %v17186_v11 = vld [vmem:[#allocation191_spill] sm:$0xff] }
 0x2cf   : > { %v4222_v62 = vadd.f32 %v4141_v28, %v3998_v4  ;;  %v4227_v14 = vadd.f32 %v4146_v44, %v4003_v52  ;;  %v4228_v29 = vadd.f32 %v4147_v10, %v4004_v15  ;;  %v4229_v60 = vadd.f32 %v4148_v41, %v4005_v21  ;;  %v17182_v7 = vld [vmem:[#allocation186_spill] sm:$0xff]  ;;  %v17184_v4 = vld [vmem:[#allocation189_spill] sm:$0xff] }
 0x2d0   : > { %v4230_v31 = vadd.f32 %v4149_v55, %v4006_v56  ;;  %v4231_v8 = vadd.f32 %v4150_v36, %v4007_v43  ;;  %v12038_v38 = vcombine.high %v17179_v57, %v17179_v57  ;;  %v4361_v30 = vmul.f32 %v11644_v33, %v17149_v24  ;;  %v17183_v43 = vld [vmem:[#allocation187_spill] sm:$0xff]  ;;  %v8957_v24 = vld [vmem:[%s15295_s6 + $0x30] sm:$0xff]   ;;  %v8958_v15 = vld [vmem:[%s15295_s6 + $0x38] sm:$0xff]  }
 0x2d1   : > { %v4362_v42 = vmul.f32 %v11648_v22, %v17150_v17  ;;  %v4363_v59 = vmul.f32 %v17179_v57, %v17151_v9  ;;  %v4364_v53 = vmul.f32 %v17181_v47, %v17153_v0  ;;  %v4370_v50 = vmul.f32 %v11644_v33, %v17182_v7  ;;  %v17185_v56 = vld [vmem:[#allocation188_spill] sm:$0xff]  ;;  %v17187_v36 = vld [vmem:[#allocation18_spill] sm:$0xff]  ;;  %8866 = vmatprep.subr.bf16.mxu0 %v8957_v24 }
 0x2d2   : > { %17180 = vst [vmem:[#allocation162_spill] sm:$0xff] %v12038_v38  ;;  %v4371_v32 = vmul.f32 %v11648_v22, %v17183_v43  ;;  %v4372_v52 = vmul.f32 %v17179_v57, %v17184_v4  ;;  %v4365_v21 = vmul.f32 %v12038_v38, %v17154_v48  ;;  %v4373_v40 = vmul.f32 %v17181_v47, %v17185_v56  ;;  %v17188_v57 = vld [vmem:[#allocation41_spill] sm:$0xff] }
 0x2d3   : > { %v4374_v28 = vmul.f32 %v12038_v38, %v17186_v11  ;;  %v4442_v44 = vadd.f32 %v4361_v30, %v4218_v1  ;;  %v4443_v10 = vadd.f32 %v4362_v42, %v4219_v46  ;;  %v4444_v41 = vadd.f32 %v4363_v59, %v4220_v51  ;;  %8867 = vmatpush3.bf16.msra.mxu0 %v8957_v24  ;;  %v17192_v30 = vld [vmem:[#allocation194_spill] sm:$0xff]  ;;  %v17225_v38 = vld [vmem:[#allocation192_spill] sm:$0xff] }
 0x2d4   : > { %v4445_v55 = vadd.f32 %v4364_v53, %v4221_v23  ;;  %v4450_v22 = vadd.f32 %v17188_v57, %v17187_v36  ;;  %v4446_v33 = vadd.f32 %v4365_v21, %v4222_v62  ;;  %v4451_v26 = vadd.f32 %v4370_v50, %v4227_v14  ;;  %8868 = vmatprep.subr.bf16.mxu0 %v8958_v15  ;;  %v17191_v23 = vld [vmem:[#allocation123_spill] sm:$0xff] }
 0x2d5   : > { %v4452_v27 = vadd.f32 %v4371_v32, %v4228_v29  ;;  %v4453_v34 = vadd.f32 %v4372_v52, %v4229_v60  ;;  %v4454_v19 = vadd.f32 %v4373_v40, %v4230_v31  ;;  %v4455_v2 = vadd.f32 %v4374_v28, %v4231_v8 }
 0x2d6   : > { %v12070_v47 = vcombine.high %v17189_v6, %v17189_v6  ;;  %v4585_v1 = vmul.f32 %v11656_v5, %v17150_v17  ;;  %v4586_v46 = vmul.f32 %v11664_v35, %v17151_v9  ;;  %v4587_v51 = vmul.f32 %v17189_v6, %v17153_v0 }
 0x2d7   : > { %v4588_v62 = vmul.f32 %v17191_v23, %v17154_v48  ;;  %v4593_v14 = vmul.f32 %v17006_v16, %v17182_v7  ;;  %v4594_v60 = vmul.f32 %v11656_v5, %v17183_v43  ;;  %v4595_v31 = vmul.f32 %v11664_v35, %v17184_v4  ;;  %8869 = vmatpush3.bf16.msra.mxu0 %v8958_v15  ;;  %v17193_v5 = vld [vmem:[#allocation125_spill] sm:$0xff] }
 0x2d8   : > { %17190 = vst [vmem:[#allocation104_spill] sm:$0xff] %v12070_v47  ;;  %v4589_v29 = vmul.f32 %v12070_v47, %v17163_v58  ;;  %v4596_v8 = vmul.f32 %v17189_v6, %v17185_v56  ;;  %v4597_v57 = vmul.f32 %v17191_v23, %v17186_v11  ;;  %v4598_v42 = vmul.f32 %v12070_v47, %v17192_v30 }
 0x2d9   : > { %v4666_v59 = vadd.f32 %v4585_v1, %v4442_v44  ;;  %v4667_v53 = vadd.f32 %v4586_v46, %v4443_v10  ;;  %v4668_v50 = vadd.f32 %v4587_v51, %v4444_v41  ;;  %v4669_v32 = vadd.f32 %v4588_v62, %v4445_v55  ;;  %v17196_v41 = vld [vmem:[#allocation195_spill] sm:$0xff] }
 0x2da   : > { %v4670_v52 = vadd.f32 %v4589_v29, %v4446_v33  ;;  %v4674_v24 = vadd.f32 %v4593_v14, %v4450_v22  ;;  %v4675_v21 = vadd.f32 %v4594_v60, %v4451_v26  ;;  %v4676_v40 = vadd.f32 %v4595_v31, %v4452_v27  ;;  %v17195_v33 = vld [vmem:[#allocation11_spill] sm:$0xff] }
 0x2db   : > { %v4677_v28 = vadd.f32 %v4596_v8, %v4453_v34  ;;  %v4678_v36 = vadd.f32 %v4597_v57, %v4454_v19  ;;  %v4679_v35 = vadd.f32 %v4598_v42, %v4455_v2  ;;  %v12096_v6 = vcombine.high %v17193_v5, %v17193_v5 }
 0x2dc   : > { %v4809_v23 = vmul.f32 %v11674_v3, %v17151_v9  ;;  %v4810_v44 = vmul.f32 %v11678_v49, %v17153_v0  ;;  %v4811_v15 = vmul.f32 %v17193_v5, %v17154_v48  ;;  %v4812_v26 = vmul.f32 %v17195_v33, %v17163_v58  ;;  %v17226_v9 = vld [vmem:[#allocation12_spill] sm:$0xff] }
 0x2dd   : > { %17194 = vst [vmem:[#allocation105_spill] sm:$0xff] %v12096_v6  ;;  %v4817_v19 = vmul.f32 %v17007_v45, %v17183_v43  ;;  %v4818_v34 = vmul.f32 %v11674_v3, %v17184_v4  ;;  %v4813_v2 = vmul.f32 %v12096_v6, %v17167_v37  ;;  %v4819_v22 = vmul.f32 %v11678_v49, %v17185_v56  ;;  %v17197_v49 = vld [vmem:[#allocation128_spill] sm:$0xff] }
 0x2de   : > { %v4820_v27 = vmul.f32 %v17193_v5, %v17186_v11  ;;  %v4821_v10 = vmul.f32 %v17195_v33, %v17192_v30  ;;  %v4822_v55 = vmul.f32 %v12096_v6, %v17196_v41  ;;  %v4890_v1 = vadd.f32 %v4809_v23, %v4666_v59  ;;  %v17211_v45 = vld [vmem:[#allocation92_spill] sm:$0xff] }
 0x2df   : > { %v4891_v46 = vadd.f32 %v4810_v44, %v4667_v53  ;;  %v4892_v51 = vadd.f32 %v4811_v15, %v4668_v50  ;;  %v4893_v62 = vadd.f32 %v4812_v26, %v4669_v32  ;;  %v4894_v14 = vadd.f32 %v4813_v2, %v4670_v52  ;;  %v17199_v53 = vld [vmem:[#allocation133_spill] sm:$0xff] }
 0x2e0   : > { %v4898_v29 = vadd.f32 %v4817_v19, %v4674_v24  ;;  %v4899_v60 = vadd.f32 %v4818_v34, %v4675_v21  ;;  %v4900_v31 = vadd.f32 %v4819_v22, %v4676_v40  ;;  %v4901_v8 = vadd.f32 %v4820_v27, %v4677_v28  ;;  %v17200_v28 = vld [vmem:[#allocation197_spill] sm:$0xff] }
 0x2e1   : > { %v4902_v57 = vadd.f32 %v4821_v10, %v4678_v36  ;;  %v4903_v42 = vadd.f32 %v4822_v55, %v4679_v35  ;;  %v12122_v5 = vcombine.high %v17197_v49, %v17197_v49  ;;  %v5033_v33 = vmul.f32 %v11684_v63, %v17153_v0 }
 0x2e2   : > { %v5034_v23 = vmul.f32 %v11692_v18, %v17154_v48  ;;  %v5035_v59 = vmul.f32 %v17197_v49, %v17163_v58  ;;  %v5036_v50 = vmul.f32 %v17199_v53, %v17167_v37  ;;  %v5041_v32 = vmul.f32 %v17054_v20, %v17184_v4 }
 0x2e3   : > { %17198 = vst [vmem:[#allocation106_spill] sm:$0xff] %v12122_v5  ;;  %v5042_v35 = vmul.f32 %v11684_v63, %v17185_v56  ;;  %v5043_v52 = vmul.f32 %v11692_v18, %v17186_v11  ;;  %v5037_v24 = vmul.f32 %v12122_v5, %v17172_v39  ;;  %v5044_v21 = vmul.f32 %v17197_v49, %v17192_v30  ;;  %v17201_v63 = vld [vmem:[#allocation131_spill] sm:$0xff] }
 0x2e4   : > { %v5045_v40 = vmul.f32 %v17199_v53, %v17196_v41  ;;  %v5046_v36 = vmul.f32 %v12122_v5, %v17200_v28  ;;  %v5114_v44 = vadd.f32 %v5033_v33, %v4890_v1  ;;  %v5115_v15 = vadd.f32 %v5034_v23, %v4891_v46  ;;  %v17203_v5 = vld [vmem:[#allocation313_spill] sm:$0xff]  ;;  %v17204_v1 = vld [vmem:[#allocation314_spill] sm:$0xff] }
 0x2e5   : > { %v5116_v26 = vadd.f32 %v5035_v59, %v4892_v51  ;;  %v5117_v19 = vadd.f32 %v5036_v50, %v4893_v62  ;;  %v5118_v34 = vadd.f32 %v5037_v24, %v4894_v14  ;;  %v5122_v2 = vadd.f32 %v5041_v32, %v4898_v29  ;;  %v17205_v62 = vld [vmem:[#allocation134_spill] sm:$0xff] }
 0x2e6   : > { %v5123_v22 = vadd.f32 %v5042_v35, %v4899_v60  ;;  %v5124_v27 = vadd.f32 %v5043_v52, %v4900_v31  ;;  %v5125_v10 = vadd.f32 %v5044_v21, %v4901_v8  ;;  %v5126_v55 = vadd.f32 %v5045_v40, %v4902_v57  ;;  %v17206_v60 = vld [vmem:[#allocation180_spill] sm:$0xff]  ;;  %v17207_v31 = vld [vmem:[#allocation130_spill] sm:$0xff]  ;;  %v17209_v35 = vld [vmem:[#allocation169_spill] sm:$0xff] }
 0x2e7   : > { %v5127_v18 = vadd.f32 %v5046_v36, %v4903_v42  ;;  %v12148_v49 = vcombine.high %v17201_v63, %v17201_v63  ;;  %v5256_v53 = vmul.f32 %v17009_v54, %v17153_v0  ;;  %v5257_v33 = vmul.f32 %v17203_v5, %v17154_v48  ;;  %v17208_v32 = vld [vmem:[#allocation198_spill] sm:$0xff] }
 0x2e8   : > { %v5258_v46 = vmul.f32 %v17204_v1, %v17163_v58  ;;  %v5259_v51 = vmul.f32 %v17201_v63, %v17167_v37  ;;  %v5260_v14 = vmul.f32 %v17205_v62, %v17172_v39  ;;  %v5263_v8 = vmul.f32 %v17207_v31, %v17206_v60  ;;  %v17210_v31 = vld [vmem:[#allocation190_spill] sm:$0xff] }
 0x2e9   : > { %17202 = vst [vmem:[#allocation147_spill] sm:$0xff] %v12148_v49  ;;  %v5261_v29 = vmul.f32 %v12148_v49, %v17178_v61  ;;  %v5265_v57 = vmul.f32 %v17009_v54, %v17185_v56  ;;  %v5266_v42 = vmul.f32 %v17203_v5, %v17186_v11  ;;  %v5267_v23 = vmul.f32 %v17204_v1, %v17192_v30 }
 0x2ea   : > { %v5268_v59 = vmul.f32 %v17201_v63, %v17196_v41  ;;  %v5269_v50 = vmul.f32 %v17205_v62, %v17200_v28  ;;  %v5270_v61 = vmul.f32 %v12148_v49, %v17208_v32  ;;  %v5337_v52 = vadd.f32 %v5256_v53, %v17209_v35  ;;  %v17213_v49 = vld [vmem:[#allocation151_spill] sm:$0xff]  ;;  %v17224_v35 = vld [vmem:[#allocation170_spill] sm:$0xff] }
 0x2eb   : > { %v5338_v24 = vadd.f32 %v5257_v33, %v5114_v44  ;;  %v5339_v21 = vadd.f32 %v5258_v46, %v5115_v15  ;;  %v5340_v40 = vadd.f32 %v5259_v51, %v5116_v26  ;;  %v5341_v36 = vadd.f32 %v5260_v14, %v5117_v19  ;;  %v17215_v44 = vld [vmem:[#allocation181_spill] sm:$0xff]  ;;  %v17216_v15 = vld [vmem:[#allocation138_spill] sm:$0xff]  ;;  %v17217_v19 = vld [vmem:[#allocation179_spill] sm:$0xff] }
 0x2ec   : > { %v5342_v60 = vadd.f32 %v5261_v29, %v5118_v34  ;;  %v5344_v5 = vadd.f32 %v5263_v8, %v17210_v31  ;;  %v5346_v54 = vadd.f32 %v5265_v57, %v5122_v2  ;;  %v5347_v1 = vadd.f32 %v5266_v42, %v5123_v22  ;;  %v17218_v34 = vld [vmem:[#allocation142_spill] sm:$0xff]  ;;  %v17219_v2 = vld [vmem:[#allocation315_spill] sm:$0xff]  ;;  %v17221_v29 = vld [vmem:[#allocation196_spill] sm:$0xff] }
 0x2ed   : > { %v5348_v20 = vadd.f32 %v5267_v23, %v5124_v27  ;;  %v5349_v6 = vadd.f32 %v5268_v59, %v5125_v10  ;;  %v5350_v63 = vadd.f32 %v5269_v50, %v5126_v55  ;;  %v5351_v3 = vadd.f32 %v5270_v61, %v5127_v18  ;;  %v17220_v27 = vld [vmem:[#allocation316_spill] sm:$0xff]  ;;  %v17222_v8 = vld [vmem:[#allocation199_spill] sm:$0xff]  ;;  %v17223_v42 = vld [vmem:[#allocation201_spill] sm:$0xff] }
 0x2ee   : > { %v12180_v62 = vcombine.high %v17211_v45, %v17211_v45  ;;  %v12184_v53 = vcombine.high %v17213_v49, %v17213_v49  ;;  %v5479_v26 = vmul.f32 %v17216_v15, %v17215_v44  ;;  %v5480_v33 = vmul.f32 %v17218_v34, %v17217_v19 }
 0x2ef   : > { %v5481_v22 = vmul.f32 %v17219_v2, %v17182_v7  ;;  %v5482_v18 = vmul.f32 %v17220_v27, %v17183_v43  ;;  %v5483_v10 = vmul.f32 %v17211_v45, %v17184_v4  ;;  %v5484_v55 = vmul.f32 %v17213_v49, %v17185_v56 }
 0x2f0   : > { %17212 = vst [vmem:[#allocation156_spill] sm:$0xff] %v12180_v62  ;;  %17214 = vst [vmem:[#allocation146_spill] sm:$0xff] %v12184_v53  ;;  %v5485_v46 = vmul.f32 %v12180_v62, %v17186_v11  ;;  %v5486_v51 = vmul.f32 %v12184_v53, %v17192_v30  ;;  %v5487_v14 = vmul.f32 %v17216_v15, %v17196_v41 }
 0x2f1   : > { %v5489_v31 = vmul.f32 %v17218_v34, %v17221_v29  ;;  %v5490_v57 = vmul.f32 %v17219_v2, %v17222_v8  ;;  %v5491_v23 = vmul.f32 %v17220_v27, %v17223_v42  ;;  %v5492_v59 = vmul.f32 %v17211_v45, %v17116_v12  ;;  %v17247_v29 = vld [vmem:[#allocation20_spill] sm:$0xff] }
 0x2f2   : > { %v5493_v50 = vmul.f32 %v17213_v49, %v17123_v13  ;;  %v5494_v61 = vmul.f32 %v12180_v62, %v11871_v25  ;;  %v5560_v44 = vadd.f32 %v5479_v26, %v17224_v35  ;;  %v5561_v15 = vadd.f32 %v5480_v33, %v5337_v52  ;;  %v17227_v26 = vld [vmem:[#allocation178_spill] sm:$0xff] }
 0x2f3   : > { %v5562_v53 = vadd.f32 %v5481_v22, %v5338_v24  ;;  %v5563_v34 = vadd.f32 %v5482_v18, %v5339_v21  ;;  %v5564_v47 = vadd.f32 %v5483_v10, %v5340_v40  ;;  %v5565_v16 = vadd.f32 %v5484_v55, %v5341_v36  ;;  %v17228_v24 = vld [vmem:[#allocation302_spill] sm:$0xff]  ;;  %v17229_v40 = vld [vmem:[#allocation317_spill] sm:$0xff] }
 0x2f4   : > { %v5566_v2 = vadd.f32 %v5485_v46, %v5342_v60  ;;  %v5567_v39 = vadd.f32 %v5486_v51, %v17225_v38  ;;  %v5568_v27 = vadd.f32 %v5487_v14, %v5344_v5  ;;  %v5570_v37 = vadd.f32 %v5489_v31, %v5346_v54  ;;  %v17230_v5 = vld [vmem:[#allocation318_spill] sm:$0xff]  ;;  %v17233_v51 = vld [vmem:[#allocation16_spill] sm:$0xff] }
 0x2f5   : > { %v5571_v58 = vadd.f32 %v5490_v57, %v5347_v1  ;;  %v5572_v45 = vadd.f32 %v5491_v23, %v5348_v20  ;;  %v5573_v48 = vadd.f32 %v5492_v59, %v5349_v6  ;;  %v5574_v0 = vadd.f32 %v5493_v50, %v5350_v63  ;;  %v17231_v20 = vld [vmem:[#allocation3_spill] sm:$0xff]  ;;  %v17235_v31 = vld [vmem:[#allocation22_spill] sm:$0xff] }
 0x2f6   : > { %v5575_v49 = vadd.f32 %v5494_v61, %v5351_v3  ;;  %v5646_v62 = vcombine.high %v17226_v9, %v17226_v9  ;;  %v5703_v52 = vmul.f32 %v17227_v26, %v17217_v19  ;;  %v5704_v21 = vmul.f32 %v17228_v24, %v17182_v7  ;;  %v17241_v59 = vld [vmem:[#allocation319_spill] sm:$0xff]  ;;  %v17242_v61 = vld [vmem:[#allocation320_spill] sm:$0xff] }
 0x2f7   : > { %v5705_v36 = vmul.f32 %v17229_v40, %v17183_v43  ;;  %v5706_v54 = vmul.f32 %v17230_v5, %v17184_v4  ;;  %v5711_v6 = vmul.f32 %v17227_v26, %v17200_v28  ;;  %v5713_v63 = vmul.f32 %v17228_v24, %v17222_v8 }
 0x2f8   : > { %v5660_v3 = vrot.slane %v5646_v62, %v17231_v20  ;;  %v5714_v9 = vmul.f32 %v17229_v40, %v17223_v42  ;;  %v5715_v38 = vmul.f32 %v17230_v5, %v17116_v12  ;;  %v5784_v1 = vadd.f32 %v5703_v52, %v5560_v44 }
 0x2f9   : > { %v5785_v60 = vadd.f32 %v5704_v21, %v5561_v15  ;;  %v5786_v19 = vadd.f32 %v5705_v36, %v5562_v53  ;;  %v5787_v33 = vadd.f32 %v5706_v54, %v5563_v34  ;;  %v5792_v10 = vadd.f32 %v5711_v6, %v5568_v27  ;;  %v17240_v27 = vld [vmem:[#allocation17_spill] sm:$0xff] }
 0x2fa   : > { %v5662_v22 = vcombine.high %v5660_v3, %v5660_v3  ;;  %v12238_v18 = vrot.slane %v5660_v3, %v17231_v20  ;;  %v5794_v55 = vadd.f32 %v5713_v63, %v5570_v37  ;;  %v5795_v62 = vadd.f32 %v5714_v9, %v5571_v58  ;;  %v17239_v58 = vld [vmem:[#allocation15_spill] sm:$0xff]  ;;  %v17244_v54 = vld [vmem:[#allocation141_spill] sm:$0xff] }
 0x2fb   : > { %v5796_v46 = vadd.f32 %v5715_v38, %v5572_v45  ;;  %v12242_v14 = vcombine.high %v17233_v51, %v17233_v51  ;;  %v12246_v57 = vcombine.high %v17235_v31, %v17235_v31  ;;  %v5927_v34 = vmul.f32 %v17239_v58, %v17182_v7 }
 0x2fc   : > { %17232 = vst [vmem:[#allocation148_spill] sm:$0xff] %v12238_v18  ;;  %v12249_v15 = vrot.slane %v5662_v22, %v17231_v20  ;;  %v12253_v53 = vcombine.high %v12238_v18, %v12238_v18  ;;  %v5707_v37 = vmul.f32 %v12238_v18, %v17185_v56  ;;  %v5716_v45 = vmul.f32 %v12238_v18, %v17123_v13 }
 0x2fd   : > { %17234 = vst [vmem:[#allocation149_spill] sm:$0xff] %v12242_v14  ;;  %17236 = vst [vmem:[#allocation176_spill] sm:$0xff] %v12246_v57  ;;  %v5928_v23 = vmul.f32 %v17240_v27, %v17183_v43  ;;  %v5929_v50 = vmul.f32 %v17241_v59, %v17184_v4  ;;  %v5930_v35 = vmul.f32 %v17242_v61, %v17185_v56 }
 0x2fe   : > { %17237 = vst [vmem:[#allocation18_spill] sm:$0xff] %v12249_v15  ;;  %17238 = vst [vmem:[#allocation41_spill] sm:$0xff] %v12253_v53  ;;  %v12269_v44 = vcombine.high %v12249_v15, %v12249_v15  ;;  %v5708_v52 = vmul.f32 %v12249_v15, %v17186_v11  ;;  %v5709_v21 = vmul.f32 %v12253_v53, %v17192_v30 }
 0x2ff   : > { %v5717_v36 = vmul.f32 %v12249_v15, %v11871_v25  ;;  %v5718_v6 = vmul.f32 %v12253_v53, %v17244_v54  ;;  %v5788_v3 = vadd.f32 %v5707_v37, %v5564_v47  ;;  %v5797_v63 = vadd.f32 %v5716_v45, %v5573_v48 }
 0x300   : > { %17243 = vst [vmem:[#allocation180_spill] sm:$0xff] %v12269_v44  ;;  %v5931_v9 = vmul.f32 %v17233_v51, %v17186_v11  ;;  %v5710_v38 = vmul.f32 %v12269_v44, %v17196_v41  ;;  %v5789_v22 = vadd.f32 %v5708_v52, %v5565_v16  ;;  %v5790_v26 = vadd.f32 %v5709_v21, %v5566_v2  ;;  %v17245_v52 = vld [vmem:[#allocation166_spill] sm:$0xff] }
 0x301   : > { %v5798_v18 = vadd.f32 %v5717_v36, %v5574_v0  ;;  %v5799_v5 = vadd.f32 %v5718_v6, %v5575_v49  ;;  %v5932_v40 = vmul.f32 %v17235_v31, %v17192_v30  ;;  %v5933_v15 = vmul.f32 %v12242_v14, %v17196_v41  ;;  %v17246_v44 = vld [vmem:[#allocation214_spill] sm:$0xff] }
 0x302   : > { %v5934_v47 = vmul.f32 %v12246_v57, %v17200_v28  ;;  %v5791_v48 = vadd.f32 %v5710_v38, %v5567_v39  ;;  %v5935_v37 = vmul.f32 %v17239_v58, %v17208_v32  ;;  %v5936_v45 = vmul.f32 %v17239_v58, %v17222_v8 }
 0x303   : > { %v5937_v16 = vmul.f32 %v17240_v27, %v17223_v42  ;;  %v5938_v49 = vmul.f32 %v17241_v59, %v17116_v12  ;;  %v5939_v0 = vmul.f32 %v17242_v61, %v17123_v13  ;;  %v5940_v2 = vmul.f32 %v17233_v51, %v11871_v25 }
 0x304   : > { %v5941_v39 = vmul.f32 %v17235_v31, %v17244_v54  ;;  %v5942_v21 = vmul.f32 %v12242_v14, %v17245_v52  ;;  %v6008_v36 = vadd.f32 %v5927_v34, %v5784_v1  ;;  %v6009_v6 = vadd.f32 %v5928_v23, %v5785_v60  ;;  %v17249_v1 = vld [vmem:[#allocation23_spill] sm:$0xff]  ;;  %v17255_v23 = vld [vmem:[#allocation100_spill] sm:$0xff] }
 0x305   : > { %v6010_v38 = vadd.f32 %v5929_v50, %v5786_v19  ;;  %v6011_v58 = vadd.f32 %v5930_v35, %v5787_v33  ;;  %v6012_v27 = vadd.f32 %v5931_v9, %v5788_v3  ;;  %v6013_v57 = vadd.f32 %v5932_v40, %v5789_v22  ;;  %v17252_v19 = vld [vmem:[#allocation21_spill] sm:$0xff] }
 0x306   : > { %v6014_v53 = vadd.f32 %v5933_v15, %v5790_v26  ;;  %v6015_v59 = vadd.f32 %v5934_v47, %v5791_v48  ;;  %v6016_v24 = vadd.f32 %v5935_v37, %v5792_v10  ;;  %v6017_v61 = vadd.f32 %v5936_v45, %v17246_v44  ;;  %v17251_v26 = vld [vmem:[#allocation19_spill] sm:$0xff]  ;;  %v17253_v10 = vld [vmem:[#allocation301_spill] sm:$0xff]  ;;  %v17256_v47 = vld [vmem:[#allocation202_spill] sm:$0xff] }
 0x307   : > { %v6018_v7 = vadd.f32 %v5937_v16, %v5794_v55  ;;  %v6019_v17 = vadd.f32 %v5938_v49, %v5795_v62  ;;  %v6020_v51 = vadd.f32 %v5939_v0, %v5796_v46  ;;  %v6021_v20 = vadd.f32 %v5940_v2, %v5797_v63 }
 0x308   : > { %v6022_v8 = vadd.f32 %v5941_v39, %v5798_v18  ;;  %v6023_v31 = vadd.f32 %v5942_v21, %v5799_v5  ;;  %v12308_v14 = vcombine.high %v17247_v29, %v17247_v29  ;;  %v12312_v60 = vcombine.high %v17249_v1, %v17249_v1  ;;  %v17254_v18 = vld [vmem:[#allocation321_spill] sm:$0xff] }
 0x309   : > { %v6151_v40 = vmul.f32 %v17251_v26, %v17183_v43  ;;  %v6152_v33 = vmul.f32 %v17252_v19, %v17184_v4  ;;  %v6153_v55 = vmul.f32 %v17253_v10, %v17185_v56  ;;  %v6154_v5 = vmul.f32 %v17254_v18, %v17186_v11 }
 0x30a   : > { %17248 = vst [vmem:[#allocation169_spill] sm:$0xff] %v12308_v14  ;;  %17250 = vst [vmem:[#allocation190_spill] sm:$0xff] %v12312_v60  ;;  %v6155_v62 = vmul.f32 %v17247_v29, %v17192_v30  ;;  %v6156_v46 = vmul.f32 %v17249_v1, %v17196_v41  ;;  %v6157_v15 = vmul.f32 %v12308_v14, %v17200_v28 }
 0x30b   : > { %v6158_v34 = vmul.f32 %v12312_v60, %v17208_v32  ;;  %v6159_v50 = vmul.f32 %v17251_v26, %v17255_v23  ;;  %v6160_v35 = vmul.f32 %v17251_v26, %v17223_v42  ;;  %v6161_v44 = vmul.f32 %v17252_v19, %v17116_v12 }
 0x30c   : > { %v6162_v3 = vmul.f32 %v17253_v10, %v17123_v13  ;;  %v6163_v63 = vmul.f32 %v17254_v18, %v11871_v25  ;;  %v6164_v9 = vmul.f32 %v17247_v29, %v17244_v54  ;;  %v6165_v22 = vmul.f32 %v17249_v1, %v17245_v52  ;;  %v17257_v1 = vld [vmem:[#allocation25_spill] sm:$0xff] }
 0x30d   : > { %v6166_v48 = vmul.f32 %v12308_v14, %v17256_v47  ;;  %v6232_v37 = vadd.f32 %v6151_v40, %v6008_v36  ;;  %v6233_v45 = vadd.f32 %v6152_v33, %v6009_v6  ;;  %v6234_v16 = vadd.f32 %v6153_v55, %v6010_v38  ;;  %v17259_v36 = vld [vmem:[#allocation28_spill] sm:$0xff] }
 0x30e   : > { %v6235_v49 = vadd.f32 %v6154_v5, %v6011_v58  ;;  %v6236_v0 = vadd.f32 %v6155_v62, %v6012_v27  ;;  %v6237_v2 = vadd.f32 %v6156_v46, %v6013_v57  ;;  %v6238_v39 = vadd.f32 %v6157_v15, %v6014_v53  ;;  %v17261_v57 = vld [vmem:[#allocation24_spill] sm:$0xff]  ;;  %v17266_v62 = vld [vmem:[#allocation166_spill] sm:$0xff] }
 0x30f   : > { %v6239_v21 = vadd.f32 %v6158_v34, %v6015_v59  ;;  %v6240_v10 = vadd.f32 %v6159_v50, %v6016_v24  ;;  %v6241_v19 = vadd.f32 %v6160_v35, %v6017_v61  ;;  %v6242_v18 = vadd.f32 %v6161_v44, %v6018_v7  ;;  %v17262_v24 = vld [vmem:[#allocation26_spill] sm:$0xff]  ;;  %v17265_v61 = vld [vmem:[#allocation207_spill] sm:$0xff] }
 0x310   : > { %v6243_v26 = vadd.f32 %v6162_v3, %v6019_v17  ;;  %v6244_v60 = vadd.f32 %v6163_v63, %v6020_v51  ;;  %v6245_v29 = vadd.f32 %v6164_v9, %v6021_v20  ;;  %v6246_v43 = vadd.f32 %v6165_v22, %v6022_v8  ;;  %v17263_v17 = vld [vmem:[#allocation322_spill] sm:$0xff]  ;;  %v17264_v8 = vld [vmem:[#allocation323_spill] sm:$0xff] }
 0x311   : > { %v6247_v42 = vadd.f32 %v6166_v48, %v6023_v31  ;;  %v12348_v52 = vcombine.high %v17257_v1, %v17257_v1  ;;  %v12352_v6 = vcombine.high %v17259_v36, %v17259_v36  ;;  %v6375_v53 = vmul.f32 %v17261_v57, %v17184_v4  ;;  %v17267_v34 = vld [vmem:[#allocation206_spill] sm:$0xff] }
 0x312   : > { %v6376_v58 = vmul.f32 %v17262_v24, %v17185_v56  ;;  %v6377_v7 = vmul.f32 %v17263_v17, %v17186_v11  ;;  %v6378_v20 = vmul.f32 %v17264_v8, %v17192_v30  ;;  %v6379_v51 = vmul.f32 %v17257_v1, %v17196_v41 }
 0x313   : > { %17258 = vst [vmem:[#allocation181_spill] sm:$0xff] %v12348_v52  ;;  %17260 = vst [vmem:[#allocation179_spill] sm:$0xff] %v12352_v6  ;;  %v6380_v31 = vmul.f32 %v17259_v36, %v17200_v28  ;;  %v6381_v27 = vmul.f32 %v12348_v52, %v17208_v32  ;;  %v6382_v59 = vmul.f32 %v12352_v6, %v17255_v23 }
 0x314   : > { %v6383_v38 = vmul.f32 %v17261_v57, %v17265_v61  ;;  %v6384_v40 = vmul.f32 %v17261_v57, %v17116_v12  ;;  %v6385_v33 = vmul.f32 %v17262_v24, %v17123_v13  ;;  %v6386_v55 = vmul.f32 %v17263_v17, %v11871_v25 }
 0x315   : > { %v6387_v5 = vmul.f32 %v17264_v8, %v17244_v54  ;;  %v6388_v46 = vmul.f32 %v17257_v1, %v17266_v62  ;;  %v6389_v15 = vmul.f32 %v17259_v36, %v17256_v47  ;;  %v6390_v50 = vmul.f32 %v12348_v52, %v17267_v34  ;;  %v17268_v36 = vld [vmem:[#allocation30_spill] sm:$0xff] }
 0x316   : > { %v6456_v35 = vadd.f32 %v6375_v53, %v6232_v37  ;;  %v6457_v44 = vadd.f32 %v6376_v58, %v6233_v45  ;;  %v6458_v3 = vadd.f32 %v6377_v7, %v6234_v16  ;;  %v6459_v63 = vadd.f32 %v6378_v20, %v6235_v49  ;;  %v17270_v37 = vld [vmem:[#allocation34_spill] sm:$0xff]  ;;  %v17272_v16 = vld [vmem:[#allocation196_spill] sm:$0xff]  ;;  %v17273_v49 = vld [vmem:[#allocation31_spill] sm:$0xff] }
 0x317   : > { %v6460_v9 = vadd.f32 %v6379_v51, %v6236_v0  ;;  %v6461_v22 = vadd.f32 %v6380_v31, %v6237_v2  ;;  %v6462_v48 = vadd.f32 %v6381_v27, %v6238_v39  ;;  %v6463_v61 = vadd.f32 %v6382_v59, %v6239_v21  ;;  %v17274_v2 = vld [vmem:[#allocation199_spill] sm:$0xff]  ;;  %v17279_v58 = vld [vmem:[#allocation208_spill] sm:$0xff]  ;;  %v17280_v20 = vld [vmem:[#allocation210_spill] sm:$0xff] }
 0x318   : > { %v6464_v17 = vadd.f32 %v6383_v38, %v6240_v10  ;;  %v6465_v24 = vadd.f32 %v6384_v40, %v6241_v19  ;;  %v6466_v8 = vadd.f32 %v6385_v33, %v6242_v18  ;;  %v6467_v57 = vadd.f32 %v6386_v55, %v6243_v26  ;;  %v17275_v10 = vld [vmem:[#allocation324_spill] sm:$0xff]  ;;  %v17276_v18 = vld [vmem:[#allocation201_spill] sm:$0xff]  ;;  %v17278_v21 = vld [vmem:[#allocation27_spill] sm:$0xff] }
 0x319   : > { %v6468_v6 = vadd.f32 %v6387_v5, %v6244_v60  ;;  %v6469_v1 = vadd.f32 %v6388_v46, %v6245_v29  ;;  %v6470_v14 = vadd.f32 %v6389_v15, %v6246_v43  ;;  %v6471_v23 = vadd.f32 %v6390_v50, %v6247_v42  ;;  %v17277_v26 = vld [vmem:[#allocation325_spill] sm:$0xff]  ;;  %v17283_v40 = vld [vmem:[#allocation215_spill] sm:$0xff]  ;;  %v17284_v55 = vld [vmem:[#allocation332_spill] sm:$0xff] }
 0x31a   : > { %v12388_v32 = vcombine.high %v17268_v36, %v17268_v36  ;;  %v12392_v45 = vcombine.high %v17270_v37, %v17270_v37  ;;  %v6600_v0 = vmul.f32 %v17273_v49, %v17272_v16  ;;  %v6601_v19 = vmul.f32 %v17275_v10, %v17274_v2  ;;  %v17281_v31 = vld [vmem:[#allocation209_spill] sm:$0xff]  ;;  %v17285_v46 = vld [vmem:[#allocation175_spill] sm:$0xff] }
 0x31b   : > { %v6602_v60 = vmul.f32 %v17277_v26, %v17276_v18  ;;  %v6603_v43 = vmul.f32 %v17268_v36, %v17116_v12  ;;  %v6604_v29 = vmul.f32 %v17270_v37, %v17123_v13  ;;  %v6607_v53 = vmul.f32 %v17278_v21, %v17266_v62  ;;  %v17282_v59 = vld [vmem:[#allocation213_spill] sm:$0xff] }
 0x31c   : > { %17269 = vst [vmem:[#allocation170_spill] sm:$0xff] %v12388_v32  ;;  %17271 = vst [vmem:[#allocation192_spill] sm:$0xff] %v12392_v45  ;;  %v6605_v42 = vmul.f32 %v12388_v32, %v11871_v25  ;;  %v6606_v39 = vmul.f32 %v12392_v45, %v17244_v54  ;;  %v6609_v7 = vmul.f32 %v17273_v49, %v17279_v58 }
 0x31d   : > { %v6610_v51 = vmul.f32 %v17275_v10, %v17280_v20  ;;  %v6611_v27 = vmul.f32 %v17277_v26, %v17281_v31  ;;  %v6612_v38 = vmul.f32 %v17268_v36, %v17282_v59  ;;  %v6613_v33 = vmul.f32 %v17270_v37, %v17283_v40  ;;  %v17286_v26 = vld [vmem:[#allocation167_spill] sm:$0xff]  ;;  %v17287_v40 = vld [vmem:[#allocation32_spill] sm:$0xff] }
 0x31e   : > { %v6614_v5 = vmul.f32 %v12388_v32, %v17284_v55  ;;  %v6680_v15 = vadd.f32 %v17285_v46, %v6456_v35  ;;  %v6681_v50 = vadd.f32 %v6600_v0, %v6457_v44  ;;  %v6682_v21 = vadd.f32 %v6601_v19, %v6458_v3  ;;  %v17289_v35 = vld [vmem:[#allocation35_spill] sm:$0xff]  ;;  %v17291_v3 = vld [vmem:[#allocation29_spill] sm:$0xff] }
 0x31f   : > { %v6683_v49 = vadd.f32 %v6602_v60, %v6459_v63  ;;  %v6684_v45 = vadd.f32 %v6603_v43, %v6460_v9  ;;  %v6685_v52 = vadd.f32 %v6604_v29, %v6461_v22  ;;  %v6686_v10 = vadd.f32 %v6605_v42, %v6462_v48  ;;  %v17295_v60 = vld [vmem:[#allocation215_spill] sm:$0xff]  ;;  %v17296_v42 = vld [vmem:[#allocation76_spill] sm:$0xff] }
 0x320   : > { %v6687_v28 = vadd.f32 %v6606_v39, %v6463_v61  ;;  %v6688_v41 = vadd.f32 %v6607_v53, %v6464_v17  ;;  %v6689_v30 = vadd.f32 %v17286_v26, %v6465_v24  ;;  %v6690_v11 = vadd.f32 %v6609_v7, %v6466_v8  ;;  %v17292_v17 = vld [vmem:[#allocation33_spill] sm:$0xff] }
 0x321   : > { %v6691_v36 = vadd.f32 %v6610_v51, %v6467_v57  ;;  %v6692_v56 = vadd.f32 %v6611_v27, %v6468_v6  ;;  %v6693_v4 = vadd.f32 %v6612_v38, %v6469_v1  ;;  %v6694_v37 = vadd.f32 %v6613_v33, %v6470_v14  ;;  %v17293_v57 = vld [vmem:[#allocation326_spill] sm:$0xff] }
 0x322   : > { %v6695_v34 = vadd.f32 %v6614_v5, %v6471_v23  ;;  %v12426_v32 = vcombine.high %v17287_v40, %v17287_v40  ;;  %v12430_v44 = vcombine.high %v17289_v35, %v17289_v35  ;;  %v6823_v63 = vmul.f32 %v17291_v3, %v17272_v16  ;;  %v17294_v14 = vld [vmem:[#allocation330_spill] sm:$0xff] }
 0x323   : > { %v6824_v24 = vmul.f32 %v17292_v17, %v17274_v2  ;;  %v6825_v6 = vmul.f32 %v17293_v57, %v17276_v18  ;;  %v6826_v1 = vmul.f32 %v17294_v14, %v17116_v12  ;;  %v6827_v23 = vmul.f32 %v17287_v40, %v17123_v13 }
 0x324   : > { %17288 = vst [vmem:[#allocation12_spill] sm:$0xff] %v12426_v32  ;;  %17290 = vst [vmem:[#allocation214_spill] sm:$0xff] %v12430_v44  ;;  %v6828_v8 = vmul.f32 %v17289_v35, %v11871_v25  ;;  %v6829_v9 = vmul.f32 %v12426_v32, %v17244_v54  ;;  %v6830_v22 = vmul.f32 %v12430_v44, %v17266_v62 }
 0x325   : > { %v6831_v48 = vmul.f32 %v17291_v3, %v17256_v47  ;;  %v6832_v61 = vmul.f32 %v17291_v3, %v17279_v58  ;;  %v6833_v0 = vmul.f32 %v17292_v17, %v17280_v20  ;;  %v6834_v19 = vmul.f32 %v17293_v57, %v17281_v31 }
 0x326   : > { %v6835_v26 = vmul.f32 %v17294_v14, %v17282_v59  ;;  %v6836_v43 = vmul.f32 %v17287_v40, %v17295_v60  ;;  %v6837_v29 = vmul.f32 %v17289_v35, %v17284_v55  ;;  %v6838_v39 = vmul.f32 %v12426_v32, %v17296_v42  ;;  %v17297_v35 = vld [vmem:[#allocation36_spill] sm:$0xff] }
 0x327   : > { %v6904_v53 = vadd.f32 %v6823_v63, %v6680_v15  ;;  %v6905_v7 = vadd.f32 %v6824_v24, %v6681_v50  ;;  %v6906_v51 = vadd.f32 %v6825_v6, %v6682_v21  ;;  %v6907_v27 = vadd.f32 %v6826_v1, %v6683_v49  ;;  %v17299_v15 = vld [vmem:[#allocation37_spill] sm:$0xff] }
 0x328   : > { %v6908_v38 = vadd.f32 %v6827_v23, %v6684_v45  ;;  %v6909_v33 = vadd.f32 %v6828_v8, %v6685_v52  ;;  %v6910_v5 = vadd.f32 %v6829_v9, %v6686_v10  ;;  %v6911_v46 = vadd.f32 %v6830_v22, %v6687_v28  ;;  %v17301_v45 = vld [vmem:[#allocation38_spill] sm:$0xff]  ;;  %v17306_v23 = vld [vmem:[#allocation332_spill] sm:$0xff] }
 0x329   : > { %v6912_v57 = vadd.f32 %v6831_v48, %v6688_v41  ;;  %v6913_v17 = vadd.f32 %v6832_v61, %v6689_v30  ;;  %v6914_v14 = vadd.f32 %v6833_v0, %v6690_v11  ;;  %v6915_v3 = vadd.f32 %v6834_v19, %v6691_v36  ;;  %v17303_v41 = vld [vmem:[#allocation40_spill] sm:$0xff]  ;;  %v17304_v36 = vld [vmem:[#allocation331_spill] sm:$0xff]  ;;  %v17305_v10 = vld [vmem:[#allocation206_spill] sm:$0xff] }
 0x32a   : > { %v6916_v44 = vadd.f32 %v6835_v26, %v6692_v56  ;;  %v6917_v40 = vadd.f32 %v6836_v43, %v6693_v4  ;;  %v6918_v58 = vadd.f32 %v6837_v29, %v6694_v37  ;;  %v6919_v16 = vadd.f32 %v6838_v39, %v6695_v34  ;;  %v17307_v22 = vld [vmem:[#allocation154_spill] sm:$0xff] }
 0x32b   : > { %v12466_v55 = vcombine.high %v17297_v35, %v17297_v35  ;;  %v12470_v21 = vcombine.high %v17299_v15, %v17299_v15  ;;  %v12474_v52 = vcombine.high %v17301_v45, %v17301_v45  ;;  %v7047_v11 = vmul.f32 %v17297_v35, %v17274_v2 }
 0x32c   : > { %v7048_v4 = vmul.f32 %v17301_v45, %v17276_v18  ;;  %v7051_v30 = vmul.f32 %v17299_v15, %v11871_v25  ;;  %v7052_v28 = vmul.f32 %v17303_v41, %v17244_v54  ;;  %v7054_v34 = vmul.f32 %v17304_v36, %v17256_v47 }
 0x32d   : > { %17298 = vst [vmem:[#allocation207_spill] sm:$0xff] %v12466_v55  ;;  %17300 = vst [vmem:[#allocation175_spill] sm:$0xff] %v12470_v21  ;;  %v7049_v56 = vmul.f32 %v12466_v55, %v17116_v12  ;;  %v7050_v37 = vmul.f32 %v12474_v52, %v17123_v13  ;;  %v7053_v49 = vmul.f32 %v12470_v21, %v17266_v62 }
 0x32e   : > { %17302 = vst [vmem:[#allocation167_spill] sm:$0xff] %v12474_v52  ;;  %v7055_v50 = vmul.f32 %v17297_v35, %v17305_v10  ;;  %v7056_v63 = vmul.f32 %v17297_v35, %v17280_v20  ;;  %v7057_v24 = vmul.f32 %v17301_v45, %v17281_v31  ;;  %v7058_v6 = vmul.f32 %v12466_v55, %v17282_v59 }
 0x32f   : > { %v7059_v1 = vmul.f32 %v12474_v52, %v17295_v60  ;;  %v7060_v8 = vmul.f32 %v17299_v15, %v17306_v23  ;;  %v7061_v9 = vmul.f32 %v17303_v41, %v17296_v42  ;;  %v7062_v48 = vmul.f32 %v12470_v21, %v17307_v22  ;;  %v17308_v41 = vld [vmem:[#allocation39_spill] sm:$0xff] }
 0x330   : > { %v7128_v61 = vadd.f32 %v7047_v11, %v6904_v53  ;;  %v7129_v0 = vadd.f32 %v7048_v4, %v6905_v7  ;;  %v7130_v19 = vadd.f32 %v7049_v56, %v6906_v51  ;;  %v7131_v26 = vadd.f32 %v7050_v37, %v6907_v27  ;;  %v17310_v53 = vld [vmem:[#allocation42_spill] sm:$0xff]  ;;  %v17312_v51 = vld [vmem:[#allocation43_spill] sm:$0xff] }
 0x331   : > { %v7132_v43 = vadd.f32 %v7051_v30, %v6908_v38  ;;  %v7133_v29 = vadd.f32 %v7052_v28, %v6909_v33  ;;  %v7134_v39 = vadd.f32 %v7053_v49, %v6910_v5  ;;  %v7135_v55 = vadd.f32 %v7054_v34, %v6911_v46  ;;  %v17316_v5 = vld [vmem:[#allocation211_spill] sm:$0xff]  ;;  %v17317_v28 = vld [vmem:[#allocation76_spill] sm:$0xff] }
 0x332   : > { %v7136_v45 = vadd.f32 %v7055_v50, %v6912_v57  ;;  %v7137_v35 = vadd.f32 %v7056_v63, %v6913_v17  ;;  %v7138_v52 = vadd.f32 %v7057_v24, %v6914_v14  ;;  %v7139_v36 = vadd.f32 %v7058_v6, %v6915_v3  ;;  %v17314_v57 = vld [vmem:[#allocation46_spill] sm:$0xff]  ;;  %v17318_v49 = vld [vmem:[#allocation155_spill] sm:$0xff] }
 0x333   : > { %v7140_v32 = vadd.f32 %v7059_v1, %v6916_v44  ;;  %v7141_v15 = vadd.f32 %v7060_v8, %v6917_v40  ;;  %v7142_v20 = vadd.f32 %v7061_v9, %v6918_v58  ;;  %v7143_v2 = vadd.f32 %v7062_v48, %v6919_v16 }
 0x334   : > { %v12510_v42 = vcombine.high %v17308_v41, %v17308_v41  ;;  %v12514_v7 = vcombine.high %v17310_v53, %v17310_v53  ;;  %v12518_v27 = vcombine.high %v17312_v51, %v17312_v51  ;;  %v12522_v17 = vcombine.high %v17314_v57, %v17314_v57 }
 0x335   : > { %v7271_v58 = vmul.f32 %v17308_v41, %v17276_v18  ;;  %v7272_v16 = vmul.f32 %v17312_v51, %v17116_v12  ;;  %v7275_v44 = vmul.f32 %v17310_v53, %v17244_v54  ;;  %v7276_v3 = vmul.f32 %v17314_v57, %v17266_v62 }
 0x336   : > { %17309 = vst [vmem:[#allocation339_spill] sm:$0xff] %v12510_v42  ;;  %17311 = vst [vmem:[#allocation340_spill] sm:$0xff] %v12514_v7  ;;  %v7273_v40 = vmul.f32 %v12510_v42, %v17123_v13  ;;  %v7277_v14 = vmul.f32 %v12514_v7, %v17256_v47  ;;  %v7274_v38 = vmul.f32 %v12518_v27, %v11871_v25 }
 0x337   : > { %17313 = vst [vmem:[#allocation341_spill] sm:$0xff] %v12518_v27  ;;  %17315 = vst [vmem:[#allocation342_spill] sm:$0xff] %v12522_v17  ;;  %v7278_v33 = vmul.f32 %v12522_v17, %v17305_v10  ;;  %v7279_v46 = vmul.f32 %v17308_v41, %v17316_v5  ;;  %v7280_v11 = vmul.f32 %v17308_v41, %v17281_v31 }
 0x338   : > { %v7281_v4 = vmul.f32 %v17312_v51, %v17282_v59  ;;  %v7282_v56 = vmul.f32 %v12510_v42, %v17295_v60  ;;  %v7283_v30 = vmul.f32 %v12518_v27, %v17306_v23  ;;  %v7284_v34 = vmul.f32 %v17310_v53, %v17317_v28 }
 0x339   : > { %v7285_v37 = vmul.f32 %v17314_v57, %v17307_v22  ;;  %v7286_v50 = vmul.f32 %v12514_v7, %v17318_v49  ;;  %v7352_v63 = vadd.f32 %v7271_v58, %v7128_v61  ;;  %v7353_v24 = vadd.f32 %v7272_v16, %v7129_v0  ;;  %v17319_v57 = vld [vmem:[#allocation6_spill] sm:$0xff] }
 0x33a   : > { %v7354_v6 = vadd.f32 %v7273_v40, %v7130_v19  ;;  %v7355_v1 = vadd.f32 %v7274_v38, %v7131_v26  ;;  %v7356_v8 = vadd.f32 %v7275_v44, %v7132_v43  ;;  %v7357_v9 = vadd.f32 %v7276_v3, %v7133_v29  ;;  %v17321_v61 = vld [vmem:[#allocation2_spill] sm:$0xff]  ;;  %v17323_v19 = vld [vmem:[#allocation7_spill] sm:$0xff] }
 0x33b   : > { %v7358_v48 = vadd.f32 %v7277_v14, %v7134_v39  ;;  %v7359_v42 = vadd.f32 %v7278_v33, %v7135_v55  ;;  %v7360_v51 = vadd.f32 %v7279_v46, %v7136_v45  ;;  %v7361_v41 = vadd.f32 %v7280_v11, %v7137_v35  ;;  %v17325_v55 = vld [vmem:[#allocation111_spill] sm:$0xff]  ;;  %v17328_v3 = vld [vmem:[#allocation154_spill] sm:$0xff] }
 0x33c   : > { %v7362_v27 = vadd.f32 %v7281_v4, %v7138_v52  ;;  %v7363_v17 = vadd.f32 %v7282_v56, %v7139_v36  ;;  %v7364_v21 = vadd.f32 %v7283_v30, %v7140_v32  ;;  %v7365_v53 = vadd.f32 %v7284_v34, %v7141_v15  ;;  %v17327_v29 = vld [vmem:[#allocation203_spill] sm:$0xff]  ;;  %v17329_v33 = vld [vmem:[#allocation218_spill] sm:$0xff] }
 0x33d   : > { %v7366_v31 = vadd.f32 %v7285_v37, %v7142_v20  ;;  %v7367_v18 = vadd.f32 %v7286_v50, %v7143_v2  ;;  %v12558_v22 = vcombine.high %v17319_v57, %v17319_v57  ;;  %v12562_v0 = vcombine.high %v17321_v61, %v17321_v61 }
 0x33e   : > { %v12566_v26 = vcombine.high %v17323_v19, %v17323_v19  ;;  %v12570_v35 = vcombine.high %v17325_v55, %v17325_v55  ;;  %v7495_v32 = vmul.f32 %v17319_v57, %v17116_v12  ;;  %v7496_v2 = vmul.f32 %v17323_v19, %v17123_v13 }
 0x33f   : > { %17320 = vst [vmem:[#allocation343_spill] sm:$0xff] %v12558_v22  ;;  %17322 = vst [vmem:[#allocation344_spill] sm:$0xff] %v12562_v0  ;;  %v7497_v20 = vmul.f32 %v12558_v22, %v11871_v25  ;;  %v7499_v15 = vmul.f32 %v17321_v61, %v17266_v62  ;;  %v7500_v45 = vmul.f32 %v17325_v55, %v17256_v47 }
 0x340   : > { %17324 = vst [vmem:[#allocation345_spill] sm:$0xff] %v12566_v26  ;;  %17326 = vst [vmem:[#allocation346_spill] sm:$0xff] %v12570_v35  ;;  %v7501_v52 = vmul.f32 %v12562_v0, %v17305_v10  ;;  %v7498_v36 = vmul.f32 %v12566_v26, %v17244_v54  ;;  %v7502_v43 = vmul.f32 %v12570_v35, %v17316_v5 }
 0x341   : > { %v7503_v39 = vmul.f32 %v17319_v57, %v17327_v29  ;;  %v7504_v58 = vmul.f32 %v17319_v57, %v17282_v59  ;;  %v7505_v16 = vmul.f32 %v17323_v19, %v17295_v60  ;;  %v7506_v40 = vmul.f32 %v12558_v22, %v17306_v23 }
 0x342   : > { %v7507_v44 = vmul.f32 %v12566_v26, %v17317_v28  ;;  %v7508_v14 = vmul.f32 %v17321_v61, %v17328_v3  ;;  %v7509_v38 = vmul.f32 %v17325_v55, %v17318_v49  ;;  %v7510_v46 = vmul.f32 %v12562_v0, %v17329_v33 }
 0x343   : > { %v7576_v11 = vadd.f32 %v7495_v32, %v7352_v63  ;;  %v7577_v4 = vadd.f32 %v7496_v2, %v7353_v24  ;;  %v7578_v56 = vadd.f32 %v7497_v20, %v7354_v6  ;;  %v7579_v30 = vadd.f32 %v7498_v36, %v7355_v1  ;;  %v17330_v6 = vld [vmem:[#allocation3_spill] sm:$0xff]  ;;  %v17339_v20 = vld [vmem:[#allocation186_spill] sm:$0xff] }
 0x344   : > { %v7580_v34 = vadd.f32 %v7499_v15, %v7356_v8  ;;  %v7581_v37 = vadd.f32 %v7500_v45, %v7357_v9  ;;  %v7582_v50 = vadd.f32 %v7501_v52, %v7358_v48  ;;  %v7583_v29 = vadd.f32 %v7502_v43, %v7359_v42  ;;  %v17334_v48 = vld [vmem:[#allocation77_spill] sm:$0xff]  ;;  %v17338_v32 = vld [vmem:[#allocation87_spill] sm:$0xff] }
 0x345   : > { %v7584_v22 = vadd.f32 %v7503_v39, %v7360_v51  ;;  %v7585_v19 = vadd.f32 %v7504_v58, %v7361_v41  ;;  %v7586_v26 = vadd.f32 %v7505_v16, %v7362_v27  ;;  %v7587_v57 = vadd.f32 %v7506_v40, %v7363_v17  ;;  %v17331_v27 = vld [vmem:[#allocation239_spill] sm:$0xff]  ;;  %v17340_v15 = vld [vmem:[#allocation81_spill] sm:$0xff] }
 0x346   : > { %v7588_v35 = vadd.f32 %v7507_v44, %v7364_v21  ;;  %v7589_v61 = vadd.f32 %v7508_v14, %v7365_v53  ;;  %v7590_v7 = vadd.f32 %v7509_v38, %v7366_v31  ;;  %v7591_v3 = vadd.f32 %v7510_v46, %v7367_v18  ;;  %v17341_v43 = vld [vmem:[#allocation187_spill] sm:$0xff]  ;;  %v17342_v58 = vld [vmem:[#allocation189_spill] sm:$0xff]  ;;  %v17343_v44 = vld [vmem:[#allocation50_spill] sm:$0xff] }
 0x347   : > { %v7738_v55 = vcombine.low %v7576_v11, %v7577_v4  ;;  %v7739_v49 = vcombine.low %v7578_v56, %v7579_v30  ;;  %v7740_v5 = vcombine.low %v7580_v34, %v7581_v37  ;;  %v7741_v0 = vcombine.low %v7582_v50, %v7583_v29  ;;  %v17344_v14 = vld [vmem:[#allocation44_spill] sm:$0xff]  ;;  %v17346_v11 = vld [vmem:[#allocation47_spill] sm:$0xff]  ;;  %v17347_v30 = vld [vmem:[#allocation73_spill] sm:$0xff] }
 0x348   : > { %v7787_v63 = vcombine.low %v7584_v22, %v7585_v19  ;;  %v7788_v24 = vcombine.low %v7586_v26, %v7587_v57  ;;  %v7789_v9 = vcombine.low %v7588_v35, %v7589_v61  ;;  %v7790_v42 = vcombine.low %v7590_v7, %v7591_v3  ;;  %v17333_v7 = vld [vmem:[#allocation152_spill] sm:$0xff]  ;;  %v17335_v61 = vld [vmem:[#allocation153_spill] sm:$0xff] }
 0x349   : > { %v7748_v1 = vrot.slane %v7738_v55, %v17330_v6  ;;  %v7755_v8 = vrot.slane %v7739_v49, %v17330_v6  ;;  %v7762_v41 = vrot.slane %v7740_v5, %v17330_v6  ;;  %v7769_v51 = vrot.slane %v7741_v0, %v17330_v6  ;;  %v17336_v0 = vld [vmem:[#allocation79_spill] sm:$0xff]  ;;  %v17337_v35 = vld [vmem:[#allocation157_spill] sm:$0xff]  ;;  %v17345_v46 = vld [vmem:[#allocation96_spill] sm:$0xff] }
 0x34a   : > { %v7797_v21 = vrot.slane %v7787_v63, %v17330_v6  ;;  %v7804_v18 = vrot.slane %v7788_v24, %v17330_v6  ;;  %v7811_v53 = vrot.slane %v7789_v9, %v17330_v6  ;;  %v7818_v22 = vrot.slane %v7790_v42, %v17330_v6  ;;  %v17348_v50 = vld [vmem:[#allocation188_spill] sm:$0xff] }
 0x34b   : > { %v7770_v31 = vcombine.low %v7748_v1, %v7755_v8  ;;  %v12614_v57 = vcombine.high %v17331_v27, %v17331_v27  ;;  %v7771_v17 = vcombine.low %v7762_v41, %v7769_v51  ;;  %v2140_v5 = vmul.f32 %v17334_v48, %v17333_v7  ;;  %v17349_v51 = vld [vmem:[#allocation55_spill] sm:$0xff]  ;;  %v17353_v7 = vld [vmem:[#allocation93_spill] sm:$0xff] }
 0x34c   : > { %v7819_v49 = vcombine.low %v7797_v21, %v7804_v18  ;;  %v2141_v19 = vmul.f32 %v17336_v0, %v17335_v61  ;;  %v7820_v55 = vcombine.low %v7811_v53, %v7818_v22  ;;  %v2142_v2 = vmul.f32 %v17338_v32, %v17337_v35  ;;  %v17351_v22 = vld [vmem:[#allocation172_spill] sm:$0xff] }
 0x34d   : > { %17332 = vst [vmem:[#allocation203_spill] sm:$0xff] %v12614_v57  ;;  %v7778_v26 = vrot.slane %v7770_v31, %v17330_v6  ;;  %v2148_v45 = vmul.f32 %v17340_v15, %v17339_v20  ;;  %v7785_v52 = vrot.slane %v7771_v17, %v17330_v6  ;;  %v2149_v39 = vmul.f32 %v17334_v48, %v17341_v43  ;;  %v17350_v31 = vld [vmem:[#allocation53_spill] sm:$0xff]  ;;  %v17352_v17 = vld [vmem:[#allocation54_spill] sm:$0xff] }
 0x34e   : > { %v7827_v36 = vrot.slane %v7819_v49, %v17330_v6  ;;  %v2150_v16 = vmul.f32 %v17336_v0, %v17342_v58  ;;  %v7834_v40 = vrot.slane %v7820_v55, %v17330_v6  ;;  %v2364_v3 = vmul.f32 %v17343_v44, %v17335_v61 }
 0x34f   : > { %v2365_v38 = vmul.f32 %v17344_v14, %v17337_v35  ;;  %v2366_v4 = vmul.f32 %v17346_v11, %v17345_v46  ;;  %v7786_v56 = vcombine.low %v7778_v26, %v7785_v52  ;;  %v2372_v34 = vmul.f32 %v17347_v30, %v17341_v43 }
 0x350   : > { %v2373_v37 = vmul.f32 %v17343_v44, %v17342_v58  ;;  %v2374_v29 = vmul.f32 %v17344_v14, %v17348_v50  ;;  %v7835_v63 = vcombine.low %v7827_v36, %v7834_v40  ;;  %v2445_v24 = vadd.f32 %v2364_v3, %v2140_v5 }
 0x351   : > { %v2446_v1 = vadd.f32 %v2365_v38, %v2141_v19  ;;  %v2447_v8 = vadd.f32 %v2366_v4, %v2142_v2  ;;  %v2453_v9 = vadd.f32 %v2372_v34, %v2148_v45  ;;  %v2588_v21 = vmul.f32 %v17349_v51, %v17337_v35  ;;  %v17354_v19 = vld [vmem:[#allocation191_spill] sm:$0xff]  ;;  %v17355_v2 = vld [vmem:[#allocation97_spill] sm:$0xff]  ;;  %v17357_v4 = vld [vmem:[#allocation56_spill] sm:$0xff] }
 0x352   : > { %v2454_v42 = vadd.f32 %v2373_v37, %v2149_v39  ;;  %v2455_v41 = vadd.f32 %v2374_v29, %v2150_v16  ;;  %v8253_v18 = vpack.c.bf16 %v7835_v63, %v7786_v56  ;;  %v2589_v53 = vmul.f32 %v17350_v31, %v17345_v46  ;;  %v17356_v16 = vld [vmem:[#allocation59_spill] sm:$0xff]  ;;  %v17358_v34 = vld [vmem:[#allocation173_spill] sm:$0xff] }
 0x353   : > { %v2590_v49 = vmul.f32 %v17352_v17, %v17351_v22  ;;  %v2596_v61 = vmul.f32 %v17353_v7, %v17342_v58  ;;  %v2597_v5 = vmul.f32 %v17349_v51, %v17348_v50  ;;  %v2598_v26 = vmul.f32 %v17350_v31, %v17354_v19  ;;  %v17359_v37 = vld [vmem:[#allocation57_spill] sm:$0xff]  ;;  %v17366_v51 = vld [vmem:[#allocation64_spill] sm:$0xff] }
 0x354   : > { %v2669_v55 = vadd.f32 %v2588_v21, %v2445_v24  ;;  %v2811_v45 = vmul.f32 %v17355_v2, %v17337_v35  ;;  %8870 = vmatprep.mubr.bf16.mxu0 %v8253_v18  ;;  %v2670_v52 = vadd.f32 %v2589_v53, %v2446_v1  ;;  %v2812_v40 = vmul.f32 %v17356_v16, %v17345_v46  ;;  %v17360_v24 = vld [vmem:[#allocation194_spill] sm:$0xff]  ;;  %v17362_v18 = vld [vmem:[#allocation101_spill] sm:$0xff] }
 0x355   : > { %v2671_v36 = vadd.f32 %v2590_v49, %v2447_v8  ;;  %v2677_v39 = vadd.f32 %v2596_v61, %v2453_v9  ;;  %v2678_v3 = vadd.f32 %v2597_v5, %v2454_v42  ;;  %v2679_v38 = vadd.f32 %v2598_v26, %v2455_v41  ;;  %v17361_v8 = vld [vmem:[#allocation158_spill] sm:$0xff]  ;;  %v17363_v26 = vld [vmem:[#allocation65_spill] sm:$0xff] }
 0x356   : > { %v2813_v56 = vmul.f32 %v17357_v4, %v17351_v22  ;;  %v2814_v29 = vmul.f32 %v17359_v37, %v17358_v34  ;;  %v2820_v63 = vmul.f32 %v17355_v2, %v17348_v50  ;;  %v2821_v35 = vmul.f32 %v17356_v16, %v17354_v19  ;;  %v17364_v37 = vld [vmem:[#allocation61_spill] sm:$0xff] }
 0x357   : > { %v2822_v1 = vmul.f32 %v17357_v4, %v17360_v24  ;;  %v2892_v9 = vadd.f32 %v2811_v45, %v17361_v8  ;;  %v2893_v21 = vadd.f32 %v2812_v40, %v2669_v55  ;;  %v3035_v53 = vmul.f32 %v17362_v18, %v17345_v46  ;;  %v17365_v31 = vld [vmem:[#allocation177_spill] sm:$0xff]  ;;  %v17368_v40 = vld [vmem:[#allocation107_spill] sm:$0xff] }
 0x358   : > { %v2894_v42 = vadd.f32 %v2813_v56, %v2670_v52  ;;  %v2895_v41 = vadd.f32 %v2814_v29, %v2671_v36  ;;  %v2901_v49 = vadd.f32 %v2820_v63, %v2677_v39  ;;  %v2902_v61 = vadd.f32 %v2821_v35, %v2678_v3  ;;  %v17367_v52 = vld [vmem:[#allocation195_spill] sm:$0xff]  ;;  %v17370_v35 = vld [vmem:[#allocation60_spill] sm:$0xff] }
 0x359   : > { %v2903_v5 = vadd.f32 %v2822_v1, %v2679_v38  ;;  %v3036_v2 = vmul.f32 %v17363_v26, %v17351_v22  ;;  %v3037_v16 = vmul.f32 %v17364_v37, %v17358_v34  ;;  %v3038_v4 = vmul.f32 %v17366_v51, %v17365_v31  ;;  %v17369_v31 = vld [vmem:[#allocation135_spill] sm:$0xff]  ;;  %v17380_v51 = vld [vmem:[#allocation165_spill] sm:$0xff] }
 0x35a   : > { %v3044_v55 = vmul.f32 %v17362_v18, %v17354_v19  ;;  %v3045_v45 = vmul.f32 %v17363_v26, %v17360_v24  ;;  %v3046_v46 = vmul.f32 %v17364_v37, %v17367_v52  ;;  %v3116_v36 = vadd.f32 %v3035_v53, %v2892_v9  ;;  %v17371_v8 = vld [vmem:[#allocation67_spill] sm:$0xff]  ;;  %v17372_v9 = vld [vmem:[#allocation68_spill] sm:$0xff] }
 0x35b   : > { %v3117_v39 = vadd.f32 %v3036_v2, %v2893_v21  ;;  %v3259_v22 = vmul.f32 %v17368_v40, %v17339_v20  ;;  %v3118_v3 = vadd.f32 %v3037_v16, %v2894_v42  ;;  %v3119_v38 = vadd.f32 %v3038_v4, %v2895_v41  ;;  %v17373_v21 = vld [vmem:[#allocation159_spill] sm:$0xff]  ;;  %v17374_v16 = vld [vmem:[#allocation196_spill] sm:$0xff]  ;;  %v17375_v4 = vld [vmem:[#allocation66_spill] sm:$0xff] }
 0x35c   : > { %v3125_v56 = vadd.f32 %v3044_v55, %v2901_v49  ;;  %v3126_v34 = vadd.f32 %v3045_v45, %v2902_v61  ;;  %v3127_v29 = vadd.f32 %v3046_v46, %v2903_v5  ;;  %v3260_v63 = vmul.f32 %v17369_v31, %v17341_v43  ;;  %v17376_v41 = vld [vmem:[#allocation199_spill] sm:$0xff]  ;;  %v17377_v49 = vld [vmem:[#allocation201_spill] sm:$0xff]  ;;  %v17379_v18 = vld [vmem:[#allocation184_spill] sm:$0xff] }
 0x35d   : > { %v3261_v1 = vmul.f32 %v17370_v35, %v17342_v58  ;;  %v3262_v26 = vmul.f32 %v17371_v8, %v17348_v50  ;;  %v3263_v2 = vmul.f32 %v17372_v9, %v17354_v19  ;;  %v3264_v20 = vmul.f32 %v17373_v21, %v17360_v24  ;;  %v17378_v9 = vld [vmem:[#allocation183_spill] sm:$0xff] }
 0x35e   : > { %v3267_v42 = vmul.f32 %v17375_v4, %v17374_v16  ;;  %v3268_v53 = vmul.f32 %v17368_v40, %v17376_v41  ;;  %v3269_v61 = vmul.f32 %v17369_v31, %v17377_v49  ;;  %v3270_v5 = vmul.f32 %v17370_v35, %v17116_v12  ;;  %v17381_v40 = vld [vmem:[#allocation136_spill] sm:$0xff]  ;;  %v17382_v31 = vld [vmem:[#allocation82_spill] sm:$0xff] }
 0x35f   : > { %v3340_v55 = vadd.f32 %v3259_v22, %v3116_v36  ;;  %v3341_v45 = vadd.f32 %v3260_v63, %v3117_v39  ;;  %v3342_v46 = vadd.f32 %v3261_v1, %v3118_v3  ;;  %v3343_v8 = vadd.f32 %v3262_v26, %v3119_v38  ;;  %v17383_v36 = vld [vmem:[#allocation63_spill] sm:$0xff]  ;;  %v17385_v3 = vld [vmem:[#allocation72_spill] sm:$0xff] }
 0x360   : > { %v3344_v37 = vadd.f32 %v3263_v2, %v17378_v9  ;;  %v3345_v21 = vadd.f32 %v3264_v20, %v17379_v18  ;;  %v3348_v7 = vadd.f32 %v3267_v42, %v17380_v51  ;;  %v3349_v4 = vadd.f32 %v3268_v53, %v3125_v56  ;;  %v17384_v26 = vld [vmem:[#allocation71_spill] sm:$0xff]  ;;  %v17386_v51 = vld [vmem:[#allocation160_spill] sm:$0xff]  ;;  %v17387_v56 = vld [vmem:[#allocation70_spill] sm:$0xff] }
 0x361   : > { %v3350_v17 = vadd.f32 %v3269_v61, %v3126_v34  ;;  %v3351_v14 = vadd.f32 %v3270_v5, %v3127_v29  ;;  %v3483_v44 = vmul.f32 %v17381_v40, %v17341_v43  ;;  %v3484_v30 = vmul.f32 %v17382_v31, %v17342_v58 }
 0x362   : > { %v3485_v39 = vmul.f32 %v17383_v36, %v17348_v50  ;;  %v3486_v22 = vmul.f32 %v17384_v26, %v17354_v19  ;;  %v3487_v18 = vmul.f32 %v17385_v3, %v17360_v24  ;;  %v3488_v38 = vmul.f32 %v17386_v51, %v17367_v52 }
 0x363   : > { %v3491_v34 = vmul.f32 %v17387_v56, %v17376_v41  ;;  %v3492_v43 = vmul.f32 %v17381_v40, %v17377_v49  ;;  %v3493_v29 = vmul.f32 %v17382_v31, %v17116_v12  ;;  %v3494_v63 = vmul.f32 %v17383_v36, %v17123_v13  ;;  %v17388_v56 = vld [vmem:[#allocation137_spill] sm:$0xff]  ;;  %v17389_v40 = vld [vmem:[#allocation86_spill] sm:$0xff] }
 0x364   : > { %v3564_v1 = vadd.f32 %v3483_v44, %v3340_v55  ;;  %v3565_v9 = vadd.f32 %v3484_v30, %v3341_v45  ;;  %v3566_v2 = vadd.f32 %v3485_v39, %v3342_v46  ;;  %v3567_v20 = vadd.f32 %v3486_v22, %v3343_v8  ;;  %v17390_v31 = vld [vmem:[#allocation74_spill] sm:$0xff]  ;;  %v17391_v44 = vld [vmem:[#allocation84_spill] sm:$0xff]  ;;  %v17392_v8 = vld [vmem:[#allocation85_spill] sm:$0xff] }
 0x365   : > { %v3568_v42 = vadd.f32 %v3487_v18, %v3344_v37  ;;  %v3569_v53 = vadd.f32 %v3488_v38, %v3345_v21  ;;  %v3572_v61 = vadd.f32 %v3491_v34, %v3348_v7  ;;  %v3573_v5 = vadd.f32 %v3492_v43, %v3349_v4  ;;  %v17393_v21 = vld [vmem:[#allocation197_spill] sm:$0xff] }
 0x366   : > { %v3574_v51 = vadd.f32 %v3493_v29, %v3350_v17  ;;  %v3575_v3 = vadd.f32 %v3494_v63, %v3351_v14  ;;  %v3707_v26 = vmul.f32 %v17388_v56, %v17342_v58  ;;  %v3708_v35 = vmul.f32 %v17389_v40, %v17348_v50  ;;  %v17394_v7 = vld [vmem:[#allocation161_spill] sm:$0xff]  ;;  %v17395_v14 = vld [vmem:[#allocation75_spill] sm:$0xff] }
 0x367   : > { %v3709_v11 = vmul.f32 %v17390_v31, %v17354_v19  ;;  %v3710_v30 = vmul.f32 %v17391_v44, %v17360_v24  ;;  %v3711_v37 = vmul.f32 %v17392_v8, %v17367_v52  ;;  %v3712_v4 = vmul.f32 %v17394_v7, %v17393_v21 }
 0x368   : > { %v3715_v17 = vmul.f32 %v17395_v14, %v17377_v49  ;;  %v3716_v55 = vmul.f32 %v17388_v56, %v17116_v12  ;;  %v3717_v45 = vmul.f32 %v17389_v40, %v17123_v13  ;;  %v3718_v46 = vmul.f32 %v17390_v31, %v11871_v25  ;;  %v17396_v14 = vld [vmem:[#allocation109_spill] sm:$0xff]  ;;  %v17397_v56 = vld [vmem:[#allocation303_spill] sm:$0xff]  ;;  %v17398_v40 = vld [vmem:[#allocation10_spill] sm:$0xff] }
 0x369   : > { %v3788_v39 = vadd.f32 %v3707_v26, %v3564_v1  ;;  %v3789_v22 = vadd.f32 %v3708_v35, %v3565_v9  ;;  %v3790_v18 = vadd.f32 %v3709_v11, %v3566_v2  ;;  %v3791_v38 = vadd.f32 %v3710_v30, %v3567_v20  ;;  %v17399_v26 = vld [vmem:[#allocation108_spill] sm:$0xff]  ;;  %v17401_v9 = vld [vmem:[#allocation9_spill] sm:$0xff] }
 0x36a   : > { %v3792_v34 = vadd.f32 %v3711_v37, %v3568_v42  ;;  %v3793_v43 = vadd.f32 %v3712_v4, %v3569_v53  ;;  %v3796_v29 = vadd.f32 %v3715_v17, %v3572_v61  ;;  %v3797_v63 = vadd.f32 %v3716_v55, %v3573_v5  ;;  %v17400_v11 = vld [vmem:[#allocation8_spill] sm:$0xff] }
 0x36b   : > { %v3798_v7 = vadd.f32 %v3717_v45, %v3574_v51  ;;  %v3799_v8 = vadd.f32 %v3718_v46, %v3575_v3  ;;  %v3930_v44 = vmul.f32 %v17396_v14, %v17342_v58  ;;  %v3931_v36 = vmul.f32 %v17397_v56, %v17348_v50  ;;  %v17402_v51 = vld [vmem:[#allocation198_spill] sm:$0xff]  ;;  %v17403_v3 = vld [vmem:[#allocation163_spill] sm:$0xff]  ;;  %v17404_v5 = vld [vmem:[#allocation200_spill] sm:$0xff] }
 0x36c   : > { %v3932_v0 = vmul.f32 %v17398_v40, %v17354_v19  ;;  %v3933_v35 = vmul.f32 %v17399_v26, %v17360_v24  ;;  %v3934_v1 = vmul.f32 %v17400_v11, %v17367_v52  ;;  %v3935_v2 = vmul.f32 %v17401_v9, %v17393_v21 }
 0x36d   : > { %v3936_v20 = vmul.f32 %v17403_v3, %v17402_v51  ;;  %v3939_v58 = vmul.f32 %v17396_v14, %v17116_v12  ;;  %v3940_v42 = vmul.f32 %v17397_v56, %v17123_v13  ;;  %v3941_v53 = vmul.f32 %v17398_v40, %v11871_v25  ;;  %v17405_v56 = vld [vmem:[#allocation113_spill] sm:$0xff]  ;;  %v17406_v40 = vld [vmem:[#allocation304_spill] sm:$0xff] }
 0x36e   : > { %v3942_v61 = vmul.f32 %v17399_v26, %v17244_v54  ;;  %v4011_v30 = vadd.f32 %v3930_v44, %v17404_v5  ;;  %v4012_v37 = vadd.f32 %v3931_v36, %v3788_v39  ;;  %v4013_v4 = vadd.f32 %v3932_v0, %v3789_v22  ;;  %v17407_v26 = vld [vmem:[#allocation267_spill] sm:$0xff]  ;;  %v17408_v36 = vld [vmem:[#allocation112_spill] sm:$0xff]  ;;  %v17409_v44 = vld [vmem:[#allocation114_spill] sm:$0xff] }
 0x36f   : > { %v4014_v17 = vadd.f32 %v3933_v35, %v3790_v18  ;;  %v4015_v55 = vadd.f32 %v3934_v1, %v3791_v38  ;;  %v4016_v45 = vadd.f32 %v3935_v2, %v3792_v34  ;;  %v4017_v46 = vadd.f32 %v3936_v20, %v3793_v43  ;;  %v17410_v22 = vld [vmem:[#allocation150_spill] sm:$0xff] }
 0x370   : > { %v4020_v3 = vadd.f32 %v3939_v58, %v3796_v29  ;;  %v4021_v9 = vadd.f32 %v3940_v42, %v3797_v63  ;;  %v4022_v14 = vadd.f32 %v3941_v53, %v3798_v7  ;;  %v4023_v11 = vadd.f32 %v3942_v61, %v3799_v8  ;;  %v17411_v7 = vld [vmem:[#allocation100_spill] sm:$0xff]  ;;  %v17412_v8 = vld [vmem:[#allocation5_spill] sm:$0xff] }
 0x371   : > { %v4154_v31 = vmul.f32 %v17405_v56, %v17348_v50  ;;  %v4155_v48 = vmul.f32 %v17406_v40, %v17354_v19  ;;  %v4156_v15 = vmul.f32 %v17407_v26, %v17360_v24  ;;  %v4157_v0 = vmul.f32 %v17408_v36, %v17367_v52  ;;  %v17415_v19 = vld [vmem:[#allocation305_spill] sm:$0xff] }
 0x372   : > { %v4158_v39 = vmul.f32 %v17409_v44, %v17393_v21  ;;  %v4159_v18 = vmul.f32 %v17410_v22, %v17402_v51  ;;  %v4160_v38 = vmul.f32 %v17412_v8, %v17411_v7  ;;  %v4163_v34 = vmul.f32 %v17405_v56, %v17123_v13  ;;  %v17413_v22 = vld [vmem:[#allocation51_spill] sm:$0xff]  ;;  %v17414_v44 = vld [vmem:[#allocation117_spill] sm:$0xff] }
 0x373   : > { %v4164_v43 = vmul.f32 %v17406_v40, %v11871_v25  ;;  %v4165_v29 = vmul.f32 %v17407_v26, %v17244_v54  ;;  %v4166_v63 = vmul.f32 %v17408_v36, %v17266_v62  ;;  %v4235_v35 = vadd.f32 %v4154_v31, %v4011_v30  ;;  %v17417_v31 = vld [vmem:[#allocation116_spill] sm:$0xff] }
 0x374   : > { %v4236_v1 = vadd.f32 %v4155_v48, %v4012_v37  ;;  %v4237_v2 = vadd.f32 %v4156_v15, %v4013_v4  ;;  %v4238_v20 = vadd.f32 %v4157_v0, %v4014_v17  ;;  %v4239_v58 = vadd.f32 %v4158_v39, %v4015_v55  ;;  %v17416_v48 = vld [vmem:[#allocation306_spill] sm:$0xff]  ;;  %v17420_v4 = vld [vmem:[#allocation208_spill] sm:$0xff] }
 0x375   : > { %v4240_v42 = vadd.f32 %v4159_v18, %v4016_v45  ;;  %v4241_v53 = vadd.f32 %v4160_v38, %v4017_v46  ;;  %v4244_v61 = vadd.f32 %v4163_v34, %v4020_v3  ;;  %v4245_v5 = vadd.f32 %v4164_v43, %v4021_v9  ;;  %v17418_v3 = vld [vmem:[#allocation118_spill] sm:$0xff]  ;;  %v17422_v46 = vld [vmem:[#allocation209_spill] sm:$0xff] }
 0x376   : > { %v4246_v8 = vadd.f32 %v4165_v29, %v4022_v14  ;;  %v4247_v56 = vadd.f32 %v4166_v63, %v4023_v11  ;;  %v4375_v40 = vmul.f32 %v17413_v22, %v17360_v24  ;;  %v4378_v26 = vmul.f32 %v17414_v44, %v17374_v16  ;;  %v17419_v14 = vld [vmem:[#allocation162_spill] sm:$0xff]  ;;  %v17423_v18 = vld [vmem:[#allocation185_spill] sm:$0xff] }
 0x377   : > { %v4379_v36 = vmul.f32 %v17415_v19, %v17376_v41  ;;  %v4380_v15 = vmul.f32 %v17416_v48, %v17377_v49  ;;  %v4381_v30 = vmul.f32 %v17417_v31, %v17116_v12  ;;  %v4382_v9 = vmul.f32 %v17418_v3, %v17123_v13  ;;  %v17421_v55 = vld [vmem:[#allocation210_spill] sm:$0xff] }
 0x378   : > { %v4383_v11 = vmul.f32 %v17419_v14, %v11871_v25  ;;  %v4384_v37 = vmul.f32 %v17413_v22, %v17244_v54  ;;  %v4387_v17 = vmul.f32 %v17414_v44, %v17420_v4  ;;  %v4388_v45 = vmul.f32 %v17415_v19, %v17421_v55  ;;  %v17424_v19 = vld [vmem:[#allocation78_spill] sm:$0xff] }
 0x379   : > { %v4389_v0 = vmul.f32 %v17416_v48, %v17422_v46  ;;  %v4390_v39 = vmul.f32 %v17417_v31, %v17282_v59  ;;  %v4456_v38 = vadd.f32 %v4375_v40, %v17423_v18  ;;  %v4459_v34 = vadd.f32 %v4378_v26, %v4235_v35  ;;  %v17425_v48 = vld [vmem:[#allocation122_spill] sm:$0xff]  ;;  %v17426_v31 = vld [vmem:[#allocation307_spill] sm:$0xff]  ;;  %v17427_v26 = vld [vmem:[#allocation308_spill] sm:$0xff] }
 0x37a   : > { %v4460_v43 = vadd.f32 %v4379_v36, %v4236_v1  ;;  %v4461_v29 = vadd.f32 %v4380_v15, %v4237_v2  ;;  %v4462_v63 = vadd.f32 %v4381_v30, %v4238_v20  ;;  %v4463_v14 = vadd.f32 %v4382_v9, %v4239_v58  ;;  %v17428_v35 = vld [vmem:[#allocation121_spill] sm:$0xff]  ;;  %v17429_v2 = vld [vmem:[#allocation123_spill] sm:$0xff] }
 0x37b   : > { %v4464_v22 = vadd.f32 %v4383_v11, %v4240_v42  ;;  %v4465_v3 = vadd.f32 %v4384_v37, %v4241_v53  ;;  %v4468_v16 = vadd.f32 %v4387_v17, %v4244_v61  ;;  %v4469_v44 = vadd.f32 %v4388_v45, %v4245_v5 }
 0x37c   : > { %v4470_v24 = vadd.f32 %v4389_v0, %v4246_v8  ;;  %v4471_v32 = vadd.f32 %v4390_v39, %v4247_v56  ;;  %v4599_v50 = vmul.f32 %v17424_v19, %v17367_v52  ;;  %v4602_v6 = vmul.f32 %v17425_v48, %v17376_v41  ;;  %v17430_v56 = vld [vmem:[#allocation104_spill] sm:$0xff] }
 0x37d   : > { %v4603_v40 = vmul.f32 %v17426_v31, %v17377_v49  ;;  %v4604_v36 = vmul.f32 %v17427_v26, %v17116_v12  ;;  %v4605_v1 = vmul.f32 %v17428_v35, %v17123_v13  ;;  %v4606_v20 = vmul.f32 %v17429_v2, %v11871_v25  ;;  %v17467_v52 = vld [vmem:[#allocation120_spill] sm:$0xff] }
 0x37e   : > { %v4607_v8 = vmul.f32 %v17430_v56, %v17244_v54  ;;  %v4608_v58 = vmul.f32 %v17424_v19, %v17266_v62  ;;  %v4611_v42 = vmul.f32 %v17425_v48, %v17421_v55  ;;  %v4612_v53 = vmul.f32 %v17426_v31, %v17422_v46  ;;  %v17431_v31 = vld [vmem:[#allocation4_spill] sm:$0xff] }
 0x37f   : > { %v4613_v61 = vmul.f32 %v17427_v26, %v17282_v59  ;;  %v4614_v5 = vmul.f32 %v17428_v35, %v17295_v60  ;;  %v4680_v15 = vadd.f32 %v4599_v50, %v4456_v38  ;;  %v4683_v30 = vadd.f32 %v4602_v6, %v4459_v34  ;;  %v17432_v26 = vld [vmem:[#allocation126_spill] sm:$0xff]  ;;  %v17433_v35 = vld [vmem:[#allocation309_spill] sm:$0xff] }
 0x380   : > { %v4684_v9 = vadd.f32 %v4603_v40, %v4460_v43  ;;  %v4685_v11 = vadd.f32 %v4604_v36, %v4461_v29  ;;  %v4686_v37 = vadd.f32 %v4605_v1, %v4462_v63  ;;  %v4687_v17 = vadd.f32 %v4606_v20, %v4463_v14  ;;  %v17434_v6 = vld [vmem:[#allocation310_spill] sm:$0xff]  ;;  %v17435_v14 = vld [vmem:[#allocation125_spill] sm:$0xff] }
 0x381   : > { %v4688_v45 = vadd.f32 %v4607_v8, %v4464_v22  ;;  %v4689_v0 = vadd.f32 %v4608_v58, %v4465_v3  ;;  %v4692_v39 = vadd.f32 %v4611_v42, %v4468_v16  ;;  %v4693_v18 = vadd.f32 %v4612_v53, %v4469_v44  ;;  %v17436_v16 = vld [vmem:[#allocation11_spill] sm:$0xff] }
 0x382   : > { %v4694_v48 = vadd.f32 %v4613_v61, %v4470_v24  ;;  %v4695_v19 = vadd.f32 %v4614_v5, %v4471_v32  ;;  %v4823_v56 = vmul.f32 %v17431_v31, %v17393_v21  ;;  %v4826_v2 = vmul.f32 %v17432_v26, %v17377_v49  ;;  %v17437_v32 = vld [vmem:[#allocation105_spill] sm:$0xff] }
 0x383   : > { %v4827_v50 = vmul.f32 %v17433_v35, %v17116_v12  ;;  %v4828_v38 = vmul.f32 %v17434_v6, %v17123_v13  ;;  %v4829_v22 = vmul.f32 %v17435_v14, %v11871_v25  ;;  %v4830_v44 = vmul.f32 %v17436_v16, %v17244_v54 }
 0x384   : > { %v4831_v24 = vmul.f32 %v17437_v32, %v17266_v62  ;;  %v4832_v3 = vmul.f32 %v17431_v31, %v17256_v47  ;;  %v4835_v34 = vmul.f32 %v17432_v26, %v17422_v46  ;;  %v4836_v43 = vmul.f32 %v17433_v35, %v17282_v59  ;;  %v17438_v35 = vld [vmem:[#allocation168_spill] sm:$0xff] }
 0x385   : > { %v4837_v29 = vmul.f32 %v17434_v6, %v17295_v60  ;;  %v4838_v63 = vmul.f32 %v17435_v14, %v17306_v23  ;;  %v4904_v40 = vadd.f32 %v4823_v56, %v4680_v15  ;;  %v4907_v36 = vadd.f32 %v4826_v2, %v4683_v30  ;;  %v17439_v6 = vld [vmem:[#allocation129_spill] sm:$0xff]  ;;  %v17440_v14 = vld [vmem:[#allocation311_spill] sm:$0xff]  ;;  %v17441_v2 = vld [vmem:[#allocation312_spill] sm:$0xff] }
 0x386   : > { %v4908_v1 = vadd.f32 %v4827_v50, %v4684_v9  ;;  %v4909_v20 = vadd.f32 %v4828_v38, %v4685_v11  ;;  %v4910_v8 = vadd.f32 %v4829_v22, %v4686_v37  ;;  %v4911_v58 = vadd.f32 %v4830_v44, %v4687_v17  ;;  %v17442_v30 = vld [vmem:[#allocation128_spill] sm:$0xff]  ;;  %v17443_v11 = vld [vmem:[#allocation133_spill] sm:$0xff] }
 0x387   : > { %v4912_v42 = vadd.f32 %v4831_v24, %v4688_v45  ;;  %v4913_v53 = vadd.f32 %v4832_v3, %v4689_v0  ;;  %v4916_v61 = vadd.f32 %v4835_v34, %v4692_v39  ;;  %v4917_v5 = vadd.f32 %v4836_v43, %v4693_v18 }
 0x388   : > { %v4918_v26 = vadd.f32 %v4837_v29, %v4694_v48  ;;  %v4919_v31 = vadd.f32 %v4838_v63, %v4695_v19  ;;  %v5047_v32 = vmul.f32 %v17438_v35, %v17402_v51  ;;  %v5050_v16 = vmul.f32 %v17439_v6, %v17116_v12  ;;  %v17444_v19 = vld [vmem:[#allocation106_spill] sm:$0xff] }
 0x389   : > { %v5051_v56 = vmul.f32 %v17440_v14, %v17123_v13  ;;  %v5052_v15 = vmul.f32 %v17441_v2, %v11871_v25  ;;  %v5053_v9 = vmul.f32 %v17442_v30, %v17244_v54  ;;  %v5054_v37 = vmul.f32 %v17443_v11, %v17266_v62  ;;  %v17469_v12 = vld [vmem:[#allocation302_spill] sm:$0xff] }
 0x38a   : > { %v5055_v48 = vmul.f32 %v17444_v19, %v17256_v47  ;;  %v5056_v17 = vmul.f32 %v17438_v35, %v17305_v10  ;;  %v5059_v45 = vmul.f32 %v17439_v6, %v17282_v59  ;;  %v5060_v0 = vmul.f32 %v17440_v14, %v17295_v60  ;;  %v17445_v14 = vld [vmem:[#allocation171_spill] sm:$0xff] }
 0x38b   : > { %v5061_v39 = vmul.f32 %v17441_v2, %v17306_v23  ;;  %v5062_v18 = vmul.f32 %v17442_v30, %v17317_v28  ;;  %v5128_v50 = vadd.f32 %v5047_v32, %v4904_v40  ;;  %v5131_v38 = vadd.f32 %v5050_v16, %v4907_v36  ;;  %v17446_v2 = vld [vmem:[#allocation132_spill] sm:$0xff]  ;;  %v17447_v30 = vld [vmem:[#allocation313_spill] sm:$0xff]  ;;  %v17448_v16 = vld [vmem:[#allocation314_spill] sm:$0xff] }
 0x38c   : > { %v5132_v22 = vadd.f32 %v5051_v56, %v4908_v1  ;;  %v5133_v44 = vadd.f32 %v5052_v15, %v4909_v20  ;;  %v5134_v24 = vadd.f32 %v5053_v9, %v4910_v8  ;;  %v5135_v3 = vadd.f32 %v5054_v37, %v4911_v58  ;;  %v17449_v36 = vld [vmem:[#allocation131_spill] sm:$0xff]  ;;  %v17450_v20 = vld [vmem:[#allocation134_spill] sm:$0xff] }
 0x38d   : > { %v5136_v34 = vadd.f32 %v5055_v48, %v4912_v42  ;;  %v5137_v43 = vadd.f32 %v5056_v17, %v4913_v53  ;;  %v5140_v29 = vadd.f32 %v5059_v45, %v4916_v61  ;;  %v5141_v63 = vadd.f32 %v5060_v0, %v4917_v5  ;;  %v17452_v58 = vld [vmem:[#allocation211_spill] sm:$0xff]  ;;  %v17453_v56 = vld [vmem:[#allocation154_spill] sm:$0xff] }
 0x38e   : > { %v5142_v6 = vadd.f32 %v5061_v39, %v4918_v26  ;;  %v5143_v35 = vadd.f32 %v5062_v18, %v4919_v31  ;;  %v5271_v19 = vmul.f32 %v17445_v14, %v17411_v7  ;;  %v5274_v11 = vmul.f32 %v17446_v2, %v17123_v13  ;;  %v17451_v31 = vld [vmem:[#allocation147_spill] sm:$0xff]  ;;  %v17468_v13 = vld [vmem:[#allocation180_spill] sm:$0xff] }
 0x38f   : > { %v5275_v32 = vmul.f32 %v17447_v30, %v11871_v25  ;;  %v5276_v40 = vmul.f32 %v17448_v16, %v17244_v54  ;;  %v5277_v1 = vmul.f32 %v17449_v36, %v17266_v62  ;;  %v5278_v8 = vmul.f32 %v17450_v20, %v17256_v47 }
 0x390   : > { %v5279_v26 = vmul.f32 %v17451_v31, %v17305_v10  ;;  %v5280_v42 = vmul.f32 %v17445_v14, %v17452_v58  ;;  %v5283_v53 = vmul.f32 %v17446_v2, %v17295_v60  ;;  %v5284_v61 = vmul.f32 %v17447_v30, %v17306_v23  ;;  %v17454_v30 = vld [vmem:[#allocation146_spill] sm:$0xff] }
 0x391   : > { %v5285_v5 = vmul.f32 %v17448_v16, %v17317_v28  ;;  %v5286_v15 = vmul.f32 %v17449_v36, %v17453_v56  ;;  %v5352_v9 = vadd.f32 %v5271_v19, %v5128_v50  ;;  %v5355_v37 = vadd.f32 %v5274_v11, %v5131_v38  ;;  %v17455_v16 = vld [vmem:[#allocation142_spill] sm:$0xff]  ;;  %v17456_v36 = vld [vmem:[#allocation315_spill] sm:$0xff]  ;;  %v17457_v11 = vld [vmem:[#allocation316_spill] sm:$0xff] }
 0x392   : > { %v5356_v48 = vadd.f32 %v5275_v32, %v5132_v22  ;;  %v5357_v17 = vadd.f32 %v5276_v40, %v5133_v44  ;;  %v5358_v45 = vadd.f32 %v5277_v1, %v5134_v24  ;;  %v5359_v0 = vadd.f32 %v5278_v8, %v5135_v3  ;;  %v17458_v38 = vld [vmem:[#allocation92_spill] sm:$0xff]  ;;  %v17459_v44 = vld [vmem:[#allocation151_spill] sm:$0xff]  ;;  %v17465_v8 = vld [vmem:[#allocation222_spill] sm:$0xff] }
 0x393   : > { %v5360_v39 = vadd.f32 %v5279_v26, %v5136_v34  ;;  %v5361_v18 = vadd.f32 %v5280_v42, %v5137_v43  ;;  %v5364_v14 = vadd.f32 %v5283_v53, %v5140_v29  ;;  %v5365_v31 = vadd.f32 %v5284_v61, %v5141_v63  ;;  %v17461_v34 = vld [vmem:[#allocation234_spill] sm:$0xff]  ;;  %v17463_v63 = vld [vmem:[#allocation225_spill] sm:$0xff]  ;;  %v17464_v40 = vld [vmem:[#allocation164_spill] sm:$0xff] }
 0x394   : > { %v5366_v2 = vadd.f32 %v5285_v5, %v5142_v6  ;;  %v5367_v20 = vadd.f32 %v5286_v15, %v5143_v35  ;;  %v5495_v7 = vmul.f32 %v17454_v30, %v17244_v54  ;;  %v5498_v51 = vmul.f32 %v17455_v16, %v17420_v4  ;;  %v17460_v35 = vld [vmem:[#allocation156_spill] sm:$0xff]  ;;  %v17462_v43 = vld [vmem:[#allocation138_spill] sm:$0xff]  ;;  %v17466_v42 = vld [vmem:[#allocation223_spill] sm:$0xff] }
 0x395   : > { %v5499_v19 = vmul.f32 %v17456_v36, %v17421_v55  ;;  %v5500_v50 = vmul.f32 %v17457_v11, %v17422_v46  ;;  %v5501_v22 = vmul.f32 %v17458_v38, %v17282_v59  ;;  %v5502_v24 = vmul.f32 %v17459_v44, %v17295_v60 }
 0x396   : > { %v5503_v6 = vmul.f32 %v17460_v35, %v17306_v23  ;;  %v5504_v3 = vmul.f32 %v17454_v30, %v17317_v28  ;;  %v5506_v29 = vmul.f32 %v17462_v43, %v17461_v34  ;;  %v5507_v32 = vmul.f32 %v17455_v16, %v17463_v63 }
 0x397   : > { %v5508_v1 = vmul.f32 %v17456_v36, %v17464_v40  ;;  %v5509_v26 = vmul.f32 %v17457_v11, %v17465_v8  ;;  %v5510_v53 = vmul.f32 %v17458_v38, %v17466_v42  ;;  %v5576_v61 = vadd.f32 %v5495_v7, %v5352_v9  ;;  %v17471_v9 = vld [vmem:[#allocation318_spill] sm:$0xff] }
 0x398   : > { %v5579_v5 = vadd.f32 %v5498_v51, %v5355_v37  ;;  %v5580_v15 = vadd.f32 %v5499_v19, %v5356_v48  ;;  %v5581_v35 = vadd.f32 %v5500_v50, %v5357_v17  ;;  %v5582_v30 = vadd.f32 %v5501_v22, %v5358_v45  ;;  %v17470_v51 = vld [vmem:[#allocation317_spill] sm:$0xff]  ;;  %v17472_v48 = vld [vmem:[#allocation148_spill] sm:$0xff]  ;;  %v17475_v45 = vld [vmem:[#allocation178_spill] sm:$0xff] }
 0x399   : > { %v5583_v44 = vadd.f32 %v5502_v24, %v5359_v0  ;;  %v5584_v21 = vadd.f32 %v5503_v6, %v5360_v39  ;;  %v5585_v43 = vadd.f32 %v5504_v3, %v5361_v18  ;;  %v5587_v4 = vadd.f32 %v5506_v29, %v17467_v52  ;;  %v17473_v52 = vld [vmem:[#allocation18_spill] sm:$0xff]  ;;  %v17476_v50 = vld [vmem:[#allocation231_spill] sm:$0xff] }
 0x39a   : > { %v5588_v16 = vadd.f32 %v5507_v32, %v5364_v14  ;;  %v5589_v54 = vadd.f32 %v5508_v1, %v5365_v31  ;;  %v5590_v25 = vadd.f32 %v5509_v26, %v5366_v2  ;;  %v5591_v36 = vadd.f32 %v5510_v53, %v5367_v20  ;;  %v17474_v2 = vld [vmem:[#allocation41_spill] sm:$0xff] }
 0x39b   : > { %v5719_v11 = vmul.f32 %v17468_v13, %v17266_v62  ;;  %v5722_v38 = vmul.f32 %v17469_v12, %v17421_v55  ;;  %v5723_v7 = vmul.f32 %v17470_v51, %v17422_v46  ;;  %v5724_v37 = vmul.f32 %v17471_v9, %v17282_v59 }
 0x39c   : > { %v5725_v17 = vmul.f32 %v17472_v48, %v17295_v60  ;;  %v5726_v14 = vmul.f32 %v17473_v52, %v17306_v23  ;;  %v5727_v20 = vmul.f32 %v17474_v2, %v17317_v28  ;;  %v5728_v31 = vmul.f32 %v17468_v13, %v17453_v56 }
 0x39d   : > { %v5730_v0 = vmul.f32 %v17475_v45, %v17463_v63  ;;  %v5731_v39 = vmul.f32 %v17469_v12, %v17464_v40  ;;  %v5732_v18 = vmul.f32 %v17470_v51, %v17465_v8  ;;  %v5733_v19 = vmul.f32 %v17471_v9, %v17466_v42  ;;  %v17477_v51 = vld [vmem:[#allocation176_spill] sm:$0xff]  ;;  %v17478_v9 = vld [vmem:[#allocation17_spill] sm:$0xff] }
 0x39e   : > { %v5734_v22 = vmul.f32 %v17472_v48, %v17476_v50  ;;  %v5800_v24 = vadd.f32 %v5719_v11, %v5576_v61  ;;  %v5803_v6 = vadd.f32 %v5722_v38, %v5579_v5  ;;  %v5804_v3 = vadd.f32 %v5723_v7, %v5580_v15  ;;  %v17479_v11 = vld [vmem:[#allocation319_spill] sm:$0xff] }
 0x39f   : > { %v5805_v29 = vadd.f32 %v5724_v37, %v5581_v35  ;;  %v5806_v32 = vadd.f32 %v5725_v17, %v5582_v30  ;;  %v5807_v1 = vadd.f32 %v5726_v14, %v5583_v44  ;;  %v5808_v26 = vadd.f32 %v5727_v20, %v5584_v21  ;;  %v17480_v35 = vld [vmem:[#allocation320_spill] sm:$0xff]  ;;  %v17485_v61 = vld [vmem:[#allocation15_spill] sm:$0xff]  ;;  %v17486_v17 = vld [vmem:[#allocation221_spill] sm:$0xff] }
 0x3a0   : > { %v5809_v53 = vadd.f32 %v5728_v31, %v5585_v43  ;;  %v5811_v45 = vadd.f32 %v5730_v0, %v5587_v4  ;;  %v5812_v13 = vadd.f32 %v5731_v39, %v5588_v16  ;;  %v5813_v12 = vadd.f32 %v5732_v18, %v5589_v54  ;;  %v17481_v21 = vld [vmem:[#allocation16_spill] sm:$0xff]  ;;  %v17482_v4 = vld [vmem:[#allocation22_spill] sm:$0xff] }
 0x3a1   : > { %v5814_v2 = vadd.f32 %v5733_v19, %v5590_v25  ;;  %v5815_v52 = vadd.f32 %v5734_v22, %v5591_v36  ;;  %v5943_v62 = vmul.f32 %v17477_v51, %v17256_v47  ;;  %v5946_v55 = vmul.f32 %v17478_v9, %v17422_v46  ;;  %v17483_v25 = vld [vmem:[#allocation149_spill] sm:$0xff]  ;;  %v17484_v36 = vld [vmem:[#allocation155_spill] sm:$0xff] }
 0x3a2   : > { %v5947_v38 = vmul.f32 %v17479_v11, %v17282_v59  ;;  %v5948_v30 = vmul.f32 %v17480_v35, %v17295_v60  ;;  %v5949_v44 = vmul.f32 %v17481_v21, %v17306_v23  ;;  %v5950_v54 = vmul.f32 %v17482_v4, %v17317_v28 }
 0x3a3   : > { %v5951_v16 = vmul.f32 %v17483_v25, %v17453_v56  ;;  %v5952_v43 = vmul.f32 %v17477_v51, %v17484_v36  ;;  %v5954_v5 = vmul.f32 %v17485_v61, %v17464_v40  ;;  %v5955_v15 = vmul.f32 %v17478_v9, %v17465_v8 }
 0x3a4   : > { %v5956_v7 = vmul.f32 %v17479_v11, %v17466_v42  ;;  %v5957_v37 = vmul.f32 %v17480_v35, %v17476_v50  ;;  %v5958_v14 = vmul.f32 %v17481_v21, %v17486_v17  ;;  %v6024_v20 = vadd.f32 %v5943_v62, %v5800_v24  ;;  %v17487_v11 = vld [vmem:[#allocation190_spill] sm:$0xff]  ;;  %v17488_v35 = vld [vmem:[#allocation19_spill] sm:$0xff]  ;;  %v17489_v62 = vld [vmem:[#allocation21_spill] sm:$0xff] }
 0x3a5   : > { %v6027_v31 = vadd.f32 %v5946_v55, %v5803_v6  ;;  %v6028_v0 = vadd.f32 %v5947_v38, %v5804_v3  ;;  %v6029_v39 = vadd.f32 %v5948_v30, %v5805_v29  ;;  %v6030_v18 = vadd.f32 %v5949_v44, %v5806_v32  ;;  %v17490_v24 = vld [vmem:[#allocation301_spill] sm:$0xff] }
 0x3a6   : > { %v6031_v19 = vadd.f32 %v5950_v54, %v5807_v1  ;;  %v6032_v22 = vadd.f32 %v5951_v16, %v5808_v26  ;;  %v6033_v61 = vadd.f32 %v5952_v43, %v5809_v53  ;;  %v6035_v51 = vadd.f32 %v5954_v5, %v5811_v45  ;;  %v17491_v3 = vld [vmem:[#allocation321_spill] sm:$0xff] }
 0x3a7   : > { %v6036_v25 = vadd.f32 %v5955_v15, %v5812_v13  ;;  %v6037_v9 = vadd.f32 %v5956_v7, %v5813_v12  ;;  %v6038_v4 = vadd.f32 %v5957_v37, %v5814_v2  ;;  %v6039_v48 = vadd.f32 %v5958_v14, %v5815_v52  ;;  %v17492_v13 = vld [vmem:[#allocation20_spill] sm:$0xff]  ;;  %v17493_v52 = vld [vmem:[#allocation23_spill] sm:$0xff]  ;;  %v17494_v45 = vld [vmem:[#allocation169_spill] sm:$0xff] }
 0x3a8   : > { %v6167_v47 = vmul.f32 %v17487_v11, %v17305_v10  ;;  %v6169_v49 = vmul.f32 %v17488_v35, %v17422_v46  ;;  %v6170_v55 = vmul.f32 %v17489_v62, %v17282_v59  ;;  %v6171_v6 = vmul.f32 %v17490_v24, %v17295_v60  ;;  %v17495_v44 = vld [vmem:[#allocation229_spill] sm:$0xff] }
 0x3a9   : > { %v6172_v29 = vmul.f32 %v17491_v3, %v17306_v23  ;;  %v6173_v12 = vmul.f32 %v17492_v13, %v17317_v28  ;;  %v6174_v2 = vmul.f32 %v17493_v52, %v17453_v56  ;;  %v6175_v32 = vmul.f32 %v17494_v45, %v17484_v36  ;;  %v17496_v43 = vld [vmem:[#allocation145_spill] sm:$0xff] }
 0x3aa   : > { %v6176_v1 = vmul.f32 %v17487_v11, %v17329_v33  ;;  %v6178_v26 = vmul.f32 %v17488_v35, %v17465_v8  ;;  %v6179_v53 = vmul.f32 %v17489_v62, %v17466_v42  ;;  %v6180_v38 = vmul.f32 %v17490_v24, %v17476_v50 }
 0x3ab   : > { %v6181_v30 = vmul.f32 %v17491_v3, %v17486_v17  ;;  %v6182_v54 = vmul.f32 %v17492_v13, %v17495_v44  ;;  %v6248_v16 = vadd.f32 %v6167_v47, %v6024_v20  ;;  %v6250_v5 = vadd.f32 %v6169_v49, %v17496_v43  ;;  %v17497_v3 = vld [vmem:[#allocation179_spill] sm:$0xff]  ;;  %v17498_v13 = vld [vmem:[#allocation24_spill] sm:$0xff]  ;;  %v17499_v49 = vld [vmem:[#allocation26_spill] sm:$0xff] }
 0x3ac   : > { %v6251_v15 = vadd.f32 %v6170_v55, %v6027_v31  ;;  %v6252_v7 = vadd.f32 %v6171_v6, %v6028_v0  ;;  %v6253_v37 = vadd.f32 %v6172_v29, %v6029_v39  ;;  %v6254_v14 = vadd.f32 %v6173_v12, %v6030_v18  ;;  %v17500_v31 = vld [vmem:[#allocation322_spill] sm:$0xff]  ;;  %v17501_v39 = vld [vmem:[#allocation323_spill] sm:$0xff] }
 0x3ad   : > { %v6255_v35 = vadd.f32 %v6174_v2, %v6031_v19  ;;  %v6256_v11 = vadd.f32 %v6175_v32, %v6032_v22  ;;  %v6257_v45 = vadd.f32 %v6176_v1, %v6033_v61  ;;  %v6259_v62 = vadd.f32 %v6178_v26, %v6035_v51  ;;  %v17502_v51 = vld [vmem:[#allocation25_spill] sm:$0xff]  ;;  %v17506_v2 = vld [vmem:[#allocation230_spill] sm:$0xff] }
 0x3ae   : > { %v6260_v52 = vadd.f32 %v6179_v53, %v6036_v25  ;;  %v6261_v21 = vadd.f32 %v6180_v38, %v6037_v9  ;;  %v6262_v24 = vadd.f32 %v6181_v30, %v6038_v4  ;;  %v6263_v10 = vadd.f32 %v6182_v54, %v6039_v48  ;;  %v17503_v48 = vld [vmem:[#allocation28_spill] sm:$0xff]  ;;  %v17504_v25 = vld [vmem:[#allocation181_spill] sm:$0xff] }
 0x3af   : > { %v6391_v46 = vmul.f32 %v17497_v3, %v17452_v58  ;;  %v6393_v47 = vmul.f32 %v17498_v13, %v17282_v59  ;;  %v6394_v20 = vmul.f32 %v17499_v49, %v17295_v60  ;;  %v6395_v0 = vmul.f32 %v17500_v31, %v17306_v23  ;;  %v17505_v19 = vld [vmem:[#allocation217_spill] sm:$0xff]  ;;  %v17507_v58 = vld [vmem:[#allocation192_spill] sm:$0xff]  ;;  %v17508_v60 = vld [vmem:[#allocation27_spill] sm:$0xff] }
 0x3b0   : > { %v6396_v61 = vmul.f32 %v17501_v39, %v17317_v28  ;;  %v6397_v9 = vmul.f32 %v17502_v51, %v17453_v56  ;;  %v6398_v4 = vmul.f32 %v17503_v48, %v17484_v36  ;;  %v6399_v18 = vmul.f32 %v17504_v25, %v17329_v33  ;;  %v17521_v59 = vld [vmem:[#allocation243_spill] sm:$0xff] }
 0x3b1   : > { %v6400_v22 = vmul.f32 %v17497_v3, %v17505_v19  ;;  %v6402_v55 = vmul.f32 %v17498_v13, %v17466_v42  ;;  %v6403_v6 = vmul.f32 %v17499_v49, %v17476_v50  ;;  %v6404_v29 = vmul.f32 %v17500_v31, %v17486_v17 }
 0x3b2   : > { %v6405_v12 = vmul.f32 %v17501_v39, %v17495_v44  ;;  %v6406_v32 = vmul.f32 %v17502_v51, %v17506_v2  ;;  %v6472_v1 = vadd.f32 %v6391_v46, %v6248_v16  ;;  %v6474_v26 = vadd.f32 %v6393_v47, %v6250_v5  ;;  %v17509_v16 = vld [vmem:[#allocation31_spill] sm:$0xff]  ;;  %v17515_v47 = vld [vmem:[#allocation238_spill] sm:$0xff] }
 0x3b3   : > { %v6475_v53 = vadd.f32 %v6394_v20, %v6251_v15  ;;  %v6476_v38 = vadd.f32 %v6395_v0, %v6252_v7  ;;  %v6477_v30 = vadd.f32 %v6396_v61, %v6253_v37  ;;  %v6478_v54 = vadd.f32 %v6397_v9, %v6254_v14  ;;  %v17514_v15 = vld [vmem:[#allocation170_spill] sm:$0xff]  ;;  %v17517_v9 = vld [vmem:[#allocation233_spill] sm:$0xff] }
 0x3b4   : > { %v6479_v43 = vadd.f32 %v6398_v4, %v6255_v35  ;;  %v6480_v13 = vadd.f32 %v6399_v18, %v6256_v11  ;;  %v6481_v3 = vadd.f32 %v6400_v22, %v6257_v45  ;;  %v6483_v25 = vadd.f32 %v6402_v55, %v6259_v62  ;;  %v17510_v11 = vld [vmem:[#allocation324_spill] sm:$0xff]  ;;  %v17511_v62 = vld [vmem:[#allocation325_spill] sm:$0xff]  ;;  %v17516_v0 = vld [vmem:[#allocation226_spill] sm:$0xff] }
 0x3b5   : > { %v6484_v49 = vadd.f32 %v6403_v6, %v6260_v52  ;;  %v6485_v48 = vadd.f32 %v6404_v29, %v6261_v21  ;;  %v6486_v23 = vadd.f32 %v6405_v12, %v6262_v24  ;;  %v6487_v31 = vadd.f32 %v6406_v32, %v6263_v10  ;;  %v17512_v10 = vld [vmem:[#allocation30_spill] sm:$0xff]  ;;  %v17518_v18 = vld [vmem:[#allocation236_spill] sm:$0xff]  ;;  %v17520_v12 = vld [vmem:[#allocation219_spill] sm:$0xff] }
 0x3b6   : > { %v6615_v39 = vmul.f32 %v17507_v58, %v17317_v28  ;;  %v6616_v51 = vmul.f32 %v17508_v60, %v17453_v56  ;;  %v6617_v46 = vmul.f32 %v17508_v60, %v17461_v34  ;;  %v6618_v5 = vmul.f32 %v17509_v16, %v17463_v63  ;;  %v17513_v52 = vld [vmem:[#allocation34_spill] sm:$0xff]  ;;  %v17519_v55 = vld [vmem:[#allocation240_spill] sm:$0xff] }
 0x3b7   : > { %v6619_v35 = vmul.f32 %v17510_v11, %v17464_v40  ;;  %v6620_v21 = vmul.f32 %v17511_v62, %v17465_v8  ;;  %v6621_v24 = vmul.f32 %v17512_v10, %v17466_v42  ;;  %v6622_v45 = vmul.f32 %v17513_v52, %v17476_v50 }
 0x3b8   : > { %v6623_v7 = vmul.f32 %v17514_v15, %v17486_v17  ;;  %v6624_v37 = vmul.f32 %v17507_v58, %v17495_v44  ;;  %v6625_v14 = vmul.f32 %v17508_v60, %v17506_v2  ;;  %v6626_v20 = vmul.f32 %v17508_v60, %v17515_v47 }
 0x3b9   : > { %v6627_v61 = vmul.f32 %v17509_v16, %v17516_v0  ;;  %v6628_v4 = vmul.f32 %v17510_v11, %v17517_v9  ;;  %v6629_v22 = vmul.f32 %v17511_v62, %v17518_v18  ;;  %v6630_v6 = vmul.f32 %v17512_v10, %v17519_v55  ;;  %v17522_v10 = vld [vmem:[#allocation214_spill] sm:$0xff] }
 0x3ba   : > { %v6696_v29 = vadd.f32 %v6615_v39, %v6472_v1  ;;  %v6697_v32 = vadd.f32 %v6616_v51, %v17520_v12  ;;  %v6698_v58 = vadd.f32 %v6617_v46, %v6474_v26  ;;  %v6699_v15 = vadd.f32 %v6618_v5, %v6475_v53  ;;  %v17523_v51 = vld [vmem:[#allocation29_spill] sm:$0xff] }
 0x3bb   : > { %v6700_v52 = vadd.f32 %v6619_v35, %v6476_v38  ;;  %v6701_v34 = vadd.f32 %v6620_v21, %v6477_v30  ;;  %v6702_v60 = vadd.f32 %v6621_v24, %v6478_v54  ;;  %v6703_v47 = vadd.f32 %v6622_v45, %v6479_v43  ;;  %v17524_v53 = vld [vmem:[#allocation33_spill] sm:$0xff]  ;;  %v17529_v30 = vld [vmem:[#allocation12_spill] sm:$0xff] }
 0x3bc   : > { %v6704_v28 = vadd.f32 %v6623_v7, %v6480_v13  ;;  %v6705_v16 = vadd.f32 %v6624_v37, %v6481_v3  ;;  %v6706_v41 = vadd.f32 %v6625_v14, %v17521_v59  ;;  %v6707_v11 = vadd.f32 %v6626_v20, %v6483_v25  ;;  %v17525_v3 = vld [vmem:[#allocation326_spill] sm:$0xff]  ;;  %v17528_v25 = vld [vmem:[#allocation35_spill] sm:$0xff]  ;;  %v17530_v46 = vld [vmem:[#allocation253_spill] sm:$0xff] }
 0x3bd   : > { %v6708_v57 = vadd.f32 %v6627_v61, %v6484_v49  ;;  %v6709_v19 = vadd.f32 %v6628_v4, %v6485_v48  ;;  %v6710_v62 = vadd.f32 %v6629_v22, %v6486_v23  ;;  %v6711_v33 = vadd.f32 %v6630_v6, %v6487_v31  ;;  %v17526_v49 = vld [vmem:[#allocation330_spill] sm:$0xff]  ;;  %v17527_v23 = vld [vmem:[#allocation32_spill] sm:$0xff] }
 0x3be   : > { %v6839_v39 = vmul.f32 %v17522_v10, %v17453_v56  ;;  %v6840_v1 = vmul.f32 %v17523_v51, %v17484_v36  ;;  %v6841_v26 = vmul.f32 %v17523_v51, %v17463_v63  ;;  %v6842_v13 = vmul.f32 %v17524_v53, %v17464_v40 }
 0x3bf   : > { %v6843_v59 = vmul.f32 %v17525_v3, %v17465_v8  ;;  %v6844_v48 = vmul.f32 %v17526_v49, %v17466_v42  ;;  %v6845_v31 = vmul.f32 %v17527_v23, %v17476_v50  ;;  %v6846_v38 = vmul.f32 %v17528_v25, %v17486_v17 }
 0x3c0   : > { %v6847_v54 = vmul.f32 %v17529_v30, %v17495_v44  ;;  %v6848_v43 = vmul.f32 %v17522_v10, %v17506_v2  ;;  %v6849_v5 = vmul.f32 %v17523_v51, %v17530_v46  ;;  %v6850_v35 = vmul.f32 %v17523_v51, %v17516_v0 }
 0x3c1   : > { %v6851_v21 = vmul.f32 %v17524_v53, %v17517_v9  ;;  %v6852_v24 = vmul.f32 %v17525_v3, %v17518_v18  ;;  %v6853_v45 = vmul.f32 %v17526_v49, %v17519_v55  ;;  %v6854_v7 = vmul.f32 %v17527_v23, %v17331_v27  ;;  %v17531_v49 = vld [vmem:[#allocation331_spill] sm:$0xff]  ;;  %v17532_v23 = vld [vmem:[#allocation218_spill] sm:$0xff] }
 0x3c2   : > { %v6920_v37 = vadd.f32 %v6839_v39, %v6696_v29  ;;  %v6921_v14 = vadd.f32 %v6840_v1, %v6697_v32  ;;  %v6922_v20 = vadd.f32 %v6841_v26, %v6698_v58  ;;  %v6923_v61 = vadd.f32 %v6842_v13, %v6699_v15  ;;  %v17533_v29 = vld [vmem:[#allocation36_spill] sm:$0xff] }
 0x3c3   : > { %v6924_v4 = vadd.f32 %v6843_v59, %v6700_v52  ;;  %v6925_v22 = vadd.f32 %v6844_v48, %v6701_v34  ;;  %v6926_v6 = vadd.f32 %v6845_v31, %v6702_v60  ;;  %v6927_v12 = vadd.f32 %v6846_v38, %v6703_v47  ;;  %v17534_v60 = vld [vmem:[#allocation38_spill] sm:$0xff]  ;;  %v17539_v52 = vld [vmem:[#allocation175_spill] sm:$0xff]  ;;  %v17540_v39 = vld [vmem:[#allocation232_spill] sm:$0xff] }
 0x3c4   : > { %v6928_v51 = vadd.f32 %v6847_v54, %v6704_v28  ;;  %v6929_v10 = vadd.f32 %v6848_v43, %v6705_v16  ;;  %v6930_v53 = vadd.f32 %v6849_v5, %v6706_v41  ;;  %v6931_v30 = vadd.f32 %v6850_v35, %v6707_v11  ;;  %v17535_v28 = vld [vmem:[#allocation207_spill] sm:$0xff]  ;;  %v17538_v11 = vld [vmem:[#allocation40_spill] sm:$0xff]  ;;  %v17541_v31 = vld [vmem:[#allocation241_spill] sm:$0xff] }
 0x3c5   : > { %v6932_v25 = vadd.f32 %v6851_v21, %v6708_v57  ;;  %v6933_v3 = vadd.f32 %v6852_v24, %v6709_v19  ;;  %v6934_v0 = vadd.f32 %v6853_v45, %v6710_v62  ;;  %v6935_v56 = vadd.f32 %v6854_v7, %v6711_v33  ;;  %v17536_v57 = vld [vmem:[#allocation167_spill] sm:$0xff]  ;;  %v17537_v33 = vld [vmem:[#allocation37_spill] sm:$0xff] }
 0x3c6   : > { %v7063_v63 = vmul.f32 %v17531_v49, %v17484_v36  ;;  %v7064_v32 = vmul.f32 %v17533_v29, %v17532_v23  ;;  %v7065_v58 = vmul.f32 %v17533_v29, %v17464_v40  ;;  %v7066_v34 = vmul.f32 %v17534_v60, %v17465_v8 }
 0x3c7   : > { %v7067_v41 = vmul.f32 %v17535_v28, %v17466_v42  ;;  %v7068_v19 = vmul.f32 %v17536_v57, %v17476_v50  ;;  %v7069_v16 = vmul.f32 %v17537_v33, %v17486_v17  ;;  %v7070_v62 = vmul.f32 %v17538_v11, %v17495_v44 }
 0x3c8   : > { %v7071_v15 = vmul.f32 %v17539_v52, %v17506_v2  ;;  %v7072_v47 = vmul.f32 %v17531_v49, %v17530_v46  ;;  %v7073_v1 = vmul.f32 %v17533_v29, %v17540_v39  ;;  %v7074_v26 = vmul.f32 %v17533_v29, %v17517_v9 }
 0x3c9   : > { %v7075_v13 = vmul.f32 %v17534_v60, %v17518_v18  ;;  %v7076_v59 = vmul.f32 %v17535_v28, %v17519_v55  ;;  %v7077_v48 = vmul.f32 %v17536_v57, %v17331_v27  ;;  %v7078_v38 = vmul.f32 %v17537_v33, %v17541_v31  ;;  %v17542_v57 = vld [vmem:[#allocation342_spill] sm:$0xff]  ;;  %v17543_v33 = vld [vmem:[#allocation217_spill] sm:$0xff] }
 0x3ca   : > { %v7144_v54 = vadd.f32 %v7063_v63, %v6920_v37  ;;  %v7145_v43 = vadd.f32 %v7064_v32, %v6921_v14  ;;  %v7146_v5 = vadd.f32 %v7065_v58, %v6922_v20  ;;  %v7147_v35 = vadd.f32 %v7066_v34, %v6923_v61  ;;  %v17544_v63 = vld [vmem:[#allocation39_spill] sm:$0xff] }
 0x3cb   : > { %v7148_v21 = vadd.f32 %v7067_v41, %v6924_v4  ;;  %v7149_v24 = vadd.f32 %v7068_v19, %v6925_v22  ;;  %v7150_v45 = vadd.f32 %v7069_v16, %v6926_v6  ;;  %v7151_v7 = vadd.f32 %v7070_v62, %v6927_v12  ;;  %v17545_v20 = vld [vmem:[#allocation43_spill] sm:$0xff]  ;;  %v17550_v4 = vld [vmem:[#allocation340_spill] sm:$0xff] }
 0x3cc   : > { %v7152_v29 = vadd.f32 %v7071_v15, %v6928_v51  ;;  %v7153_v49 = vadd.f32 %v7072_v47, %v6929_v10  ;;  %v7154_v60 = vadd.f32 %v7073_v1, %v6930_v53  ;;  %v7155_v52 = vadd.f32 %v7074_v26, %v6931_v30  ;;  %v17546_v10 = vld [vmem:[#allocation339_spill] sm:$0xff]  ;;  %v17547_v53 = vld [vmem:[#allocation341_spill] sm:$0xff] }
 0x3cd   : > { %v7156_v11 = vadd.f32 %v7075_v13, %v6932_v25  ;;  %v7157_v28 = vadd.f32 %v7076_v59, %v6933_v3  ;;  %v7158_v9 = vadd.f32 %v7077_v48, %v6934_v0  ;;  %v7159_v36 = vadd.f32 %v7078_v38, %v6935_v56  ;;  %v17548_v56 = vld [vmem:[#allocation42_spill] sm:$0xff]  ;;  %v17551_v12 = vld [vmem:[#allocation227_spill] sm:$0xff] }
 0x3ce   : > { %v7287_v40 = vmul.f32 %v17542_v57, %v17532_v23  ;;  %v7288_v37 = vmul.f32 %v17544_v63, %v17543_v33  ;;  %v7289_v14 = vmul.f32 %v17544_v63, %v17465_v8  ;;  %v7290_v61 = vmul.f32 %v17545_v20, %v17466_v42  ;;  %v17549_v25 = vld [vmem:[#allocation46_spill] sm:$0xff]  ;;  %v17552_v16 = vld [vmem:[#allocation203_spill] sm:$0xff] }
 0x3cf   : > { %v7291_v51 = vmul.f32 %v17546_v10, %v17476_v50  ;;  %v7292_v3 = vmul.f32 %v17547_v53, %v17486_v17  ;;  %v7293_v0 = vmul.f32 %v17548_v56, %v17495_v44  ;;  %v7294_v30 = vmul.f32 %v17549_v25, %v17506_v2 }
 0x3d0   : > { %v7295_v22 = vmul.f32 %v17550_v4, %v17530_v46  ;;  %v7296_v6 = vmul.f32 %v17542_v57, %v17540_v39  ;;  %v7297_v32 = vmul.f32 %v17544_v63, %v17551_v12  ;;  %v7298_v58 = vmul.f32 %v17544_v63, %v17518_v18 }
 0x3d1   : > { %v7299_v34 = vmul.f32 %v17545_v20, %v17519_v55  ;;  %v7300_v41 = vmul.f32 %v17546_v10, %v17331_v27  ;;  %v7301_v19 = vmul.f32 %v17547_v53, %v17541_v31  ;;  %v7302_v62 = vmul.f32 %v17548_v56, %v17552_v16  ;;  %v17553_v53 = vld [vmem:[#allocation346_spill] sm:$0xff]  ;;  %v17554_v56 = vld [vmem:[#allocation220_spill] sm:$0xff] }
 0x3d2   : > { %v7368_v15 = vadd.f32 %v7287_v40, %v7144_v54  ;;  %v7369_v47 = vadd.f32 %v7288_v37, %v7145_v43  ;;  %v7370_v1 = vadd.f32 %v7289_v14, %v7146_v5  ;;  %v7371_v26 = vadd.f32 %v7290_v61, %v7147_v35  ;;  %v17555_v40 = vld [vmem:[#allocation6_spill] sm:$0xff]  ;;  %v17556_v5 = vld [vmem:[#allocation7_spill] sm:$0xff] }
 0x3d3   : > { %v7372_v13 = vadd.f32 %v7291_v51, %v7148_v21  ;;  %v7373_v59 = vadd.f32 %v7292_v3, %v7149_v24  ;;  %v7374_v48 = vadd.f32 %v7293_v0, %v7150_v45  ;;  %v7375_v38 = vadd.f32 %v7294_v30, %v7151_v7  ;;  %v17561_v21 = vld [vmem:[#allocation344_spill] sm:$0xff]  ;;  %v17562_v7 = vld [vmem:[#allocation258_spill] sm:$0xff] }
 0x3d4   : > { %v7376_v63 = vadd.f32 %v7295_v22, %v7152_v29  ;;  %v7377_v57 = vadd.f32 %v7296_v6, %v7153_v49  ;;  %v7378_v20 = vadd.f32 %v7297_v32, %v7154_v60  ;;  %v7379_v4 = vadd.f32 %v7298_v58, %v7155_v52  ;;  %v17557_v49 = vld [vmem:[#allocation343_spill] sm:$0xff]  ;;  %v17558_v60 = vld [vmem:[#allocation345_spill] sm:$0xff] }
 0x3d5   : > { %v7380_v25 = vadd.f32 %v7299_v34, %v7156_v11  ;;  %v7381_v10 = vadd.f32 %v7300_v41, %v7157_v28  ;;  %v7382_v18 = vadd.f32 %v7301_v19, %v7158_v9  ;;  %v7383_v23 = vadd.f32 %v7302_v62, %v7159_v36  ;;  %v17559_v36 = vld [vmem:[#allocation2_spill] sm:$0xff]  ;;  %v17560_v11 = vld [vmem:[#allocation111_spill] sm:$0xff] }
 0x3d6   : > { %v7511_v8 = vmul.f32 %v17553_v53, %v17543_v33  ;;  %v7512_v54 = vmul.f32 %v17555_v40, %v17554_v56  ;;  %v7513_v43 = vmul.f32 %v17555_v40, %v17466_v42  ;;  %v7514_v35 = vmul.f32 %v17556_v5, %v17476_v50  ;;  %v17563_v56 = vld [vmem:[#allocation247_spill] sm:$0xff] }
 0x3d7   : > { %v7515_v29 = vmul.f32 %v17557_v49, %v17486_v17  ;;  %v7516_v28 = vmul.f32 %v17558_v60, %v17495_v44  ;;  %v7517_v9 = vmul.f32 %v17559_v36, %v17506_v2  ;;  %v7518_v52 = vmul.f32 %v17560_v11, %v17530_v46 }
 0x3d8   : > { %v7519_v24 = vmul.f32 %v17561_v21, %v17540_v39  ;;  %v7520_v45 = vmul.f32 %v17553_v53, %v17551_v12  ;;  %v7521_v37 = vmul.f32 %v17555_v40, %v17562_v7  ;;  %v7522_v14 = vmul.f32 %v17555_v40, %v17519_v55  ;;  %v17616_v12 = vld [vmem:[#allocation100_spill] sm:$0xff] }
 0x3d9   : > { %v7523_v61 = vmul.f32 %v17556_v5, %v17331_v27  ;;  %v7524_v51 = vmul.f32 %v17557_v49, %v17541_v31  ;;  %v7525_v3 = vmul.f32 %v17558_v60, %v17552_v16  ;;  %v7526_v0 = vmul.f32 %v17559_v36, %v17563_v56  ;;  %v17606_v27 = vld [vmem:[#allocation198_spill] sm:$0xff] }
 0x3da   : > { %v7592_v30 = vadd.f32 %v7511_v8, %v7368_v15  ;;  %v7593_v22 = vadd.f32 %v7512_v54, %v7369_v47  ;;  %v7594_v6 = vadd.f32 %v7513_v43, %v7370_v1  ;;  %v7595_v32 = vadd.f32 %v7514_v35, %v7371_v26  ;;  %v17564_v47 = vld [vmem:[#allocation3_spill] sm:$0xff]  ;;  %v17569_v43 = vld [vmem:[#allocation194_spill] sm:$0xff] }
 0x3db   : > { %v7596_v58 = vadd.f32 %v7515_v29, %v7372_v13  ;;  %v7597_v34 = vadd.f32 %v7516_v28, %v7373_v59  ;;  %v7598_v41 = vadd.f32 %v7517_v9, %v7374_v48  ;;  %v7599_v19 = vadd.f32 %v7518_v52, %v7375_v38  ;;  %v17572_v28 = vld [vmem:[#allocation80_spill] sm:$0xff]  ;;  %v17573_v9 = vld [vmem:[#allocation199_spill] sm:$0xff] }
 0x3dc   : > { %v7600_v62 = vadd.f32 %v7519_v24, %v7376_v63  ;;  %v7601_v40 = vadd.f32 %v7520_v45, %v7377_v57  ;;  %v7602_v5 = vadd.f32 %v7521_v37, %v7378_v20  ;;  %v7603_v53 = vadd.f32 %v7522_v14, %v7379_v4  ;;  %v17566_v4 = vld [vmem:[#allocation87_spill] sm:$0xff]  ;;  %v17575_v45 = vld [vmem:[#allocation201_spill] sm:$0xff] }
 0x3dd   : > { %v7604_v21 = vadd.f32 %v7523_v61, %v7380_v25  ;;  %v7605_v49 = vadd.f32 %v7524_v51, %v7381_v10  ;;  %v7606_v11 = vadd.f32 %v7525_v3, %v7382_v18  ;;  %v7607_v31 = vadd.f32 %v7526_v0, %v7383_v23  ;;  %v17577_v14 = vld [vmem:[#allocation205_spill] sm:$0xff]  ;;  %v17578_v61 = vld [vmem:[#allocation79_spill] sm:$0xff]  ;;  %v17579_v0 = vld [vmem:[#allocation212_spill] sm:$0xff] }
 0x3de   : > { %v7836_v60 = vcombine.low %v7592_v30, %v7593_v22  ;;  %v7837_v16 = vcombine.low %v7594_v6, %v7595_v32  ;;  %v7838_v7 = vcombine.low %v7596_v58, %v7597_v34  ;;  %v7839_v36 = vcombine.low %v7598_v41, %v7599_v19  ;;  %v17580_v22 = vld [vmem:[#allocation14_spill] sm:$0xff]  ;;  %v17581_v32 = vld [vmem:[#allocation141_spill] sm:$0xff]  ;;  %v17582_v41 = vld [vmem:[#allocation208_spill] sm:$0xff] }
 0x3df   : > { %v7885_v8 = vcombine.low %v7600_v62, %v7601_v40  ;;  %v7886_v15 = vcombine.low %v7602_v5, %v7603_v53  ;;  %v7887_v13 = vcombine.low %v7604_v21, %v7605_v49  ;;  %v7888_v59 = vcombine.low %v7606_v11, %v7607_v31  ;;  %v17565_v53 = vld [vmem:[#allocation188_spill] sm:$0xff]  ;;  %v17567_v40 = vld [vmem:[#allocation191_spill] sm:$0xff]  ;;  %v17568_v31 = vld [vmem:[#allocation89_spill] sm:$0xff] }
 0x3e0   : > { %v7846_v1 = vrot.slane %v7836_v60, %v17564_v47  ;;  %v7853_v26 = vrot.slane %v7837_v16, %v17564_v47  ;;  %v7860_v57 = vrot.slane %v7838_v7, %v17564_v47  ;;  %v7867_v63 = vrot.slane %v7839_v36, %v17564_v47  ;;  %v17570_v5 = vld [vmem:[#allocation90_spill] sm:$0xff]  ;;  %v17571_v60 = vld [vmem:[#allocation196_spill] sm:$0xff]  ;;  %v17574_v11 = vld [vmem:[#allocation81_spill] sm:$0xff] }
 0x3e1   : > { %v7895_v20 = vrot.slane %v7885_v8, %v17564_v47  ;;  %v7902_v18 = vrot.slane %v7886_v15, %v17564_v47  ;;  %v7909_v10 = vrot.slane %v7887_v13, %v17564_v47  ;;  %v7916_v25 = vrot.slane %v7888_v59, %v17564_v47  ;;  %v17576_v7 = vld [vmem:[#allocation77_spill] sm:$0xff]  ;;  %v17583_v62 = vld [vmem:[#allocation210_spill] sm:$0xff]  ;;  %v17584_v15 = vld [vmem:[#allocation47_spill] sm:$0xff] }
 0x3e2   : > { %v7868_v23 = vcombine.low %v7846_v1, %v7853_v26  ;;  %v2151_v48 = vmul.f32 %v17566_v4, %v17565_v53  ;;  %v7869_v38 = vcombine.low %v7860_v57, %v7867_v63  ;;  %v2152_v54 = vmul.f32 %v17568_v31, %v17567_v40  ;;  %v17585_v13 = vld [vmem:[#allocation88_spill] sm:$0xff]  ;;  %v17586_v57 = vld [vmem:[#allocation195_spill] sm:$0xff]  ;;  %v17590_v53 = vld [vmem:[#allocation50_spill] sm:$0xff] }
 0x3e3   : > { %v7917_v16 = vcombine.low %v7895_v20, %v7902_v18  ;;  %v2153_v35 = vmul.f32 %v17570_v5, %v17569_v43  ;;  %v7918_v29 = vcombine.low %v7909_v10, %v7916_v25  ;;  %v2156_v36 = vmul.f32 %v17572_v28, %v17571_v60  ;;  %v17587_v63 = vld [vmem:[#allocation91_spill] sm:$0xff]  ;;  %v17588_v18 = vld [vmem:[#allocation45_spill] sm:$0xff] }
 0x3e4   : > { %v7876_v49 = vrot.slane %v7868_v23, %v17564_v47  ;;  %v2157_v52 = vmul.f32 %v17574_v11, %v17573_v9  ;;  %v7883_v21 = vrot.slane %v7869_v38, %v17564_v47  ;;  %v2158_v37 = vmul.f32 %v17576_v7, %v17575_v45  ;;  %v17589_v10 = vld [vmem:[#allocation73_spill] sm:$0xff] }
 0x3e5   : > { %v7925_v24 = vrot.slane %v7917_v16, %v17564_v47  ;;  %v2159_v51 = vmul.f32 %v17578_v61, %v17577_v14  ;;  %v7932_v3 = vrot.slane %v7918_v29, %v17564_v47  ;;  %v2160_v30 = vmul.f32 %v17566_v4, %v17579_v0  ;;  %v17591_v16 = vld [vmem:[#allocation44_spill] sm:$0xff] }
 0x3e6   : > { %v2161_v6 = vmul.f32 %v17568_v31, %v17580_v22  ;;  %v2162_v58 = vmul.f32 %v17570_v5, %v17581_v32  ;;  %v7884_v34 = vcombine.low %v7876_v49, %v7883_v21  ;;  %v2165_v19 = vmul.f32 %v17572_v28, %v17582_v41  ;;  %v17592_v21 = vld [vmem:[#allocation166_spill] sm:$0xff] }
 0x3e7   : > { %v2166_v8 = vmul.f32 %v17574_v11, %v17583_v62  ;;  %v2375_v1 = vmul.f32 %v17584_v15, %v17567_v40  ;;  %v7933_v26 = vcombine.low %v7925_v24, %v7932_v3  ;;  %v2376_v59 = vmul.f32 %v17585_v13, %v17569_v43  ;;  %v17593_v3 = vld [vmem:[#allocation209_spill] sm:$0xff] }
 0x3e8   : > { %v2377_v20 = vmul.f32 %v17587_v63, %v17586_v57  ;;  %v2380_v23 = vmul.f32 %v17588_v18, %v17573_v9  ;;  %v2381_v25 = vmul.f32 %v17589_v10, %v17575_v45  ;;  %v2382_v38 = vmul.f32 %v17590_v53, %v17577_v14 }
 0x3e9   : > { %v2383_v49 = vmul.f32 %v17591_v16, %v17579_v0  ;;  %v2384_v40 = vmul.f32 %v17584_v15, %v17580_v22  ;;  %v8254_v29 = vpack.c.bf16 %v7933_v26, %v7884_v34  ;;  %v2385_v60 = vmul.f32 %v17585_v13, %v17581_v32 }
 0x3ea   : > { %v2386_v24 = vmul.f32 %v17587_v63, %v17592_v21  ;;  %v2389_v9 = vmul.f32 %v17588_v18, %v17583_v62  ;;  %v2390_v11 = vmul.f32 %v17589_v10, %v17593_v3  ;;  %v2456_v53 = vadd.f32 %v2375_v1, %v2151_v48  ;;  %v17594_v63 = vld [vmem:[#allocation54_spill] sm:$0xff]  ;;  %v17596_v10 = vld [vmem:[#allocation197_spill] sm:$0xff]  ;;  %v17597_v48 = vld [vmem:[#allocation95_spill] sm:$0xff] }
 0x3eb   : > { %v2457_v28 = vadd.f32 %v2376_v59, %v2152_v54  ;;  %v2458_v5 = vadd.f32 %v2377_v20, %v2153_v35  ;;  %8871 = vmatmul.mubr.bf16.vlgmr.msra.gmra.mrb[4].mxu0 %v8254_v29  ;;  %v2461_v16 = vadd.f32 %v2380_v23, %v2156_v36  ;;  %v2462_v31 = vadd.f32 %v2381_v25, %v2157_v52  ;;  %v17595_v18 = vld [vmem:[#allocation94_spill] sm:$0xff]  ;;  %v17598_v35 = vld [vmem:[#allocation48_spill] sm:$0xff]  ;;  %v17599_v52 = vld [vmem:[#allocation93_spill] sm:$0xff] }
 0x3ec   : > { %v2463_v15 = vadd.f32 %v2382_v38, %v2158_v37  ;;  %v2464_v34 = vadd.f32 %v2383_v49, %v2159_v51  ;;  %v2465_v26 = vadd.f32 %v2384_v40, %v2160_v30  ;;  %v2466_v4 = vadd.f32 %v2385_v60, %v2161_v6  ;;  %v17600_v51 = vld [vmem:[#allocation55_spill] sm:$0xff]  ;;  %v17603_v1 = vld [vmem:[#allocation213_spill] sm:$0xff] }
 0x3ed   : > { %v2467_v13 = vadd.f32 %v2386_v24, %v2162_v58  ;;  %v2470_v61 = vadd.f32 %v2389_v9, %v2165_v19  ;;  %v2471_v7 = vadd.f32 %v2390_v11, %v2166_v8  ;;  %v2599_v47 = vmul.f32 %v17594_v63, %v17569_v43  ;;  %v17601_v11 = vld [vmem:[#allocation53_spill] sm:$0xff]  ;;  %v17602_v19 = vld [vmem:[#allocation202_spill] sm:$0xff] }
 0x3ee   : > { %v2600_v56 = vmul.f32 %v17595_v18, %v17586_v57  ;;  %v2601_v54 = vmul.f32 %v17597_v48, %v17596_v10  ;;  %v2604_v36 = vmul.f32 %v17598_v35, %v17575_v45  ;;  %v2605_v37 = vmul.f32 %v17599_v52, %v17577_v14 }
 0x3ef   : > { %v2606_v30 = vmul.f32 %v17600_v51, %v17579_v0  ;;  %v2607_v6 = vmul.f32 %v17601_v11, %v17580_v22  ;;  %v2608_v43 = vmul.f32 %v17594_v63, %v17581_v32  ;;  %v2609_v58 = vmul.f32 %v17595_v18, %v17592_v21 }
 0x3f0   : > { %v2610_v8 = vmul.f32 %v17597_v48, %v17602_v19  ;;  %v2613_v45 = vmul.f32 %v17598_v35, %v17593_v3  ;;  %v2614_v59 = vmul.f32 %v17599_v52, %v17603_v1  ;;  %v2680_v20 = vadd.f32 %v2599_v47, %v2456_v53  ;;  %v17604_v48 = vld [vmem:[#allocation57_spill] sm:$0xff]  ;;  %v17605_v35 = vld [vmem:[#allocation98_spill] sm:$0xff]  ;;  %v17607_v52 = vld [vmem:[#allocation99_spill] sm:$0xff] }
 0x3f1   : > { %v2681_v23 = vadd.f32 %v2600_v56, %v2457_v28  ;;  %v2682_v25 = vadd.f32 %v2601_v54, %v2458_v5  ;;  %v2685_v38 = vadd.f32 %v2604_v36, %v2461_v16  ;;  %v2686_v49 = vadd.f32 %v2605_v37, %v2462_v31  ;;  %v17608_v56 = vld [vmem:[#allocation52_spill] sm:$0xff]  ;;  %v17609_v31 = vld [vmem:[#allocation97_spill] sm:$0xff]  ;;  %v17612_v53 = vld [vmem:[#allocation206_spill] sm:$0xff] }
 0x3f2   : > { %v2687_v40 = vadd.f32 %v2606_v30, %v2463_v15  ;;  %v2688_v29 = vadd.f32 %v2607_v6, %v2464_v34  ;;  %v2689_v60 = vadd.f32 %v2608_v43, %v2465_v26  ;;  %v2690_v24 = vadd.f32 %v2609_v58, %v2466_v4  ;;  %v17610_v4 = vld [vmem:[#allocation59_spill] sm:$0xff] }
 0x3f3   : > { %v2691_v9 = vadd.f32 %v2610_v8, %v2467_v13  ;;  %v2694_v18 = vadd.f32 %v2613_v45, %v2470_v61  ;;  %v2695_v63 = vadd.f32 %v2614_v59, %v2471_v7  ;;  %v2823_v11 = vmul.f32 %v17604_v48, %v17586_v57  ;;  %v17611_v7 = vld [vmem:[#allocation56_spill] sm:$0xff]  ;;  %v17613_v34 = vld [vmem:[#allocation215_spill] sm:$0xff] }
 0x3f4   : > { %v2824_v51 = vmul.f32 %v17605_v35, %v17596_v10  ;;  %v2825_v47 = vmul.f32 %v17607_v52, %v17606_v27  ;;  %v2828_v5 = vmul.f32 %v17608_v56, %v17577_v14  ;;  %v2829_v28 = vmul.f32 %v17609_v31, %v17579_v0 }
 0x3f5   : > { %v2830_v15 = vmul.f32 %v17610_v4, %v17580_v22  ;;  %v2831_v61 = vmul.f32 %v17611_v7, %v17581_v32  ;;  %v2832_v13 = vmul.f32 %v17604_v48, %v17592_v21  ;;  %v2833_v57 = vmul.f32 %v17605_v35, %v17602_v19 }
 0x3f6   : > { %v2834_v16 = vmul.f32 %v17607_v52, %v17612_v53  ;;  %v2837_v14 = vmul.f32 %v17608_v56, %v17603_v1  ;;  %v2838_v26 = vmul.f32 %v17609_v31, %v17613_v34  ;;  %v2904_v54 = vadd.f32 %v2823_v11, %v2680_v20  ;;  %v17614_v52 = vld [vmem:[#allocation64_spill] sm:$0xff]  ;;  %v17615_v56 = vld [vmem:[#allocation102_spill] sm:$0xff]  ;;  %v17617_v31 = vld [vmem:[#allocation103_spill] sm:$0xff] }
 0x3f7   : > { %v2905_v36 = vadd.f32 %v2824_v51, %v2681_v23  ;;  %v2906_v37 = vadd.f32 %v2825_v47, %v2682_v25  ;;  %v2909_v30 = vadd.f32 %v2828_v5, %v2685_v38  ;;  %v2910_v6 = vadd.f32 %v2829_v28, %v2686_v49  ;;  %v17618_v51 = vld [vmem:[#allocation58_spill] sm:$0xff]  ;;  %v17619_v23 = vld [vmem:[#allocation101_spill] sm:$0xff] }
 0x3f8   : > { %v2911_v43 = vadd.f32 %v2830_v15, %v2687_v40  ;;  %v2912_v58 = vadd.f32 %v2831_v61, %v2688_v29  ;;  %v2913_v8 = vadd.f32 %v2832_v13, %v2689_v60  ;;  %v2914_v45 = vadd.f32 %v2833_v57, %v2690_v24  ;;  %v17620_v38 = vld [vmem:[#allocation65_spill] sm:$0xff]  ;;  %v17622_v40 = vld [vmem:[#allocation211_spill] sm:$0xff]  ;;  %v17623_v60 = vld [vmem:[#allocation332_spill] sm:$0xff] }
 0x3f9   : > { %v2915_v59 = vadd.f32 %v2834_v16, %v2691_v9  ;;  %v2918_v35 = vadd.f32 %v2837_v14, %v2694_v18  ;;  %v2919_v48 = vadd.f32 %v2838_v26, %v2695_v63  ;;  %v3047_v7 = vmul.f32 %v17614_v52, %v17596_v10  ;;  %v17621_v63 = vld [vmem:[#allocation61_spill] sm:$0xff] }
 0x3fa   : > { %v3048_v4 = vmul.f32 %v17615_v56, %v17606_v27  ;;  %v3049_v11 = vmul.f32 %v17617_v31, %v17616_v12  ;;  %v3052_v20 = vmul.f32 %v17618_v51, %v17579_v0  ;;  %v3053_v25 = vmul.f32 %v17619_v23, %v17580_v22 }
 0x3fb   : > { %v3054_v49 = vmul.f32 %v17620_v38, %v17581_v32  ;;  %v3055_v18 = vmul.f32 %v17621_v63, %v17592_v21  ;;  %v3056_v10 = vmul.f32 %v17614_v52, %v17602_v19  ;;  %v3057_v27 = vmul.f32 %v17615_v56, %v17612_v53 }
 0x3fc   : > { %v3058_v12 = vmul.f32 %v17617_v31, %v17622_v40  ;;  %v3061_v29 = vmul.f32 %v17618_v51, %v17613_v34  ;;  %v3062_v24 = vmul.f32 %v17619_v23, %v17623_v60  ;;  %v3128_v9 = vadd.f32 %v3047_v7, %v2904_v54  ;;  %v17624_v31 = vld [vmem:[#allocation67_spill] sm:$0xff]  ;;  %v17625_v51 = vld [vmem:[#allocation68_spill] sm:$0xff] }
 0x3fd   : > { %v3129_v47 = vadd.f32 %v3048_v4, %v2905_v36  ;;  %v3130_v5 = vadd.f32 %v3049_v11, %v2906_v37  ;;  %v3133_v28 = vadd.f32 %v3052_v20, %v2909_v30  ;;  %v3134_v15 = vadd.f32 %v3053_v25, %v2910_v6  ;;  %v17626_v23 = vld [vmem:[#allocation159_spill] sm:$0xff]  ;;  %v17627_v4 = vld [vmem:[#allocation66_spill] sm:$0xff] }
 0x3fe   : > { %v3135_v61 = vadd.f32 %v3054_v49, %v2911_v43  ;;  %v3136_v13 = vadd.f32 %v3055_v18, %v2912_v58  ;;  %v3137_v57 = vadd.f32 %v3056_v10, %v2913_v8  ;;  %v3138_v16 = vadd.f32 %v3057_v27, %v2914_v45  ;;  %v17628_v36 = vld [vmem:[#allocation107_spill] sm:$0xff]  ;;  %v17631_v58 = vld [vmem:[#allocation76_spill] sm:$0xff]  ;;  %v17632_v45 = vld [vmem:[#allocation225_spill] sm:$0xff] }
 0x3ff   : > { %v3139_v14 = vadd.f32 %v3058_v12, %v2915_v59  ;;  %v3142_v26 = vadd.f32 %v3061_v29, %v2918_v35  ;;  %v3143_v56 = vadd.f32 %v3062_v24, %v2919_v48  ;;  %v3271_v52 = vmul.f32 %v17624_v31, %v17579_v0  ;;  %v17629_v30 = vld [vmem:[#allocation135_spill] sm:$0xff]  ;;  %v17630_v48 = vld [vmem:[#allocation60_spill] sm:$0xff] }
 0x400   : > { %v3272_v63 = vmul.f32 %v17625_v51, %v17580_v22  ;;  %v3273_v7 = vmul.f32 %v17626_v23, %v17581_v32  ;;  %v3276_v54 = vmul.f32 %v17627_v4, %v17582_v41  ;;  %v3277_v37 = vmul.f32 %v17628_v36, %v17583_v62  ;;  %v17633_v59 = vld [vmem:[#allocation164_spill] sm:$0xff] }
 0x401   : > { %v3278_v6 = vmul.f32 %v17629_v30, %v17593_v3  ;;  %v3279_v35 = vmul.f32 %v17630_v48, %v17603_v1  ;;  %v3280_v0 = vmul.f32 %v17624_v31, %v17613_v34  ;;  %v3281_v43 = vmul.f32 %v17625_v51, %v17623_v60 }
 0x402   : > { %v3282_v8 = vmul.f32 %v17626_v23, %v17631_v58  ;;  %v3285_v41 = vmul.f32 %v17627_v4, %v17632_v45  ;;  %v3286_v11 = vmul.f32 %v17628_v36, %v17633_v59  ;;  %v3352_v20 = vadd.f32 %v3271_v52, %v3128_v9  ;;  %v17634_v23 = vld [vmem:[#allocation71_spill] sm:$0xff]  ;;  %v17635_v4 = vld [vmem:[#allocation72_spill] sm:$0xff] }
 0x403   : > { %v3353_v25 = vadd.f32 %v3272_v63, %v3129_v47  ;;  %v3354_v49 = vadd.f32 %v3273_v7, %v3130_v5  ;;  %v3357_v18 = vadd.f32 %v3276_v54, %v3133_v28  ;;  %v3358_v10 = vadd.f32 %v3277_v37, %v3134_v15  ;;  %v17636_v36 = vld [vmem:[#allocation160_spill] sm:$0xff]  ;;  %v17637_v63 = vld [vmem:[#allocation70_spill] sm:$0xff] }
 0x404   : > { %v3359_v27 = vadd.f32 %v3278_v6, %v3135_v61  ;;  %v3360_v12 = vadd.f32 %v3279_v35, %v3136_v13  ;;  %v3361_v29 = vadd.f32 %v3280_v0, %v3137_v57  ;;  %v3362_v24 = vadd.f32 %v3281_v43, %v3138_v16  ;;  %v17638_v47 = vld [vmem:[#allocation136_spill] sm:$0xff]  ;;  %v17639_v28 = vld [vmem:[#allocation82_spill] sm:$0xff] }
 0x405   : > { %v3363_v31 = vadd.f32 %v3282_v8, %v3139_v14  ;;  %v3366_v51 = vadd.f32 %v3285_v41, %v3142_v26  ;;  %v3367_v48 = vadd.f32 %v3286_v11, %v3143_v56  ;;  %v3495_v30 = vmul.f32 %v17634_v23, %v17580_v22  ;;  %v17640_v56 = vld [vmem:[#allocation63_spill] sm:$0xff]  ;;  %v17641_v57 = vld [vmem:[#allocation154_spill] sm:$0xff] }
 0x406   : > { %v3496_v38 = vmul.f32 %v17635_v4, %v17581_v32  ;;  %v3497_v52 = vmul.f32 %v17636_v36, %v17592_v21  ;;  %v3500_v9 = vmul.f32 %v17637_v63, %v17583_v62  ;;  %v3501_v5 = vmul.f32 %v17638_v47, %v17593_v3  ;;  %v17642_v14 = vld [vmem:[#allocation222_spill] sm:$0xff] }
 0x407   : > { %v3502_v15 = vmul.f32 %v17639_v28, %v17603_v1  ;;  %v3503_v61 = vmul.f32 %v17640_v56, %v17613_v34  ;;  %v3504_v22 = vmul.f32 %v17634_v23, %v17623_v60  ;;  %v3505_v13 = vmul.f32 %v17635_v4, %v17631_v58 }
 0x408   : > { %v3506_v16 = vmul.f32 %v17636_v36, %v17641_v57  ;;  %v3509_v62 = vmul.f32 %v17637_v63, %v17633_v59  ;;  %v3510_v26 = vmul.f32 %v17638_v47, %v17642_v14  ;;  %v3576_v7 = vadd.f32 %v3495_v30, %v3352_v20  ;;  %v17643_v36 = vld [vmem:[#allocation84_spill] sm:$0xff]  ;;  %v17644_v63 = vld [vmem:[#allocation85_spill] sm:$0xff] }
 0x409   : > { %v3577_v54 = vadd.f32 %v3496_v38, %v3353_v25  ;;  %v3578_v37 = vadd.f32 %v3497_v52, %v3354_v49  ;;  %v3581_v6 = vadd.f32 %v3500_v9, %v3357_v18  ;;  %v3582_v35 = vadd.f32 %v3501_v5, %v3358_v10  ;;  %v17645_v47 = vld [vmem:[#allocation161_spill] sm:$0xff]  ;;  %v17646_v38 = vld [vmem:[#allocation75_spill] sm:$0xff]  ;;  %v17648_v18 = vld [vmem:[#allocation86_spill] sm:$0xff] }
 0x40a   : > { %v3583_v0 = vadd.f32 %v3502_v15, %v3359_v27  ;;  %v3584_v43 = vadd.f32 %v3503_v61, %v3360_v12  ;;  %v3585_v8 = vadd.f32 %v3504_v22, %v3361_v29  ;;  %v3586_v41 = vadd.f32 %v3505_v13, %v3362_v24  ;;  %v17647_v25 = vld [vmem:[#allocation137_spill] sm:$0xff]  ;;  %v17650_v27 = vld [vmem:[#allocation155_spill] sm:$0xff] }
 0x40b   : > { %v3587_v11 = vadd.f32 %v3506_v16, %v3363_v31  ;;  %v3590_v4 = vadd.f32 %v3509_v62, %v3366_v51  ;;  %v3591_v23 = vadd.f32 %v3510_v26, %v3367_v48  ;;  %v3719_v56 = vmul.f32 %v17643_v36, %v17581_v32  ;;  %v17649_v51 = vld [vmem:[#allocation74_spill] sm:$0xff] }
 0x40c   : > { %v3720_v28 = vmul.f32 %v17644_v63, %v17592_v21  ;;  %v3721_v30 = vmul.f32 %v17645_v47, %v17602_v19  ;;  %v3724_v20 = vmul.f32 %v17646_v38, %v17593_v3  ;;  %v3725_v49 = vmul.f32 %v17647_v25, %v17603_v1 }
 0x40d   : > { %v3726_v31 = vmul.f32 %v17648_v18, %v17613_v34  ;;  %v3727_v48 = vmul.f32 %v17649_v51, %v17623_v60  ;;  %v3728_v32 = vmul.f32 %v17643_v36, %v17631_v58  ;;  %v3729_v10 = vmul.f32 %v17644_v63, %v17641_v57 }
 0x40e   : > { %v3730_v12 = vmul.f32 %v17645_v47, %v17650_v27  ;;  %v3733_v29 = vmul.f32 %v17646_v38, %v17642_v14  ;;  %v3734_v24 = vmul.f32 %v17647_v25, %v17466_v42  ;;  %v3800_v52 = vadd.f32 %v3719_v56, %v3576_v7  ;;  %v17651_v47 = vld [vmem:[#allocation8_spill] sm:$0xff]  ;;  %v17652_v38 = vld [vmem:[#allocation9_spill] sm:$0xff]  ;;  %v17653_v25 = vld [vmem:[#allocation163_spill] sm:$0xff] }
 0x40f   : > { %v3801_v9 = vadd.f32 %v3720_v28, %v3577_v54  ;;  %v3802_v5 = vadd.f32 %v3721_v30, %v3578_v37  ;;  %v3805_v15 = vadd.f32 %v3724_v20, %v3581_v6  ;;  %v3806_v61 = vadd.f32 %v3725_v49, %v3582_v35  ;;  %v17654_v28 = vld [vmem:[#allocation109_spill] sm:$0xff]  ;;  %v17655_v54 = vld [vmem:[#allocation303_spill] sm:$0xff]  ;;  %v17656_v6 = vld [vmem:[#allocation10_spill] sm:$0xff] }
 0x410   : > { %v3807_v22 = vadd.f32 %v3726_v31, %v3583_v0  ;;  %v3808_v13 = vadd.f32 %v3727_v48, %v3584_v43  ;;  %v3809_v16 = vadd.f32 %v3728_v32, %v3585_v8  ;;  %v3810_v62 = vadd.f32 %v3729_v10, %v3586_v41  ;;  %v17658_v43 = vld [vmem:[#allocation218_spill] sm:$0xff] }
 0x411   : > { %v3811_v26 = vadd.f32 %v3730_v12, %v3587_v11  ;;  %v3814_v63 = vadd.f32 %v3733_v29, %v3590_v4  ;;  %v3815_v36 = vadd.f32 %v3734_v24, %v3591_v23  ;;  %v3943_v51 = vmul.f32 %v17651_v47, %v17592_v21  ;;  %v17657_v23 = vld [vmem:[#allocation108_spill] sm:$0xff] }
 0x412   : > { %v3944_v18 = vmul.f32 %v17652_v38, %v17602_v19  ;;  %v3945_v56 = vmul.f32 %v17653_v25, %v17612_v53  ;;  %v3948_v7 = vmul.f32 %v17654_v28, %v17603_v1  ;;  %v3949_v37 = vmul.f32 %v17655_v54, %v17613_v34 }
 0x413   : > { %v3950_v35 = vmul.f32 %v17656_v6, %v17623_v60  ;;  %v3951_v4 = vmul.f32 %v17657_v23, %v17631_v58  ;;  %v3952_v21 = vmul.f32 %v17651_v47, %v17641_v57  ;;  %v3953_v0 = vmul.f32 %v17652_v38, %v17650_v27 }
 0x414   : > { %v3954_v8 = vmul.f32 %v17653_v25, %v17658_v43  ;;  %v3957_v41 = vmul.f32 %v17654_v28, %v17466_v42  ;;  %v3958_v11 = vmul.f32 %v17655_v54, %v17476_v50  ;;  %v4024_v30 = vadd.f32 %v3943_v51, %v3800_v52  ;;  %v17659_v25 = vld [vmem:[#allocation114_spill] sm:$0xff]  ;;  %v17661_v54 = vld [vmem:[#allocation5_spill] sm:$0xff] }
 0x415   : > { %v4025_v20 = vadd.f32 %v3944_v18, %v3801_v9  ;;  %v4026_v49 = vadd.f32 %v3945_v56, %v3802_v5  ;;  %v4029_v31 = vadd.f32 %v3948_v7, %v3805_v15  ;;  %v4030_v48 = vadd.f32 %v3949_v37, %v3806_v61  ;;  %v17660_v28 = vld [vmem:[#allocation150_spill] sm:$0xff]  ;;  %v17662_v18 = vld [vmem:[#allocation113_spill] sm:$0xff]  ;;  %v17663_v9 = vld [vmem:[#allocation304_spill] sm:$0xff] }
 0x416   : > { %v4031_v32 = vadd.f32 %v3950_v35, %v3807_v22  ;;  %v4032_v10 = vadd.f32 %v3951_v4, %v3808_v13  ;;  %v4033_v12 = vadd.f32 %v3952_v21, %v3809_v16  ;;  %v4034_v29 = vadd.f32 %v3953_v0, %v3810_v62  ;;  %v17664_v15 = vld [vmem:[#allocation267_spill] sm:$0xff] }
 0x417   : > { %v4035_v24 = vadd.f32 %v3954_v8, %v3811_v26  ;;  %v4038_v38 = vadd.f32 %v3957_v41, %v3814_v63  ;;  %v4039_v47 = vadd.f32 %v3958_v11, %v3815_v36  ;;  %v4167_v23 = vmul.f32 %v17659_v25, %v17602_v19  ;;  %v17665_v36 = vld [vmem:[#allocation112_spill] sm:$0xff]  ;;  %v17666_v11 = vld [vmem:[#allocation118_spill] sm:$0xff] }
 0x418   : > { %v4168_v6 = vmul.f32 %v17660_v28, %v17612_v53  ;;  %v4169_v51 = vmul.f32 %v17661_v54, %v17622_v40  ;;  %v4172_v52 = vmul.f32 %v17662_v18, %v17613_v34  ;;  %v4173_v5 = vmul.f32 %v17663_v9, %v17623_v60 }
 0x419   : > { %v4174_v61 = vmul.f32 %v17664_v15, %v17631_v58  ;;  %v4175_v63 = vmul.f32 %v17665_v36, %v17641_v57  ;;  %v4176_v19 = vmul.f32 %v17659_v25, %v17650_v27  ;;  %v4177_v53 = vmul.f32 %v17660_v28, %v17658_v43  ;;  %v17678_v15 = vld [vmem:[#allocation235_spill] sm:$0xff] }
 0x41a   : > { %v4178_v40 = vmul.f32 %v17661_v54, %v17543_v33  ;;  %v4181_v22 = vmul.f32 %v17662_v18, %v17476_v50  ;;  %v4182_v13 = vmul.f32 %v17663_v9, %v17486_v17  ;;  %v4248_v16 = vadd.f32 %v4167_v23, %v4024_v30  ;;  %v17667_v18 = vld [vmem:[#allocation162_spill] sm:$0xff]  ;;  %v17668_v9 = vld [vmem:[#allocation51_spill] sm:$0xff] }
 0x41b   : > { %v4249_v62 = vadd.f32 %v4168_v6, %v4025_v20  ;;  %v4250_v26 = vadd.f32 %v4169_v51, %v4026_v49  ;;  %v4253_v56 = vadd.f32 %v4172_v52, %v4029_v31  ;;  %v4254_v7 = vadd.f32 %v4173_v5, %v4030_v48  ;;  %v17669_v6 = vld [vmem:[#allocation234_spill] sm:$0xff]  ;;  %v17670_v30 = vld [vmem:[#allocation115_spill] sm:$0xff]  ;;  %v17671_v49 = vld [vmem:[#allocation117_spill] sm:$0xff] }
 0x41c   : > { %v4255_v37 = vadd.f32 %v4174_v61, %v4031_v32  ;;  %v4256_v35 = vadd.f32 %v4175_v63, %v4032_v10  ;;  %v4257_v4 = vadd.f32 %v4176_v19, %v4033_v12  ;;  %v4258_v21 = vadd.f32 %v4177_v53, %v4034_v29  ;;  %v17672_v48 = vld [vmem:[#allocation305_spill] sm:$0xff]  ;;  %v17674_v10 = vld [vmem:[#allocation116_spill] sm:$0xff]  ;;  %v17675_v5 = vld [vmem:[#allocation226_spill] sm:$0xff] }
 0x41d   : > { %v4259_v0 = vadd.f32 %v4178_v40, %v4035_v24  ;;  %v4262_v8 = vadd.f32 %v4181_v22, %v4038_v38  ;;  %v4263_v41 = vadd.f32 %v4182_v13, %v4039_v47  ;;  %v4391_v54 = vmul.f32 %v17666_v11, %v17613_v34  ;;  %v17673_v47 = vld [vmem:[#allocation306_spill] sm:$0xff]  ;;  %v17676_v63 = vld [vmem:[#allocation233_spill] sm:$0xff]  ;;  %v17677_v13 = vld [vmem:[#allocation216_spill] sm:$0xff] }
 0x41e   : > { %v4392_v28 = vmul.f32 %v17667_v18, %v17623_v60  ;;  %v4393_v23 = vmul.f32 %v17668_v9, %v17631_v58  ;;  %v4395_v20 = vmul.f32 %v17670_v30, %v17669_v6  ;;  %v4396_v31 = vmul.f32 %v17671_v49, %v17632_v45 }
 0x41f   : > { %v4397_v32 = vmul.f32 %v17672_v48, %v17633_v59  ;;  %v4398_v38 = vmul.f32 %v17673_v47, %v17642_v14  ;;  %v4399_v12 = vmul.f32 %v17674_v10, %v17466_v42  ;;  %v4400_v29 = vmul.f32 %v17666_v11, %v17476_v50 }
 0x420   : > { %v4401_v24 = vmul.f32 %v17667_v18, %v17486_v17  ;;  %v4402_v51 = vmul.f32 %v17668_v9, %v17495_v44  ;;  %v4403_v52 = vmul.f32 %v17670_v30, %v17506_v2  ;;  %v4405_v61 = vmul.f32 %v17671_v49, %v17675_v5  ;;  %v17679_v49 = vld [vmem:[#allocation123_spill] sm:$0xff] }
 0x421   : > { %v4406_v19 = vmul.f32 %v17672_v48, %v17676_v63  ;;  %v4472_v53 = vadd.f32 %v4391_v54, %v4248_v16  ;;  %v4473_v40 = vadd.f32 %v4392_v28, %v4249_v62  ;;  %v4474_v22 = vadd.f32 %v4393_v23, %v4250_v26  ;;  %v17680_v54 = vld [vmem:[#allocation104_spill] sm:$0xff]  ;;  %v17681_v16 = vld [vmem:[#allocation78_spill] sm:$0xff]  ;;  %v17682_v26 = vld [vmem:[#allocation119_spill] sm:$0xff] }
 0x422   : > { %v4476_v6 = vadd.f32 %v4395_v20, %v17677_v13  ;;  %v4477_v11 = vadd.f32 %v4396_v31, %v4253_v56  ;;  %v4478_v10 = vadd.f32 %v4397_v32, %v4254_v7  ;;  %v4479_v18 = vadd.f32 %v4398_v38, %v4255_v37  ;;  %v17683_v7 = vld [vmem:[#allocation122_spill] sm:$0xff]  ;;  %v17687_v38 = vld [vmem:[#allocation236_spill] sm:$0xff] }
 0x423   : > { %v4480_v47 = vadd.f32 %v4399_v12, %v4256_v35  ;;  %v4481_v25 = vadd.f32 %v4400_v29, %v4257_v4  ;;  %v4482_v9 = vadd.f32 %v4401_v24, %v4258_v21  ;;  %v4483_v36 = vadd.f32 %v4402_v51, %v4259_v0  ;;  %v17684_v35 = vld [vmem:[#allocation307_spill] sm:$0xff]  ;;  %v17685_v4 = vld [vmem:[#allocation308_spill] sm:$0xff]  ;;  %v17686_v0 = vld [vmem:[#allocation121_spill] sm:$0xff] }
 0x424   : > { %v4484_v30 = vadd.f32 %v4403_v52, %v17678_v15  ;;  %v4486_v34 = vadd.f32 %v4405_v61, %v4262_v8  ;;  %v4487_v1 = vadd.f32 %v4406_v19, %v4263_v41  ;;  %v4615_v3 = vmul.f32 %v17679_v49, %v17623_v60  ;;  %v17689_v60 = vld [vmem:[#allocation105_spill] sm:$0xff] }
 0x425   : > { %v4616_v28 = vmul.f32 %v17680_v54, %v17631_v58  ;;  %v4617_v62 = vmul.f32 %v17681_v16, %v17641_v57  ;;  %v4619_v56 = vmul.f32 %v17682_v26, %v17632_v45  ;;  %v4620_v37 = vmul.f32 %v17683_v7, %v17633_v59  ;;  %v17688_v45 = vld [vmem:[#allocation11_spill] sm:$0xff] }
 0x426   : > { %v4621_v15 = vmul.f32 %v17684_v35, %v17642_v14  ;;  %v4622_v21 = vmul.f32 %v17685_v4, %v17466_v42  ;;  %v4623_v8 = vmul.f32 %v17686_v0, %v17476_v50  ;;  %v4624_v41 = vmul.f32 %v17679_v49, %v17486_v17 }
 0x427   : > { %v4625_v23 = vmul.f32 %v17680_v54, %v17495_v44  ;;  %v4626_v20 = vmul.f32 %v17681_v16, %v17506_v2  ;;  %v4627_v31 = vmul.f32 %v17682_v26, %v17530_v46  ;;  %v4629_v32 = vmul.f32 %v17683_v7, %v17676_v63 }
 0x428   : > { %v4630_v12 = vmul.f32 %v17684_v35, %v17687_v38  ;;  %v4696_v29 = vadd.f32 %v4615_v3, %v4472_v53  ;;  %v4697_v24 = vadd.f32 %v4616_v28, %v4473_v40  ;;  %v4698_v51 = vadd.f32 %v4617_v62, %v4474_v22  ;;  %v17690_v3 = vld [vmem:[#allocation4_spill] sm:$0xff] }
 0x429   : > { %v4700_v52 = vadd.f32 %v4619_v56, %v4476_v6  ;;  %v4701_v61 = vadd.f32 %v4620_v37, %v4477_v11  ;;  %v4702_v19 = vadd.f32 %v4621_v15, %v4478_v10  ;;  %v4703_v13 = vadd.f32 %v4622_v21, %v4479_v18  ;;  %v17691_v11 = vld [vmem:[#allocation124_spill] sm:$0xff]  ;;  %v17692_v18 = vld [vmem:[#allocation126_spill] sm:$0xff] }
 0x42a   : > { %v4704_v54 = vadd.f32 %v4623_v8, %v4480_v47  ;;  %v4705_v49 = vadd.f32 %v4624_v41, %v4481_v25  ;;  %v4706_v0 = vadd.f32 %v4625_v23, %v4482_v9  ;;  %v4707_v16 = vadd.f32 %v4626_v20, %v4483_v36  ;;  %v17693_v9 = vld [vmem:[#allocation309_spill] sm:$0xff] }
 0x42b   : > { %v4708_v4 = vadd.f32 %v4627_v31, %v4484_v30  ;;  %v4710_v48 = vadd.f32 %v4629_v32, %v4486_v34  ;;  %v4711_v26 = vadd.f32 %v4630_v12, %v4487_v1  ;;  %v4839_v7 = vmul.f32 %v17688_v45, %v17631_v58  ;;  %v17694_v1 = vld [vmem:[#allocation310_spill] sm:$0xff]  ;;  %v17695_v30 = vld [vmem:[#allocation125_spill] sm:$0xff] }
 0x42c   : > { %v4840_v35 = vmul.f32 %v17689_v60, %v17641_v57  ;;  %v4841_v53 = vmul.f32 %v17690_v3, %v17650_v27  ;;  %v4843_v10 = vmul.f32 %v17691_v11, %v17633_v59  ;;  %v4844_v25 = vmul.f32 %v17692_v18, %v17642_v14 }
 0x42d   : > { %v4845_v36 = vmul.f32 %v17693_v9, %v17466_v42  ;;  %v4846_v34 = vmul.f32 %v17694_v1, %v17476_v50  ;;  %v4847_v47 = vmul.f32 %v17695_v30, %v17486_v17  ;;  %v4848_v40 = vmul.f32 %v17688_v45, %v17495_v44  ;;  %v17696_v30 = vld [vmem:[#allocation133_spill] sm:$0xff]  ;;  %v17697_v1 = vld [vmem:[#allocation106_spill] sm:$0xff] }
 0x42e   : > { %v4849_v22 = vmul.f32 %v17689_v60, %v17506_v2  ;;  %v4850_v6 = vmul.f32 %v17690_v3, %v17530_v46  ;;  %v4851_v28 = vmul.f32 %v17691_v11, %v17540_v39  ;;  %v4853_v62 = vmul.f32 %v17692_v18, %v17687_v38 }
 0x42f   : > { %v4854_v56 = vmul.f32 %v17693_v9, %v17519_v55  ;;  %v4920_v37 = vadd.f32 %v4839_v7, %v4696_v29  ;;  %v4921_v15 = vadd.f32 %v4840_v35, %v4697_v24  ;;  %v4922_v21 = vadd.f32 %v4841_v53, %v4698_v51  ;;  %v17698_v7 = vld [vmem:[#allocation168_spill] sm:$0xff]  ;;  %v17699_v29 = vld [vmem:[#allocation127_spill] sm:$0xff] }
 0x430   : > { %v4924_v8 = vadd.f32 %v4843_v10, %v4700_v52  ;;  %v4925_v41 = vadd.f32 %v4844_v25, %v4701_v61  ;;  %v4926_v23 = vadd.f32 %v4845_v36, %v4702_v19  ;;  %v4927_v20 = vadd.f32 %v4846_v34, %v4703_v13  ;;  %v17704_v13 = vld [vmem:[#allocation227_spill] sm:$0xff] }
 0x431   : > { %v4928_v31 = vadd.f32 %v4847_v47, %v4704_v54  ;;  %v4929_v32 = vadd.f32 %v4848_v40, %v4705_v49  ;;  %v4930_v12 = vadd.f32 %v4849_v22, %v4706_v0  ;;  %v4931_v3 = vadd.f32 %v4850_v6, %v4707_v16  ;;  %v17700_v54 = vld [vmem:[#allocation129_spill] sm:$0xff]  ;;  %v17701_v16 = vld [vmem:[#allocation311_spill] sm:$0xff]  ;;  %v17703_v0 = vld [vmem:[#allocation128_spill] sm:$0xff] }
 0x432   : > { %v4932_v60 = vadd.f32 %v4851_v28, %v4708_v4  ;;  %v4934_v45 = vadd.f32 %v4853_v62, %v4710_v48  ;;  %v4935_v11 = vadd.f32 %v4854_v56, %v4711_v26  ;;  %v5063_v18 = vmul.f32 %v17696_v30, %v17641_v57  ;;  %v17702_v48 = vld [vmem:[#allocation312_spill] sm:$0xff]  ;;  %v17705_v25 = vld [vmem:[#allocation239_spill] sm:$0xff]  ;;  %v17706_v57 = vld [vmem:[#allocation134_spill] sm:$0xff] }
 0x433   : > { %v5064_v9 = vmul.f32 %v17697_v1, %v17650_v27  ;;  %v5065_v35 = vmul.f32 %v17698_v7, %v17658_v43  ;;  %v5067_v24 = vmul.f32 %v17699_v29, %v17642_v14  ;;  %v5068_v49 = vmul.f32 %v17700_v54, %v17466_v42  ;;  %v17707_v14 = vld [vmem:[#allocation147_spill] sm:$0xff] }
 0x434   : > { %v5069_v4 = vmul.f32 %v17701_v16, %v17476_v50  ;;  %v5070_v26 = vmul.f32 %v17702_v48, %v17486_v17  ;;  %v5071_v51 = vmul.f32 %v17703_v0, %v17495_v44  ;;  %v5072_v52 = vmul.f32 %v17696_v30, %v17506_v2 }
 0x435   : > { %v5073_v61 = vmul.f32 %v17697_v1, %v17530_v46  ;;  %v5074_v19 = vmul.f32 %v17698_v7, %v17540_v39  ;;  %v5075_v53 = vmul.f32 %v17699_v29, %v17704_v13  ;;  %v5077_v10 = vmul.f32 %v17700_v54, %v17519_v55 }
 0x436   : > { %v5078_v36 = vmul.f32 %v17701_v16, %v17705_v25  ;;  %v5144_v34 = vadd.f32 %v5063_v18, %v4920_v37  ;;  %v5145_v47 = vadd.f32 %v5064_v9, %v4921_v15  ;;  %v5146_v40 = vadd.f32 %v5065_v35, %v4922_v21  ;;  %v17708_v18 = vld [vmem:[#allocation171_spill] sm:$0xff]  ;;  %v17709_v37 = vld [vmem:[#allocation130_spill] sm:$0xff]  ;;  %v17710_v21 = vld [vmem:[#allocation132_spill] sm:$0xff] }
 0x437   : > { %v5148_v22 = vadd.f32 %v5067_v24, %v4924_v8  ;;  %v5149_v6 = vadd.f32 %v5068_v49, %v4925_v41  ;;  %v5150_v28 = vadd.f32 %v5069_v4, %v4926_v23  ;;  %v5151_v62 = vadd.f32 %v5070_v26, %v4927_v20  ;;  %v17713_v41 = vld [vmem:[#allocation131_spill] sm:$0xff]  ;;  %v17715_v49 = vld [vmem:[#allocation241_spill] sm:$0xff] }
 0x438   : > { %v5152_v56 = vadd.f32 %v5071_v51, %v4928_v31  ;;  %v5153_v1 = vadd.f32 %v5072_v52, %v4929_v32  ;;  %v5154_v30 = vadd.f32 %v5073_v61, %v4930_v12  ;;  %v5155_v7 = vadd.f32 %v5074_v19, %v4931_v3  ;;  %v17711_v3 = vld [vmem:[#allocation313_spill] sm:$0xff]  ;;  %v17714_v12 = vld [vmem:[#allocation258_spill] sm:$0xff] }
 0x439   : > { %v5156_v0 = vadd.f32 %v5075_v53, %v4932_v60  ;;  %v5158_v48 = vadd.f32 %v5077_v10, %v4934_v45  ;;  %v5159_v29 = vadd.f32 %v5078_v36, %v4935_v11  ;;  %v5287_v54 = vmul.f32 %v17706_v57, %v17650_v27  ;;  %v17712_v45 = vld [vmem:[#allocation314_spill] sm:$0xff] }
 0x43a   : > { %v5288_v16 = vmul.f32 %v17707_v14, %v17658_v43  ;;  %v5289_v9 = vmul.f32 %v17708_v18, %v17543_v33  ;;  %v5291_v15 = vmul.f32 %v17709_v37, %v17466_v42  ;;  %v5292_v8 = vmul.f32 %v17710_v21, %v17476_v50  ;;  %v17716_v33 = vld [vmem:[#allocation151_spill] sm:$0xff]  ;;  %v17717_v43 = vld [vmem:[#allocation156_spill] sm:$0xff] }
 0x43b   : > { %v5293_v60 = vmul.f32 %v17711_v3, %v17486_v17  ;;  %v5294_v11 = vmul.f32 %v17712_v45, %v17495_v44  ;;  %v5295_v23 = vmul.f32 %v17713_v41, %v17506_v2  ;;  %v5296_v20 = vmul.f32 %v17706_v57, %v17530_v46 }
 0x43c   : > { %v5297_v31 = vmul.f32 %v17707_v14, %v17540_v39  ;;  %v5298_v32 = vmul.f32 %v17708_v18, %v17704_v13  ;;  %v5299_v35 = vmul.f32 %v17709_v37, %v17714_v12  ;;  %v5301_v24 = vmul.f32 %v17710_v21, %v17705_v25 }
 0x43d   : > { %v5302_v4 = vmul.f32 %v17711_v3, %v17715_v49  ;;  %v5368_v26 = vadd.f32 %v5287_v54, %v5144_v34  ;;  %v5369_v51 = vadd.f32 %v5288_v16, %v5145_v47  ;;  %v5370_v52 = vadd.f32 %v5289_v9, %v5146_v40  ;;  %v17718_v54 = vld [vmem:[#allocation146_spill] sm:$0xff]  ;;  %v17725_v9 = vld [vmem:[#allocation203_spill] sm:$0xff] }
 0x43e   : > { %v5372_v61 = vadd.f32 %v5291_v15, %v5148_v22  ;;  %v5373_v19 = vadd.f32 %v5292_v8, %v5149_v6  ;;  %v5374_v53 = vadd.f32 %v5293_v60, %v5150_v28  ;;  %v5375_v10 = vadd.f32 %v5294_v11, %v5151_v62  ;;  %v17719_v34 = vld [vmem:[#allocation138_spill] sm:$0xff]  ;;  %v17724_v6 = vld [vmem:[#allocation92_spill] sm:$0xff]  ;;  %v17726_v8 = vld [vmem:[#allocation247_spill] sm:$0xff] }
 0x43f   : > { %v5376_v36 = vadd.f32 %v5295_v23, %v5152_v56  ;;  %v5377_v14 = vadd.f32 %v5296_v20, %v5153_v1  ;;  %v5378_v57 = vadd.f32 %v5297_v31, %v5154_v30  ;;  %v5379_v18 = vadd.f32 %v5298_v32, %v5155_v7  ;;  %v17720_v40 = vld [vmem:[#allocation238_spill] sm:$0xff]  ;;  %v17728_v20 = vld [vmem:[#allocation248_spill] sm:$0xff] }
 0x440   : > { %v5380_v41 = vadd.f32 %v5299_v35, %v5156_v0  ;;  %v5382_v45 = vadd.f32 %v5301_v24, %v5158_v48  ;;  %v5383_v37 = vadd.f32 %v5302_v4, %v5159_v29  ;;  %v5511_v21 = vmul.f32 %v17716_v33, %v17476_v50  ;;  %v17721_v30 = vld [vmem:[#allocation142_spill] sm:$0xff]  ;;  %v17722_v29 = vld [vmem:[#allocation315_spill] sm:$0xff]  ;;  %v17723_v0 = vld [vmem:[#allocation316_spill] sm:$0xff] }
 0x441   : > { %v5512_v3 = vmul.f32 %v17717_v43, %v17486_v17  ;;  %v5513_v16 = vmul.f32 %v17718_v54, %v17495_v44  ;;  %v5514_v47 = vmul.f32 %v17719_v34, %v17506_v2  ;;  %v5515_v1 = vmul.f32 %v17719_v34, %v17720_v40  ;;  %v17727_v11 = vld [vmem:[#allocation242_spill] sm:$0xff]  ;;  %v17729_v4 = vld [vmem:[#allocation237_spill] sm:$0xff] }
 0x442   : > { %v5516_v7 = vmul.f32 %v17721_v30, %v17675_v5  ;;  %v5517_v48 = vmul.f32 %v17722_v29, %v17676_v63  ;;  %v5518_v22 = vmul.f32 %v17723_v0, %v17687_v38  ;;  %v5519_v28 = vmul.f32 %v17724_v6, %v17519_v55 }
 0x443   : > { %v5520_v62 = vmul.f32 %v17716_v33, %v17705_v25  ;;  %v5521_v56 = vmul.f32 %v17717_v43, %v17715_v49  ;;  %v5522_v15 = vmul.f32 %v17718_v54, %v17725_v9  ;;  %v5523_v60 = vmul.f32 %v17719_v34, %v17726_v8 }
 0x444   : > { %v5525_v23 = vmul.f32 %v17721_v30, %v17727_v11  ;;  %v5526_v31 = vmul.f32 %v17722_v29, %v17728_v20  ;;  %v5592_v32 = vadd.f32 %v5511_v21, %v5368_v26  ;;  %v5593_v35 = vadd.f32 %v5512_v3, %v5369_v51  ;;  %v17730_v30 = vld [vmem:[#allocation18_spill] sm:$0xff]  ;;  %v17731_v21 = vld [vmem:[#allocation41_spill] sm:$0xff]  ;;  %v17732_v26 = vld [vmem:[#allocation180_spill] sm:$0xff] }
 0x445   : > { %v5594_v24 = vadd.f32 %v5513_v16, %v5370_v52  ;;  %v5595_v40 = vadd.f32 %v5514_v47, %v17729_v4  ;;  %v5596_v33 = vadd.f32 %v5515_v1, %v5372_v61  ;;  %v5597_v6 = vadd.f32 %v5516_v7, %v5373_v19  ;;  %v17733_v52 = vld [vmem:[#allocation178_spill] sm:$0xff]  ;;  %v17738_v1 = vld [vmem:[#allocation244_spill] sm:$0xff] }
 0x446   : > { %v5598_v43 = vadd.f32 %v5517_v48, %v5374_v53  ;;  %v5599_v0 = vadd.f32 %v5518_v22, %v5375_v10  ;;  %v5600_v27 = vadd.f32 %v5519_v28, %v5376_v36  ;;  %v5601_v54 = vadd.f32 %v5520_v62, %v5377_v14  ;;  %v17737_v53 = vld [vmem:[#allocation148_spill] sm:$0xff]  ;;  %v17739_v22 = vld [vmem:[#allocation251_spill] sm:$0xff] }
 0x447   : > { %v5602_v50 = vadd.f32 %v5521_v56, %v5378_v57  ;;  %v5603_v42 = vadd.f32 %v5522_v15, %v5379_v18  ;;  %v5604_v34 = vadd.f32 %v5523_v60, %v5380_v41  ;;  %v5606_v59 = vadd.f32 %v5525_v23, %v5382_v45  ;;  %v17734_v57 = vld [vmem:[#allocation302_spill] sm:$0xff] }
 0x448   : > { %v5607_v58 = vadd.f32 %v5526_v31, %v5383_v37  ;;  %v5735_v11 = vmul.f32 %v17730_v30, %v17486_v17  ;;  %v5736_v3 = vmul.f32 %v17731_v21, %v17495_v44  ;;  %v5737_v51 = vmul.f32 %v17732_v26, %v17506_v2  ;;  %v17735_v37 = vld [vmem:[#allocation317_spill] sm:$0xff]  ;;  %v17736_v41 = vld [vmem:[#allocation318_spill] sm:$0xff] }
 0x449   : > { %v5738_v61 = vmul.f32 %v17733_v52, %v17530_v46  ;;  %v5739_v14 = vmul.f32 %v17733_v52, %v17675_v5  ;;  %v5740_v18 = vmul.f32 %v17734_v57, %v17676_v63  ;;  %v5741_v45 = vmul.f32 %v17735_v37, %v17687_v38 }
 0x44a   : > { %v5742_v19 = vmul.f32 %v17736_v41, %v17519_v55  ;;  %v5743_v10 = vmul.f32 %v17737_v53, %v17705_v25  ;;  %v5744_v36 = vmul.f32 %v17730_v30, %v17715_v49  ;;  %v5745_v16 = vmul.f32 %v17731_v21, %v17725_v9 }
 0x44b   : > { %v5746_v47 = vmul.f32 %v17732_v26, %v17726_v8  ;;  %v5747_v7 = vmul.f32 %v17733_v52, %v17738_v1  ;;  %v5749_v48 = vmul.f32 %v17734_v57, %v17728_v20  ;;  %v5750_v28 = vmul.f32 %v17735_v37, %v17739_v22  ;;  %v17740_v57 = vld [vmem:[#allocation22_spill] sm:$0xff]  ;;  %v17741_v37 = vld [vmem:[#allocation149_spill] sm:$0xff] }
 0x44c   : > { %v5816_v62 = vadd.f32 %v5735_v11, %v5592_v32  ;;  %v5817_v56 = vadd.f32 %v5736_v3, %v5593_v35  ;;  %v5818_v15 = vadd.f32 %v5737_v51, %v5594_v24  ;;  %v5819_v60 = vadd.f32 %v5738_v61, %v5595_v40  ;;  %v17742_v32 = vld [vmem:[#allocation176_spill] sm:$0xff]  ;;  %v17748_v51 = vld [vmem:[#allocation246_spill] sm:$0xff] }
 0x44d   : > { %v5820_v23 = vadd.f32 %v5739_v14, %v5596_v33  ;;  %v5821_v31 = vadd.f32 %v5740_v18, %v5597_v6  ;;  %v5822_v4 = vadd.f32 %v5741_v45, %v5598_v43  ;;  %v5823_v21 = vadd.f32 %v5742_v19, %v5599_v0  ;;  %v17743_v33 = vld [vmem:[#allocation15_spill] sm:$0xff]  ;;  %v17747_v0 = vld [vmem:[#allocation16_spill] sm:$0xff]  ;;  %v17749_v18 = vld [vmem:[#allocation245_spill] sm:$0xff] }
 0x44e   : > { %v5824_v30 = vadd.f32 %v5743_v10, %v5600_v27  ;;  %v5825_v53 = vadd.f32 %v5744_v36, %v5601_v54  ;;  %v5826_v26 = vadd.f32 %v5745_v16, %v5602_v50  ;;  %v5827_v41 = vadd.f32 %v5746_v47, %v5603_v42  ;;  %v17744_v42 = vld [vmem:[#allocation17_spill] sm:$0xff]  ;;  %v17746_v54 = vld [vmem:[#allocation320_spill] sm:$0xff] }
 0x44f   : > { %v5828_v29 = vadd.f32 %v5747_v7, %v5604_v34  ;;  %v5830_v52 = vadd.f32 %v5749_v48, %v5606_v59  ;;  %v5831_v5 = vadd.f32 %v5750_v28, %v5607_v58  ;;  %v5959_v17 = vmul.f32 %v17740_v57, %v17495_v44  ;;  %v17745_v58 = vld [vmem:[#allocation319_spill] sm:$0xff] }
 0x450   : > { %v5960_v11 = vmul.f32 %v17741_v37, %v17506_v2  ;;  %v5961_v35 = vmul.f32 %v17742_v32, %v17530_v46  ;;  %v5962_v43 = vmul.f32 %v17743_v33, %v17540_v39  ;;  %v5963_v27 = vmul.f32 %v17743_v33, %v17676_v63 }
 0x451   : > { %v5964_v50 = vmul.f32 %v17744_v42, %v17687_v38  ;;  %v5965_v59 = vmul.f32 %v17745_v58, %v17519_v55  ;;  %v5966_v34 = vmul.f32 %v17746_v54, %v17705_v25  ;;  %v5967_v6 = vmul.f32 %v17747_v0, %v17715_v49 }
 0x452   : > { %v5968_v24 = vmul.f32 %v17740_v57, %v17725_v9  ;;  %v5969_v40 = vmul.f32 %v17741_v37, %v17726_v8  ;;  %v5970_v3 = vmul.f32 %v17742_v32, %v17738_v1  ;;  %v5971_v61 = vmul.f32 %v17743_v33, %v17748_v51 }
 0x453   : > { %v5973_v14 = vmul.f32 %v17744_v42, %v17739_v22  ;;  %v5974_v45 = vmul.f32 %v17745_v58, %v17749_v18  ;;  %v6040_v19 = vadd.f32 %v5959_v17, %v5816_v62  ;;  %v6041_v10 = vadd.f32 %v5960_v11, %v5817_v56  ;;  %v17750_v42 = vld [vmem:[#allocation23_spill] sm:$0xff]  ;;  %v17751_v58 = vld [vmem:[#allocation169_spill] sm:$0xff]  ;;  %v17752_v62 = vld [vmem:[#allocation190_spill] sm:$0xff] }
 0x454   : > { %v6042_v36 = vadd.f32 %v5961_v35, %v5818_v15  ;;  %v6043_v16 = vadd.f32 %v5962_v43, %v5819_v60  ;;  %v6044_v47 = vadd.f32 %v5963_v27, %v5820_v23  ;;  %v6045_v7 = vadd.f32 %v5964_v50, %v5821_v31  ;;  %v17753_v15 = vld [vmem:[#allocation19_spill] sm:$0xff]  ;;  %v17759_v50 = vld [vmem:[#allocation249_spill] sm:$0xff] }
 0x455   : > { %v6046_v48 = vadd.f32 %v5965_v59, %v5822_v4  ;;  %v6047_v28 = vadd.f32 %v5966_v34, %v5823_v21  ;;  %v6048_v37 = vadd.f32 %v5967_v6, %v5824_v30  ;;  %v6049_v57 = vadd.f32 %v5968_v24, %v5825_v53  ;;  %v17754_v21 = vld [vmem:[#allocation21_spill] sm:$0xff]  ;;  %v17757_v53 = vld [vmem:[#allocation20_spill] sm:$0xff]  ;;  %v17758_v35 = vld [vmem:[#allocation259_spill] sm:$0xff] }
 0x456   : > { %v6050_v32 = vadd.f32 %v5969_v40, %v5826_v26  ;;  %v6051_v0 = vadd.f32 %v5970_v3, %v5827_v41  ;;  %v6052_v54 = vadd.f32 %v5971_v61, %v5828_v29  ;;  %v6054_v33 = vadd.f32 %v5973_v14, %v5830_v52  ;;  %v17756_v52 = vld [vmem:[#allocation321_spill] sm:$0xff] }
 0x457   : > { %v6055_v63 = vadd.f32 %v5974_v45, %v5831_v5  ;;  %v6183_v44 = vmul.f32 %v17750_v42, %v17506_v2  ;;  %v6184_v17 = vmul.f32 %v17751_v58, %v17530_v46  ;;  %v6185_v56 = vmul.f32 %v17752_v62, %v17540_v39  ;;  %v17755_v5 = vld [vmem:[#allocation301_spill] sm:$0xff] }
 0x458   : > { %v6186_v60 = vmul.f32 %v17753_v15, %v17704_v13  ;;  %v6187_v30 = vmul.f32 %v17753_v15, %v17687_v38  ;;  %v6188_v29 = vmul.f32 %v17754_v21, %v17519_v55  ;;  %v6189_v26 = vmul.f32 %v17755_v5, %v17705_v25 }
 0x459   : > { %v6190_v41 = vmul.f32 %v17756_v52, %v17715_v49  ;;  %v6191_v23 = vmul.f32 %v17757_v53, %v17725_v9  ;;  %v6192_v31 = vmul.f32 %v17750_v42, %v17726_v8  ;;  %v6193_v4 = vmul.f32 %v17751_v58, %v17738_v1 }
 0x45a   : > { %v6194_v11 = vmul.f32 %v17752_v62, %v17748_v51  ;;  %v6195_v43 = vmul.f32 %v17753_v15, %v17758_v35  ;;  %v6197_v27 = vmul.f32 %v17754_v21, %v17749_v18  ;;  %v6198_v59 = vmul.f32 %v17755_v5, %v17759_v50  ;;  %v17760_v21 = vld [vmem:[#allocation28_spill] sm:$0xff]  ;;  %v17761_v5 = vld [vmem:[#allocation181_spill] sm:$0xff] }
 0x45b   : > { %v6264_v34 = vadd.f32 %v6183_v44, %v6040_v19  ;;  %v6265_v6 = vadd.f32 %v6184_v17, %v6041_v10  ;;  %v6266_v24 = vadd.f32 %v6185_v56, %v6042_v36  ;;  %v6267_v40 = vadd.f32 %v6186_v60, %v6043_v16  ;;  %v17762_v19 = vld [vmem:[#allocation179_spill] sm:$0xff]  ;;  %v17763_v36 = vld [vmem:[#allocation24_spill] sm:$0xff] }
 0x45c   : > { %v6268_v3 = vadd.f32 %v6187_v30, %v6044_v47  ;;  %v6269_v61 = vadd.f32 %v6188_v29, %v6045_v7  ;;  %v6270_v14 = vadd.f32 %v6189_v26, %v6046_v48  ;;  %v6271_v45 = vadd.f32 %v6190_v41, %v6047_v28  ;;  %v17767_v47 = vld [vmem:[#allocation25_spill] sm:$0xff]  ;;  %v17768_v56 = vld [vmem:[#allocation260_spill] sm:$0xff]  ;;  %v17769_v29 = vld [vmem:[#allocation250_spill] sm:$0xff] }
 0x45d   : > { %v6272_v58 = vadd.f32 %v6191_v23, %v6048_v37  ;;  %v6273_v42 = vadd.f32 %v6192_v31, %v6049_v57  ;;  %v6274_v62 = vadd.f32 %v6193_v4, %v6050_v32  ;;  %v6275_v53 = vadd.f32 %v6194_v11, %v6051_v0  ;;  %v17764_v37 = vld [vmem:[#allocation26_spill] sm:$0xff] }
 0x45e   : > { %v6276_v52 = vadd.f32 %v6195_v43, %v6052_v54  ;;  %v6278_v15 = vadd.f32 %v6197_v27, %v6054_v33  ;;  %v6279_v38 = vadd.f32 %v6198_v59, %v6055_v63  ;;  %v6407_v2 = vmul.f32 %v17760_v21, %v17530_v46  ;;  %v17765_v63 = vld [vmem:[#allocation322_spill] sm:$0xff]  ;;  %v17766_v54 = vld [vmem:[#allocation323_spill] sm:$0xff] }
 0x45f   : > { %v6408_v44 = vmul.f32 %v17761_v5, %v17540_v39  ;;  %v6409_v10 = vmul.f32 %v17762_v19, %v17704_v13  ;;  %v6410_v16 = vmul.f32 %v17763_v36, %v17714_v12  ;;  %v6411_v57 = vmul.f32 %v17763_v36, %v17519_v55 }
 0x460   : > { %v6412_v32 = vmul.f32 %v17764_v37, %v17705_v25  ;;  %v6413_v33 = vmul.f32 %v17765_v63, %v17715_v49  ;;  %v6414_v0 = vmul.f32 %v17766_v54, %v17725_v9  ;;  %v6415_v7 = vmul.f32 %v17767_v47, %v17726_v8 }
 0x461   : > { %v6416_v48 = vmul.f32 %v17760_v21, %v17738_v1  ;;  %v6417_v28 = vmul.f32 %v17761_v5, %v17748_v51  ;;  %v6418_v17 = vmul.f32 %v17762_v19, %v17758_v35  ;;  %v6419_v60 = vmul.f32 %v17763_v36, %v17768_v56  ;;  %v17795_v35 = vld [vmem:[#allocation40_spill] sm:$0xff] }
 0x462   : > { %v6421_v30 = vmul.f32 %v17764_v37, %v17759_v50  ;;  %v6422_v26 = vmul.f32 %v17765_v63, %v17769_v29  ;;  %v6488_v41 = vadd.f32 %v6407_v2, %v6264_v34  ;;  %v6489_v23 = vadd.f32 %v6408_v44, %v6265_v6  ;;  %v17770_v37 = vld [vmem:[#allocation34_spill] sm:$0xff]  ;;  %v17772_v34 = vld [vmem:[#allocation192_spill] sm:$0xff] }
 0x463   : > { %v6490_v31 = vadd.f32 %v6409_v10, %v6266_v24  ;;  %v6491_v4 = vadd.f32 %v6410_v16, %v6267_v40  ;;  %v6492_v11 = vadd.f32 %v6411_v57, %v6268_v3  ;;  %v6493_v43 = vadd.f32 %v6412_v32, %v6269_v61  ;;  %v17771_v63 = vld [vmem:[#allocation170_spill] sm:$0xff]  ;;  %v17773_v24 = vld [vmem:[#allocation27_spill] sm:$0xff]  ;;  %v17779_v44 = vld [vmem:[#allocation252_spill] sm:$0xff] }
 0x464   : > { %v6494_v27 = vadd.f32 %v6413_v33, %v6270_v14  ;;  %v6495_v59 = vadd.f32 %v6414_v0, %v6271_v45  ;;  %v6496_v5 = vadd.f32 %v6415_v7, %v6272_v58  ;;  %v6497_v21 = vadd.f32 %v6416_v48, %v6273_v42  ;;  %v17774_v3 = vld [vmem:[#allocation242_spill] sm:$0xff]  ;;  %v17775_v58 = vld [vmem:[#allocation31_spill] sm:$0xff]  ;;  %v17780_v16 = vld [vmem:[#allocation256_spill] sm:$0xff] }
 0x465   : > { %v6498_v19 = vadd.f32 %v6417_v28, %v6274_v62  ;;  %v6499_v47 = vadd.f32 %v6418_v17, %v6275_v53  ;;  %v6500_v54 = vadd.f32 %v6419_v60, %v6276_v52  ;;  %v6502_v36 = vadd.f32 %v6421_v30, %v6278_v15  ;;  %v17776_v62 = vld [vmem:[#allocation324_spill] sm:$0xff]  ;;  %v17778_v53 = vld [vmem:[#allocation30_spill] sm:$0xff]  ;;  %v17781_v32 = vld [vmem:[#allocation265_spill] sm:$0xff] }
 0x466   : > { %v6503_v12 = vadd.f32 %v6422_v26, %v6279_v38  ;;  %v6631_v55 = vmul.f32 %v17770_v37, %v17705_v25  ;;  %v6632_v2 = vmul.f32 %v17771_v63, %v17715_v49  ;;  %v6633_v6 = vmul.f32 %v17772_v34, %v17725_v9  ;;  %v17777_v38 = vld [vmem:[#allocation325_spill] sm:$0xff]  ;;  %v17782_v0 = vld [vmem:[#allocation266_spill] sm:$0xff]  ;;  %v17783_v30 = vld [vmem:[#allocation255_spill] sm:$0xff] }
 0x467   : > { %v6634_v40 = vmul.f32 %v17773_v24, %v17726_v8  ;;  %v6636_v42 = vmul.f32 %v17775_v58, %v17774_v3  ;;  %v6637_v52 = vmul.f32 %v17776_v62, %v17728_v20  ;;  %v6638_v15 = vmul.f32 %v17777_v38, %v17739_v22 }
 0x468   : > { %v6639_v61 = vmul.f32 %v17778_v53, %v17749_v18  ;;  %v6640_v14 = vmul.f32 %v17770_v37, %v17759_v50  ;;  %v6641_v45 = vmul.f32 %v17771_v63, %v17769_v29  ;;  %v6642_v10 = vmul.f32 %v17772_v34, %v17779_v44 }
 0x469   : > { %v6643_v57 = vmul.f32 %v17773_v24, %v17780_v16  ;;  %v6645_v33 = vmul.f32 %v17775_v58, %v17781_v32  ;;  %v6646_v7 = vmul.f32 %v17776_v62, %v17782_v0  ;;  %v6712_v48 = vadd.f32 %v6631_v55, %v6488_v41  ;;  %v17784_v58 = vld [vmem:[#allocation35_spill] sm:$0xff]  ;;  %v17785_v55 = vld [vmem:[#allocation12_spill] sm:$0xff] }
 0x46a   : > { %v6713_v28 = vadd.f32 %v6632_v2, %v6489_v23  ;;  %v6714_v17 = vadd.f32 %v6633_v6, %v6490_v31  ;;  %v6715_v60 = vadd.f32 %v6634_v40, %v6491_v4  ;;  %v6716_v26 = vadd.f32 %v17783_v30, %v6492_v11  ;;  %v17786_v23 = vld [vmem:[#allocation214_spill] sm:$0xff]  ;;  %v17787_v4 = vld [vmem:[#allocation29_spill] sm:$0xff] }
 0x46b   : > { %v6717_v37 = vadd.f32 %v6636_v42, %v6493_v43  ;;  %v6718_v63 = vadd.f32 %v6637_v52, %v6494_v27  ;;  %v6719_v53 = vadd.f32 %v6638_v15, %v6495_v59  ;;  %v6720_v38 = vadd.f32 %v6639_v61, %v6496_v5  ;;  %v17788_v5 = vld [vmem:[#allocation33_spill] sm:$0xff]  ;;  %v17791_v43 = vld [vmem:[#allocation32_spill] sm:$0xff] }
 0x46c   : > { %v6721_v34 = vadd.f32 %v6640_v14, %v6497_v21  ;;  %v6722_v25 = vadd.f32 %v6641_v45, %v6498_v19  ;;  %v6723_v13 = vadd.f32 %v6642_v10, %v6499_v47  ;;  %v6724_v24 = vadd.f32 %v6643_v57, %v6500_v54  ;;  %v17790_v54 = vld [vmem:[#allocation330_spill] sm:$0xff]  ;;  %v17792_v40 = vld [vmem:[#allocation257_spill] sm:$0xff] }
 0x46d   : > { %v6726_v39 = vadd.f32 %v6645_v33, %v6502_v36  ;;  %v6727_v46 = vadd.f32 %v6646_v7, %v6503_v12  ;;  %v6855_v56 = vmul.f32 %v17784_v58, %v17715_v49  ;;  %v6856_v41 = vmul.f32 %v17785_v55, %v17725_v9  ;;  %v17789_v12 = vld [vmem:[#allocation326_spill] sm:$0xff]  ;;  %v17793_v61 = vld [vmem:[#allocation49_spill] sm:$0xff] }
 0x46e   : > { %v6857_v31 = vmul.f32 %v17786_v23, %v17726_v8  ;;  %v6858_v11 = vmul.f32 %v17787_v4, %v17738_v1  ;;  %v6859_v21 = vmul.f32 %v17787_v4, %v17774_v3  ;;  %v6860_v19 = vmul.f32 %v17788_v5, %v17728_v20 }
 0x46f   : > { %v6861_v36 = vmul.f32 %v17789_v12, %v17739_v22  ;;  %v6862_v47 = vmul.f32 %v17790_v54, %v17749_v18  ;;  %v6863_v27 = vmul.f32 %v17791_v43, %v17759_v50  ;;  %v6864_v59 = vmul.f32 %v17784_v58, %v17769_v29 }
 0x470   : > { %v6865_v2 = vmul.f32 %v17785_v55, %v17779_v44  ;;  %v6866_v6 = vmul.f32 %v17786_v23, %v17780_v16  ;;  %v6867_v42 = vmul.f32 %v17787_v4, %v17792_v40  ;;  %v6868_v52 = vmul.f32 %v17787_v4, %v17781_v32  ;;  %v17794_v4 = vld [vmem:[#allocation182_spill] sm:$0xff] }
 0x471   : > { %v6869_v15 = vmul.f32 %v17788_v5, %v17782_v0  ;;  %v6870_v14 = vmul.f32 %v17789_v12, %v17793_v61  ;;  %v6936_v45 = vadd.f32 %v6855_v56, %v6712_v48  ;;  %v6937_v10 = vadd.f32 %v6856_v41, %v6713_v28  ;;  %v17796_v56 = vld [vmem:[#allocation175_spill] sm:$0xff] }
 0x472   : > { %v6938_v57 = vadd.f32 %v6857_v31, %v6714_v17  ;;  %v6939_v33 = vadd.f32 %v6858_v11, %v6715_v60  ;;  %v6940_v7 = vadd.f32 %v6859_v21, %v6716_v26  ;;  %v6941_v30 = vadd.f32 %v6860_v19, %v6717_v37  ;;  %v17797_v28 = vld [vmem:[#allocation331_spill] sm:$0xff]  ;;  %v17802_v17 = vld [vmem:[#allocation37_spill] sm:$0xff] }
 0x473   : > { %v6942_v55 = vadd.f32 %v6861_v36, %v6718_v63  ;;  %v6943_v23 = vadd.f32 %v6862_v47, %v6719_v53  ;;  %v6944_v58 = vadd.f32 %v6863_v27, %v6720_v38  ;;  %v6945_v43 = vadd.f32 %v6864_v59, %v6721_v34  ;;  %v17798_v63 = vld [vmem:[#allocation36_spill] sm:$0xff]  ;;  %v17804_v36 = vld [vmem:[#allocation271_spill] sm:$0xff] }
 0x474   : > { %v6946_v54 = vadd.f32 %v6865_v2, %v6722_v25  ;;  %v6947_v62 = vadd.f32 %v6866_v6, %v6723_v13  ;;  %v6948_v3 = vadd.f32 %v6867_v42, %v6724_v24  ;;  %v6949_v32 = vadd.f32 %v6868_v52, %v17794_v4  ;;  %v17799_v25 = vld [vmem:[#allocation38_spill] sm:$0xff]  ;;  %v17801_v24 = vld [vmem:[#allocation167_spill] sm:$0xff] }
 0x475   : > { %v6950_v49 = vadd.f32 %v6869_v15, %v6726_v39  ;;  %v6951_v5 = vadd.f32 %v6870_v14, %v6727_v46  ;;  %v7079_v12 = vmul.f32 %v17795_v35, %v17725_v9  ;;  %v7080_v48 = vmul.f32 %v17796_v56, %v17726_v8  ;;  %v17800_v46 = vld [vmem:[#allocation207_spill] sm:$0xff]  ;;  %v17803_v4 = vld [vmem:[#allocation262_spill] sm:$0xff] }
 0x476   : > { %v7081_v37 = vmul.f32 %v17797_v28, %v17738_v1  ;;  %v7082_v38 = vmul.f32 %v17798_v63, %v17748_v51  ;;  %v7083_v13 = vmul.f32 %v17798_v63, %v17728_v20  ;;  %v7084_v34 = vmul.f32 %v17799_v25, %v17739_v22 }
 0x477   : > { %v7085_v39 = vmul.f32 %v17800_v46, %v17749_v18  ;;  %v7086_v53 = vmul.f32 %v17801_v24, %v17759_v50  ;;  %v7087_v60 = vmul.f32 %v17802_v17, %v17769_v29  ;;  %v7088_v26 = vmul.f32 %v17795_v35, %v17779_v44 }
 0x478   : > { %v7089_v41 = vmul.f32 %v17796_v56, %v17780_v16  ;;  %v7090_v31 = vmul.f32 %v17797_v28, %v17792_v40  ;;  %v7091_v11 = vmul.f32 %v17798_v63, %v17803_v4  ;;  %v7092_v21 = vmul.f32 %v17798_v63, %v17782_v0 }
 0x479   : > { %v7093_v19 = vmul.f32 %v17799_v25, %v17793_v61  ;;  %v7094_v47 = vmul.f32 %v17800_v46, %v17804_v36  ;;  %v7160_v27 = vadd.f32 %v7079_v12, %v6936_v45  ;;  %v7161_v59 = vadd.f32 %v7080_v48, %v6937_v10  ;;  %v17805_v25 = vld [vmem:[#allocation46_spill] sm:$0xff]  ;;  %v17806_v12 = vld [vmem:[#allocation340_spill] sm:$0xff] }
 0x47a   : > { %v7162_v2 = vadd.f32 %v7081_v37, %v6938_v57  ;;  %v7163_v6 = vadd.f32 %v7082_v38, %v6939_v33  ;;  %v7164_v42 = vadd.f32 %v7083_v13, %v6940_v7  ;;  %v7165_v52 = vadd.f32 %v7084_v34, %v6941_v30  ;;  %v17807_v10 = vld [vmem:[#allocation342_spill] sm:$0xff]  ;;  %v17808_v33 = vld [vmem:[#allocation259_spill] sm:$0xff]  ;;  %v17814_v38 = vld [vmem:[#allocation264_spill] sm:$0xff] }
 0x47b   : > { %v7166_v15 = vadd.f32 %v7085_v39, %v6942_v55  ;;  %v7167_v14 = vadd.f32 %v7086_v53, %v6943_v23  ;;  %v7168_v56 = vadd.f32 %v7087_v60, %v6944_v58  ;;  %v7169_v35 = vadd.f32 %v7088_v26, %v6945_v43  ;;  %v17809_v55 = vld [vmem:[#allocation39_spill] sm:$0xff]  ;;  %v17813_v43 = vld [vmem:[#allocation42_spill] sm:$0xff]  ;;  %v17815_v53 = vld [vmem:[#allocation276_spill] sm:$0xff] }
 0x47c   : > { %v7170_v17 = vadd.f32 %v7089_v41, %v6946_v54  ;;  %v7171_v24 = vadd.f32 %v7090_v31, %v6947_v62  ;;  %v7172_v20 = vadd.f32 %v7091_v11, %v6948_v3  ;;  %v7173_v63 = vadd.f32 %v7092_v21, %v6949_v32  ;;  %v17810_v3 = vld [vmem:[#allocation43_spill] sm:$0xff] }
 0x47d   : > { %v7174_v0 = vadd.f32 %v7093_v19, %v6950_v49  ;;  %v7175_v9 = vadd.f32 %v7094_v47, %v6951_v5  ;;  %v7303_v28 = vmul.f32 %v17805_v25, %v17726_v8  ;;  %v7304_v45 = vmul.f32 %v17806_v12, %v17738_v1  ;;  %v17811_v49 = vld [vmem:[#allocation339_spill] sm:$0xff]  ;;  %v17812_v5 = vld [vmem:[#allocation341_spill] sm:$0xff] }
 0x47e   : > { %v7305_v57 = vmul.f32 %v17807_v10, %v17748_v51  ;;  %v7306_v23 = vmul.f32 %v17809_v55, %v17808_v33  ;;  %v7307_v58 = vmul.f32 %v17809_v55, %v17739_v22  ;;  %v7308_v62 = vmul.f32 %v17810_v3, %v17749_v18 }
 0x47f   : > { %v7309_v32 = vmul.f32 %v17811_v49, %v17759_v50  ;;  %v7310_v54 = vmul.f32 %v17812_v5, %v17769_v29  ;;  %v7311_v7 = vmul.f32 %v17813_v43, %v17779_v44  ;;  %v7312_v30 = vmul.f32 %v17805_v25, %v17780_v16 }
 0x480   : > { %v7313_v48 = vmul.f32 %v17806_v12, %v17792_v40  ;;  %v7314_v37 = vmul.f32 %v17807_v10, %v17803_v4  ;;  %v7315_v13 = vmul.f32 %v17809_v55, %v17814_v38  ;;  %v7316_v34 = vmul.f32 %v17809_v55, %v17793_v61 }
 0x481   : > { %v7317_v39 = vmul.f32 %v17810_v3, %v17804_v36  ;;  %v7318_v60 = vmul.f32 %v17811_v49, %v17815_v53  ;;  %v7384_v26 = vadd.f32 %v7303_v28, %v7160_v27  ;;  %v7385_v41 = vadd.f32 %v7304_v45, %v7161_v59  ;;  %v17816_v3 = vld [vmem:[#allocation111_spill] sm:$0xff]  ;;  %v17817_v28 = vld [vmem:[#allocation344_spill] sm:$0xff]  ;;  %v17818_v59 = vld [vmem:[#allocation346_spill] sm:$0xff] }
 0x482   : > { %v7386_v31 = vadd.f32 %v7305_v57, %v7162_v2  ;;  %v7387_v11 = vadd.f32 %v7306_v23, %v7163_v6  ;;  %v7388_v21 = vadd.f32 %v7307_v58, %v7164_v42  ;;  %v7389_v19 = vadd.f32 %v7308_v62, %v7165_v52  ;;  %v17819_v6 = vld [vmem:[#allocation260_spill] sm:$0xff]  ;;  %v17820_v42 = vld [vmem:[#allocation6_spill] sm:$0xff]  ;;  %v17825_v23 = vld [vmem:[#allocation261_spill] sm:$0xff] }
 0x483   : > { %v7390_v47 = vadd.f32 %v7309_v32, %v7166_v15  ;;  %v7391_v10 = vadd.f32 %v7310_v54, %v7167_v14  ;;  %v7392_v12 = vadd.f32 %v7311_v7, %v7168_v56  ;;  %v7393_v25 = vadd.f32 %v7312_v30, %v7169_v35  ;;  %v17826_v54 = vld [vmem:[#allocation279_spill] sm:$0xff] }
 0x484   : > { %v7394_v43 = vadd.f32 %v7313_v48, %v7170_v17  ;;  %v7395_v5 = vadd.f32 %v7314_v37, %v7171_v24  ;;  %v7396_v46 = vadd.f32 %v7315_v13, %v7172_v20  ;;  %v7397_v55 = vadd.f32 %v7316_v34, %v7173_v63  ;;  %v17821_v20 = vld [vmem:[#allocation7_spill] sm:$0xff]  ;;  %v17823_v63 = vld [vmem:[#allocation345_spill] sm:$0xff]  ;;  %v17824_v17 = vld [vmem:[#allocation2_spill] sm:$0xff] }
 0x485   : > { %v7398_v61 = vadd.f32 %v7317_v39, %v7174_v0  ;;  %v7399_v22 = vadd.f32 %v7318_v60, %v7175_v9  ;;  %v7527_v8 = vmul.f32 %v17816_v3, %v17738_v1  ;;  %v7528_v27 = vmul.f32 %v17817_v28, %v17748_v51  ;;  %v17822_v9 = vld [vmem:[#allocation343_spill] sm:$0xff] }
 0x486   : > { %v7529_v2 = vmul.f32 %v17818_v59, %v17808_v33  ;;  %v7530_v52 = vmul.f32 %v17820_v42, %v17819_v6  ;;  %v7531_v35 = vmul.f32 %v17820_v42, %v17749_v18  ;;  %v7532_v56 = vmul.f32 %v17821_v20, %v17759_v50 }
 0x487   : > { %v7533_v0 = vmul.f32 %v17822_v9, %v17769_v29  ;;  %v7534_v24 = vmul.f32 %v17823_v63, %v17779_v44  ;;  %v7535_v15 = vmul.f32 %v17824_v17, %v17780_v16  ;;  %v7536_v14 = vmul.f32 %v17816_v3, %v17792_v40  ;;  %v17904_v40 = vld [vmem:[#allocation82_spill] sm:$0xff]  ;;  %v17905_v16 = vld [vmem:[#allocation63_spill] sm:$0xff] }
 0x488   : > { %v7537_v45 = vmul.f32 %v17817_v28, %v17803_v4  ;;  %v7538_v57 = vmul.f32 %v17818_v59, %v17814_v38  ;;  %v7539_v58 = vmul.f32 %v17820_v42, %v17825_v23  ;;  %v7540_v62 = vmul.f32 %v17820_v42, %v17804_v36 }
 0x489   : > { %v7541_v32 = vmul.f32 %v17821_v20, %v17815_v53  ;;  %v7542_v7 = vmul.f32 %v17822_v9, %v17826_v54  ;;  %v7608_v30 = vadd.f32 %v7527_v8, %v7384_v26  ;;  %v7609_v48 = vadd.f32 %v7528_v27, %v7385_v41  ;;  %v17834_v27 = vld [vmem:[#allocation77_spill] sm:$0xff] }
 0x48a   : > { %v7610_v37 = vadd.f32 %v7529_v2, %v7386_v31  ;;  %v7611_v13 = vadd.f32 %v7530_v52, %v7387_v11  ;;  %v7612_v34 = vadd.f32 %v7531_v35, %v7388_v21  ;;  %v7613_v39 = vadd.f32 %v7532_v56, %v7389_v19  ;;  %v17827_v11 = vld [vmem:[#allocation3_spill] sm:$0xff]  ;;  %v17831_v19 = vld [vmem:[#allocation288_spill] sm:$0xff]  ;;  %v17835_v2 = vld [vmem:[#allocation213_spill] sm:$0xff] }
 0x48b   : > { %v7614_v60 = vadd.f32 %v7533_v0, %v7390_v47  ;;  %v7615_v59 = vadd.f32 %v7534_v24, %v7391_v10  ;;  %v7616_v28 = vadd.f32 %v7535_v15, %v7392_v12  ;;  %v7617_v3 = vadd.f32 %v7536_v14, %v7393_v25  ;;  %v17837_v56 = vld [vmem:[#allocation215_spill] sm:$0xff]  ;;  %v17840_v24 = vld [vmem:[#allocation89_spill] sm:$0xff] }
 0x48c   : > { %v7618_v23 = vadd.f32 %v7537_v45, %v7394_v43  ;;  %v7619_v17 = vadd.f32 %v7538_v57, %v7395_v5  ;;  %v7620_v63 = vadd.f32 %v7539_v58, %v7396_v46  ;;  %v7621_v42 = vadd.f32 %v7540_v62, %v7397_v55  ;;  %v17829_v5 = vld [vmem:[#allocation331_spill] sm:$0xff]  ;;  %v17841_v45 = vld [vmem:[#allocation76_spill] sm:$0xff]  ;;  %v17842_v57 = vld [vmem:[#allocation90_spill] sm:$0xff] }
 0x48d   : > { %v7622_v49 = vadd.f32 %v7541_v32, %v7398_v61  ;;  %v7623_v36 = vadd.f32 %v7542_v7, %v7399_v22  ;;  %v7934_v20 = vcombine.low %v7608_v30, %v7609_v48  ;;  %v7935_v53 = vcombine.low %v7610_v37, %v7611_v13  ;;  %v17843_v62 = vld [vmem:[#allocation225_spill] sm:$0xff]  ;;  %v17844_v32 = vld [vmem:[#allocation80_spill] sm:$0xff] }
 0x48e   : > { %v7936_v38 = vcombine.low %v7612_v34, %v7613_v39  ;;  %v7937_v9 = vcombine.low %v7614_v60, %v7615_v59  ;;  %v7983_v8 = vcombine.low %v7616_v28, %v7617_v3  ;;  %v7984_v26 = vcombine.low %v7618_v23, %v7619_v17  ;;  %v17828_v3 = vld [vmem:[#allocation336_spill] sm:$0xff]  ;;  %v17833_v28 = vld [vmem:[#allocation209_spill] sm:$0xff]  ;;  %v17847_v34 = vld [vmem:[#allocation222_spill] sm:$0xff] }
 0x48f   : > { %v7985_v41 = vcombine.low %v7620_v63, %v7621_v42  ;;  %v7986_v31 = vcombine.low %v7622_v49, %v7623_v36  ;;  %v7944_v21 = vrot.slane %v7934_v20, %v17827_v11  ;;  %v7951_v10 = vrot.slane %v7935_v53, %v17827_v11  ;;  %v17836_v42 = vld [vmem:[#allocation79_spill] sm:$0xff]  ;;  %v17839_v63 = vld [vmem:[#allocation332_spill] sm:$0xff]  ;;  %v17846_v37 = vld [vmem:[#allocation81_spill] sm:$0xff] }
 0x490   : > { %v7958_v25 = vrot.slane %v7936_v38, %v17827_v11  ;;  %v7965_v12 = vrot.slane %v7937_v9, %v17827_v11  ;;  %v7993_v46 = vrot.slane %v7983_v8, %v17827_v11  ;;  %v8000_v22 = vrot.slane %v7984_v26, %v17827_v11  ;;  %v17838_v9 = vld [vmem:[#allocation87_spill] sm:$0xff]  ;;  %v17845_v48 = vld [vmem:[#allocation164_spill] sm:$0xff] }
 0x491   : > { %v8007_v61 = vrot.slane %v7985_v41, %v17827_v11  ;;  %v8014_v55 = vrot.slane %v7986_v31, %v17827_v11  ;;  %v13925_v43 = vmul.f32 %v17829_v5, %v17828_v3  ;;  %v7966_v36 = vcombine.low %v7944_v21, %v7951_v10  ;;  %v17848_v60 = vld [vmem:[#allocation223_spill] sm:$0xff]  ;;  %v17850_v31 = vld [vmem:[#allocation221_spill] sm:$0xff]  ;;  %v17851_v10 = vld [vmem:[#allocation50_spill] sm:$0xff] }
 0x492   : > { %v7967_v49 = vcombine.low %v7958_v25, %v7965_v12  ;;  %v13929_v53 = vcombine.high %v17831_v19, %v17831_v19  ;;  %v8015_v38 = vcombine.low %v7993_v46, %v8000_v22  ;;  %v2167_v59 = vmul.f32 %v17834_v27, %v17833_v28  ;;  %v17849_v26 = vld [vmem:[#allocation231_spill] sm:$0xff]  ;;  %v17852_v12 = vld [vmem:[#allocation229_spill] sm:$0xff]  ;;  %v17853_v22 = vld [vmem:[#allocation44_spill] sm:$0xff] }
 0x493   : > { %17830 = vst [vmem:[#allocation152_spill] sm:$0xff] %v13925_v43  ;;  %v8016_v47 = vcombine.low %v8007_v61, %v8014_v55  ;;  %v2168_v52 = vmul.f32 %v17836_v42, %v17835_v2  ;;  %v7974_v35 = vrot.slane %v7966_v36, %v17827_v11  ;;  %v2169_v0 = vmul.f32 %v17838_v9, %v17837_v56  ;;  %v17854_v55 = vld [vmem:[#allocation47_spill] sm:$0xff] }
 0x494   : > { %17832 = vst [vmem:[#allocation153_spill] sm:$0xff] %v13929_v53  ;;  %v7981_v20 = vrot.slane %v7967_v49, %v17827_v11  ;;  %v2170_v17 = vmul.f32 %v17840_v24, %v17839_v63  ;;  %v8023_v15 = vrot.slane %v8015_v38, %v17827_v11  ;;  %v2171_v58 = vmul.f32 %v17842_v57, %v17841_v45  ;;  %v17855_v49 = vld [vmem:[#allocation154_spill] sm:$0xff]  ;;  %v17856_v38 = vld [vmem:[#allocation91_spill] sm:$0xff] }
 0x495   : > { %v8030_v14 = vrot.slane %v8016_v47, %v17827_v11  ;;  %v2174_v7 = vmul.f32 %v17844_v32, %v17843_v62  ;;  %v2175_v13 = vmul.f32 %v17846_v37, %v17845_v48  ;;  %v2176_v39 = vmul.f32 %v17834_v27, %v17847_v34  ;;  %v17859_v62 = vld [vmem:[#allocation88_spill] sm:$0xff] }
 0x496   : > { %v7982_v30 = vcombine.low %v7974_v35, %v7981_v20  ;;  %v2177_v23 = vmul.f32 %v17836_v42, %v17848_v60  ;;  %v2178_v41 = vmul.f32 %v17838_v9, %v17849_v26  ;;  %v2179_v21 = vmul.f32 %v17840_v24, %v17850_v31  ;;  %v17857_v35 = vld [vmem:[#allocation45_spill] sm:$0xff]  ;;  %v17860_v24 = vld [vmem:[#allocation230_spill] sm:$0xff] }
 0x497   : > { %v8031_v8 = vcombine.low %v8023_v15, %v8030_v14  ;;  %v2391_v25 = vmul.f32 %v17851_v10, %v17835_v2  ;;  %v2180_v46 = vmul.f32 %v17842_v57, %v17852_v12  ;;  %v2392_v61 = vmul.f32 %v17853_v22, %v17837_v56  ;;  %v17858_v15 = vld [vmem:[#allocation73_spill] sm:$0xff] }
 0x498   : > { %v2393_v36 = vmul.f32 %v17854_v55, %v17839_v63  ;;  %v2395_v47 = vmul.f32 %v17856_v38, %v17855_v49  ;;  %v2398_v20 = vmul.f32 %v17857_v35, %v17845_v48  ;;  %v2399_v14 = vmul.f32 %v17858_v15, %v17847_v34 }
 0x499   : > { %v8255_v28 = vpack.c.bf16 %v8031_v8, %v7982_v30  ;;  %v2400_v2 = vmul.f32 %v17851_v10, %v17848_v60  ;;  %v2394_v32 = vmul.f32 %v17859_v62, %v17841_v45  ;;  %v2401_v43 = vmul.f32 %v17853_v22, %v17849_v26 }
 0x49a   : > { %v2403_v57 = vmul.f32 %v17859_v62, %v17852_v12  ;;  %v2404_v30 = vmul.f32 %v17856_v38, %v17860_v24  ;;  %v2402_v48 = vmul.f32 %v17854_v55, %v17850_v31  ;;  %v2472_v8 = vadd.f32 %v2391_v25, %v2167_v59  ;;  %v17861_v62 = vld [vmem:[#allocation55_spill] sm:$0xff]  ;;  %v17863_v55 = vld [vmem:[#allocation54_spill] sm:$0xff] }
 0x49b   : > { %8874 = vmatprep.mubr.bf16.mxu0 %v8255_v28  ;;  %v2473_v35 = vadd.f32 %v2392_v61, %v2168_v52  ;;  %v2474_v15 = vadd.f32 %v2393_v36, %v2169_v0  ;;  %v2475_v10 = vadd.f32 %v2394_v32, %v2170_v17  ;;  %v2476_v9 = vadd.f32 %v2395_v47, %v2171_v58  ;;  %v17862_v28 = vld [vmem:[#allocation53_spill] sm:$0xff]  ;;  %v17864_v52 = vld [vmem:[#allocation94_spill] sm:$0xff]  ;;  %v17865_v17 = vld [vmem:[#allocation155_spill] sm:$0xff] }
 0x49c   : > { %v2479_v42 = vadd.f32 %v2398_v20, %v2174_v7  ;;  %v2480_v27 = vadd.f32 %v2399_v14, %v2175_v13  ;;  %v2481_v37 = vadd.f32 %v2400_v2, %v2176_v39  ;;  %v2482_v3 = vadd.f32 %v2401_v43, %v2177_v23  ;;  %v17866_v58 = vld [vmem:[#allocation95_spill] sm:$0xff]  ;;  %v17867_v43 = vld [vmem:[#allocation48_spill] sm:$0xff] }
 0x49d   : > { %v2483_v22 = vadd.f32 %v2402_v48, %v2178_v41  ;;  %v2484_v11 = vadd.f32 %v2403_v57, %v2179_v21  ;;  %v2485_v19 = vadd.f32 %v2404_v30, %v2180_v46  ;;  %v2615_v5 = vmul.f32 %v17861_v62, %v17837_v56  ;;  %v17868_v56 = vld [vmem:[#allocation93_spill] sm:$0xff] }
 0x49e   : > { %v2616_v38 = vmul.f32 %v17862_v28, %v17839_v63  ;;  %v2617_v59 = vmul.f32 %v17863_v55, %v17841_v45  ;;  %v2618_v0 = vmul.f32 %v17864_v52, %v17855_v49  ;;  %v2619_v7 = vmul.f32 %v17866_v58, %v17865_v17  ;;  %v17869_v21 = vld [vmem:[#allocation253_spill] sm:$0xff] }
 0x49f   : > { %v2622_v13 = vmul.f32 %v17867_v43, %v17847_v34  ;;  %v2624_v57 = vmul.f32 %v17861_v62, %v17849_v26  ;;  %v2623_v39 = vmul.f32 %v17868_v56, %v17848_v60  ;;  %v2625_v23 = vmul.f32 %v17862_v28, %v17850_v31 }
 0x4a0   : > { %v2626_v41 = vmul.f32 %v17863_v55, %v17852_v12  ;;  %v2628_v25 = vmul.f32 %v17866_v58, %v17869_v21  ;;  %v2627_v46 = vmul.f32 %v17864_v52, %v17860_v24  ;;  %v2696_v61 = vadd.f32 %v2615_v5, %v2472_v8  ;;  %v17870_v55 = vld [vmem:[#allocation59_spill] sm:$0xff]  ;;  %v17871_v58 = vld [vmem:[#allocation56_spill] sm:$0xff]  ;;  %v17872_v52 = vld [vmem:[#allocation57_spill] sm:$0xff] }
 0x4a1   : > { %v2697_v36 = vadd.f32 %v2616_v38, %v2473_v35  ;;  %v2698_v47 = vadd.f32 %v2617_v59, %v2474_v15  ;;  %v2699_v20 = vadd.f32 %v2618_v0, %v2475_v10  ;;  %v2700_v14 = vadd.f32 %v2619_v7, %v2476_v9  ;;  %v17873_v38 = vld [vmem:[#allocation98_spill] sm:$0xff]  ;;  %v17878_v35 = vld [vmem:[#allocation232_spill] sm:$0xff] }
 0x4a2   : > { %v2703_v2 = vadd.f32 %v2622_v13, %v2479_v42  ;;  %v2704_v32 = vadd.f32 %v2623_v39, %v2480_v27  ;;  %v2705_v30 = vadd.f32 %v2624_v57, %v2481_v37  ;;  %v2706_v48 = vadd.f32 %v2625_v23, %v2482_v3  ;;  %v17874_v9 = vld [vmem:[#allocation218_spill] sm:$0xff]  ;;  %v17875_v42 = vld [vmem:[#allocation99_spill] sm:$0xff]  ;;  %v17876_v3 = vld [vmem:[#allocation52_spill] sm:$0xff] }
 0x4a3   : > { %v2707_v43 = vadd.f32 %v2626_v41, %v2483_v22  ;;  %v2708_v28 = vadd.f32 %v2627_v46, %v2484_v11  ;;  %v2709_v62 = vadd.f32 %v2628_v25, %v2485_v19  ;;  %v2839_v56 = vmul.f32 %v17870_v55, %v17839_v63  ;;  %v17877_v11 = vld [vmem:[#allocation97_spill] sm:$0xff] }
 0x4a4   : > { %v2840_v53 = vmul.f32 %v17871_v58, %v17841_v45  ;;  %v2841_v5 = vmul.f32 %v17872_v52, %v17855_v49  ;;  %v2842_v10 = vmul.f32 %v17873_v38, %v17865_v17  ;;  %v2843_v27 = vmul.f32 %v17875_v42, %v17874_v9 }
 0x4a5   : > { %v2846_v37 = vmul.f32 %v17876_v3, %v17848_v60  ;;  %v2847_v19 = vmul.f32 %v17877_v11, %v17849_v26  ;;  %v2848_v63 = vmul.f32 %v17870_v55, %v17850_v31  ;;  %v2849_v22 = vmul.f32 %v17871_v58, %v17852_v12 }
 0x4a6   : > { %v2850_v15 = vmul.f32 %v17872_v52, %v17860_v24  ;;  %v2851_v8 = vmul.f32 %v17873_v38, %v17869_v21  ;;  %v2852_v59 = vmul.f32 %v17875_v42, %v17878_v35  ;;  %v2920_v0 = vadd.f32 %v2839_v56, %v2696_v61  ;;  %v17879_v52 = vld [vmem:[#allocation65_spill] sm:$0xff]  ;;  %v17881_v42 = vld [vmem:[#allocation64_spill] sm:$0xff] }
 0x4a7   : > { %v2921_v7 = vadd.f32 %v2840_v53, %v2697_v36  ;;  %v2922_v13 = vadd.f32 %v2841_v5, %v2698_v47  ;;  %v2923_v57 = vadd.f32 %v2842_v10, %v2699_v20  ;;  %v2924_v39 = vadd.f32 %v2843_v27, %v2700_v14  ;;  %v17880_v38 = vld [vmem:[#allocation61_spill] sm:$0xff]  ;;  %v17882_v53 = vld [vmem:[#allocation102_spill] sm:$0xff]  ;;  %v17884_v47 = vld [vmem:[#allocation103_spill] sm:$0xff] }
 0x4a8   : > { %v2927_v23 = vadd.f32 %v2846_v37, %v2703_v2  ;;  %v2928_v41 = vadd.f32 %v2847_v19, %v2704_v32  ;;  %v2929_v25 = vadd.f32 %v2848_v63, %v2705_v30  ;;  %v2930_v46 = vadd.f32 %v2849_v22, %v2706_v48  ;;  %v17883_v36 = vld [vmem:[#allocation217_spill] sm:$0xff]  ;;  %v17885_v14 = vld [vmem:[#allocation58_spill] sm:$0xff]  ;;  %v17887_v30 = vld [vmem:[#allocation227_spill] sm:$0xff] }
 0x4a9   : > { %v2931_v3 = vadd.f32 %v2850_v15, %v2707_v43  ;;  %v2932_v58 = vadd.f32 %v2851_v8, %v2708_v28  ;;  %v2933_v55 = vadd.f32 %v2852_v59, %v2709_v62  ;;  %v3063_v11 = vmul.f32 %v17879_v52, %v17841_v45  ;;  %v17886_v62 = vld [vmem:[#allocation101_spill] sm:$0xff] }
 0x4aa   : > { %v3064_v54 = vmul.f32 %v17880_v38, %v17855_v49  ;;  %v3065_v56 = vmul.f32 %v17881_v42, %v17865_v17  ;;  %v3066_v61 = vmul.f32 %v17882_v53, %v17874_v9  ;;  %v3067_v20 = vmul.f32 %v17884_v47, %v17883_v36  ;;  %v17888_v36 = vld [vmem:[#allocation135_spill] sm:$0xff] }
 0x4ab   : > { %v3070_v2 = vmul.f32 %v17885_v14, %v17849_v26  ;;  %v3071_v28 = vmul.f32 %v17886_v62, %v17850_v31  ;;  %v3072_v45 = vmul.f32 %v17879_v52, %v17852_v12  ;;  %v3073_v49 = vmul.f32 %v17880_v38, %v17860_v24 }
 0x4ac   : > { %v3074_v17 = vmul.f32 %v17881_v42, %v17869_v21  ;;  %v3075_v32 = vmul.f32 %v17882_v53, %v17878_v35  ;;  %v3076_v48 = vmul.f32 %v17884_v47, %v17887_v30  ;;  %v3144_v43 = vadd.f32 %v3063_v11, %v2920_v0  ;;  %v17889_v53 = vld [vmem:[#allocation60_spill] sm:$0xff]  ;;  %v17890_v47 = vld [vmem:[#allocation67_spill] sm:$0xff] }
 0x4ad   : > { %v3145_v5 = vadd.f32 %v3064_v54, %v2921_v7  ;;  %v3146_v10 = vadd.f32 %v3065_v56, %v2922_v13  ;;  %v3147_v9 = vadd.f32 %v3066_v61, %v2923_v57  ;;  %v3148_v27 = vadd.f32 %v3067_v20, %v2924_v39  ;;  %v17891_v54 = vld [vmem:[#allocation68_spill] sm:$0xff]  ;;  %v17892_v7 = vld [vmem:[#allocation159_spill] sm:$0xff]  ;;  %v17893_v57 = vld [vmem:[#allocation62_spill] sm:$0xff] }
 0x4ae   : > { %v3151_v37 = vadd.f32 %v3070_v2, %v2927_v23  ;;  %v3152_v19 = vadd.f32 %v3071_v28, %v2928_v41  ;;  %v3153_v63 = vadd.f32 %v3072_v45, %v2929_v25  ;;  %v3154_v22 = vadd.f32 %v3073_v49, %v2930_v46  ;;  %v17896_v41 = vld [vmem:[#allocation233_spill] sm:$0xff]  ;;  %v17898_v46 = vld [vmem:[#allocation236_spill] sm:$0xff]  ;;  %v17900_v20 = vld [vmem:[#allocation239_spill] sm:$0xff] }
 0x4af   : > { %v3155_v15 = vadd.f32 %v3074_v17, %v2931_v3  ;;  %v3156_v8 = vadd.f32 %v3075_v32, %v2932_v58  ;;  %v3157_v59 = vadd.f32 %v3076_v48, %v2933_v55  ;;  %v3287_v14 = vmul.f32 %v17888_v36, %v17847_v34  ;;  %v17894_v58 = vld [vmem:[#allocation226_spill] sm:$0xff]  ;;  %v17897_v34 = vld [vmem:[#allocation107_spill] sm:$0xff]  ;;  %v17899_v56 = vld [vmem:[#allocation240_spill] sm:$0xff] }
 0x4b0   : > { %v3288_v42 = vmul.f32 %v17889_v53, %v17848_v60  ;;  %v3289_v11 = vmul.f32 %v17890_v47, %v17849_v26  ;;  %v3290_v0 = vmul.f32 %v17891_v54, %v17850_v31  ;;  %v3291_v13 = vmul.f32 %v17892_v7, %v17852_v12  ;;  %v17895_v55 = vld [vmem:[#allocation66_spill] sm:$0xff]  ;;  %v17901_v28 = vld [vmem:[#allocation241_spill] sm:$0xff]  ;;  %v17902_v49 = vld [vmem:[#allocation203_spill] sm:$0xff] }
 0x4b1   : > { %v3292_v39 = vmul.f32 %v17893_v57, %v17860_v24  ;;  %v3294_v23 = vmul.f32 %v17895_v55, %v17894_v58  ;;  %v3295_v25 = vmul.f32 %v17897_v34, %v17896_v41  ;;  %v3296_v3 = vmul.f32 %v17888_v36, %v17898_v46  ;;  %v17903_v34 = vld [vmem:[#allocation228_spill] sm:$0xff] }
 0x4b2   : > { %v3297_v61 = vmul.f32 %v17889_v53, %v17899_v56  ;;  %v3298_v2 = vmul.f32 %v17890_v47, %v17900_v20  ;;  %v3299_v45 = vmul.f32 %v17891_v54, %v17901_v28  ;;  %v3300_v17 = vmul.f32 %v17892_v7, %v17902_v49 }
 0x4b3   : > { %v3368_v32 = vadd.f32 %v3287_v14, %v3144_v43  ;;  %v3369_v48 = vadd.f32 %v3288_v42, %v3145_v5  ;;  %v3370_v57 = vadd.f32 %v3289_v11, %v3146_v10  ;;  %v3371_v58 = vadd.f32 %v3290_v0, %v3147_v9  ;;  %v17906_v42 = vld [vmem:[#allocation71_spill] sm:$0xff]  ;;  %v17907_v5 = vld [vmem:[#allocation72_spill] sm:$0xff]  ;;  %v17908_v9 = vld [vmem:[#allocation69_spill] sm:$0xff] }
 0x4b4   : > { %v3372_v55 = vadd.f32 %v3291_v13, %v3148_v27  ;;  %v3373_v38 = vadd.f32 %v3292_v39, %v17903_v34  ;;  %v3375_v36 = vadd.f32 %v3294_v23, %v3151_v37  ;;  %v3376_v52 = vadd.f32 %v3295_v25, %v3152_v19  ;;  %v17909_v37 = vld [vmem:[#allocation160_spill] sm:$0xff]  ;;  %v17912_v0 = vld [vmem:[#allocation247_spill] sm:$0xff] }
 0x4b5   : > { %v3377_v62 = vadd.f32 %v3296_v3, %v3153_v63  ;;  %v3378_v53 = vadd.f32 %v3297_v61, %v3154_v22  ;;  %v3379_v6 = vadd.f32 %v3298_v2, %v3155_v15  ;;  %v3380_v4 = vadd.f32 %v3299_v45, %v3156_v8  ;;  %v17910_v63 = vld [vmem:[#allocation70_spill] sm:$0xff] }
 0x4b6   : > { %v3381_v47 = vadd.f32 %v3300_v17, %v3157_v59  ;;  %v3511_v54 = vmul.f32 %v17904_v40, %v17848_v60  ;;  %v3512_v7 = vmul.f32 %v17905_v16, %v17849_v26  ;;  %v3513_v43 = vmul.f32 %v17906_v42, %v17850_v31  ;;  %v17911_v60 = vld [vmem:[#allocation136_spill] sm:$0xff] }
 0x4b7   : > { %v3514_v10 = vmul.f32 %v17907_v5, %v17852_v12  ;;  %v3516_v27 = vmul.f32 %v17908_v9, %v17869_v21  ;;  %v3515_v19 = vmul.f32 %v17909_v37, %v17860_v24  ;;  %v3518_v22 = vmul.f32 %v17910_v63, %v17896_v41 }
 0x4b8   : > { %v3519_v15 = vmul.f32 %v17911_v60, %v17898_v46  ;;  %v3520_v8 = vmul.f32 %v17904_v40, %v17899_v56  ;;  %v3521_v59 = vmul.f32 %v17905_v16, %v17900_v20  ;;  %v3522_v14 = vmul.f32 %v17906_v42, %v17901_v28  ;;  %v17913_v42 = vld [vmem:[#allocation86_spill] sm:$0xff] }
 0x4b9   : > { %v3523_v11 = vmul.f32 %v17907_v5, %v17902_v49  ;;  %v3524_v13 = vmul.f32 %v17909_v37, %v17912_v0  ;;  %v3592_v39 = vadd.f32 %v3511_v54, %v3368_v32  ;;  %v3593_v23 = vadd.f32 %v3512_v7, %v3369_v48  ;;  %v17914_v5 = vld [vmem:[#allocation74_spill] sm:$0xff]  ;;  %v17915_v54 = vld [vmem:[#allocation84_spill] sm:$0xff]  ;;  %v17916_v32 = vld [vmem:[#allocation85_spill] sm:$0xff] }
 0x4ba   : > { %v3594_v34 = vadd.f32 %v3513_v43, %v3370_v57  ;;  %v3595_v25 = vadd.f32 %v3514_v10, %v3371_v58  ;;  %v3596_v3 = vadd.f32 %v3515_v19, %v3372_v55  ;;  %v3597_v61 = vadd.f32 %v3516_v27, %v3373_v38  ;;  %v17917_v38 = vld [vmem:[#allocation161_spill] sm:$0xff] }
 0x4bb   : > { %v3599_v2 = vadd.f32 %v3518_v22, %v3375_v36  ;;  %v3600_v45 = vadd.f32 %v3519_v15, %v3376_v52  ;;  %v3601_v17 = vadd.f32 %v3520_v8, %v3377_v62  ;;  %v3602_v9 = vadd.f32 %v3521_v59, %v3378_v53  ;;  %v17918_v53 = vld [vmem:[#allocation83_spill] sm:$0xff] }
 0x4bc   : > { %v3603_v63 = vadd.f32 %v3522_v14, %v3379_v6  ;;  %v3604_v16 = vadd.f32 %v3523_v11, %v3380_v4  ;;  %v3605_v40 = vadd.f32 %v3524_v13, %v3381_v47  ;;  %v3735_v60 = vmul.f32 %v17913_v42, %v17849_v26  ;;  %v17919_v4 = vld [vmem:[#allocation75_spill] sm:$0xff]  ;;  %v17920_v26 = vld [vmem:[#allocation137_spill] sm:$0xff] }
 0x4bd   : > { %v3736_v41 = vmul.f32 %v17914_v5, %v17850_v31  ;;  %v3737_v7 = vmul.f32 %v17915_v54, %v17852_v12  ;;  %v3738_v48 = vmul.f32 %v17916_v32, %v17860_v24  ;;  %v3739_v52 = vmul.f32 %v17917_v38, %v17869_v21 }
 0x4be   : > { %v3740_v6 = vmul.f32 %v17918_v53, %v17878_v35  ;;  %v3742_v47 = vmul.f32 %v17919_v4, %v17898_v46  ;;  %v3743_v62 = vmul.f32 %v17920_v26, %v17899_v56  ;;  %v3744_v36 = vmul.f32 %v17913_v42, %v17900_v20 }
 0x4bf   : > { %v3745_v57 = vmul.f32 %v17914_v5, %v17901_v28  ;;  %v3746_v58 = vmul.f32 %v17915_v54, %v17902_v49  ;;  %v3747_v55 = vmul.f32 %v17916_v32, %v17912_v0  ;;  %v3748_v43 = vmul.f32 %v17917_v38, %v17738_v1  ;;  %v17921_v54 = vld [vmem:[#allocation10_spill] sm:$0xff]  ;;  %v17922_v32 = vld [vmem:[#allocation108_spill] sm:$0xff] }
 0x4c0   : > { %v3816_v10 = vadd.f32 %v3735_v60, %v3592_v39  ;;  %v3817_v27 = vadd.f32 %v3736_v41, %v3593_v23  ;;  %v3818_v19 = vadd.f32 %v3737_v7, %v3594_v34  ;;  %v3819_v22 = vadd.f32 %v3738_v48, %v3595_v25  ;;  %v17923_v60 = vld [vmem:[#allocation8_spill] sm:$0xff]  ;;  %v17924_v39 = vld [vmem:[#allocation9_spill] sm:$0xff]  ;;  %v17925_v34 = vld [vmem:[#allocation163_spill] sm:$0xff] }
 0x4c1   : > { %v3820_v15 = vadd.f32 %v3739_v52, %v3596_v3  ;;  %v3821_v8 = vadd.f32 %v3740_v6, %v3597_v61  ;;  %v3823_v59 = vadd.f32 %v3742_v47, %v3599_v2  ;;  %v3824_v14 = vadd.f32 %v3743_v62, %v3600_v45  ;;  %v17926_v3 = vld [vmem:[#allocation13_spill] sm:$0xff] }
 0x4c2   : > { %v3825_v11 = vadd.f32 %v3744_v36, %v3601_v17  ;;  %v3826_v13 = vadd.f32 %v3745_v57, %v3602_v9  ;;  %v3827_v53 = vadd.f32 %v3746_v58, %v3603_v63  ;;  %v3828_v4 = vadd.f32 %v3747_v55, %v3604_v16  ;;  %v17927_v16 = vld [vmem:[#allocation109_spill] sm:$0xff] }
 0x4c3   : > { %v3829_v5 = vadd.f32 %v3748_v43, %v3605_v40  ;;  %v3959_v42 = vmul.f32 %v17921_v54, %v17850_v31  ;;  %v3960_v26 = vmul.f32 %v17922_v32, %v17852_v12  ;;  %v3961_v41 = vmul.f32 %v17923_v60, %v17860_v24  ;;  %v17928_v31 = vld [vmem:[#allocation303_spill] sm:$0xff] }
 0x4c4   : > { %v3962_v23 = vmul.f32 %v17924_v39, %v17869_v21  ;;  %v3963_v25 = vmul.f32 %v17925_v34, %v17878_v35  ;;  %v3964_v61 = vmul.f32 %v17926_v3, %v17887_v30  ;;  %v3966_v40 = vmul.f32 %v17927_v16, %v17899_v56 }
 0x4c5   : > { %v3967_v2 = vmul.f32 %v17928_v31, %v17900_v20  ;;  %v3968_v45 = vmul.f32 %v17921_v54, %v17901_v28  ;;  %v3969_v17 = vmul.f32 %v17922_v32, %v17902_v49  ;;  %v3970_v9 = vmul.f32 %v17923_v60, %v17912_v0  ;;  %v17929_v60 = vld [vmem:[#allocation267_spill] sm:$0xff] }
 0x4c6   : > { %v3971_v63 = vmul.f32 %v17924_v39, %v17738_v1  ;;  %v3972_v7 = vmul.f32 %v17925_v34, %v17748_v51  ;;  %v4040_v48 = vadd.f32 %v3959_v42, %v3816_v10  ;;  %v4041_v52 = vadd.f32 %v3960_v26, %v3817_v27  ;;  %v17930_v39 = vld [vmem:[#allocation112_spill] sm:$0xff]  ;;  %v17931_v42 = vld [vmem:[#allocation114_spill] sm:$0xff] }
 0x4c7   : > { %v4042_v6 = vadd.f32 %v3961_v41, %v3818_v19  ;;  %v4043_v47 = vadd.f32 %v3962_v23, %v3819_v22  ;;  %v4044_v62 = vadd.f32 %v3963_v25, %v3820_v15  ;;  %v4045_v36 = vadd.f32 %v3964_v61, %v3821_v8  ;;  %v17932_v10 = vld [vmem:[#allocation150_spill] sm:$0xff]  ;;  %v17933_v19 = vld [vmem:[#allocation5_spill] sm:$0xff] }
 0x4c8   : > { %v4047_v57 = vadd.f32 %v3966_v40, %v3823_v59  ;;  %v4048_v58 = vadd.f32 %v3967_v2, %v3824_v14  ;;  %v4049_v55 = vadd.f32 %v3968_v45, %v3825_v11  ;;  %v4050_v43 = vadd.f32 %v3969_v17, %v3826_v13  ;;  %v17934_v15 = vld [vmem:[#allocation258_spill] sm:$0xff] }
 0x4c9   : > { %v4051_v3 = vadd.f32 %v3970_v9, %v3827_v53  ;;  %v4052_v16 = vadd.f32 %v3971_v63, %v3828_v4  ;;  %v4053_v32 = vadd.f32 %v3972_v7, %v3829_v5  ;;  %v4183_v54 = vmul.f32 %v17929_v60, %v17852_v12  ;;  %v17935_v8 = vld [vmem:[#allocation110_spill] sm:$0xff]  ;;  %v17936_v5 = vld [vmem:[#allocation113_spill] sm:$0xff]  ;;  %v17937_v12 = vld [vmem:[#allocation304_spill] sm:$0xff] }
 0x4ca   : > { %v4184_v31 = vmul.f32 %v17930_v39, %v17860_v24  ;;  %v4185_v26 = vmul.f32 %v17931_v42, %v17869_v21  ;;  %v4186_v27 = vmul.f32 %v17932_v10, %v17878_v35  ;;  %v4187_v22 = vmul.f32 %v17933_v19, %v17887_v30 }
 0x4cb   : > { %v4188_v59 = vmul.f32 %v17935_v8, %v17934_v15  ;;  %v4190_v14 = vmul.f32 %v17936_v5, %v17900_v20  ;;  %v4191_v11 = vmul.f32 %v17937_v12, %v17901_v28  ;;  %v4192_v24 = vmul.f32 %v17929_v60, %v17902_v49  ;;  %v17938_v15 = vld [vmem:[#allocation306_spill] sm:$0xff]  ;;  %v17939_v5 = vld [vmem:[#allocation116_spill] sm:$0xff] }
 0x4cc   : > { %v4193_v21 = vmul.f32 %v17930_v39, %v17912_v0  ;;  %v4194_v35 = vmul.f32 %v17931_v42, %v17738_v1  ;;  %v4195_v30 = vmul.f32 %v17932_v10, %v17748_v51  ;;  %v4196_v13 = vmul.f32 %v17933_v19, %v17808_v33 }
 0x4cd   : > { %v4264_v53 = vadd.f32 %v4183_v54, %v4040_v48  ;;  %v4265_v4 = vadd.f32 %v4184_v31, %v4041_v52  ;;  %v4266_v41 = vadd.f32 %v4185_v26, %v4042_v6  ;;  %v4267_v23 = vadd.f32 %v4186_v27, %v4043_v47  ;;  %v17940_v54 = vld [vmem:[#allocation118_spill] sm:$0xff]  ;;  %v17942_v6 = vld [vmem:[#allocation51_spill] sm:$0xff] }
 0x4ce   : > { %v4268_v25 = vadd.f32 %v4187_v22, %v4044_v62  ;;  %v4269_v61 = vadd.f32 %v4188_v59, %v4045_v36  ;;  %v4271_v40 = vadd.f32 %v4190_v14, %v4047_v57  ;;  %v4272_v2 = vadd.f32 %v4191_v11, %v4048_v58  ;;  %v17941_v48 = vld [vmem:[#allocation162_spill] sm:$0xff]  ;;  %v17943_v62 = vld [vmem:[#allocation115_spill] sm:$0xff] }
 0x4cf   : > { %v4273_v45 = vadd.f32 %v4192_v24, %v4049_v55  ;;  %v4274_v17 = vadd.f32 %v4193_v21, %v4050_v43  ;;  %v4275_v9 = vadd.f32 %v4194_v35, %v4051_v3  ;;  %v4276_v63 = vadd.f32 %v4195_v30, %v4052_v16  ;;  %v17944_v57 = vld [vmem:[#allocation242_spill] sm:$0xff]  ;;  %v17946_v55 = vld [vmem:[#allocation248_spill] sm:$0xff]  ;;  %v17947_v43 = vld [vmem:[#allocation305_spill] sm:$0xff] }
 0x4d0   : > { %v4277_v7 = vadd.f32 %v4196_v13, %v4053_v32  ;;  %v4407_v8 = vmul.f32 %v17938_v15, %v17898_v46  ;;  %v4408_v10 = vmul.f32 %v17939_v5, %v17899_v56  ;;  %v4409_v31 = vmul.f32 %v17940_v54, %v17900_v20  ;;  %v17945_v32 = vld [vmem:[#allocation117_spill] sm:$0xff]  ;;  %v17948_v16 = vld [vmem:[#allocation251_spill] sm:$0xff] }
 0x4d1   : > { %v4410_v52 = vmul.f32 %v17941_v48, %v17901_v28  ;;  %v4411_v47 = vmul.f32 %v17942_v6, %v17902_v49  ;;  %v4412_v36 = vmul.f32 %v17943_v62, %v17912_v0  ;;  %v4414_v58 = vmul.f32 %v17945_v32, %v17944_v57 }
 0x4d2   : > { %v4415_v3 = vmul.f32 %v17947_v43, %v17946_v55  ;;  %v4416_v26 = vmul.f32 %v17938_v15, %v17948_v16  ;;  %v4417_v27 = vmul.f32 %v17939_v5, %v17749_v18  ;;  %v4418_v22 = vmul.f32 %v17940_v54, %v17759_v50  ;;  %v17949_v54 = vld [vmem:[#allocation308_spill] sm:$0xff] }
 0x4d3   : > { %v4419_v59 = vmul.f32 %v17941_v48, %v17769_v29  ;;  %v4420_v14 = vmul.f32 %v17942_v6, %v17779_v44  ;;  %v4488_v11 = vadd.f32 %v4407_v8, %v4264_v53  ;;  %v4489_v24 = vadd.f32 %v4408_v10, %v4265_v4  ;;  %v17950_v48 = vld [vmem:[#allocation121_spill] sm:$0xff]  ;;  %v17951_v53 = vld [vmem:[#allocation123_spill] sm:$0xff]  ;;  %v17952_v4 = vld [vmem:[#allocation104_spill] sm:$0xff] }
 0x4d4   : > { %v4490_v21 = vadd.f32 %v4409_v31, %v4266_v41  ;;  %v4491_v35 = vadd.f32 %v4410_v52, %v4267_v23  ;;  %v4492_v30 = vadd.f32 %v4411_v47, %v4268_v25  ;;  %v4493_v13 = vadd.f32 %v4412_v36, %v4269_v61  ;;  %v17953_v23 = vld [vmem:[#allocation78_spill] sm:$0xff]  ;;  %v17954_v61 = vld [vmem:[#allocation119_spill] sm:$0xff]  ;;  %v17957_v52 = vld [vmem:[#allocation256_spill] sm:$0xff] }
 0x4d5   : > { %v4495_v57 = vadd.f32 %v4414_v58, %v4271_v40  ;;  %v4496_v32 = vadd.f32 %v4415_v3, %v4272_v2  ;;  %v4497_v62 = vadd.f32 %v4416_v26, %v4273_v45  ;;  %v4498_v15 = vadd.f32 %v4417_v27, %v4274_v17  ;;  %v17955_v2 = vld [vmem:[#allocation122_spill] sm:$0xff]  ;;  %v17956_v17 = vld [vmem:[#allocation307_spill] sm:$0xff] }
 0x4d6   : > { %v4499_v5 = vadd.f32 %v4418_v22, %v4275_v9  ;;  %v4500_v43 = vadd.f32 %v4419_v59, %v4276_v63  ;;  %v4501_v19 = vadd.f32 %v4420_v14, %v4277_v7  ;;  %v4631_v42 = vmul.f32 %v17949_v54, %v17899_v56  ;;  %v18058_v56 = vld [vmem:[#allocation204_spill] sm:$0xff] }
 0x4d7   : > { %v4632_v39 = vmul.f32 %v17950_v48, %v17900_v20  ;;  %v4633_v10 = vmul.f32 %v17951_v53, %v17901_v28  ;;  %v4634_v41 = vmul.f32 %v17952_v4, %v17902_v49  ;;  %v4635_v25 = vmul.f32 %v17953_v23, %v17912_v0 }
 0x4d8   : > { %v4636_v40 = vmul.f32 %v17954_v61, %v17738_v1  ;;  %v4638_v45 = vmul.f32 %v17955_v2, %v17946_v55  ;;  %v4639_v9 = vmul.f32 %v17956_v17, %v17948_v16  ;;  %v4640_v63 = vmul.f32 %v17949_v54, %v17749_v18 }
 0x4d9   : > { %v4641_v7 = vmul.f32 %v17950_v48, %v17759_v50  ;;  %v4642_v8 = vmul.f32 %v17951_v53, %v17769_v29  ;;  %v4643_v31 = vmul.f32 %v17952_v4, %v17779_v44  ;;  %v4644_v47 = vmul.f32 %v17953_v23, %v17957_v52  ;;  %v17958_v53 = vld [vmem:[#allocation310_spill] sm:$0xff]  ;;  %v17959_v4 = vld [vmem:[#allocation125_spill] sm:$0xff] }
 0x4da   : > { %v4712_v36 = vadd.f32 %v4631_v42, %v4488_v11  ;;  %v4713_v58 = vadd.f32 %v4632_v39, %v4489_v24  ;;  %v4714_v3 = vadd.f32 %v4633_v10, %v4490_v21  ;;  %v4715_v26 = vadd.f32 %v4634_v41, %v4491_v35  ;;  %v17960_v42 = vld [vmem:[#allocation11_spill] sm:$0xff]  ;;  %v17961_v11 = vld [vmem:[#allocation105_spill] sm:$0xff]  ;;  %v17962_v21 = vld [vmem:[#allocation4_spill] sm:$0xff] }
 0x4db   : > { %v4716_v27 = vadd.f32 %v4635_v25, %v4492_v30  ;;  %v4717_v22 = vadd.f32 %v4636_v40, %v4493_v13  ;;  %v4719_v59 = vadd.f32 %v4638_v45, %v4495_v57  ;;  %v4720_v14 = vadd.f32 %v4639_v9, %v4496_v32  ;;  %v17966_v41 = vld [vmem:[#allocation257_spill] sm:$0xff] }
 0x4dc   : > { %v4721_v2 = vadd.f32 %v4640_v63, %v4497_v62  ;;  %v4722_v61 = vadd.f32 %v4641_v7, %v4498_v15  ;;  %v4723_v48 = vadd.f32 %v4642_v8, %v4499_v5  ;;  %v4724_v54 = vadd.f32 %v4643_v31, %v4500_v43  ;;  %v17963_v15 = vld [vmem:[#allocation124_spill] sm:$0xff]  ;;  %v17965_v43 = vld [vmem:[#allocation309_spill] sm:$0xff] }
 0x4dd   : > { %v4725_v17 = vadd.f32 %v4644_v47, %v4501_v19  ;;  %v4855_v6 = vmul.f32 %v17958_v53, %v17900_v20  ;;  %v4856_v60 = vmul.f32 %v17959_v4, %v17901_v28  ;;  %v4857_v39 = vmul.f32 %v17960_v42, %v17902_v49  ;;  %v17964_v19 = vld [vmem:[#allocation126_spill] sm:$0xff] }
 0x4de   : > { %v4858_v24 = vmul.f32 %v17961_v11, %v17912_v0  ;;  %v4859_v35 = vmul.f32 %v17962_v21, %v17738_v1  ;;  %v4860_v5 = vmul.f32 %v17963_v15, %v17748_v51  ;;  %v4862_v62 = vmul.f32 %v17964_v19, %v17948_v16 }
 0x4df   : > { %v4863_v30 = vmul.f32 %v17965_v43, %v17749_v18  ;;  %v4864_v13 = vmul.f32 %v17958_v53, %v17759_v50  ;;  %v4865_v57 = vmul.f32 %v17959_v4, %v17769_v29  ;;  %v4866_v32 = vmul.f32 %v17960_v42, %v17779_v44  ;;  %v17967_v42 = vld [vmem:[#allocation312_spill] sm:$0xff] }
 0x4e0   : > { %v4867_v10 = vmul.f32 %v17961_v11, %v17957_v52  ;;  %v4868_v25 = vmul.f32 %v17962_v21, %v17966_v41  ;;  %v4936_v40 = vadd.f32 %v4855_v6, %v4712_v36  ;;  %v4937_v45 = vadd.f32 %v4856_v60, %v4713_v58  ;;  %v17968_v11 = vld [vmem:[#allocation128_spill] sm:$0xff]  ;;  %v17969_v6 = vld [vmem:[#allocation133_spill] sm:$0xff]  ;;  %v17970_v36 = vld [vmem:[#allocation106_spill] sm:$0xff] }
 0x4e1   : > { %v4938_v9 = vadd.f32 %v4857_v39, %v4714_v3  ;;  %v4939_v63 = vadd.f32 %v4858_v24, %v4715_v26  ;;  %v4940_v7 = vadd.f32 %v4859_v35, %v4716_v27  ;;  %v4941_v8 = vadd.f32 %v4860_v5, %v4717_v22  ;;  %v17971_v3 = vld [vmem:[#allocation168_spill] sm:$0xff]  ;;  %v17974_v27 = vld [vmem:[#allocation311_spill] sm:$0xff]  ;;  %v17975_v24 = vld [vmem:[#allocation262_spill] sm:$0xff] }
 0x4e2   : > { %v4943_v31 = vadd.f32 %v4862_v62, %v4719_v59  ;;  %v4944_v47 = vadd.f32 %v4863_v30, %v4720_v14  ;;  %v4945_v19 = vadd.f32 %v4864_v13, %v4721_v2  ;;  %v4946_v15 = vadd.f32 %v4865_v57, %v4722_v61  ;;  %v17972_v61 = vld [vmem:[#allocation127_spill] sm:$0xff] }
 0x4e3   : > { %v4947_v4 = vadd.f32 %v4866_v32, %v4723_v48  ;;  %v4948_v53 = vadd.f32 %v4867_v10, %v4724_v54  ;;  %v4949_v43 = vadd.f32 %v4868_v25, %v4725_v17  ;;  %v5079_v23 = vmul.f32 %v17967_v42, %v17901_v28  ;;  %v17973_v54 = vld [vmem:[#allocation129_spill] sm:$0xff] }
 0x4e4   : > { %v5080_v12 = vmul.f32 %v17968_v11, %v17902_v49  ;;  %v5081_v60 = vmul.f32 %v17969_v6, %v17912_v0  ;;  %v5082_v58 = vmul.f32 %v17970_v36, %v17738_v1  ;;  %v5083_v26 = vmul.f32 %v17971_v3, %v17748_v51 }
 0x4e5   : > { %v5084_v48 = vmul.f32 %v17972_v61, %v17808_v33  ;;  %v5086_v17 = vmul.f32 %v17973_v54, %v17749_v18  ;;  %v5087_v22 = vmul.f32 %v17974_v27, %v17759_v50  ;;  %v5088_v59 = vmul.f32 %v17967_v42, %v17769_v29 }
 0x4e6   : > { %v5089_v14 = vmul.f32 %v17968_v11, %v17779_v44  ;;  %v5090_v2 = vmul.f32 %v17969_v6, %v17957_v52  ;;  %v5091_v39 = vmul.f32 %v17970_v36, %v17966_v41  ;;  %v5092_v35 = vmul.f32 %v17971_v3, %v17975_v24  ;;  %v17976_v6 = vld [vmem:[#allocation314_spill] sm:$0xff]  ;;  %v17977_v36 = vld [vmem:[#allocation131_spill] sm:$0xff] }
 0x4e7   : > { %v5160_v5 = vadd.f32 %v5079_v23, %v4936_v40  ;;  %v5161_v62 = vadd.f32 %v5080_v12, %v4937_v45  ;;  %v5162_v30 = vadd.f32 %v5081_v60, %v4938_v9  ;;  %v5163_v13 = vadd.f32 %v5082_v58, %v4939_v63  ;;  %v17978_v23 = vld [vmem:[#allocation134_spill] sm:$0xff]  ;;  %v17979_v40 = vld [vmem:[#allocation147_spill] sm:$0xff] }
 0x4e8   : > { %v5164_v57 = vadd.f32 %v5083_v26, %v4940_v7  ;;  %v5165_v32 = vadd.f32 %v5084_v48, %v4941_v8  ;;  %v5167_v10 = vadd.f32 %v5086_v17, %v4943_v31  ;;  %v5168_v25 = vadd.f32 %v5087_v22, %v4944_v47  ;;  %v17980_v9 = vld [vmem:[#allocation171_spill] sm:$0xff]  ;;  %v17981_v7 = vld [vmem:[#allocation260_spill] sm:$0xff]  ;;  %v17984_v8 = vld [vmem:[#allocation313_spill] sm:$0xff] }
 0x4e9   : > { %v5169_v54 = vadd.f32 %v5088_v59, %v4945_v19  ;;  %v5170_v61 = vadd.f32 %v5089_v14, %v4946_v15  ;;  %v5171_v11 = vadd.f32 %v5090_v2, %v4947_v4  ;;  %v5172_v42 = vadd.f32 %v5091_v39, %v4948_v53  ;;  %v17982_v15 = vld [vmem:[#allocation130_spill] sm:$0xff]  ;;  %v17983_v53 = vld [vmem:[#allocation132_spill] sm:$0xff] }
 0x4ea   : > { %v5173_v27 = vadd.f32 %v5092_v35, %v4949_v43  ;;  %v5303_v21 = vmul.f32 %v17976_v6, %v17902_v49  ;;  %v5304_v34 = vmul.f32 %v17977_v36, %v17912_v0  ;;  %v5305_v12 = vmul.f32 %v17978_v23, %v17738_v1  ;;  %v17985_v26 = vld [vmem:[#allocation264_spill] sm:$0xff] }
 0x4eb   : > { %v5306_v45 = vmul.f32 %v17979_v40, %v17748_v51  ;;  %v5307_v63 = vmul.f32 %v17980_v9, %v17808_v33  ;;  %v5308_v4 = vmul.f32 %v17982_v15, %v17981_v7  ;;  %v5310_v43 = vmul.f32 %v17983_v53, %v17759_v50 }
 0x4ec   : > { %v5311_v31 = vmul.f32 %v17984_v8, %v17769_v29  ;;  %v5312_v47 = vmul.f32 %v17976_v6, %v17779_v44  ;;  %v5313_v19 = vmul.f32 %v17977_v36, %v17957_v52  ;;  %v5314_v60 = vmul.f32 %v17978_v23, %v17966_v41  ;;  %v17986_v23 = vld [vmem:[#allocation316_spill] sm:$0xff] }
 0x4ed   : > { %v5315_v58 = vmul.f32 %v17979_v40, %v17975_v24  ;;  %v5316_v48 = vmul.f32 %v17980_v9, %v17985_v26  ;;  %v5384_v17 = vadd.f32 %v5303_v21, %v5160_v5  ;;  %v5385_v22 = vadd.f32 %v5304_v34, %v5161_v62  ;;  %v17987_v40 = vld [vmem:[#allocation92_spill] sm:$0xff]  ;;  %v17988_v21 = vld [vmem:[#allocation151_spill] sm:$0xff] }
 0x4ee   : > { %v5386_v59 = vadd.f32 %v5305_v12, %v5162_v30  ;;  %v5387_v14 = vadd.f32 %v5306_v45, %v5163_v13  ;;  %v5388_v2 = vadd.f32 %v5307_v63, %v5164_v57  ;;  %v5389_v39 = vadd.f32 %v5308_v4, %v5165_v32  ;;  %v17989_v5 = vld [vmem:[#allocation156_spill] sm:$0xff]  ;;  %v17990_v30 = vld [vmem:[#allocation146_spill] sm:$0xff]  ;;  %v17997_v45 = vld [vmem:[#allocation271_spill] sm:$0xff] }
 0x4ef   : > { %v5391_v35 = vadd.f32 %v5310_v43, %v5167_v10  ;;  %v5392_v7 = vadd.f32 %v5311_v31, %v5168_v25  ;;  %v5393_v53 = vadd.f32 %v5312_v47, %v5169_v54  ;;  %v5394_v15 = vadd.f32 %v5313_v19, %v5170_v61  ;;  %v17991_v61 = vld [vmem:[#allocation138_spill] sm:$0xff]  ;;  %v17995_v10 = vld [vmem:[#allocation315_spill] sm:$0xff]  ;;  %v17996_v54 = vld [vmem:[#allocation49_spill] sm:$0xff] }
 0x4f0   : > { %v5395_v36 = vadd.f32 %v5314_v60, %v5171_v11  ;;  %v5396_v6 = vadd.f32 %v5315_v58, %v5172_v42  ;;  %v5397_v8 = vadd.f32 %v5316_v48, %v5173_v27  ;;  %v5527_v3 = vmul.f32 %v17986_v23, %v17948_v16  ;;  %v17992_v42 = vld [vmem:[#allocation265_spill] sm:$0xff]  ;;  %v17993_v27 = vld [vmem:[#allocation142_spill] sm:$0xff]  ;;  %v17998_v4 = vld [vmem:[#allocation276_spill] sm:$0xff] }
 0x4f1   : > { %v5528_v38 = vmul.f32 %v17987_v40, %v17749_v18  ;;  %v5529_v34 = vmul.f32 %v17988_v21, %v17759_v50  ;;  %v5530_v62 = vmul.f32 %v17989_v5, %v17769_v29  ;;  %v5531_v13 = vmul.f32 %v17990_v30, %v17779_v44  ;;  %v17994_v32 = vld [vmem:[#allocation266_spill] sm:$0xff]  ;;  %v17999_v31 = vld [vmem:[#allocation279_spill] sm:$0xff]  ;;  %v18000_v19 = vld [vmem:[#allocation269_spill] sm:$0xff] }
 0x4f2   : > { %v5532_v11 = vmul.f32 %v17991_v61, %v17957_v52  ;;  %v5534_v57 = vmul.f32 %v17993_v27, %v17992_v42  ;;  %v5535_v25 = vmul.f32 %v17995_v10, %v17994_v32  ;;  %v5536_v12 = vmul.f32 %v17986_v23, %v17996_v54 }
 0x4f3   : > { %v5537_v63 = vmul.f32 %v17987_v40, %v17997_v45  ;;  %v5538_v43 = vmul.f32 %v17988_v21, %v17998_v4  ;;  %v5539_v47 = vmul.f32 %v17989_v5, %v17999_v31  ;;  %v5540_v60 = vmul.f32 %v17990_v30, %v18000_v19  ;;  %v18001_v21 = vld [vmem:[#allocation318_spill] sm:$0xff]  ;;  %v18002_v5 = vld [vmem:[#allocation148_spill] sm:$0xff] }
 0x4f4   : > { %v5608_v58 = vadd.f32 %v5527_v3, %v5384_v17  ;;  %v5609_v48 = vadd.f32 %v5528_v38, %v5385_v22  ;;  %v5610_v42 = vadd.f32 %v5529_v34, %v5386_v59  ;;  %v5611_v27 = vadd.f32 %v5530_v62, %v5387_v14  ;;  %v18003_v3 = vld [vmem:[#allocation18_spill] sm:$0xff]  ;;  %v18004_v17 = vld [vmem:[#allocation41_spill] sm:$0xff]  ;;  %v18005_v59 = vld [vmem:[#allocation180_spill] sm:$0xff] }
 0x4f5   : > { %v5612_v61 = vadd.f32 %v5531_v13, %v5388_v2  ;;  %v5613_v10 = vadd.f32 %v5532_v11, %v5389_v39  ;;  %v5615_v9 = vadd.f32 %v5534_v57, %v5391_v35  ;;  %v5616_v23 = vadd.f32 %v5535_v25, %v5392_v7  ;;  %v18008_v2 = vld [vmem:[#allocation317_spill] sm:$0xff] }
 0x4f6   : > { %v5617_v37 = vadd.f32 %v5536_v12, %v5393_v53  ;;  %v5618_v16 = vadd.f32 %v5537_v63, %v5394_v15  ;;  %v5619_v40 = vadd.f32 %v5538_v43, %v5395_v36  ;;  %v5620_v55 = vadd.f32 %v5539_v47, %v5396_v6  ;;  %v18006_v15 = vld [vmem:[#allocation178_spill] sm:$0xff]  ;;  %v18009_v62 = vld [vmem:[#allocation273_spill] sm:$0xff] }
 0x4f7   : > { %v5621_v33 = vadd.f32 %v5540_v60, %v5397_v8  ;;  %v5751_v51 = vmul.f32 %v18001_v21, %v17749_v18  ;;  %v5752_v1 = vmul.f32 %v18002_v5, %v17759_v50  ;;  %v5753_v38 = vmul.f32 %v18003_v3, %v17769_v29  ;;  %v18007_v6 = vld [vmem:[#allocation302_spill] sm:$0xff] }
 0x4f8   : > { %v5754_v22 = vmul.f32 %v18004_v17, %v17779_v44  ;;  %v5755_v14 = vmul.f32 %v18005_v59, %v17957_v52  ;;  %v5756_v36 = vmul.f32 %v18006_v15, %v17966_v41  ;;  %v5758_v8 = vmul.f32 %v18007_v6, %v17994_v32 }
 0x4f9   : > { %v5759_v39 = vmul.f32 %v18008_v2, %v17996_v54  ;;  %v5760_v35 = vmul.f32 %v18001_v21, %v17997_v45  ;;  %v5761_v7 = vmul.f32 %v18002_v5, %v17998_v4  ;;  %v5762_v53 = vmul.f32 %v18003_v3, %v17999_v31  ;;  %v18010_v3 = vld [vmem:[#allocation320_spill] sm:$0xff] }
 0x4fa   : > { %v5763_v34 = vmul.f32 %v18004_v17, %v18000_v19  ;;  %v5764_v13 = vmul.f32 %v18005_v59, %v18009_v62  ;;  %v5832_v11 = vadd.f32 %v5751_v51, %v5608_v58  ;;  %v5833_v57 = vadd.f32 %v5752_v1, %v5609_v48  ;;  %v18011_v17 = vld [vmem:[#allocation16_spill] sm:$0xff]  ;;  %v18012_v51 = vld [vmem:[#allocation22_spill] sm:$0xff]  ;;  %v18013_v58 = vld [vmem:[#allocation149_spill] sm:$0xff] }
 0x4fb   : > { %v5834_v25 = vadd.f32 %v5753_v38, %v5610_v42  ;;  %v5835_v12 = vadd.f32 %v5754_v22, %v5611_v27  ;;  %v5836_v63 = vadd.f32 %v5755_v14, %v5612_v61  ;;  %v5837_v43 = vadd.f32 %v5756_v36, %v5613_v10  ;;  %v18018_v22 = vld [vmem:[#allocation274_spill] sm:$0xff] }
 0x4fc   : > { %v5839_v47 = vadd.f32 %v5758_v8, %v5615_v9  ;;  %v5840_v60 = vadd.f32 %v5759_v39, %v5616_v23  ;;  %v5841_v6 = vadd.f32 %v5760_v35, %v5617_v37  ;;  %v5842_v15 = vadd.f32 %v5761_v7, %v5618_v16  ;;  %v18014_v9 = vld [vmem:[#allocation176_spill] sm:$0xff]  ;;  %v18015_v37 = vld [vmem:[#allocation15_spill] sm:$0xff] }
 0x4fd   : > { %v5843_v5 = vadd.f32 %v5762_v53, %v5619_v40  ;;  %v5844_v21 = vadd.f32 %v5763_v34, %v5620_v55  ;;  %v5845_v2 = vadd.f32 %v5764_v13, %v5621_v33  ;;  %v5975_v30 = vmul.f32 %v18010_v3, %v17759_v50  ;;  %v18016_v33 = vld [vmem:[#allocation17_spill] sm:$0xff]  ;;  %v18017_v40 = vld [vmem:[#allocation319_spill] sm:$0xff] }
 0x4fe   : > { %v5976_v32 = vmul.f32 %v18011_v17, %v17769_v29  ;;  %v5977_v1 = vmul.f32 %v18012_v51, %v17779_v44  ;;  %v5978_v61 = vmul.f32 %v18013_v58, %v17957_v52  ;;  %v5979_v23 = vmul.f32 %v18014_v9, %v17966_v41 }
 0x4ff   : > { %v5980_v16 = vmul.f32 %v18015_v37, %v17975_v24  ;;  %v5982_v55 = vmul.f32 %v18016_v33, %v17996_v54  ;;  %v5983_v10 = vmul.f32 %v18017_v40, %v17997_v45  ;;  %v5984_v48 = vmul.f32 %v18010_v3, %v17998_v4 }
 0x500   : > { %v5985_v42 = vmul.f32 %v18011_v17, %v17999_v31  ;;  %v5986_v27 = vmul.f32 %v18012_v51, %v18000_v19  ;;  %v5987_v38 = vmul.f32 %v18013_v58, %v18009_v62  ;;  %v5988_v14 = vmul.f32 %v18014_v9, %v18018_v22  ;;  %v18019_v51 = vld [vmem:[#allocation321_spill] sm:$0xff]  ;;  %v18020_v58 = vld [vmem:[#allocation20_spill] sm:$0xff] }
 0x501   : > { %v6056_v36 = vadd.f32 %v5975_v30, %v5832_v11  ;;  %v6057_v8 = vadd.f32 %v5976_v32, %v5833_v57  ;;  %v6058_v39 = vadd.f32 %v5977_v1, %v5834_v25  ;;  %v6059_v35 = vadd.f32 %v5978_v61, %v5835_v12  ;;  %v18021_v30 = vld [vmem:[#allocation23_spill] sm:$0xff]  ;;  %v18022_v11 = vld [vmem:[#allocation169_spill] sm:$0xff]  ;;  %v18023_v25 = vld [vmem:[#allocation190_spill] sm:$0xff] }
 0x502   : > { %v6060_v7 = vadd.f32 %v5979_v23, %v5836_v63  ;;  %v6061_v53 = vadd.f32 %v5980_v16, %v5837_v43  ;;  %v6063_v34 = vadd.f32 %v5982_v55, %v5839_v47  ;;  %v6064_v13 = vadd.f32 %v5983_v10, %v5840_v60  ;;  %v18026_v43 = vld [vmem:[#allocation301_spill] sm:$0xff]  ;;  %v18027_v23 = vld [vmem:[#allocation278_spill] sm:$0xff] }
 0x503   : > { %v6065_v33 = vadd.f32 %v5984_v48, %v5841_v6  ;;  %v6066_v37 = vadd.f32 %v5985_v42, %v5842_v15  ;;  %v6067_v17 = vadd.f32 %v5986_v27, %v5843_v5  ;;  %v6068_v3 = vadd.f32 %v5987_v38, %v5844_v21  ;;  %v18024_v15 = vld [vmem:[#allocation19_spill] sm:$0xff] }
 0x504   : > { %v6069_v40 = vadd.f32 %v5988_v14, %v5845_v2  ;;  %v6199_v59 = vmul.f32 %v18019_v51, %v17769_v29  ;;  %v6200_v0 = vmul.f32 %v18020_v58, %v17779_v44  ;;  %v6201_v32 = vmul.f32 %v18021_v30, %v17957_v52  ;;  %v18025_v2 = vld [vmem:[#allocation21_spill] sm:$0xff]  ;;  %v18028_v14 = vld [vmem:[#allocation275_spill] sm:$0xff] }
 0x505   : > { %v6202_v57 = vmul.f32 %v18022_v11, %v17966_v41  ;;  %v6203_v12 = vmul.f32 %v18023_v25, %v17975_v24  ;;  %v6204_v5 = vmul.f32 %v18024_v15, %v17985_v26  ;;  %v6205_v21 = vmul.f32 %v18024_v15, %v17996_v54 }
 0x506   : > { %v6206_v63 = vmul.f32 %v18025_v2, %v17997_v45  ;;  %v6207_v47 = vmul.f32 %v18026_v43, %v17998_v4  ;;  %v6208_v60 = vmul.f32 %v18019_v51, %v17999_v31  ;;  %v6209_v6 = vmul.f32 %v18020_v58, %v18000_v19 }
 0x507   : > { %v6210_v1 = vmul.f32 %v18021_v30, %v18009_v62  ;;  %v6211_v61 = vmul.f32 %v18022_v11, %v18018_v22  ;;  %v6212_v16 = vmul.f32 %v18023_v25, %v18027_v23  ;;  %v6280_v55 = vadd.f32 %v6199_v59, %v6056_v36  ;;  %v18029_v11 = vld [vmem:[#allocation323_spill] sm:$0xff]  ;;  %v18030_v25 = vld [vmem:[#allocation25_spill] sm:$0xff] }
 0x508   : > { %v6281_v10 = vadd.f32 %v6200_v0, %v6057_v8  ;;  %v6282_v48 = vadd.f32 %v6201_v32, %v6058_v39  ;;  %v6283_v42 = vadd.f32 %v6202_v57, %v6059_v35  ;;  %v6284_v27 = vadd.f32 %v6203_v12, %v6060_v7  ;;  %v18031_v0 = vld [vmem:[#allocation28_spill] sm:$0xff]  ;;  %v18032_v8 = vld [vmem:[#allocation181_spill] sm:$0xff]  ;;  %v18033_v35 = vld [vmem:[#allocation179_spill] sm:$0xff] }
 0x509   : > { %v6285_v38 = vadd.f32 %v6204_v5, %v6061_v53  ;;  %v6286_v2 = vadd.f32 %v6205_v21, %v18028_v14  ;;  %v6287_v15 = vadd.f32 %v6206_v63, %v6063_v34  ;;  %v6288_v51 = vadd.f32 %v6207_v47, %v6064_v13  ;;  %v18036_v53 = vld [vmem:[#allocation322_spill] sm:$0xff]  ;;  %v18038_v21 = vld [vmem:[#allocation153_spill] sm:$0xff] }
 0x50a   : > { %v6289_v58 = vadd.f32 %v6208_v60, %v6065_v33  ;;  %v6290_v43 = vadd.f32 %v6209_v6, %v6066_v37  ;;  %v6291_v9 = vadd.f32 %v6210_v1, %v6067_v17  ;;  %v6292_v30 = vadd.f32 %v6211_v61, %v6068_v3  ;;  %v18034_v37 = vld [vmem:[#allocation24_spill] sm:$0xff]  ;;  %v18035_v3 = vld [vmem:[#allocation26_spill] sm:$0xff] }
 0x50b   : > { %v6293_v29 = vadd.f32 %v6212_v16, %v6069_v40  ;;  %v6423_v50 = vmul.f32 %v18029_v11, %v17779_v44  ;;  %v6424_v59 = vmul.f32 %v18030_v25, %v17957_v52  ;;  %v6425_v36 = vmul.f32 %v18031_v0, %v17966_v41  ;;  %v18037_v12 = vld [vmem:[#allocation270_spill] sm:$0xff]  ;;  %v18040_v16 = vld [vmem:[#allocation193_spill] sm:$0xff] }
 0x50c   : > { %v6426_v39 = vmul.f32 %v18032_v8, %v17975_v24  ;;  %v6427_v7 = vmul.f32 %v18033_v35, %v17985_v26  ;;  %v6429_v17 = vmul.f32 %v18034_v37, %v17997_v45  ;;  %v6430_v40 = vmul.f32 %v18035_v3, %v17998_v4 }
 0x50d   : > { %v6431_v34 = vmul.f32 %v18036_v53, %v17999_v31  ;;  %v6432_v13 = vmul.f32 %v18029_v11, %v18000_v19  ;;  %v6433_v33 = vmul.f32 %v18030_v25, %v18009_v62  ;;  %v6434_v32 = vmul.f32 %v18031_v0, %v18018_v22 }
 0x50e   : > { %v6435_v57 = vmul.f32 %v18032_v8, %v18027_v23  ;;  %v6436_v5 = vmul.f32 %v18033_v35, %v18037_v12  ;;  %v14451_v63 = vmul.f32 %v18034_v37, %v18038_v21  ;;  %v6504_v47 = vadd.f32 %v6423_v50, %v6280_v55  ;;  %v18041_v35 = vld [vmem:[#allocation325_spill] sm:$0xff]  ;;  %v18042_v37 = vld [vmem:[#allocation30_spill] sm:$0xff] }
 0x50f   : > { %v6505_v60 = vadd.f32 %v6424_v59, %v6281_v10  ;;  %v6506_v6 = vadd.f32 %v6425_v36, %v6282_v48  ;;  %v6507_v1 = vadd.f32 %v6426_v39, %v6283_v42  ;;  %v6508_v61 = vadd.f32 %v6427_v7, %v6284_v27  ;;  %v18043_v55 = vld [vmem:[#allocation34_spill] sm:$0xff]  ;;  %v18049_v27 = vld [vmem:[#allocation31_spill] sm:$0xff]  ;;  %v18051_v59 = vld [vmem:[#allocation324_spill] sm:$0xff] }
 0x510   : > { %18039 = vst [vmem:[#allocation157_spill] sm:$0xff] %v14451_v63  ;;  %v6509_v14 = vadd.f32 %v18040_v16, %v6285_v38  ;;  %v6510_v3 = vadd.f32 %v6429_v17, %v6286_v2  ;;  %v6511_v25 = vadd.f32 %v6430_v40, %v6287_v15  ;;  %v6512_v0 = vadd.f32 %v6431_v34, %v6288_v51  ;;  %v18044_v48 = vld [vmem:[#allocation170_spill] sm:$0xff]  ;;  %v18045_v15 = vld [vmem:[#allocation192_spill] sm:$0xff]  ;;  %v18053_v17 = vld [vmem:[#allocation281_spill] sm:$0xff] }
 0x511   : > { %v6513_v11 = vadd.f32 %v6432_v13, %v6289_v58  ;;  %v6514_v53 = vadd.f32 %v6433_v33, %v6290_v43  ;;  %v6515_v8 = vadd.f32 %v6434_v32, %v6291_v9  ;;  %v6516_v26 = vadd.f32 %v6435_v57, %v6292_v30  ;;  %v18046_v58 = vld [vmem:[#allocation27_spill] sm:$0xff]  ;;  %v18047_v30 = vld [vmem:[#allocation296_spill] sm:$0xff]  ;;  %v18048_v43 = vld [vmem:[#allocation282_spill] sm:$0xff] }
 0x512   : > { %v6517_v24 = vadd.f32 %v6436_v5, %v6293_v29  ;;  %v6647_v41 = vmul.f32 %v18041_v35, %v17996_v54  ;;  %v6648_v50 = vmul.f32 %v18042_v37, %v17997_v45  ;;  %v6649_v10 = vmul.f32 %v18043_v55, %v17998_v4  ;;  %v18050_v2 = vld [vmem:[#allocation272_spill] sm:$0xff]  ;;  %v18054_v34 = vld [vmem:[#allocation285_spill] sm:$0xff]  ;;  %v18055_v33 = vld [vmem:[#allocation283_spill] sm:$0xff] }
 0x513   : > { %v6650_v42 = vmul.f32 %v18044_v48, %v17999_v31  ;;  %v6651_v51 = vmul.f32 %v18045_v15, %v18000_v19  ;;  %v6652_v9 = vmul.f32 %v18046_v58, %v18009_v62  ;;  %v6653_v29 = vmul.f32 %v18046_v58, %v18047_v30  ;;  %v18052_v39 = vld [vmem:[#allocation280_spill] sm:$0xff]  ;;  %v18057_v16 = vld [vmem:[#allocation289_spill] sm:$0xff] }
 0x514   : > { %v6654_v38 = vmul.f32 %v18049_v27, %v18048_v43  ;;  %v6655_v36 = vmul.f32 %v18051_v59, %v18050_v2  ;;  %v6656_v7 = vmul.f32 %v18041_v35, %v18052_v39  ;;  %v6657_v40 = vmul.f32 %v18042_v37, %v18053_v17  ;;  %v18056_v57 = vld [vmem:[#allocation284_spill] sm:$0xff] }
 0x515   : > { %v6658_v13 = vmul.f32 %v18043_v55, %v18054_v34  ;;  %v6659_v32 = vmul.f32 %v18044_v48, %v18055_v33  ;;  %v6660_v5 = vmul.f32 %v18045_v15, %v18056_v57  ;;  %v6661_v30 = vmul.f32 %v18046_v58, %v18057_v16  ;;  %v18059_v15 = vld [vmem:[#allocation330_spill] sm:$0xff] }
 0x516   : > { %v6728_v27 = vadd.f32 %v6647_v41, %v6504_v47  ;;  %v6729_v59 = vadd.f32 %v6648_v50, %v6505_v60  ;;  %v6730_v63 = vadd.f32 %v6649_v10, %v6506_v6  ;;  %v6731_v54 = vadd.f32 %v6650_v42, %v6507_v1  ;;  %v18060_v41 = vld [vmem:[#allocation32_spill] sm:$0xff]  ;;  %v18061_v60 = vld [vmem:[#allocation35_spill] sm:$0xff] }
 0x517   : > { %v6732_v35 = vadd.f32 %v6651_v51, %v6508_v61  ;;  %v6733_v52 = vadd.f32 %v6652_v9, %v6509_v14  ;;  %v6734_v44 = vadd.f32 %v6653_v29, %v6510_v3  ;;  %v6735_v37 = vadd.f32 %v6654_v38, %v6511_v25  ;;  %v18062_v1 = vld [vmem:[#allocation12_spill] sm:$0xff]  ;;  %v18066_v61 = vld [vmem:[#allocation326_spill] sm:$0xff]  ;;  %v18067_v9 = vld [vmem:[#allocation291_spill] sm:$0xff] }
 0x518   : > { %v6736_v18 = vadd.f32 %v6655_v36, %v6512_v0  ;;  %v6737_v49 = vadd.f32 %v6656_v7, %v6513_v11  ;;  %v6738_v55 = vadd.f32 %v6657_v40, %v6514_v53  ;;  %v6739_v28 = vadd.f32 %v6658_v13, %v6515_v8  ;;  %v18063_v11 = vld [vmem:[#allocation214_spill] sm:$0xff]  ;;  %v18065_v8 = vld [vmem:[#allocation33_spill] sm:$0xff] }
 0x519   : > { %v6740_v20 = vadd.f32 %v6659_v32, %v6516_v26  ;;  %v6741_v48 = vadd.f32 %v6660_v5, %v6517_v24  ;;  %v6742_v46 = vadd.f32 %v6661_v30, %v18058_v56  ;;  %v6871_v21 = vmul.f32 %v18059_v15, %v17997_v45  ;;  %v18064_v26 = vld [vmem:[#allocation29_spill] sm:$0xff] }
 0x51a   : > { %v6872_v47 = vmul.f32 %v18060_v41, %v17998_v4  ;;  %v6873_v6 = vmul.f32 %v18061_v60, %v17999_v31  ;;  %v6874_v25 = vmul.f32 %v18062_v1, %v18000_v19  ;;  %v6875_v0 = vmul.f32 %v18063_v11, %v18009_v62 }
 0x51b   : > { %v6876_v24 = vmul.f32 %v18064_v26, %v18018_v22  ;;  %v6877_v56 = vmul.f32 %v18064_v26, %v18048_v43  ;;  %v6878_v53 = vmul.f32 %v18065_v8, %v18050_v2  ;;  %v6879_v14 = vmul.f32 %v18066_v61, %v18052_v39 }
 0x51c   : > { %v6880_v3 = vmul.f32 %v18059_v15, %v18053_v17  ;;  %v6881_v50 = vmul.f32 %v18060_v41, %v18054_v34  ;;  %v6882_v10 = vmul.f32 %v18061_v60, %v18055_v33  ;;  %v6883_v42 = vmul.f32 %v18062_v1, %v18056_v57 }
 0x51d   : > { %v6884_v51 = vmul.f32 %v18063_v11, %v18057_v16  ;;  %v6885_v29 = vmul.f32 %v18064_v26, %v18067_v9  ;;  %v6952_v43 = vadd.f32 %v6871_v21, %v6728_v27  ;;  %v6953_v38 = vadd.f32 %v6872_v47, %v6729_v59  ;;  %v18068_v11 = vld [vmem:[#allocation167_spill] sm:$0xff]  ;;  %v18069_v26 = vld [vmem:[#allocation37_spill] sm:$0xff] }
 0x51e   : > { %v6954_v36 = vadd.f32 %v6873_v6, %v6730_v63  ;;  %v6955_v7 = vadd.f32 %v6874_v25, %v6731_v54  ;;  %v6956_v40 = vadd.f32 %v6875_v0, %v6732_v35  ;;  %v6957_v13 = vadd.f32 %v6876_v24, %v6733_v52  ;;  %v18070_v63 = vld [vmem:[#allocation40_spill] sm:$0xff]  ;;  %v18071_v52 = vld [vmem:[#allocation175_spill] sm:$0xff]  ;;  %v18074_v35 = vld [vmem:[#allocation38_spill] sm:$0xff] }
 0x51f   : > { %v6958_v32 = vadd.f32 %v6877_v56, %v6734_v44  ;;  %v6959_v5 = vadd.f32 %v6878_v53, %v6735_v37  ;;  %v6960_v30 = vadd.f32 %v6879_v14, %v6736_v18  ;;  %v6961_v8 = vadd.f32 %v6880_v3, %v6737_v49  ;;  %v18072_v18 = vld [vmem:[#allocation331_spill] sm:$0xff]  ;;  %v18076_v0 = vld [vmem:[#allocation288_spill] sm:$0xff] }
 0x520   : > { %v6962_v60 = vadd.f32 %v6881_v50, %v6738_v55  ;;  %v6963_v41 = vadd.f32 %v6882_v10, %v6739_v28  ;;  %v6964_v15 = vadd.f32 %v6883_v42, %v6740_v20  ;;  %v6965_v1 = vadd.f32 %v6884_v51, %v6741_v48  ;;  %v18073_v28 = vld [vmem:[#allocation36_spill] sm:$0xff]  ;;  %v18075_v55 = vld [vmem:[#allocation207_spill] sm:$0xff] }
 0x521   : > { %v6966_v61 = vadd.f32 %v6885_v29, %v6742_v46  ;;  %v7095_v58 = vmul.f32 %v18068_v11, %v17998_v4  ;;  %v7096_v21 = vmul.f32 %v18069_v26, %v17999_v31  ;;  %v7097_v54 = vmul.f32 %v18070_v63, %v18000_v19  ;;  %v18077_v56 = vld [vmem:[#allocation295_spill] sm:$0xff]  ;;  %v18078_v4 = vld [vmem:[#allocation224_spill] sm:$0xff] }
 0x522   : > { %v7098_v44 = vmul.f32 %v18071_v52, %v18009_v62  ;;  %v7099_v49 = vmul.f32 %v18072_v18, %v18018_v22  ;;  %v7100_v20 = vmul.f32 %v18073_v28, %v18027_v23  ;;  %v7101_v46 = vmul.f32 %v18073_v28, %v18050_v2 }
 0x523   : > { %v7102_v37 = vmul.f32 %v18074_v35, %v18052_v39  ;;  %v7103_v48 = vmul.f32 %v18075_v55, %v18053_v17  ;;  %v7104_v59 = vmul.f32 %v18068_v11, %v18054_v34  ;;  %v7105_v27 = vmul.f32 %v18069_v26, %v18055_v33 }
 0x524   : > { %v7106_v47 = vmul.f32 %v18070_v63, %v18056_v57  ;;  %v7107_v6 = vmul.f32 %v18071_v52, %v18057_v16  ;;  %v7108_v25 = vmul.f32 %v18072_v18, %v18067_v9  ;;  %v7109_v24 = vmul.f32 %v18073_v28, %v18076_v0  ;;  %v18079_v0 = vld [vmem:[#allocation341_spill] sm:$0xff] }
 0x525   : > { %v7110_v53 = vmul.f32 %v18073_v28, %v18077_v56  ;;  %v7176_v14 = vadd.f32 %v7095_v58, %v6952_v43  ;;  %v7177_v3 = vadd.f32 %v7096_v21, %v6953_v38  ;;  %v7178_v50 = vadd.f32 %v7097_v54, %v6954_v36  ;;  %v18080_v58 = vld [vmem:[#allocation42_spill] sm:$0xff] }
 0x526   : > { %v7179_v10 = vadd.f32 %v7098_v44, %v6955_v7  ;;  %v7180_v42 = vadd.f32 %v7099_v49, %v6956_v40  ;;  %v7181_v51 = vadd.f32 %v7100_v20, %v6957_v13  ;;  %v7182_v29 = vadd.f32 %v7101_v46, %v6958_v32  ;;  %v18081_v38 = vld [vmem:[#allocation46_spill] sm:$0xff]  ;;  %v18082_v7 = vld [vmem:[#allocation340_spill] sm:$0xff]  ;;  %v18086_v32 = vld [vmem:[#allocation339_spill] sm:$0xff] }
 0x527   : > { %v7183_v63 = vadd.f32 %v7102_v37, %v6959_v5  ;;  %v7184_v26 = vadd.f32 %v7103_v48, %v6960_v30  ;;  %v7185_v11 = vadd.f32 %v7104_v59, %v6961_v8  ;;  %v7186_v52 = vadd.f32 %v7105_v27, %v6962_v60  ;;  %v18083_v60 = vld [vmem:[#allocation342_spill] sm:$0xff]  ;;  %v18087_v44 = vld [vmem:[#allocation288_spill] sm:$0xff] }
 0x528   : > { %v7187_v55 = vadd.f32 %v7106_v47, %v6963_v41  ;;  %v7188_v35 = vadd.f32 %v7107_v6, %v6964_v15  ;;  %v7189_v18 = vadd.f32 %v7108_v25, %v6965_v1  ;;  %v7190_v2 = vadd.f32 %v7109_v24, %v6966_v61  ;;  %v18084_v15 = vld [vmem:[#allocation39_spill] sm:$0xff]  ;;  %v18088_v20 = vld [vmem:[#allocation290_spill] sm:$0xff] }
 0x529   : > { %v7191_v45 = vadd.f32 %v7110_v53, %v18078_v4  ;;  %v7319_v28 = vmul.f32 %v18079_v0, %v17999_v31  ;;  %v7320_v43 = vmul.f32 %v18080_v58, %v18000_v19  ;;  %v7321_v36 = vmul.f32 %v18081_v38, %v18009_v62  ;;  %v18085_v61 = vld [vmem:[#allocation43_spill] sm:$0xff]  ;;  %v18089_v37 = vld [vmem:[#allocation298_spill] sm:$0xff]  ;;  %v18090_v31 = vld [vmem:[#allocation345_spill] sm:$0xff] }
 0x52a   : > { %v7322_v40 = vmul.f32 %v18082_v7, %v18018_v22  ;;  %v7323_v41 = vmul.f32 %v18083_v60, %v18027_v23  ;;  %v7324_v1 = vmul.f32 %v18084_v15, %v18037_v12  ;;  %v7325_v4 = vmul.f32 %v18084_v15, %v18052_v39 }
 0x52b   : > { %v7326_v13 = vmul.f32 %v18085_v61, %v18053_v17  ;;  %v7327_v5 = vmul.f32 %v18086_v32, %v18054_v34  ;;  %v7328_v30 = vmul.f32 %v18079_v0, %v18055_v33  ;;  %v7329_v8 = vmul.f32 %v18080_v58, %v18056_v57 }
 0x52c   : > { %v7330_v21 = vmul.f32 %v18081_v38, %v18057_v16  ;;  %v7331_v54 = vmul.f32 %v18082_v7, %v18067_v9  ;;  %v7332_v49 = vmul.f32 %v18083_v60, %v18087_v44  ;;  %v7333_v46 = vmul.f32 %v18084_v15, %v18088_v20 }
 0x52d   : > { %v7334_v48 = vmul.f32 %v18084_v15, %v18089_v37  ;;  %v7400_v59 = vadd.f32 %v7319_v28, %v7176_v14  ;;  %v7401_v27 = vadd.f32 %v7320_v43, %v7177_v3  ;;  %v7402_v47 = vadd.f32 %v7321_v36, %v7178_v50  ;;  %v18091_v28 = vld [vmem:[#allocation2_spill] sm:$0xff]  ;;  %v18092_v3 = vld [vmem:[#allocation111_spill] sm:$0xff] }
 0x52e   : > { %v7403_v6 = vadd.f32 %v7322_v40, %v7179_v10  ;;  %v7404_v25 = vadd.f32 %v7323_v41, %v7180_v42  ;;  %v7405_v24 = vadd.f32 %v7324_v1, %v7181_v51  ;;  %v7406_v53 = vadd.f32 %v7325_v4, %v7182_v29  ;;  %v18093_v10 = vld [vmem:[#allocation344_spill] sm:$0xff]  ;;  %v18098_v42 = vld [vmem:[#allocation343_spill] sm:$0xff]  ;;  %v18099_v41 = vld [vmem:[#allocation290_spill] sm:$0xff] }
 0x52f   : > { %v7407_v38 = vadd.f32 %v7326_v13, %v7183_v63  ;;  %v7408_v58 = vadd.f32 %v7327_v5, %v7184_v26  ;;  %v7409_v0 = vadd.f32 %v7328_v30, %v7185_v11  ;;  %v7410_v7 = vadd.f32 %v7329_v8, %v7186_v52  ;;  %v18094_v11 = vld [vmem:[#allocation346_spill] sm:$0xff]  ;;  %v18095_v52 = vld [vmem:[#allocation277_spill] sm:$0xff]  ;;  %v18101_v5 = vld [vmem:[#allocation300_spill] sm:$0xff] }
 0x530   : > { %v7411_v32 = vadd.f32 %v7330_v21, %v7187_v55  ;;  %v7412_v61 = vadd.f32 %v7331_v54, %v7188_v35  ;;  %v7413_v60 = vadd.f32 %v7332_v49, %v7189_v18  ;;  %v7414_v56 = vadd.f32 %v7333_v46, %v7190_v2  ;;  %v18096_v35 = vld [vmem:[#allocation6_spill] sm:$0xff]  ;;  %v18097_v2 = vld [vmem:[#allocation7_spill] sm:$0xff]  ;;  %v18100_v4 = vld [vmem:[#allocation153_spill] sm:$0xff] }
 0x531   : > { %v7415_v39 = vadd.f32 %v7334_v48, %v7191_v45  ;;  %v7543_v20 = vmul.f32 %v18090_v31, %v18000_v19  ;;  %v7544_v14 = vmul.f32 %v18091_v28, %v18009_v62  ;;  %v7545_v50 = vmul.f32 %v18092_v3, %v18018_v22 }
 0x532   : > { %v7546_v63 = vmul.f32 %v18093_v10, %v18027_v23  ;;  %v7547_v26 = vmul.f32 %v18094_v11, %v18037_v12  ;;  %v7548_v18 = vmul.f32 %v18096_v35, %v18095_v52  ;;  %v7549_v45 = vmul.f32 %v18096_v35, %v18053_v17 }
 0x533   : > { %v7550_v55 = vmul.f32 %v18097_v2, %v18054_v34  ;;  %v7551_v51 = vmul.f32 %v18098_v42, %v18055_v33  ;;  %v7552_v29 = vmul.f32 %v18090_v31, %v18056_v57  ;;  %v7553_v43 = vmul.f32 %v18091_v28, %v18057_v16 }
 0x534   : > { %v7554_v36 = vmul.f32 %v18092_v3, %v18067_v9  ;;  %v7555_v40 = vmul.f32 %v18093_v10, %v18087_v44  ;;  %v7556_v1 = vmul.f32 %v18094_v11, %v18099_v41  ;;  %v7557_v13 = vmul.f32 %v18096_v35, %v18100_v4 }
 0x535   : > { %v7558_v30 = vmul.f32 %v18096_v35, %v18101_v5  ;;  %v7624_v8 = vadd.f32 %v7543_v20, %v7400_v59  ;;  %v7625_v21 = vadd.f32 %v7544_v14, %v7401_v27  ;;  %v7626_v54 = vadd.f32 %v7545_v50, %v7402_v47  ;;  %v18102_v59 = vld [vmem:[#allocation3_spill] sm:$0xff] }
 0x536   : > { %v7627_v49 = vadd.f32 %v7546_v63, %v7403_v6  ;;  %v7628_v46 = vadd.f32 %v7547_v26, %v7404_v25  ;;  %v7629_v48 = vadd.f32 %v7548_v18, %v7405_v24  ;;  %v7630_v52 = vadd.f32 %v7549_v45, %v7406_v53  ;;  %v18112_v18 = vld [vmem:[#allocation81_spill] sm:$0xff] }
 0x537   : > { %v7631_v3 = vadd.f32 %v7550_v55, %v7407_v38  ;;  %v7632_v28 = vadd.f32 %v7551_v51, %v7408_v58  ;;  %v7633_v31 = vadd.f32 %v7552_v29, %v7409_v0  ;;  %v7634_v10 = vadd.f32 %v7553_v43, %v7410_v7  ;;  %v18114_v55 = vld [vmem:[#allocation77_spill] sm:$0xff]  ;;  %v18115_v43 = vld [vmem:[#allocation240_spill] sm:$0xff] }
 0x538   : > { %v7635_v42 = vadd.f32 %v7554_v36, %v7411_v32  ;;  %v7636_v2 = vadd.f32 %v7555_v40, %v7412_v61  ;;  %v7637_v11 = vadd.f32 %v7556_v1, %v7413_v60  ;;  %v7638_v15 = vadd.f32 %v7557_v13, %v7414_v56  ;;  %v18116_v36 = vld [vmem:[#allocation79_spill] sm:$0xff] }
 0x539   : > { %v7639_v37 = vadd.f32 %v7558_v30, %v7415_v39  ;;  %v8032_v4 = vcombine.low %v7624_v8, %v7625_v21  ;;  %v8033_v41 = vcombine.low %v7626_v54, %v7627_v49  ;;  %v8034_v44 = vcombine.low %v7628_v46, %v7629_v48  ;;  %v18118_v1 = vld [vmem:[#allocation87_spill] sm:$0xff]  ;;  %v18119_v30 = vld [vmem:[#allocation241_spill] sm:$0xff]  ;;  %v18122_v49 = vld [vmem:[#allocation90_spill] sm:$0xff] }
 0x53a   : > { %v8035_v35 = vcombine.low %v7630_v52, %v7631_v3  ;;  %v8081_v20 = vcombine.low %v7632_v28, %v7633_v31  ;;  %v8082_v47 = vcombine.low %v7634_v10, %v7635_v42  ;;  %v8083_v6 = vcombine.low %v7636_v2, %v7637_v11  ;;  %v18103_v31 = vld [vmem:[#allocation297_spill] sm:$0xff]  ;;  %v18107_v3 = vld [vmem:[#allocation143_spill] sm:$0xff]  ;;  %v18109_v10 = vld [vmem:[#allocation336_spill] sm:$0xff] }
 0x53b   : > { %v8042_v27 = vrot.slane %v8032_v4, %v18102_v59  ;;  %v8084_v25 = vcombine.low %v7638_v15, %v7639_v37  ;;  %v8049_v38 = vrot.slane %v8033_v41, %v18102_v59  ;;  %v8056_v0 = vrot.slane %v8034_v44, %v18102_v59  ;;  %v18104_v37 = vld [vmem:[#allocation254_spill] sm:$0xff]  ;;  %v18105_v44 = vld [vmem:[#allocation329_spill] sm:$0xff]  ;;  %v18113_v2 = vld [vmem:[#allocation236_spill] sm:$0xff] }
 0x53c   : > { %v8063_v58 = vrot.slane %v8035_v35, %v18102_v59  ;;  %v8091_v7 = vrot.slane %v8081_v20, %v18102_v59  ;;  %v8098_v39 = vrot.slane %v8082_v47, %v18102_v59  ;;  %v8105_v56 = vrot.slane %v8083_v6, %v18102_v59  ;;  %v18111_v35 = vld [vmem:[#allocation233_spill] sm:$0xff]  ;;  %v18117_v41 = vld [vmem:[#allocation239_spill] sm:$0xff]  ;;  %v18125_v6 = vld [vmem:[#allocation250_spill] sm:$0xff] }
 0x53d   : > { %v8112_v60 = vrot.slane %v8084_v25, %v18102_v59  ;;  %v14622_v61 = vcombine.high %v18103_v31, %v18103_v31  ;;  %v8064_v32 = vcombine.low %v8042_v27, %v8049_v38  ;;  %v14626_v24 = vcombine.high %v18104_v37, %v18104_v37  ;;  %v18120_v8 = vld [vmem:[#allocation89_spill] sm:$0xff]  ;;  %v18121_v54 = vld [vmem:[#allocation203_spill] sm:$0xff] }
 0x53e   : > { %v8065_v15 = vcombine.low %v8056_v0, %v8063_v58  ;;  %v14630_v53 = vcombine.high %v18105_v44, %v18105_v44  ;;  %v8113_v28 = vcombine.low %v8091_v7, %v8098_v39  ;;  %v14634_v50 = vcombine.high %v18107_v3, %v18107_v3  ;;  %v18123_v48 = vld [vmem:[#allocation245_spill] sm:$0xff]  ;;  %v18127_v58 = vld [vmem:[#allocation50_spill] sm:$0xff]  ;;  %v18128_v39 = vld [vmem:[#allocation44_spill] sm:$0xff] }
 0x53f   : > { %v8114_v14 = vcombine.low %v8105_v56, %v8112_v60  ;;  %v14638_v63 = vcombine.high %v18109_v10, %v18109_v10  ;;  %v8072_v11 = vrot.slane %v8064_v32, %v18102_v59  ;;  %v2184_v45 = vmul.f32 %v18112_v18, %v18111_v35  ;;  %v18124_v27 = vld [vmem:[#allocation249_spill] sm:$0xff]  ;;  %v18129_v60 = vld [vmem:[#allocation47_spill] sm:$0xff] }
 0x540   : > { %18106 = vst [vmem:[#allocation186_spill] sm:$0xff] %v14630_v53  ;;  %18108 = vst [vmem:[#allocation187_spill] sm:$0xff] %v14634_v50  ;;  %v8079_v26 = vrot.slane %v8065_v15, %v18102_v59  ;;  %v2185_v42 = vmul.f32 %v18114_v55, %v18113_v2  ;;  %v8121_v51 = vrot.slane %v8113_v28, %v18102_v59  ;;  %v18126_v38 = vld [vmem:[#allocation73_spill] sm:$0xff]  ;;  %v18130_v15 = vld [vmem:[#allocation88_spill] sm:$0xff] }
 0x541   : > { %18110 = vst [vmem:[#allocation189_spill] sm:$0xff] %v14638_v63  ;;  %v8128_v29 = vrot.slane %v8114_v14, %v18102_v59  ;;  %v2186_v40 = vmul.f32 %v18116_v36, %v18115_v43  ;;  %v2187_v4 = vmul.f32 %v18118_v1, %v18117_v41  ;;  %v2188_v21 = vmul.f32 %v18120_v8, %v18119_v30  ;;  %v18133_v55 = vld [vmem:[#allocation252_spill] sm:$0xff] }
 0x542   : > { %v8080_v13 = vcombine.low %v8072_v11, %v8079_v26  ;;  %v2189_v46 = vmul.f32 %v18122_v49, %v18121_v54  ;;  %v2195_v52 = vmul.f32 %v18116_v36, %v18123_v48  ;;  %v2196_v47 = vmul.f32 %v18118_v1, %v18124_v27  ;;  %v18131_v11 = vld [vmem:[#allocation247_spill] sm:$0xff] }
 0x543   : > { %v8129_v20 = vcombine.low %v8121_v51, %v8128_v29  ;;  %v2197_v25 = vmul.f32 %v18120_v8, %v18125_v6  ;;  %v2408_v0 = vmul.f32 %v18126_v38, %v18113_v2  ;;  %v2409_v7 = vmul.f32 %v18127_v58, %v18115_v43  ;;  %v18132_v26 = vld [vmem:[#allocation91_spill] sm:$0xff] }
 0x544   : > { %v2410_v56 = vmul.f32 %v18128_v39, %v18117_v41  ;;  %v2411_v32 = vmul.f32 %v18129_v60, %v18119_v30  ;;  %v2412_v28 = vmul.f32 %v18130_v15, %v18121_v54  ;;  %v2413_v35 = vmul.f32 %v18132_v26, %v18131_v11  ;;  %v18134_v26 = vld [vmem:[#allocation93_spill] sm:$0xff] }
 0x545   : > { %v8256_v14 = vpack.c.bf16 %v8129_v20, %v8080_v13  ;;  %v2419_v18 = vmul.f32 %v18128_v39, %v18124_v27  ;;  %v2420_v2 = vmul.f32 %v18129_v60, %v18125_v6  ;;  %v2421_v51 = vmul.f32 %v18130_v15, %v18133_v55  ;;  %v18135_v39 = vld [vmem:[#allocation55_spill] sm:$0xff]  ;;  %v18136_v60 = vld [vmem:[#allocation53_spill] sm:$0xff] }
 0x546   : > { %v2489_v29 = vadd.f32 %v2408_v0, %v2184_v45  ;;  %v2490_v36 = vadd.f32 %v2409_v7, %v2185_v42  ;;  %v2491_v1 = vadd.f32 %v2410_v56, %v2186_v40  ;;  %v2492_v8 = vadd.f32 %v2411_v32, %v2187_v4  ;;  %v18137_v45 = vld [vmem:[#allocation54_spill] sm:$0xff] }
 0x547   : > { %8875 = vmatmul.mubr.bf16.gmra.mrb[8].mxu0 %v8256_v14  ;;  %v2493_v49 = vadd.f32 %v2412_v28, %v2188_v21  ;;  %v2494_v38 = vadd.f32 %v2413_v35, %v2189_v46  ;;  %v2500_v13 = vadd.f32 %v2419_v18, %v2195_v52  ;;  %v2501_v20 = vadd.f32 %v2420_v2, %v2196_v47  ;;  %v18138_v40 = vld [vmem:[#allocation94_spill] sm:$0xff]  ;;  %v18139_v21 = vld [vmem:[#allocation244_spill] sm:$0xff]  ;;  %v18140_v46 = vld [vmem:[#allocation95_spill] sm:$0xff] }
 0x548   : > { %v2502_v58 = vadd.f32 %v2421_v51, %v2197_v25  ;;  %v2632_v59 = vmul.f32 %v18134_v26, %v18115_v43  ;;  %v2633_v63 = vmul.f32 %v18135_v39, %v18117_v41  ;;  %v2634_v53 = vmul.f32 %v18136_v60, %v18119_v30  ;;  %v18141_v25 = vld [vmem:[#allocation256_spill] sm:$0xff]  ;;  %v18142_v51 = vld [vmem:[#allocation97_spill] sm:$0xff]  ;;  %v18143_v39 = vld [vmem:[#allocation59_spill] sm:$0xff] }
 0x549   : > { %v2635_v42 = vmul.f32 %v18137_v45, %v18121_v54  ;;  %v2636_v4 = vmul.f32 %v18138_v40, %v18131_v11  ;;  %v2637_v52 = vmul.f32 %v18140_v46, %v18139_v21  ;;  %v2643_v47 = vmul.f32 %v18136_v60, %v18125_v6 }
 0x54a   : > { %v2644_v43 = vmul.f32 %v18137_v45, %v18133_v55  ;;  %v2645_v0 = vmul.f32 %v18138_v40, %v18141_v25  ;;  %v2713_v7 = vadd.f32 %v2632_v59, %v2489_v29  ;;  %v2714_v56 = vadd.f32 %v2633_v63, %v2490_v36  ;;  %v18144_v45 = vld [vmem:[#allocation56_spill] sm:$0xff]  ;;  %v18145_v40 = vld [vmem:[#allocation57_spill] sm:$0xff]  ;;  %v18147_v29 = vld [vmem:[#allocation246_spill] sm:$0xff] }
 0x54b   : > { %v2715_v32 = vadd.f32 %v2634_v53, %v2491_v1  ;;  %v2716_v15 = vadd.f32 %v2635_v42, %v2492_v8  ;;  %v2717_v28 = vadd.f32 %v2636_v4, %v2493_v49  ;;  %v2718_v14 = vadd.f32 %v2637_v52, %v2494_v38  ;;  %v18146_v53 = vld [vmem:[#allocation98_spill] sm:$0xff]  ;;  %v18148_v36 = vld [vmem:[#allocation99_spill] sm:$0xff]  ;;  %v18149_v49 = vld [vmem:[#allocation257_spill] sm:$0xff] }
 0x54c   : > { %v2724_v35 = vadd.f32 %v2643_v47, %v2500_v13  ;;  %v2725_v18 = vadd.f32 %v2644_v43, %v2501_v20  ;;  %v2726_v2 = vadd.f32 %v2645_v0, %v2502_v58  ;;  %v2856_v26 = vmul.f32 %v18142_v51, %v18117_v41  ;;  %v18150_v51 = vld [vmem:[#allocation101_spill] sm:$0xff] }
 0x54d   : > { %v2857_v60 = vmul.f32 %v18143_v39, %v18119_v30  ;;  %v2858_v46 = vmul.f32 %v18144_v45, %v18121_v54  ;;  %v2859_v59 = vmul.f32 %v18145_v40, %v18131_v11  ;;  %v2860_v63 = vmul.f32 %v18146_v53, %v18139_v21 }
 0x54e   : > { %v2861_v1 = vmul.f32 %v18148_v36, %v18147_v29  ;;  %v2867_v8 = vmul.f32 %v18144_v45, %v18133_v55  ;;  %v2868_v41 = vmul.f32 %v18145_v40, %v18141_v25  ;;  %v2869_v38 = vmul.f32 %v18146_v53, %v18149_v49  ;;  %v18151_v45 = vld [vmem:[#allocation65_spill] sm:$0xff]  ;;  %v18153_v53 = vld [vmem:[#allocation64_spill] sm:$0xff] }
 0x54f   : > { %v2937_v13 = vadd.f32 %v2856_v26, %v2713_v7  ;;  %v2938_v20 = vadd.f32 %v2857_v60, %v2714_v56  ;;  %v2939_v58 = vadd.f32 %v2858_v46, %v2715_v32  ;;  %v2940_v42 = vadd.f32 %v2859_v59, %v2716_v15  ;;  %v18152_v40 = vld [vmem:[#allocation61_spill] sm:$0xff]  ;;  %v18154_v56 = vld [vmem:[#allocation102_spill] sm:$0xff]  ;;  %v18155_v15 = vld [vmem:[#allocation259_spill] sm:$0xff] }
 0x550   : > { %v2941_v4 = vadd.f32 %v2860_v63, %v2717_v28  ;;  %v2942_v52 = vadd.f32 %v2861_v1, %v2718_v14  ;;  %v2948_v47 = vadd.f32 %v2867_v8, %v2724_v35  ;;  %v2949_v43 = vadd.f32 %v2868_v41, %v2725_v18  ;;  %v18156_v28 = vld [vmem:[#allocation103_spill] sm:$0xff]  ;;  %v18157_v18 = vld [vmem:[#allocation262_spill] sm:$0xff]  ;;  %v18158_v1 = vld [vmem:[#allocation248_spill] sm:$0xff] }
 0x551   : > { %v2950_v0 = vadd.f32 %v2869_v38, %v2726_v2  ;;  %v3080_v39 = vmul.f32 %v18150_v51, %v18119_v30  ;;  %v3081_v36 = vmul.f32 %v18151_v45, %v18121_v54  ;;  %v3082_v50 = vmul.f32 %v18152_v40, %v18131_v11  ;;  %v18159_v8 = vld [vmem:[#allocation107_spill] sm:$0xff] }
 0x552   : > { %v3083_v7 = vmul.f32 %v18153_v53, %v18139_v21  ;;  %v3084_v32 = vmul.f32 %v18154_v56, %v18147_v29  ;;  %v3085_v14 = vmul.f32 %v18156_v28, %v18155_v15  ;;  %v3091_v35 = vmul.f32 %v18152_v40, %v18141_v25  ;;  %v18160_v38 = vld [vmem:[#allocation251_spill] sm:$0xff]  ;;  %v18162_v40 = vld [vmem:[#allocation60_spill] sm:$0xff] }
 0x553   : > { %v3092_v30 = vmul.f32 %v18153_v53, %v18149_v49  ;;  %v3093_v54 = vmul.f32 %v18154_v56, %v18157_v18  ;;  %v3161_v2 = vadd.f32 %v3080_v39, %v2937_v13  ;;  %v3162_v11 = vadd.f32 %v3081_v36, %v2938_v20  ;;  %v18161_v51 = vld [vmem:[#allocation135_spill] sm:$0xff] }
 0x554   : > { %v3163_v26 = vadd.f32 %v3082_v50, %v2939_v58  ;;  %v3164_v60 = vadd.f32 %v3083_v7, %v2940_v42  ;;  %v3165_v21 = vadd.f32 %v3084_v32, %v2941_v4  ;;  %v3166_v46 = vadd.f32 %v3085_v14, %v2942_v52  ;;  %v18163_v56 = vld [vmem:[#allocation67_spill] sm:$0xff]  ;;  %v18164_v50 = vld [vmem:[#allocation68_spill] sm:$0xff] }
 0x555   : > { %v3172_v59 = vadd.f32 %v3091_v35, %v2948_v47  ;;  %v3173_v63 = vadd.f32 %v3092_v30, %v2949_v43  ;;  %v3174_v29 = vadd.f32 %v3093_v54, %v2950_v0  ;;  %v3304_v41 = vmul.f32 %v18159_v8, %v18158_v1  ;;  %v18165_v58 = vld [vmem:[#allocation159_spill] sm:$0xff]  ;;  %v18167_v47 = vld [vmem:[#allocation276_spill] sm:$0xff] }
 0x556   : > { %v3305_v45 = vmul.f32 %v18161_v51, %v18160_v38  ;;  %v3306_v53 = vmul.f32 %v18162_v40, %v18123_v48  ;;  %v3307_v13 = vmul.f32 %v18163_v56, %v18124_v27  ;;  %v3308_v20 = vmul.f32 %v18164_v50, %v18125_v6  ;;  %v18166_v4 = vld [vmem:[#allocation271_spill] sm:$0xff]  ;;  %v18169_v1 = vld [vmem:[#allocation136_spill] sm:$0xff]  ;;  %v18170_v51 = vld [vmem:[#allocation82_spill] sm:$0xff] }
 0x557   : > { %v3309_v42 = vmul.f32 %v18165_v58, %v18133_v55  ;;  %v3315_v52 = vmul.f32 %v18162_v40, %v18166_v4  ;;  %v3316_v43 = vmul.f32 %v18163_v56, %v18167_v47  ;;  %v18168_v0 = vld [vmem:[#allocation279_spill] sm:$0xff]  ;;  %v3385_v36 = vadd.f32 %v3304_v41, %v3161_v2 }
 0x558   : > { %v3317_v39 = vmul.f32 %v18164_v50, %v18168_v0  ;;  %v3386_v7 = vadd.f32 %v3305_v45, %v3162_v11  ;;  %v3387_v32 = vadd.f32 %v3306_v53, %v3163_v26  ;;  %v3388_v15 = vadd.f32 %v3307_v13, %v3164_v60  ;;  %v18171_v56 = vld [vmem:[#allocation63_spill] sm:$0xff]  ;;  %v18173_v11 = vld [vmem:[#allocation72_spill] sm:$0xff] }
 0x559   : > { %v3389_v28 = vadd.f32 %v3308_v20, %v3165_v21  ;;  %v3390_v14 = vadd.f32 %v3309_v42, %v3166_v46  ;;  %v3396_v35 = vadd.f32 %v3315_v52, %v3172_v59  ;;  %v3397_v30 = vadd.f32 %v3316_v43, %v3173_v63  ;;  %v18172_v50 = vld [vmem:[#allocation71_spill] sm:$0xff]  ;;  %v18174_v60 = vld [vmem:[#allocation160_spill] sm:$0xff]  ;;  %v18175_v43 = vld [vmem:[#allocation137_spill] sm:$0xff] }
 0x55a   : > { %v3398_v54 = vadd.f32 %v3317_v39, %v3174_v29  ;;  %v3528_v8 = vmul.f32 %v18169_v1, %v18160_v38  ;;  %v3529_v40 = vmul.f32 %v18170_v51, %v18123_v48  ;;  %v3530_v58 = vmul.f32 %v18171_v56, %v18124_v27  ;;  %v18176_v1 = vld [vmem:[#allocation86_spill] sm:$0xff] }
 0x55b   : > { %v3531_v2 = vmul.f32 %v18172_v50, %v18125_v6  ;;  %v3532_v26 = vmul.f32 %v18173_v11, %v18133_v55  ;;  %v3533_v21 = vmul.f32 %v18174_v60, %v18141_v25  ;;  %v3539_v46 = vmul.f32 %v18171_v56, %v18167_v47  ;;  %v18177_v56 = vld [vmem:[#allocation74_spill] sm:$0xff] }
 0x55c   : > { %v3540_v59 = vmul.f32 %v18172_v50, %v18168_v0  ;;  %v3541_v63 = vmul.f32 %v18173_v11, %v18000_v19  ;;  %v3609_v29 = vadd.f32 %v3528_v8, %v3385_v36  ;;  %v3610_v41 = vadd.f32 %v3529_v40, %v3386_v7  ;;  %v18178_v11 = vld [vmem:[#allocation84_spill] sm:$0xff]  ;;  %v18179_v7 = vld [vmem:[#allocation85_spill] sm:$0xff] }
 0x55d   : > { %v3611_v38 = vadd.f32 %v3530_v58, %v3387_v32  ;;  %v3612_v45 = vadd.f32 %v3531_v2, %v3388_v15  ;;  %v3613_v53 = vadd.f32 %v3532_v26, %v3389_v28  ;;  %v3614_v13 = vadd.f32 %v3533_v21, %v3390_v14  ;;  %v18180_v15 = vld [vmem:[#allocation161_spill] sm:$0xff] }
 0x55e   : > { %v3620_v20 = vadd.f32 %v3539_v46, %v3396_v35  ;;  %v3621_v42 = vadd.f32 %v3540_v59, %v3397_v30  ;;  %v3622_v52 = vadd.f32 %v3541_v63, %v3398_v54  ;;  %v3752_v39 = vmul.f32 %v18175_v43, %v18123_v48  ;;  %v18181_v46 = vld [vmem:[#allocation303_spill] sm:$0xff]  ;;  %v18182_v63 = vld [vmem:[#allocation10_spill] sm:$0xff] }
 0x55f   : > { %v3753_v51 = vmul.f32 %v18176_v1, %v18124_v27  ;;  %v3754_v50 = vmul.f32 %v18177_v56, %v18125_v6  ;;  %v3755_v36 = vmul.f32 %v18178_v11, %v18133_v55  ;;  %v3756_v32 = vmul.f32 %v18179_v7, %v18141_v25  ;;  %v18183_v1 = vld [vmem:[#allocation108_spill] sm:$0xff] }
 0x560   : > { %v3757_v28 = vmul.f32 %v18180_v15, %v18149_v49  ;;  %v3763_v14 = vmul.f32 %v18177_v56, %v18168_v0  ;;  %v3764_v48 = vmul.f32 %v18178_v11, %v18000_v19  ;;  %v3765_v35 = vmul.f32 %v18179_v7, %v18009_v62  ;;  %v18184_v11 = vld [vmem:[#allocation8_spill] sm:$0xff] }
 0x561   : > { %v3833_v30 = vadd.f32 %v3752_v39, %v3609_v29  ;;  %v3834_v54 = vadd.f32 %v3753_v51, %v3610_v41  ;;  %v3835_v8 = vadd.f32 %v3754_v50, %v3611_v38  ;;  %v3836_v40 = vadd.f32 %v3755_v36, %v3612_v45  ;;  %v18185_v41 = vld [vmem:[#allocation9_spill] sm:$0xff]  ;;  %v18186_v45 = vld [vmem:[#allocation163_spill] sm:$0xff] }
 0x562   : > { %v3837_v58 = vadd.f32 %v3756_v32, %v3613_v53  ;;  %v3838_v2 = vadd.f32 %v3757_v28, %v3614_v13  ;;  %v3844_v26 = vadd.f32 %v3763_v14, %v3620_v20  ;;  %v3845_v60 = vadd.f32 %v3764_v48, %v3621_v42  ;;  %v18187_v28 = vld [vmem:[#allocation304_spill] sm:$0xff]  ;;  %v18188_v48 = vld [vmem:[#allocation267_spill] sm:$0xff] }
 0x563   : > { %v3846_v21 = vadd.f32 %v3765_v35, %v3622_v52  ;;  %v3976_v59 = vmul.f32 %v18181_v46, %v18124_v27  ;;  %v3977_v43 = vmul.f32 %v18182_v63, %v18125_v6  ;;  %v3978_v56 = vmul.f32 %v18183_v1, %v18133_v55  ;;  %v18189_v46 = vld [vmem:[#allocation112_spill] sm:$0xff] }
 0x564   : > { %v3979_v29 = vmul.f32 %v18184_v11, %v18141_v25  ;;  %v3980_v38 = vmul.f32 %v18185_v41, %v18149_v49  ;;  %v3981_v53 = vmul.f32 %v18186_v45, %v18157_v18  ;;  %v3987_v13 = vmul.f32 %v18183_v1, %v18000_v19  ;;  %v18190_v1 = vld [vmem:[#allocation114_spill] sm:$0xff] }
 0x565   : > { %v3988_v27 = vmul.f32 %v18184_v11, %v18009_v62  ;;  %v3989_v20 = vmul.f32 %v18185_v41, %v18018_v22  ;;  %v4057_v42 = vadd.f32 %v3976_v59, %v3833_v30  ;;  %v4058_v52 = vadd.f32 %v3977_v43, %v3834_v54  ;;  %v18191_v54 = vld [vmem:[#allocation150_spill] sm:$0xff] }
 0x566   : > { %v4059_v39 = vadd.f32 %v3978_v56, %v3835_v8  ;;  %v4060_v51 = vadd.f32 %v3979_v29, %v3836_v40  ;;  %v4061_v50 = vadd.f32 %v3980_v38, %v3837_v58  ;;  %v4062_v36 = vadd.f32 %v3981_v53, %v3838_v2  ;;  %v18192_v40 = vld [vmem:[#allocation264_spill] sm:$0xff]  ;;  %v18193_v58 = vld [vmem:[#allocation5_spill] sm:$0xff] }
 0x567   : > { %v4068_v7 = vadd.f32 %v3987_v13, %v3844_v26  ;;  %v4069_v32 = vadd.f32 %v3988_v27, %v3845_v60  ;;  %v4070_v15 = vadd.f32 %v3989_v20, %v3846_v21  ;;  %v4200_v14 = vmul.f32 %v18187_v28, %v18125_v6  ;;  %v18197_v13 = vld [vmem:[#allocation266_spill] sm:$0xff]  ;;  %v18198_v27 = vld [vmem:[#allocation305_spill] sm:$0xff] }
 0x568   : > { %v4201_v35 = vmul.f32 %v18188_v48, %v18133_v55  ;;  %v4202_v63 = vmul.f32 %v18189_v46, %v18141_v25  ;;  %v4203_v30 = vmul.f32 %v18190_v1, %v18149_v49  ;;  %v4204_v8 = vmul.f32 %v18191_v54, %v18157_v18  ;;  %v8959_v55 = vld [vmem:[%s15297_s8] sm:$0xff]   ;;  %v8960_v25 = vld [vmem:[%s15297_s8 + $0x8] sm:$0xff]   ;;  %v14828_v49 = vpop.f32.mrb[4].mxu0  ;;  %v18199_v28 = vld [vmem:[#allocation49_spill] sm:$0xff] }
 0x569   : > { %v4205_v2 = vmul.f32 %v18193_v58, %v18192_v40  ;;  %v4211_v26 = vmul.f32 %v18189_v46, %v18009_v62  ;;  %v4212_v6 = vmul.f32 %v18190_v1, %v18018_v22  ;;  %18194 = vst [vmem:[#allocation96_spill] sm:$0xff] %v14828_v49  ;;  %v4213_v18 = vmul.f32 %v18191_v54, %v18027_v23  ;;  %v14832_v43 = vpop.f32.mrb[5].mxu0  ;;  %v18200_v48 = vld [vmem:[#allocation306_spill] sm:$0xff] }
 0x56a   : > { %v4281_v60 = vadd.f32 %v4200_v14, %v4057_v42  ;;  %v4282_v21 = vadd.f32 %v4201_v35, %v4058_v52  ;;  %v4283_v59 = vadd.f32 %v4202_v63, %v4059_v39  ;;  %18195 = vst [vmem:[#allocation172_spill] sm:$0xff] %v14832_v43  ;;  %v4284_v56 = vadd.f32 %v4203_v30, %v4060_v51  ;;  %v14834_v38 = vpop.f32.mrb[6].mxu0  ;;  %v18202_v52 = vld [vmem:[#allocation116_spill] sm:$0xff]  ;;  %v18203_v51 = vld [vmem:[#allocation118_spill] sm:$0xff] }
 0x56b   : > { %v4285_v11 = vadd.f32 %v4204_v8, %v4061_v50  ;;  %v4286_v29 = vadd.f32 %v4205_v2, %v4062_v36  ;;  %v4292_v41 = vadd.f32 %v4211_v26, %v4068_v7  ;;  %8882 = vmatprep.subr.bf16.mxu0 %v8959_v55  ;;  %18196 = vst [vmem:[#allocation173_spill] sm:$0xff] %v14834_v38  ;;  %v14840_v42 = vpop.f32.mrb[7].mxu0  ;;  %v18204_v36 = vld [vmem:[#allocation162_spill] sm:$0xff]  ;;  %v8961_v14 = vld [vmem:[%s15297_s8 + $0x10] sm:$0xff]   ;;  %v18308_v38 = vld [vmem:[#allocation43_spill] sm:$0xff] }
 0x56c   : > { %v4293_v45 = vadd.f32 %v4212_v6, %v4069_v32  ;;  %v4294_v53 = vadd.f32 %v4213_v18, %v4070_v15  ;;  %v4424_v20 = vmul.f32 %v18198_v27, %v18197_v13  ;;  %v4425_v46 = vmul.f32 %v18200_v48, %v18199_v28  ;;  %8883 = vmatpush3.bf16.msra.mxu0 %v8959_v55  ;;  %v18205_v32 = vld [vmem:[#allocation51_spill] sm:$0xff]  ;;  %v18207_v27 = vld [vmem:[#allocation308_spill] sm:$0xff] }
 0x56d   : > { %18201 = vst [vmem:[#allocation158_spill] sm:$0xff] %v14840_v42  ;;  %v4426_v39 = vmul.f32 %v18202_v52, %v18166_v4  ;;  %v4427_v50 = vmul.f32 %v18203_v51, %v18167_v47  ;;  %v4428_v7 = vmul.f32 %v18204_v36, %v18168_v0  ;;  %v4429_v15 = vmul.f32 %v18205_v32, %v18000_v19  ;;  %v18206_v18 = vld [vmem:[#allocation307_spill] sm:$0xff]  ;;  %v18307_v42 = vld [vmem:[#allocation152_spill] sm:$0xff] }
 0x56e   : > { %8884 = vmatprep.subr.bf16.mxu0 %v8960_v25  ;;  %v4435_v35 = vmul.f32 %v18202_v52, %v18053_v17  ;;  %v4436_v63 = vmul.f32 %v18203_v51, %v18054_v34  ;;  %v4437_v1 = vmul.f32 %v18204_v36, %v18055_v33  ;;  %v4505_v30 = vadd.f32 %v4424_v20, %v4281_v60  ;;  %v18208_v52 = vld [vmem:[#allocation121_spill] sm:$0xff]  ;;  %v18209_v60 = vld [vmem:[#allocation123_spill] sm:$0xff] }
 0x56f   : > { %v4506_v54 = vadd.f32 %v4425_v46, %v4282_v21  ;;  %v4507_v8 = vadd.f32 %v4426_v39, %v4283_v59  ;;  %v4508_v40 = vadd.f32 %v4427_v50, %v4284_v56  ;;  %v4509_v58 = vadd.f32 %v4428_v7, %v4285_v11  ;;  %v8962_v59 = vld [vmem:[%s15297_s8 + $0x18] sm:$0xff]   ;;  %v18210_v56 = vld [vmem:[#allocation104_spill] sm:$0xff]  ;;  %v18211_v11 = vld [vmem:[#allocation78_spill] sm:$0xff] }
 0x570   : > { %v4510_v2 = vadd.f32 %v4429_v15, %v4286_v29  ;;  %v4516_v26 = vadd.f32 %v4435_v35, %v4292_v41  ;;  %v4517_v6 = vadd.f32 %v4436_v63, %v4293_v45  ;;  %v4518_v55 = vadd.f32 %v4437_v1, %v4294_v53  ;;  %8885 = vmatpush3.bf16.msra.mxu0 %v8960_v25  ;;  %v18212_v35 = vld [vmem:[#allocation309_spill] sm:$0xff]  ;;  %v18213_v1 = vld [vmem:[#allocation310_spill] sm:$0xff] }
 0x571   : > { %v4648_v13 = vmul.f32 %v18206_v18, %v18199_v28  ;;  %v4649_v48 = vmul.f32 %v18207_v27, %v18166_v4  ;;  %v4650_v51 = vmul.f32 %v18208_v52, %v18167_v47  ;;  %v4651_v21 = vmul.f32 %v18209_v60, %v18168_v0  ;;  %8886 = vmatprep.subr.bf16.mxu0 %v8961_v14 }
 0x572   : > { %v4652_v25 = vmul.f32 %v18210_v56, %v18000_v19  ;;  %v4653_v29 = vmul.f32 %v18211_v11, %v18009_v62  ;;  %v4659_v41 = vmul.f32 %v18208_v52, %v18054_v34  ;;  %v4660_v45 = vmul.f32 %v18209_v60, %v18055_v33 }
 0x573   : > { %v4661_v53 = vmul.f32 %v18210_v56, %v18056_v57  ;;  %v4729_v20 = vadd.f32 %v4648_v13, %v4505_v30  ;;  %v4730_v28 = vadd.f32 %v4649_v48, %v4506_v54  ;;  %v4731_v46 = vadd.f32 %v4650_v51, %v4507_v8  ;;  %v8963_v30 = vld [vmem:[%s15297_s8 + $0x20] sm:$0xff]   ;;  %v18214_v54 = vld [vmem:[#allocation125_spill] sm:$0xff] }
 0x574   : > { %v4732_v39 = vadd.f32 %v4651_v21, %v4508_v40  ;;  %v4733_v50 = vadd.f32 %v4652_v25, %v4509_v58  ;;  %v4734_v36 = vadd.f32 %v4653_v29, %v4510_v2  ;;  %v4740_v7 = vadd.f32 %v4659_v41, %v4516_v26  ;;  %8887 = vmatpush3.bf16.msra.mxu0 %v8961_v14  ;;  %v18215_v40 = vld [vmem:[#allocation11_spill] sm:$0xff]  ;;  %v18216_v14 = vld [vmem:[#allocation105_spill] sm:$0xff]  ;;  %v18217_v26 = vld [vmem:[#allocation4_spill] sm:$0xff] }
 0x575   : > { %v4741_v32 = vadd.f32 %v4660_v45, %v4517_v6  ;;  %v4742_v15 = vadd.f32 %v4661_v53, %v4518_v55  ;;  %v4872_v63 = vmul.f32 %v18212_v35, %v18166_v4  ;;  %v4873_v18 = vmul.f32 %v18213_v1, %v18167_v47  ;;  %8888 = vmatprep.subr.bf16.mxu0 %v8962_v59  ;;  %v8964_v29 = vld [vmem:[%s15297_s8 + $0x28] sm:$0xff]   ;;  %v18219_v53 = vld [vmem:[#allocation312_spill] sm:$0xff] }
 0x576   : > { %v4874_v8 = vmul.f32 %v18214_v54, %v18168_v0  ;;  %v4875_v58 = vmul.f32 %v18215_v40, %v18000_v19  ;;  %v4876_v2 = vmul.f32 %v18216_v14, %v18009_v62  ;;  %v4877_v4 = vmul.f32 %v18217_v26, %v18018_v22  ;;  %v18218_v41 = vld [vmem:[#allocation311_spill] sm:$0xff] }
 0x577   : > { %v4883_v6 = vmul.f32 %v18214_v54, %v18055_v33  ;;  %v4884_v55 = vmul.f32 %v18215_v40, %v18056_v57  ;;  %v4885_v13 = vmul.f32 %v18216_v14, %v18057_v16  ;;  %v4953_v27 = vadd.f32 %v4872_v63, %v4729_v20  ;;  %v8965_v14 = vld [vmem:[%s15297_s8 + $0x30] sm:$0xff]  }
 0x578   : > { %v4954_v48 = vadd.f32 %v4873_v18, %v4730_v28  ;;  %v4955_v52 = vadd.f32 %v4874_v8, %v4731_v46  ;;  %v4956_v51 = vadd.f32 %v4875_v58, %v4732_v39  ;;  %v4957_v60 = vadd.f32 %v4876_v2, %v4733_v50  ;;  %8889 = vmatpush3.bf16.msra.mxu0 %v8962_v59  ;;  %v18220_v28 = vld [vmem:[#allocation128_spill] sm:$0xff]  ;;  %v18221_v59 = vld [vmem:[#allocation133_spill] sm:$0xff]  ;;  %v18222_v50 = vld [vmem:[#allocation106_spill] sm:$0xff] }
 0x579   : > { %v4958_v21 = vadd.f32 %v4877_v4, %v4734_v36  ;;  %v4964_v56 = vadd.f32 %v4883_v6, %v4740_v7  ;;  %v4965_v25 = vadd.f32 %v4884_v55, %v4741_v32  ;;  %v4966_v11 = vadd.f32 %v4885_v13, %v4742_v15  ;;  %8890 = vmatprep.subr.bf16.mxu0 %v8963_v30  ;;  %v18223_v7 = vld [vmem:[#allocation168_spill] sm:$0xff]  ;;  %v18224_v4 = vld [vmem:[#allocation313_spill] sm:$0xff]  ;;  %v18225_v55 = vld [vmem:[#allocation314_spill] sm:$0xff] }
 0x57a   : > { %v5096_v45 = vmul.f32 %v18218_v41, %v18167_v47  ;;  %v5097_v20 = vmul.f32 %v18219_v53, %v18168_v0  ;;  %v5098_v46 = vmul.f32 %v18220_v28, %v18000_v19  ;;  %v5099_v39 = vmul.f32 %v18221_v59, %v18009_v62 }
 0x57b   : > { %v5100_v36 = vmul.f32 %v18222_v50, %v18018_v22  ;;  %v5101_v32 = vmul.f32 %v18223_v7, %v18027_v23  ;;  %v5107_v15 = vmul.f32 %v18220_v28, %v18056_v57  ;;  %v5108_v47 = vmul.f32 %v18221_v59, %v18057_v16  ;;  %v18231_v59 = vld [vmem:[#allocation272_spill] sm:$0xff] }
 0x57c   : > { %v5109_v35 = vmul.f32 %v18222_v50, %v18067_v9  ;;  %v5177_v63 = vadd.f32 %v5096_v45, %v4953_v27  ;;  %v5178_v1 = vadd.f32 %v5097_v20, %v4954_v48  ;;  %v5179_v18 = vadd.f32 %v5098_v46, %v4955_v52  ;;  %8891 = vmatpush3.bf16.msra.mxu0 %v8963_v30  ;;  %v18226_v27 = vld [vmem:[#allocation131_spill] sm:$0xff]  ;;  %v18227_v48 = vld [vmem:[#allocation134_spill] sm:$0xff]  ;;  %v18234_v7 = vld [vmem:[#allocation316_spill] sm:$0xff] }
 0x57d   : > { %v5180_v54 = vadd.f32 %v5099_v39, %v4956_v51  ;;  %v5181_v8 = vadd.f32 %v5100_v36, %v4957_v60  ;;  %v5182_v40 = vadd.f32 %v5101_v32, %v4958_v21  ;;  %v5188_v58 = vadd.f32 %v5107_v15, %v4964_v56  ;;  %8892 = vmatprep.subr.bf16.mxu0 %v8964_v29  ;;  %v18228_v51 = vld [vmem:[#allocation147_spill] sm:$0xff]  ;;  %v18233_v36 = vld [vmem:[#allocation280_spill] sm:$0xff] }
 0x57e   : > { %v5189_v2 = vadd.f32 %v5108_v47, %v4965_v25  ;;  %v5190_v26 = vadd.f32 %v5109_v35, %v4966_v11  ;;  %v5320_v6 = vmul.f32 %v18224_v4, %v18168_v0  ;;  %v5321_v13 = vmul.f32 %v18225_v55, %v18000_v19  ;;  %v18229_v21 = vld [vmem:[#allocation171_spill] sm:$0xff]  ;;  %v18230_v11 = vld [vmem:[#allocation288_spill] sm:$0xff] }
 0x57f   : > { %v5322_v30 = vmul.f32 %v18226_v27, %v18009_v62  ;;  %v5323_v52 = vmul.f32 %v18227_v48, %v18018_v22  ;;  %v5324_v60 = vmul.f32 %v18228_v51, %v18027_v23  ;;  %v5325_v56 = vmul.f32 %v18229_v21, %v18037_v12  ;;  %v8966_v23 = vld [vmem:[%s15297_s8 + $0x38] sm:$0xff]   ;;  %v18232_v39 = vld [vmem:[#allocation315_spill] sm:$0xff] }
 0x580   : > { %v5331_v25 = vmul.f32 %v18226_v27, %v18057_v16  ;;  %v5332_v0 = vmul.f32 %v18227_v48, %v18067_v9  ;;  %v5333_v19 = vmul.f32 %v18228_v51, %v18230_v11  ;;  %v5401_v41 = vadd.f32 %v5320_v6, %v5177_v63  ;;  %8893 = vmatpush3.bf16.msra.mxu0 %v8964_v29  ;;  %v18235_v29 = vld [vmem:[#allocation92_spill] sm:$0xff]  ;;  %v18236_v47 = vld [vmem:[#allocation151_spill] sm:$0xff] }
 0x581   : > { %v5402_v62 = vadd.f32 %v5321_v13, %v5178_v1  ;;  %v5403_v45 = vadd.f32 %v5322_v30, %v5179_v18  ;;  %v5404_v22 = vadd.f32 %v5323_v52, %v5180_v54  ;;  %v5405_v53 = vadd.f32 %v5324_v60, %v5181_v8  ;;  %8894 = vmatprep.subr.bf16.mxu0 %v8965_v14  ;;  %v18237_v63 = vld [vmem:[#allocation156_spill] sm:$0xff]  ;;  %v18238_v18 = vld [vmem:[#allocation146_spill] sm:$0xff]  ;;  %v18241_v6 = vld [vmem:[#allocation299_spill] sm:$0xff] }
 0x582   : > { %v5406_v12 = vadd.f32 %v5325_v56, %v5182_v40  ;;  %v5412_v20 = vadd.f32 %v5331_v25, %v5188_v58  ;;  %v5413_v28 = vadd.f32 %v5332_v0, %v5189_v2  ;;  %v5414_v46 = vadd.f32 %v5333_v19, %v5190_v26  ;;  %v18239_v8 = vld [vmem:[#allocation138_spill] sm:$0xff]  ;;  %v18242_v60 = vld [vmem:[#allocation292_spill] sm:$0xff] }
 0x583   : > { %v5544_v50 = vmul.f32 %v18232_v39, %v18231_v59  ;;  %v5545_v32 = vmul.f32 %v18234_v7, %v18233_v36  ;;  %v5546_v15 = vmul.f32 %v18235_v29, %v18053_v17  ;;  %v5547_v35 = vmul.f32 %v18236_v47, %v18054_v34  ;;  %v18240_v2 = vld [vmem:[#allocation294_spill] sm:$0xff]  ;;  %v18244_v59 = vld [vmem:[#allocation317_spill] sm:$0xff] }
 0x584   : > { %v5548_v1 = vmul.f32 %v18237_v63, %v18055_v33  ;;  %v5549_v54 = vmul.f32 %v18238_v18, %v18056_v57  ;;  %v5550_v40 = vmul.f32 %v18239_v8, %v18057_v16  ;;  %v5555_v58 = vmul.f32 %v18235_v29, %v18101_v5  ;;  %8895 = vmatpush3.bf16.msra.mxu0 %v8965_v14  ;;  %v18243_v0 = vld [vmem:[#allocation174_spill] sm:$0xff] }
 0x585   : > { %v5556_v26 = vmul.f32 %v18236_v47, %v18240_v2  ;;  %v5557_v4 = vmul.f32 %v18237_v63, %v18103_v31  ;;  %v5558_v55 = vmul.f32 %v18238_v18, %v18241_v6  ;;  %v5625_v13 = vadd.f32 %v5544_v50, %v5401_v41  ;;  %8896 = vmatprep.subr.bf16.mxu0 %v8966_v23  ;;  %v18245_v7 = vld [vmem:[#allocation318_spill] sm:$0xff]  ;;  %v18246_v41 = vld [vmem:[#allocation148_spill] sm:$0xff] }
 0x586   : > { %v5626_v27 = vadd.f32 %v5545_v32, %v5402_v62  ;;  %v5627_v30 = vadd.f32 %v5546_v15, %v5403_v45  ;;  %v5628_v48 = vadd.f32 %v5547_v35, %v5404_v22  ;;  %v5629_v52 = vadd.f32 %v5548_v1, %v5405_v53  ;;  %v18247_v45 = vld [vmem:[#allocation18_spill] sm:$0xff]  ;;  %v18248_v53 = vld [vmem:[#allocation41_spill] sm:$0xff] }
 0x587   : > { %v5630_v51 = vadd.f32 %v5549_v54, %v5406_v12  ;;  %v5631_v21 = vadd.f32 %v5550_v40, %v18242_v60  ;;  %v5636_v56 = vadd.f32 %v5555_v58, %v5412_v20  ;;  %v5637_v14 = vadd.f32 %v5556_v26, %v5413_v28  ;;  %v18249_v20 = vld [vmem:[#allocation180_spill] sm:$0xff]  ;;  %v18251_v60 = vld [vmem:[#allocation319_spill] sm:$0xff] }
 0x588   : > { %v5638_v25 = vadd.f32 %v5557_v4, %v5414_v46  ;;  %v5639_v19 = vadd.f32 %v5558_v55, %v18243_v0  ;;  %v5768_v39 = vmul.f32 %v18244_v59, %v18233_v36  ;;  %v5769_v29 = vmul.f32 %v18245_v7, %v18053_v17  ;;  %8897 = vmatpush3.bf16.msra.mxu0 %v8966_v23  ;;  %v18250_v46 = vld [vmem:[#allocation178_spill] sm:$0xff]  ;;  %v18252_v59 = vld [vmem:[#allocation320_spill] sm:$0xff] }
 0x589   : > { %v5770_v62 = vmul.f32 %v18246_v41, %v18054_v34  ;;  %v5771_v22 = vmul.f32 %v18247_v45, %v18055_v33  ;;  %v5772_v12 = vmul.f32 %v18248_v53, %v18056_v57  ;;  %v5773_v28 = vmul.f32 %v18249_v20, %v18057_v16 }
 0x58a   : > { %v5774_v50 = vmul.f32 %v18250_v46, %v18067_v9  ;;  %v5779_v36 = vmul.f32 %v18246_v41, %v18240_v2  ;;  %v5780_v23 = vmul.f32 %v18247_v45, %v18103_v31  ;;  %v5781_v32 = vmul.f32 %v18248_v53, %v18241_v6  ;;  %v18253_v41 = vld [vmem:[#allocation16_spill] sm:$0xff] }
 0x58b   : > { %v5782_v15 = vmul.f32 %v18249_v20, %v14622_v61  ;;  %v5849_v47 = vadd.f32 %v5768_v39, %v5625_v13  ;;  %v5850_v35 = vadd.f32 %v5769_v29, %v5626_v27  ;;  %v5851_v63 = vadd.f32 %v5770_v62, %v5627_v30  ;;  %v18254_v13 = vld [vmem:[#allocation22_spill] sm:$0xff]  ;;  %v18255_v30 = vld [vmem:[#allocation149_spill] sm:$0xff] }
 0x58c   : > { %v5852_v1 = vadd.f32 %v5771_v22, %v5628_v48  ;;  %v5853_v18 = vadd.f32 %v5772_v12, %v5629_v52  ;;  %v5854_v54 = vadd.f32 %v5773_v28, %v5630_v51  ;;  %v5855_v40 = vadd.f32 %v5774_v50, %v5631_v21  ;;  %v18256_v52 = vld [vmem:[#allocation176_spill] sm:$0xff]  ;;  %v18257_v21 = vld [vmem:[#allocation15_spill] sm:$0xff] }
 0x58d   : > { %v5860_v58 = vadd.f32 %v5779_v36, %v5636_v56  ;;  %v5861_v26 = vadd.f32 %v5780_v23, %v5637_v14  ;;  %v5862_v4 = vadd.f32 %v5781_v32, %v5638_v25  ;;  %v5863_v55 = vadd.f32 %v5782_v15, %v5639_v19  ;;  %v18258_v32 = vld [vmem:[#allocation301_spill] sm:$0xff] }
 0x58e   : > { %v5992_v0 = vmul.f32 %v18251_v60, %v18053_v17  ;;  %v5993_v7 = vmul.f32 %v18252_v59, %v18054_v34  ;;  %v5994_v45 = vmul.f32 %v18253_v41, %v18055_v33  ;;  %v5995_v27 = vmul.f32 %v18254_v13, %v18056_v57  ;;  %v18259_v60 = vld [vmem:[#allocation321_spill] sm:$0xff] }
 0x58f   : > { %v5996_v48 = vmul.f32 %v18255_v30, %v18057_v16  ;;  %v5997_v51 = vmul.f32 %v18256_v52, %v18067_v9  ;;  %v5998_v56 = vmul.f32 %v18257_v21, %v18230_v11  ;;  %v6003_v17 = vmul.f32 %v18253_v41, %v18103_v31  ;;  %v18260_v41 = vld [vmem:[#allocation20_spill] sm:$0xff]  ;;  %v18297_v21 = vld [vmem:[#allocation207_spill] sm:$0xff] }
 0x590   : > { %v6004_v14 = vmul.f32 %v18254_v13, %v18241_v6  ;;  %v6005_v25 = vmul.f32 %v18255_v30, %v14622_v61  ;;  %v6006_v19 = vmul.f32 %v18256_v52, %v18104_v37  ;;  %v6073_v39 = vadd.f32 %v5992_v0, %v5849_v47  ;;  %v18261_v47 = vld [vmem:[#allocation23_spill] sm:$0xff] }
 0x591   : > { %v6074_v29 = vadd.f32 %v5993_v7, %v5850_v35  ;;  %v6075_v62 = vadd.f32 %v5994_v45, %v5851_v63  ;;  %v6076_v22 = vadd.f32 %v5995_v27, %v5852_v1  ;;  %v6077_v53 = vadd.f32 %v5996_v48, %v5853_v18  ;;  %v18262_v63 = vld [vmem:[#allocation169_spill] sm:$0xff]  ;;  %v18263_v18 = vld [vmem:[#allocation190_spill] sm:$0xff] }
 0x592   : > { %v6078_v12 = vadd.f32 %v5997_v51, %v5854_v54  ;;  %v6079_v20 = vadd.f32 %v5998_v56, %v5855_v40  ;;  %v6084_v28 = vadd.f32 %v6003_v17, %v5860_v58  ;;  %v6085_v50 = vadd.f32 %v6004_v14, %v5861_v26  ;;  %v18264_v40 = vld [vmem:[#allocation290_spill] sm:$0xff]  ;;  %v18265_v58 = vld [vmem:[#allocation19_spill] sm:$0xff] }
 0x593   : > { %v6086_v36 = vadd.f32 %v6005_v25, %v5862_v4  ;;  %v6087_v23 = vadd.f32 %v6006_v19, %v5863_v55  ;;  %v6216_v15 = vmul.f32 %v18258_v32, %v18054_v34  ;;  %v6217_v59 = vmul.f32 %v18259_v60, %v18055_v33  ;;  %v18266_v19 = vld [vmem:[#allocation322_spill] sm:$0xff]  ;;  %v18267_v60 = vld [vmem:[#allocation323_spill] sm:$0xff] }
 0x594   : > { %v6218_v13 = vmul.f32 %v18260_v41, %v18056_v57  ;;  %v6219_v35 = vmul.f32 %v18261_v47, %v18057_v16  ;;  %v6220_v1 = vmul.f32 %v18262_v63, %v18067_v9  ;;  %v6221_v54 = vmul.f32 %v18263_v18, %v18230_v11 }
 0x595   : > { %v6222_v26 = vmul.f32 %v18265_v58, %v18264_v40  ;;  %v6227_v34 = vmul.f32 %v18260_v41, %v18241_v6  ;;  %v6228_v4 = vmul.f32 %v18261_v47, %v14622_v61  ;;  %v6229_v55 = vmul.f32 %v18262_v63, %v18104_v37  ;;  %v18268_v47 = vld [vmem:[#allocation25_spill] sm:$0xff]  ;;  %v18296_v58 = vld [vmem:[#allocation38_spill] sm:$0xff] }
 0x596   : > { %v6230_v0 = vmul.f32 %v18263_v18, %v18105_v44  ;;  %v6297_v7 = vadd.f32 %v6216_v15, %v6073_v39  ;;  %v6298_v45 = vadd.f32 %v6217_v59, %v6074_v29  ;;  %v6299_v27 = vadd.f32 %v6218_v13, %v6075_v62  ;;  %v18269_v39 = vld [vmem:[#allocation28_spill] sm:$0xff]  ;;  %v18270_v62 = vld [vmem:[#allocation181_spill] sm:$0xff] }
 0x597   : > { %v6300_v30 = vadd.f32 %v6219_v35, %v6076_v22  ;;  %v6301_v48 = vadd.f32 %v6220_v1, %v6077_v53  ;;  %v6302_v52 = vadd.f32 %v6221_v54, %v6078_v12  ;;  %v6303_v51 = vadd.f32 %v6222_v26, %v6079_v20  ;;  %v18271_v53 = vld [vmem:[#allocation179_spill] sm:$0xff]  ;;  %v18272_v35 = vld [vmem:[#allocation157_spill] sm:$0xff] }
 0x598   : > { %v6308_v56 = vadd.f32 %v6227_v34, %v6084_v28  ;;  %v6309_v17 = vadd.f32 %v6228_v4, %v6085_v50  ;;  %v6310_v14 = vadd.f32 %v6229_v55, %v6086_v36  ;;  %v6311_v25 = vadd.f32 %v6230_v0, %v6087_v23  ;;  %v18273_v4 = vld [vmem:[#allocation295_spill] sm:$0xff]  ;;  %v18274_v55 = vld [vmem:[#allocation324_spill] sm:$0xff] }
 0x599   : > { %v6440_v32 = vmul.f32 %v18266_v19, %v18055_v33  ;;  %v6441_v41 = vmul.f32 %v18267_v60, %v18056_v57  ;;  %v6442_v63 = vmul.f32 %v18268_v47, %v18057_v16  ;;  %v6443_v29 = vmul.f32 %v18269_v39, %v18067_v9  ;;  %v18275_v19 = vld [vmem:[#allocation298_spill] sm:$0xff]  ;;  %v18276_v60 = vld [vmem:[#allocation325_spill] sm:$0xff] }
 0x59a   : > { %v6444_v22 = vmul.f32 %v18270_v62, %v18230_v11  ;;  %v6445_v12 = vmul.f32 %v18271_v53, %v18264_v40  ;;  %v6451_v20 = vmul.f32 %v18268_v47, %v14622_v61  ;;  %v6452_v33 = vmul.f32 %v18269_v39, %v18104_v37  ;;  %v18277_v39 = vld [vmem:[#allocation30_spill] sm:$0xff] }
 0x59b   : > { %v6453_v57 = vmul.f32 %v18270_v62, %v18105_v44  ;;  %v6454_v28 = vmul.f32 %v18271_v53, %v14626_v24  ;;  %v6521_v50 = vadd.f32 %v6440_v32, %v6297_v7  ;;  %v6522_v36 = vadd.f32 %v6441_v41, %v6298_v45  ;;  %v18278_v45 = vld [vmem:[#allocation34_spill] sm:$0xff]  ;;  %v18283_v32 = vld [vmem:[#allocation337_spill] sm:$0xff] }
 0x59c   : > { %v6523_v23 = vadd.f32 %v6442_v63, %v6299_v27  ;;  %v6524_v15 = vadd.f32 %v6443_v29, %v6300_v30  ;;  %v6525_v59 = vadd.f32 %v6444_v22, %v6301_v48  ;;  %v6526_v13 = vadd.f32 %v6445_v12, %v6302_v52  ;;  %v18279_v30 = vld [vmem:[#allocation170_spill] sm:$0xff]  ;;  %v18280_v52 = vld [vmem:[#allocation192_spill] sm:$0xff] }
 0x59d   : > { %v6527_v1 = vadd.f32 %v18272_v35, %v6303_v51  ;;  %v6532_v18 = vadd.f32 %v6451_v20, %v6308_v56  ;;  %v6533_v54 = vadd.f32 %v6452_v33, %v6309_v17  ;;  %v6534_v26 = vadd.f32 %v6453_v57, %v6310_v14  ;;  %v18281_v56 = vld [vmem:[#allocation27_spill] sm:$0xff]  ;;  %v18282_v14 = vld [vmem:[#allocation334_spill] sm:$0xff] }
 0x59e   : > { %v6535_v34 = vadd.f32 %v6454_v28, %v6311_v25  ;;  %v6664_v0 = vmul.f32 %v18274_v55, %v18273_v4  ;;  %v6665_v47 = vmul.f32 %v18276_v60, %v18275_v19  ;;  %v6666_v7 = vmul.f32 %v18277_v39, %v18101_v5  ;;  %v18284_v33 = vld [vmem:[#allocation335_spill] sm:$0xff]  ;;  %v18285_v28 = vld [vmem:[#allocation144_spill] sm:$0xff]  ;;  %v18286_v60 = vld [vmem:[#allocation326_spill] sm:$0xff] }
 0x59f   : > { %v6667_v27 = vmul.f32 %v18278_v45, %v18240_v2  ;;  %v6668_v48 = vmul.f32 %v18279_v30, %v18103_v31  ;;  %v6669_v51 = vmul.f32 %v18280_v52, %v18241_v6  ;;  %v6670_v17 = vmul.f32 %v18281_v56, %v14622_v61  ;;  %v18287_v45 = vld [vmem:[#allocation330_spill] sm:$0xff] }
 0x5a0   : > { %v6677_v25 = vmul.f32 %v18279_v30, %v18282_v14  ;;  %v6678_v41 = vmul.f32 %v18280_v52, %v18283_v32  ;;  %v6745_v63 = vadd.f32 %v6664_v0, %v6521_v50  ;;  %v6746_v29 = vadd.f32 %v6665_v47, %v6522_v36  ;;  %v18288_v50 = vld [vmem:[#allocation32_spill] sm:$0xff] }
 0x5a1   : > { %v6747_v62 = vadd.f32 %v6666_v7, %v6523_v23  ;;  %v6748_v22 = vadd.f32 %v6667_v27, %v6524_v15  ;;  %v6749_v53 = vadd.f32 %v6668_v48, %v6525_v59  ;;  %v6750_v12 = vadd.f32 %v6669_v51, %v6526_v13  ;;  %v18289_v23 = vld [vmem:[#allocation35_spill] sm:$0xff]  ;;  %v18290_v59 = vld [vmem:[#allocation12_spill] sm:$0xff] }
 0x5a2   : > { %v6751_v20 = vadd.f32 %v6670_v17, %v6527_v1  ;;  %v6756_v57 = vadd.f32 %v18284_v33, %v6532_v18  ;;  %v6757_v35 = vadd.f32 %v18285_v28, %v6533_v54  ;;  %v6758_v4 = vadd.f32 %v6677_v25, %v6534_v26  ;;  %v18291_v1 = vld [vmem:[#allocation214_spill] sm:$0xff]  ;;  %v18292_v54 = vld [vmem:[#allocation29_spill] sm:$0xff]  ;;  %v18294_v28 = vld [vmem:[#allocation327_spill] sm:$0xff] }
 0x5a3   : > { %v6759_v55 = vadd.f32 %v6678_v41, %v6535_v34  ;;  %v6888_v39 = vmul.f32 %v18286_v60, %v18275_v19  ;;  %v6889_v30 = vmul.f32 %v18287_v45, %v18101_v5  ;;  %v6890_v36 = vmul.f32 %v18288_v50, %v18240_v2  ;;  %v18293_v34 = vld [vmem:[#allocation333_spill] sm:$0xff]  ;;  %v18295_v60 = vld [vmem:[#allocation338_spill] sm:$0xff] }
 0x5a4   : > { %v6891_v15 = vmul.f32 %v18289_v23, %v18103_v31  ;;  %v6892_v13 = vmul.f32 %v18290_v59, %v18241_v6  ;;  %v6893_v18 = vmul.f32 %v18291_v1, %v14622_v61  ;;  %v6894_v26 = vmul.f32 %v18292_v54, %v18104_v37 }
 0x5a5   : > { %v6899_v0 = vmul.f32 %v18288_v50, %v18293_v34  ;;  %v6900_v47 = vmul.f32 %v18289_v23, %v18282_v14  ;;  %v6901_v7 = vmul.f32 %v18290_v59, %v18283_v32  ;;  %v6902_v27 = vmul.f32 %v18291_v1, %v18107_v3 }
 0x5a6   : > { %v6969_v48 = vadd.f32 %v6888_v39, %v6745_v63  ;;  %v6970_v52 = vadd.f32 %v6889_v30, %v6746_v29  ;;  %v6971_v51 = vadd.f32 %v6890_v36, %v6747_v62  ;;  %v6972_v17 = vadd.f32 %v6891_v15, %v6748_v22  ;;  %v18298_v63 = vld [vmem:[#allocation167_spill] sm:$0xff]  ;;  %v18299_v62 = vld [vmem:[#allocation37_spill] sm:$0xff] }
 0x5a7   : > { %v6973_v25 = vadd.f32 %v6892_v13, %v6749_v53  ;;  %v6974_v41 = vadd.f32 %v6893_v18, %v6750_v12  ;;  %v6975_v33 = vadd.f32 %v6894_v26, %v6751_v20  ;;  %v6979_v45 = vadd.f32 %v18295_v60, %v18294_v28  ;;  %v18300_v53 = vld [vmem:[#allocation40_spill] sm:$0xff]  ;;  %v18301_v20 = vld [vmem:[#allocation175_spill] sm:$0xff] }
 0x5a8   : > { %v6980_v50 = vadd.f32 %v6899_v0, %v6756_v57  ;;  %v6981_v54 = vadd.f32 %v6900_v47, %v6757_v35  ;;  %v6982_v56 = vadd.f32 %v6901_v7, %v6758_v4  ;;  %v6983_v23 = vadd.f32 %v6902_v27, %v6759_v55  ;;  %v18302_v35 = vld [vmem:[#allocation331_spill] sm:$0xff]  ;;  %v18304_v55 = vld [vmem:[#allocation140_spill] sm:$0xff] }
 0x5a9   : > { %v7111_v59 = vmul.f32 %v18296_v58, %v18275_v19  ;;  %v7112_v1 = vmul.f32 %v18297_v21, %v18101_v5  ;;  %v7113_v29 = vmul.f32 %v18298_v63, %v18240_v2  ;;  %v7114_v22 = vmul.f32 %v18299_v62, %v18103_v31  ;;  %v18303_v58 = vld [vmem:[#allocation36_spill] sm:$0xff] }
 0x5aa   : > { %v7115_v12 = vmul.f32 %v18300_v53, %v18241_v6  ;;  %v7116_v57 = vmul.f32 %v18301_v20, %v14622_v61  ;;  %v7117_v4 = vmul.f32 %v18302_v35, %v18104_v37  ;;  %v7118_v19 = vmul.f32 %v18303_v58, %v18105_v44  ;;  %v18305_v18 = vld [vmem:[#allocation328_spill] sm:$0xff]  ;;  %v18306_v35 = vld [vmem:[#allocation293_spill] sm:$0xff] }
 0x5ab   : > { %v7121_v39 = vmul.f32 %v18297_v21, %v18304_v55  ;;  %v7122_v30 = vmul.f32 %v18298_v63, %v18293_v34  ;;  %v7123_v36 = vmul.f32 %v18299_v62, %v18282_v14  ;;  %v7124_v15 = vmul.f32 %v18300_v53, %v18283_v32 }
 0x5ac   : > { %v7125_v13 = vmul.f32 %v18301_v20, %v18107_v3  ;;  %v7192_v26 = vadd.f32 %v7111_v59, %v18305_v18  ;;  %v7193_v0 = vadd.f32 %v7112_v1, %v6969_v48  ;;  %v7194_v47 = vadd.f32 %v7113_v29, %v6970_v52  ;;  %v18309_v59 = vld [vmem:[#allocation339_spill] sm:$0xff]  ;;  %v18310_v52 = vld [vmem:[#allocation341_spill] sm:$0xff] }
 0x5ad   : > { %v7195_v7 = vadd.f32 %v7114_v22, %v6971_v51  ;;  %v7196_v27 = vadd.f32 %v7115_v12, %v6972_v17  ;;  %v7197_v28 = vadd.f32 %v7116_v57, %v6973_v25  ;;  %v7198_v21 = vadd.f32 %v7117_v4, %v6974_v41  ;;  %v18311_v17 = vld [vmem:[#allocation42_spill] sm:$0xff]  ;;  %v18316_v4 = vld [vmem:[#allocation187_spill] sm:$0xff] }
 0x5ae   : > { %v7199_v60 = vadd.f32 %v7118_v19, %v6975_v33  ;;  %v7202_v63 = vadd.f32 %v7121_v39, %v18306_v35  ;;  %v7203_v58 = vadd.f32 %v7122_v30, %v6979_v45  ;;  %v7204_v46 = vadd.f32 %v7123_v36, %v6980_v50  ;;  %v18312_v41 = vld [vmem:[#allocation46_spill] sm:$0xff] }
 0x5af   : > { %v7205_v62 = vadd.f32 %v7124_v15, %v6981_v54  ;;  %v7206_v8 = vadd.f32 %v7125_v13, %v6982_v56  ;;  %v7207_v53 = vadd.f32 %v18307_v42, %v6983_v23  ;;  %v7335_v20 = vmul.f32 %v18308_v38, %v18101_v5  ;;  %v18313_v54 = vld [vmem:[#allocation340_spill] sm:$0xff]  ;;  %v18314_v42 = vld [vmem:[#allocation342_spill] sm:$0xff]  ;;  %v18315_v5 = vld [vmem:[#allocation39_spill] sm:$0xff] }
 0x5b0   : > { %v7336_v48 = vmul.f32 %v18309_v59, %v18240_v2  ;;  %v7337_v51 = vmul.f32 %v18310_v52, %v18103_v31  ;;  %v7338_v25 = vmul.f32 %v18311_v17, %v18241_v6  ;;  %v7339_v33 = vmul.f32 %v18312_v41, %v14622_v61 }
 0x5b1   : > { %v7340_v56 = vmul.f32 %v18313_v54, %v18104_v37  ;;  %v7341_v45 = vmul.f32 %v18314_v42, %v18105_v44  ;;  %v7342_v50 = vmul.f32 %v18315_v5, %v14626_v24  ;;  %v7344_v23 = vmul.f32 %v18308_v38, %v18304_v55 }
 0x5b2   : > { %v7345_v1 = vmul.f32 %v18309_v59, %v18293_v34  ;;  %v7346_v29 = vmul.f32 %v18310_v52, %v18282_v14  ;;  %v7347_v22 = vmul.f32 %v18311_v17, %v18283_v32  ;;  %v7348_v12 = vmul.f32 %v18312_v41, %v18107_v3  ;;  %v18317_v59 = vld [vmem:[#allocation268_spill] sm:$0xff] }
 0x5b3   : > { %v7349_v57 = vmul.f32 %v18313_v54, %v18109_v10  ;;  %v7350_v19 = vmul.f32 %v18314_v42, %v18316_v4  ;;  %v7416_v39 = vadd.f32 %v7335_v20, %v7192_v26  ;;  %v7417_v38 = vadd.f32 %v7336_v48, %v7193_v0  ;;  %v18318_v54 = vld [vmem:[#allocation7_spill] sm:$0xff] }
 0x5b4   : > { %v7418_v30 = vadd.f32 %v7337_v51, %v7194_v47  ;;  %v7419_v36 = vadd.f32 %v7338_v25, %v7195_v7  ;;  %v7420_v15 = vadd.f32 %v7339_v33, %v7196_v27  ;;  %v7421_v13 = vadd.f32 %v7340_v56, %v7197_v28  ;;  %v18319_v26 = vld [vmem:[#allocation343_spill] sm:$0xff]  ;;  %v18320_v47 = vld [vmem:[#allocation345_spill] sm:$0xff]  ;;  %v18321_v27 = vld [vmem:[#allocation2_spill] sm:$0xff] }
 0x5b5   : > { %v7422_v18 = vadd.f32 %v7341_v45, %v7198_v21  ;;  %v7423_v35 = vadd.f32 %v7342_v50, %v7199_v60  ;;  %v7425_v52 = vadd.f32 %v7344_v23, %v18317_v59  ;;  %v7426_v17 = vadd.f32 %v7345_v1, %v7202_v63  ;;  %v18322_v21 = vld [vmem:[#allocation111_spill] sm:$0xff]  ;;  %v18327_v56 = vld [vmem:[#allocation189_spill] sm:$0xff] }
 0x5b6   : > { %v7427_v5 = vadd.f32 %v7346_v29, %v7203_v58  ;;  %v7428_v43 = vadd.f32 %v7347_v22, %v7204_v46  ;;  %v7429_v41 = vadd.f32 %v7348_v12, %v7205_v62  ;;  %v7430_v49 = vadd.f32 %v7349_v57, %v7206_v8  ;;  %v18323_v46 = vld [vmem:[#allocation344_spill] sm:$0xff]  ;;  %v18324_v8 = vld [vmem:[#allocation346_spill] sm:$0xff]  ;;  %v18328_v29 = vld [vmem:[#allocation139_spill] sm:$0xff] }
 0x5b7   : > { %v7431_v40 = vadd.f32 %v7350_v19, %v7207_v53  ;;  %v7559_v11 = vmul.f32 %v18318_v54, %v18240_v2  ;;  %v7560_v0 = vmul.f32 %v18319_v26, %v18103_v31  ;;  %v7561_v7 = vmul.f32 %v18320_v47, %v18241_v6  ;;  %v18325_v62 = vld [vmem:[#allocation186_spill] sm:$0xff] }
 0x5b8   : > { %v7562_v28 = vmul.f32 %v18321_v27, %v14622_v61  ;;  %v7563_v60 = vmul.f32 %v18322_v21, %v18104_v37  ;;  %v7564_v58 = vmul.f32 %v18323_v46, %v18105_v44  ;;  %v7565_v63 = vmul.f32 %v18324_v8, %v14626_v24  ;;  %v18326_v2 = vld [vmem:[#allocation6_spill] sm:$0xff] }
 0x5b9   : > { %v7566_v53 = vmul.f32 %v18326_v2, %v18325_v62  ;;  %v7567_v31 = vmul.f32 %v18326_v2, %v18304_v55  ;;  %v7568_v6 = vmul.f32 %v18318_v54, %v18293_v34  ;;  %v7569_v20 = vmul.f32 %v18319_v26, %v18282_v14 }
 0x5ba   : > { %v7570_v48 = vmul.f32 %v18320_v47, %v18283_v32  ;;  %v7571_v51 = vmul.f32 %v18321_v27, %v18107_v3  ;;  %v7572_v25 = vmul.f32 %v18322_v21, %v18109_v10  ;;  %v7573_v33 = vmul.f32 %v18323_v46, %v18316_v4 }
 0x5bb   : > { %v7574_v55 = vmul.f32 %v18324_v8, %v18327_v56  ;;  %v7640_v42 = vadd.f32 %v7559_v11, %v7416_v39  ;;  %v7641_v34 = vadd.f32 %v7560_v0, %v7417_v38  ;;  %v7642_v45 = vadd.f32 %v7561_v7, %v7418_v30 }
 0x5bc   : > { %v7643_v50 = vadd.f32 %v7562_v28, %v7419_v36  ;;  %v7644_v14 = vadd.f32 %v7563_v60, %v7420_v15  ;;  %v7645_v23 = vadd.f32 %v7564_v58, %v7421_v13  ;;  %v7646_v1 = vadd.f32 %v7565_v63, %v7422_v18  ;;  %v18329_v36 = vld [vmem:[#allocation287_spill] sm:$0xff]  ;;  %v18330_v15 = vld [vmem:[#allocation286_spill] sm:$0xff] }
 0x5bd   : > { %v7647_v32 = vadd.f32 %v7566_v53, %v7423_v35  ;;  %v7648_v22 = vadd.f32 %v7567_v31, %v18328_v29  ;;  %v7649_v12 = vadd.f32 %v7568_v6, %v7425_v52  ;;  %v7650_v57 = vadd.f32 %v7569_v20, %v7426_v17  ;;  %v18331_v18 = vld [vmem:[#allocation3_spill] sm:$0xff] }
 0x5be   : > { %v7651_v19 = vadd.f32 %v7570_v48, %v7427_v5  ;;  %v7652_v59 = vadd.f32 %v7571_v51, %v7428_v43  ;;  %v7653_v54 = vadd.f32 %v7572_v25, %v7429_v41  ;;  %v7654_v26 = vadd.f32 %v7573_v33, %v7430_v49  ;;  %v18332_v28 = vld [vmem:[#allocation115_spill] sm:$0xff]  ;;  %v15213_v51 = vld [vmem:[%s15296_s7] ss:$0 sm:$0xff] }
 0x5bf   : > { %v7655_v47 = vadd.f32 %v7574_v55, %v7431_v40  ;;  %v8130_v27 = vcombine.low %v7640_v42, %v7641_v34  ;;  %v8131_v21 = vcombine.low %v7642_v45, %v7643_v50  ;;  %v8132_v46 = vcombine.low %v7644_v14, %v7645_v23  ;;  %v18333_v31 = vld [vmem:[#allocation119_spill] sm:$0xff]  ;;  %v18334_v55 = vld [vmem:[#allocation288_spill] sm:$0xff]  ;;  %v18336_v14 = vld [vmem:[#allocation290_spill] sm:$0xff] }
 0x5c0   : > { %v8133_v11 = vcombine.low %v7646_v1, %v7647_v32  ;;  %v8179_v39 = vcombine.low %v7648_v22, %v7649_v12  ;;  %v8180_v38 = vcombine.low %v7650_v57, %v7651_v19  ;;  %v8181_v30 = vcombine.low %v7652_v59, %v7653_v54  ;;  %v18335_v42 = vld [vmem:[#allocation124_spill] sm:$0xff]  ;;  %v18337_v23 = vld [vmem:[#allocation127_spill] sm:$0xff]  ;;  %v18340_v57 = vld [vmem:[#allocation173_spill] sm:$0xff] }
 0x5c1   : > { %v4296_v13 = vadd.f32 %v18330_v15, %v18329_v36  ;;  %v8140_v35 = vrot.slane %v8130_v27, %v18331_v18  ;;  %v8147_v52 = vrot.slane %v8131_v21, %v18331_v18  ;;  %v8182_v17 = vcombine.low %v7654_v26, %v7655_v47  ;;  %v18338_v32 = vld [vmem:[#allocation96_spill] sm:$0xff]  ;;  %v18341_v59 = vld [vmem:[#allocation158_spill] sm:$0xff]  ;;  %v18342_v26 = vld [vmem:[#allocation153_spill] sm:$0xff] }
 0x5c2   : > { %v8154_v43 = vrot.slane %v8132_v46, %v18331_v18  ;;  %v8161_v49 = vrot.slane %v8133_v11, %v18331_v18  ;;  %v8189_v40 = vrot.slane %v8179_v39, %v18331_v18  ;;  %v8196_v5 = vrot.slane %v8180_v38, %v18331_v18  ;;  %v18339_v22 = vld [vmem:[#allocation172_spill] sm:$0xff]  ;;  %v18343_v47 = vld [vmem:[#allocation130_spill] sm:$0xff] }
 0x5c3   : > { %v8162_v41 = vcombine.low %v8140_v35, %v8147_v52  ;;  %v8203_v0 = vrot.slane %v8181_v30, %v18331_v18  ;;  %v8210_v7 = vrot.slane %v8182_v17, %v18331_v18  ;;  %v4439_v60 = vmul.f32 %v18332_v28, %v18057_v16  ;;  %v18344_v15 = vld [vmem:[#allocation138_spill] sm:$0xff] }
 0x5c4   : > { %v8163_v58 = vcombine.low %v8154_v43, %v8161_v49  ;;  %v8211_v8 = vcombine.low %v8189_v40, %v8196_v5  ;;  %v4663_v6 = vmul.f32 %v18333_v31, %v18067_v9  ;;  %v4887_v34 = vmul.f32 %v18335_v42, %v18334_v55  ;;  %v8969_v17 = vld [vmem:[%s15294_s5] ss:$0 sm:$0xff]  ;;  %v18345_v43 = vld [vmem:[#allocation263_spill] sm:$0xff]  ;;  %v18352_v42 = vld [vmem:[#allocation36_spill] sm:$0xff] }
 0x5c5   : > { %v8212_v63 = vcombine.low %v8203_v0, %v8210_v7  ;;  %v4520_v53 = vadd.f32 %v4439_v60, %v4296_v13  ;;  %v8170_v20 = vrot.slane %v8162_v41, %v18331_v18  ;;  %v5111_v1 = vmul.f32 %v18337_v23, %v18336_v14  ;;  %v18346_v5 = vld [vmem:[#allocation178_spill] sm:$0xff]  ;;  %v18347_v7 = vld [vmem:[#allocation15_spill] sm:$0xff] }
 0x5c6   : > { %v8177_v48 = vrot.slane %v8163_v58, %v18331_v18  ;;  %v8219_v25 = vrot.slane %v8211_v8, %v18331_v18  ;;  %v8373_v29 = vadd.f32 %v18338_v32, %v15213_v51  ;;  %v8365_v12 = vadd.f32 %v15213_v51, %v18339_v22 }
 0x5c7   : > { %v8226_v16 = vrot.slane %v8212_v63, %v18331_v18  ;;  %v4744_v33 = vadd.f32 %v4663_v6, %v4520_v53  ;;  %v8376_v19 = vadd.f32 %v18340_v57, %v15213_v51  ;;  %v8368_v54 = vadd.f32 %v15213_v51, %v18341_v59  ;;  %v18349_v53 = vld [vmem:[#allocation24_spill] sm:$0xff] }
 0x5c8   : > { %v8178_v45 = vcombine.low %v8170_v20, %v8177_v48  ;;  %v5335_v27 = vmul.f32 %v18343_v47, %v18342_v26  ;;  %v8412_v11 = vmax.f32 %v8373_v29, 0.0  ;;  %v8410_v39 = vmax.f32 %v8365_v12, 0.0  ;;  %v18350_v48 = vld [vmem:[#allocation27_spill] sm:$0xff] }
 0x5c9   : > { %v8227_v50 = vcombine.low %v8219_v25, %v8226_v16  ;;  %v4968_v9 = vadd.f32 %v4887_v34, %v4744_v33  ;;  %v8413_v38 = vmax.f32 %v8376_v19, 0.0  ;;  %v8411_v30 = vmax.f32 %v8368_v54, 0.0  ;;  %v18351_v16 = vld [vmem:[#allocation29_spill] sm:$0xff] }
 0x5ca   : > { %v5559_v13 = vmul.f32 %v18344_v15, %v14622_v61  ;;  %v798_v49 = vadd.f32 %v8969_v17, %v18345_v43  ;;  %v5783_v41 = vmul.f32 %v18346_v5, %v18104_v37  ;;  %v6007_v28 = vmul.f32 %v18347_v7, %v18105_v44  ;;  %v18348_v61 = vld [vmem:[#allocation19_spill] sm:$0xff] }
 0x5cb   : > { %v8257_v21 = vpack.c.bf16 %v8227_v50, %v8178_v45  ;;  %v5192_v46 = vadd.f32 %v5111_v1, %v4968_v9  ;;  %v8422_v35 = vpack.c.bf16 %v8413_v38, %v8412_v11  ;;  %v8421_v52 = vpack.c.bf16 %v8411_v30, %v8410_v39  ;;  %v18353_v45 = vld [vmem:[#allocation39_spill] sm:$0xff] }
 0x5cc   : > { %v822_v60 = vmax.f32 %v798_v49, 0.0  ;;  %v6231_v8 = vmul.f32 %v18348_v61, %v14626_v24  ;;  %v6455_v31 = vmul.f32 %v18349_v53, %v18325_v62  ;;  %v6679_v25 = vmul.f32 %v18350_v48, %v18107_v3 }
 0x5cd   : > { %8878 = vmatprep.mubr.bf16.mxu0 %v8257_v21  ;;  %v5416_v36 = vadd.f32 %v5335_v27, %v5192_v46  ;;  %v6903_v33 = vmul.f32 %v18351_v16, %v18109_v10  ;;  %v7127_v24 = vmul.f32 %v18352_v42, %v18316_v4  ;;  %v7351_v62 = vmul.f32 %v18353_v45, %v18327_v56 }
 0x5ce   : > { %v1880_v6 = vrot.slane %v822_v60, %v18331_v18 }
 0x5cf   : > { %v5640_v40 = vadd.f32 %v5559_v13, %v5416_v36  ;;  %v8705_v13 = vld [vmem:[%s15298_s9] ss:$0 sm:$0xff] }
 0x5d0   : > { %v1887_v44 = vrot.slane %v1880_v6, %v18331_v18 }
 0x5d1   : > { %v5864_v0 = vadd.f32 %v5783_v41, %v5640_v40 }
 0x5d2   : > { %v7575_v50 = vmul.f32 %v18326_v2, %v1887_v44 }
 0x5d3   : > { %v6088_v58 = vadd.f32 %v6007_v28, %v5864_v0 }
 0x5d5   : > { %v6312_v63 = vadd.f32 %v6231_v8, %v6088_v58 }
 0x5d7   : > { %v6536_v20 = vadd.f32 %v6455_v31, %v6312_v63 }
 0x5d9   : > { %v6760_v37 = vadd.f32 %v6679_v25, %v6536_v20 }
 0x5db   : > { %v6984_v55 = vadd.f32 %v6903_v33, %v6760_v37 }
 0x5dd   : > { %v7208_v34 = vadd.f32 %v7127_v24, %v6984_v55 }
 0x5df   : > { %v7432_v9 = vadd.f32 %v7351_v62, %v7208_v34 }
 0x5e1   : > { %v7656_v14 = vadd.f32 %v7575_v50, %v7432_v9 }
 0x5e3   : > { %v8234_v3 = vrot.slane %v7656_v14, %v18331_v18 }
 0x5e5   : > { %v8241_v23 = vrot.slane %v8234_v3, %v18331_v18 }
 0x5e7   : > { %v8258_v1 = vpack.c.bf16 %v8241_v23, %v8241_v23 }
 0x5e9   : > { %8879 = vmatmul.mubr.bf16.gmra.mrb[12].mxu0 %v8258_v1 }
 0x5ea   : > { %8898 = vmatprep.mubr.bf16.mxu0 %v8421_v52 }
 0x5f1   : > { %8899 = vmatmul.mubr.bf16.vlgmr.msra.gmra.mrb[16].mxu0 %v8422_v35 }
 0x61a   : > { %v8876_v10 = vpop.f32.mrb[8].mxu0 }
 0x61b   : > { %v8389_v32 = vadd.f32 %v8876_v10, %v15213_v51  ;;  %v8380_v4 = vpop.f32.mrb[9].mxu0 }
 0x61c   : > { %v8381_v29 = vadd.f32 %v15213_v51, %v8380_v4  ;;  %v8877_v22 = vpop.f32.mrb[10].mxu0 }
 0x61d   : > { %v8392_v56 = vadd.f32 %v8877_v22, %v15213_v51  ;;  %v8383_v2 = vpop.f32.mrb[11].mxu0  ;;  %v8416_v57 = vmax.f32 %v8389_v32, 0.0 }
 0x61e   : > { %v8384_v12 = vadd.f32 %v15213_v51, %v8383_v2  ;;  %v8414_v59 = vmax.f32 %v8381_v29, 0.0 }
 0x61f   : > { %v8417_v19 = vmax.f32 %v8392_v56, 0.0 }
 0x620   : > { %v8415_v18 = vmax.f32 %v8384_v12, 0.0 }
 0x621   : > { %v8424_v54 = vpack.c.bf16 %v8417_v19, %v8416_v57 }
 0x622   : > { %v8423_v26 = vpack.c.bf16 %v8415_v18, %v8414_v59 }
 0x624   : > { %8902 = vmatprep.mubr.bf16.mxu0 %v8423_v26 }
 0x625   : > { %8903 = vmatmul.mubr.bf16.gmra.mrb[20].mxu0 %v8424_v54 }
 0x6bc   : > { %v8880_v47 = vpop.f32.mrb[12].mxu0 }
 0x6bd   : > { %v8405_v27 = vadd.f32 %v8880_v47, %v15213_v51  ;;  %v8396_v21 = vpop.f32.mrb[13].mxu0 }
 0x6be   : > { %v8397_v46 = vadd.f32 %v15213_v51, %v8396_v21  ;;  %v8881_v11 = vpop.f32.mrb[14].mxu0 }
 0x6bf   : > { %v8399_v39 = vpop.f32.mrb[15].mxu0  ;;  %v8420_v30 = vmax.f32 %v8405_v27, 0.0 }
 0x6c0   : > { %v8400_v38 = vadd.f32 %v15213_v51, %v8399_v39  ;;  %v8418_v36 = vmax.f32 %v8397_v46, 0.0 }
 0x6c1   : > { %v8426_v51 = vpack.c.bf16 %v8420_v30, %v8420_v30 }
 0x6c2   : > { %v8419_v15 = vmax.f32 %v8400_v38, 0.0 }
 0x6c4   : > { %v8425_v35 = vpack.c.bf16 %v8419_v15, %v8418_v36  ;;  %v8900_v52 = vpop.f32.mrb[16].mxu0 }
 0x6c5   : > { %v8541_v17 = vadd.f32 %v8900_v52, %v8705_v13  ;;  %v8532_v43 = vpop.f32.mrb[17].mxu0 }
 0x6c6   : > { %8906 = vmatprep.mubr.bf16.mxu0 %v8425_v35  ;;  %v8533_v49 = vadd.f32 %v8705_v13, %v8532_v43  ;;  %v8901_v40 = vpop.f32.mrb[18].mxu0 }
 0x6c7   : > { %8907 = vmatmul.mubr.bf16.gmra.mrb[24].mxu0 %v8426_v51  ;;  %8580 = vst [vmem:[%s15273_s17 + $0x10] sm:$0xff] %v8541_v17  ;;  %v8544_v5 = vadd.f32 %v8901_v40, %v8705_v13  ;;  %v8535_v41 = vpop.f32.mrb[19].mxu0 }
 0x6c8   : > { %8578 = vst [vmem:[%s15273_s17] sm:$0xff] %v8533_v49  ;;  %v8536_v0 = vadd.f32 %v8705_v13, %v8535_v41 }
 0x6c9   : > { %8581 = vst [vmem:[%s15273_s17 + $0x18] sm:$0xff] %v8544_v5 }
 0x6ca   : > { %8579 = vst [vmem:[%s15273_s17 + $0x8] sm:$0xff] %v8536_v0 }
 0x6f8   : > { %v8904_v7 = vpop.f32.mrb[20].mxu0 }
 0x6f9   : > { %v8557_v28 = vadd.f32 %v8904_v7, %v8705_v13  ;;  %v8548_v60 = vpop.f32.mrb[21].mxu0 }
 0x6fa   : > { %v8549_v58 = vadd.f32 %v8705_v13, %v8548_v60  ;;  %v8905_v61 = vpop.f32.mrb[22].mxu0 }
 0x6fb   : > { %8584 = vst [vmem:[%s15273_s17 + $0x30] sm:$0xff] %v8557_v28  ;;  %v8560_v8 = vadd.f32 %v8905_v61, %v8705_v13  ;;  %v8551_v63 = vpop.f32.mrb[23].mxu0 }
 0x6fc   : > { %8582 = vst [vmem:[%s15273_s17 + $0x20] sm:$0xff] %v8549_v58  ;;  %v8552_v53 = vadd.f32 %v8705_v13, %v8551_v63 }
 0x6fd   : > { %8585 = vst [vmem:[%s15273_s17 + $0x38] sm:$0xff] %v8560_v8 }
 0x6fe   : > { %8583 = vst [vmem:[%s15273_s17 + $0x28] sm:$0xff] %v8552_v53 }
 0x79a   : > { %v8908_v31 = vpop.f32.mrb[24].mxu0 }
 0x79b   : > { %v8573_v6 = vadd.f32 %v8908_v31, %v8705_v13  ;;  %v8564_v20 = vpop.f32.mrb[25].mxu0 }
 0x79c   : > { %v8565_v48 = vadd.f32 %v8705_v13, %v8564_v20  ;;  %v8909_v25 = vpop.f32.mrb[26].mxu0 }
 0x79d   : > { %8588 = vst [vmem:[%s15273_s17 + $0x50] sm:$0x1] %v8573_v6  ;;  %v8567_v37 = vpop.f32.mrb[27].mxu0 }
 0x79e   : > { %8586 = vst [vmem:[%s15273_s17 + $0x40] sm:$0xff] %v8565_v48  ;;  %v8568_v16 = vadd.f32 %v8705_v13, %v8567_v37 }
 0x7a0   : > { %8587 = vst [vmem:[%s15273_s17 + $0x48] sm:$0xff] %v8568_v16 }
 0x7a1 PF: > { %s20_s13 = sadd.s32 1, %s8976_s13  }
 0x7a2   : > { %p17_p4 = scmp.ge.s32.totalorder %s20_s13, 4  }
 0x7a4   :  { %19 = sbr.rel (!%p17_p4) target bundleno = 1 (0x1), region = 93 }

</bundles_post_ra>
